<compile_context>
chip_gen: v6e
topology: v6e:2x2x1
jax: 0.10.0
libtpu: 0.0.40
codegen_flags: <defaults>
</compile_context>

<pallas_src>
import jax
import jax.numpy as jnp
from jax.experimental import pallas as pl
from jax.experimental.pallas import tpu as pltpu

KSIZE = 5   # Conv2d kernel_size
PAD = 2     # Conv2d padding
STRIDE = 2  # Conv2d stride


def _conv_out(n):
    return (n + 2 * PAD - KSIZE) // STRIDE + 1


def _make_fused_kernel(dims):
    ho1, wo1, c1, ho2, wo2, c2, ho3, wo3, c3 = dims
    h1, w1 = ho1 // 2, wo1 // 2   # pooled block-1 spatial (= block-2 input)
    h2, w2 = ho2 // 2, wo2 // 2   # pooled block-2 spatial (= block-3 input)
    h3, w3 = ho3 // 2, wo3 // 2   # pooled block-3 spatial (= output)

    def _pool_split(z, ho, wo, c):
        """2x2 max-pool of conv output z:(ho*wo, c); returns the pooled map
        split by output-column parity: (even, odd), each (ho//2, wo//4, c)."""
        zv = z.reshape(ho // 2, 2, wo, c)            # pure re-index of rows
        tv = jnp.maximum(zv[:, 0], zv[:, 1])         # vertical max (ho//2, wo, c)
        t4 = tv.reshape(ho // 2, wo // 4, 4, c)      # group 4 conv columns
        even = jnp.maximum(t4[:, :, 0, :], t4[:, :, 1, :])  # pooled cols 0,2,4,..
        odd = jnp.maximum(t4[:, :, 2, :], t4[:, :, 3, :])   # pooled cols 1,3,5,..
        return even, odd

    def _im2col(pad_ref, col_ref, ho, wo, c):
        """Fill the (ho, wo, 25*c) im2col slab from the zero-padded,
        column-parity-split activation pad_ref:(2, Hp, Wp/2, c) where
        pad_ref[p, h, j, :] == padded[h, 2*j + p, :]. Every tap read is a
        contiguous slice (stride-2 rows realised via an outer-dim reshape)."""
        padded = pad_ref[...]
        for kh in range(KSIZE):
            for kw in range(KSIZE):
                rows = padded[kw % 2, kh:kh + 2 * ho]               # (2*ho, Wp/2, c)
                rows = rows.reshape(ho, 2, rows.shape[1], c)[:, 0]  # rows kh + 2p
                patch = rows[:, kw // 2:kw // 2 + wo, :]            # (ho, wo, c)
                tap = kh * KSIZE + kw
                col_ref[:, :, tap * c:(tap + 1) * c] = patch

    def kernel(xcol_ref, w1_ref, w2_ref, w3_ref, p1_ref, p2_ref, p3_ref,
               o_ref, pad2_ref, col2_ref, pad3_ref, col3_ref):
        # -------- Block 1: Conv(3->c1) + bias + ReLU + BN + MaxPool ---------
        z1 = jnp.dot(xcol_ref[0], w1_ref[...],
                     preferred_element_type=jnp.float32)      # (ho1*wo1, c1)
        z1 = jnp.maximum(z1 + p1_ref[0:1, :], 0.0)            # bias + ReLU
        z1 = z1 * p1_ref[1:2, :] + p1_ref[2:3, :]             # folded BatchNorm
        y1e, y1o = _pool_split(z1, ho1, wo1, c1)              # (h1, w1//2, c1)

        # Stage block-2 input: zero-padded + column-parity-split, in VMEM.
        pad2_ref[...] = jnp.zeros_like(pad2_ref)
        pad2_ref[0, PAD:PAD + h1, 1:1 + w1 // 2, :] = y1e
        pad2_ref[1, PAD:PAD + h1, 1:1 + w1 // 2, :] = y1o

        # -------- Block 2: Conv(c1->c2) + bias + ReLU + BN + MaxPool --------
        _im2col(pad2_ref, col2_ref, ho2, wo2, c1)
        z2 = jnp.dot(col2_ref[...].reshape(ho2 * wo2, KSIZE * KSIZE * c1),
                     w2_ref[...], preferred_element_type=jnp.float32)
        z2 = jnp.maximum(z2 + p2_ref[0:1, :], 0.0)
        z2 = z2 * p2_ref[1:2, :] + p2_ref[2:3, :]
        y2e, y2o = _pool_split(z2, ho2, wo2, c2)              # (h2, w2//2, c2)

        pad3_ref[...] = jnp.zeros_like(pad3_ref)
        pad3_ref[0, PAD:PAD + h2, 1:1 + w2 // 2, :] = y2e
        pad3_ref[1, PAD:PAD + h2, 1:1 + w2 // 2, :] = y2o

        # -------- Block 3: Conv(c2->c3) + bias + ReLU + BN + MaxPool --------
        _im2col(pad3_ref, col3_ref, ho3, wo3, c2)
        z3 = jnp.dot(col3_ref[...].reshape(ho3 * wo3, KSIZE * KSIZE * c2),
                     w3_ref[...], preferred_element_type=jnp.float32)
        z3 = jnp.maximum(z3 + p3_ref[0:1, :], 0.0)
        z3 = z3 * p3_ref[1:2, :] + p3_ref[2:3, :]             # (ho3*wo3, c3)

        # Final 2x2 max-pool -> (h3, w3, c3).
        z3v = z3.reshape(h3, 2, wo3, c3)
        t3 = jnp.maximum(z3v[:, 0], z3v[:, 1])                # (h3, wo3, c3)
        t3 = t3.reshape(h3, w3, 2, c3)
        y3 = jnp.maximum(t3[:, :, 0, :], t3[:, :, 1, :])      # (h3, w3, c3)
        o_ref[0] = y3.astype(o_ref.dtype)

    return kernel


def init_params(key, eps=1e-5):
    """Deterministic synthetic parameters for the three conv/BN blocks, with
    inference-mode BatchNorm folded into per-channel scale/shift (applied
    after ReLU, matching the PyTorch order Conv -> ReLU -> BN)."""
    specs = [(3, 16), (16, 32), (32, 64)]
    params = []
    for cin, cout in specs:
        key, k1, k2, k3, k4, k5, k6 = jax.random.split(key, 7)
        fan_in = cin * KSIZE * KSIZE
        w = jax.random.normal(k1, (KSIZE, KSIZE, cin, cout), jnp.float32)
        w = w / jnp.sqrt(fan_in)
        b = 0.1 * jax.random.normal(k2, (cout,), jnp.float32)
        gamma = 1.0 + 0.1 * jax.random.normal(k3, (cout,), jnp.float32)
        beta = 0.1 * jax.random.normal(k4, (cout,), jnp.float32)
        rmean = 0.1 * jax.random.normal(k5, (cout,), jnp.float32)
        rvar = 1.0 + 0.1 * jnp.abs(jax.random.normal(k6, (cout,), jnp.float32))
        scale = gamma / jnp.sqrt(rvar + eps)
        shift = beta - rmean * scale
        params.append(dict(w=w, b=b, scale=scale, shift=shift))
    return params


@jax.jit
def cnn_forward(x_nchw, params):
    """Inference forward of the PyTorch CNN. x_nchw: (N, 3, H, W) -> NCHW out."""
    x = jnp.transpose(x_nchw, (0, 2, 3, 1)).astype(jnp.float32)   # NCHW -> NHWC
    n, h, w, cin = x.shape
    c1 = params[0]["w"].shape[-1]
    c2 = params[1]["w"].shape[-1]
    c3 = params[2]["w"].shape[-1]

    ho1, wo1 = _conv_out(h), _conv_out(w)
    h1, w1 = ho1 // 2, wo1 // 2
    ho2, wo2 = _conv_out(h1), _conv_out(w1)
    h2, w2 = ho2 // 2, wo2 // 2
    ho3, wo3 = _conv_out(h2), _conv_out(w2)
    h3, w3 = ho3 // 2, wo3 // 2
    # Shape requirements of the fused kernel's pool/parity tricks (hold for
    # e.g. 64x64 inputs; PyTorch itself needs h3, w3 >= 1).
    assert ho1 % 4 == 0 and wo1 % 4 == 0, (ho1, wo1)
    assert ho2 % 4 == 0 and wo2 % 4 == 0, (ho2, wo2)
    assert ho3 % 2 == 0 and wo3 % 2 == 0 and h3 >= 1 and w3 >= 1, (ho3, wo3)

    # Block-1 im2col built in XLA: one cheap pass over the tiny input, giving a
    # lane-dense (M1, 128) slab (K: 75 -> 128 zero-padded).
    k1 = KSIZE * KSIZE * cin
    k1p = ((k1 + 127) // 128) * 128
    xp = jnp.pad(x, ((0, 0), (PAD, PAD), (PAD, PAD), (0, 0)))
    taps = [xp[:, kh:kh + 2 * ho1:2, kw:kw + 2 * wo1:2, :]
            for kh in range(KSIZE) for kw in range(KSIZE)]
    xcol = jnp.concatenate(taps, axis=-1).reshape(n, ho1 * wo1, k1)
    xcol = jnp.pad(xcol, ((0, 0), (0, 0), (0, k1p - k1)))

    # Kernel-ready parameters.
    w1m = jnp.pad(params[0]["w"].reshape(k1, c1), ((0, k1p - k1), (0, 0)))
    w2m = params[1]["w"].reshape(KSIZE * KSIZE * c1, c2)
    w3m = params[2]["w"].reshape(KSIZE * KSIZE * c2, c3)
    p1 = jnp.stack([params[0]["b"], params[0]["scale"], params[0]["shift"]])
    p2 = jnp.stack([params[1]["b"], params[1]["scale"], params[1]["shift"]])
    p3 = jnp.stack([params[2]["b"], params[2]["scale"], params[2]["shift"]])

    kernel = _make_fused_kernel((ho1, wo1, c1, ho2, wo2, c2, ho3, wo3, c3))

    out = pl.pallas_call(
        kernel,
        out_shape=jax.ShapeDtypeStruct((n, h3, w3, c3), jnp.float32),
        grid=(n,),
        in_specs=[
            pl.BlockSpec((1, ho1 * wo1, k1p), lambda i: (i, 0, 0)),
            pl.BlockSpec((k1p, c1), lambda i: (0, 0)),
            pl.BlockSpec((KSIZE * KSIZE * c1, c2), lambda i: (0, 0)),
            pl.BlockSpec((KSIZE * KSIZE * c2, c3), lambda i: (0, 0)),
            pl.BlockSpec((3, c1), lambda i: (0, 0)),
            pl.BlockSpec((3, c2), lambda i: (0, 0)),
            pl.BlockSpec((3, c3), lambda i: (0, 0)),
        ],
        out_specs=pl.BlockSpec((1, h3, w3, c3), lambda i: (i, 0, 0, 0)),
        scratch_shapes=[
            pltpu.VMEM((2, h1 + 2 * PAD, (w1 + 2 * PAD) // 2, c1), jnp.float32),
            pltpu.VMEM((ho2, wo2, KSIZE * KSIZE * c1), jnp.float32),
            pltpu.VMEM((2, h2 + 2 * PAD, (w2 + 2 * PAD) // 2, c2), jnp.float32),
            pltpu.VMEM((ho3, wo3, KSIZE * KSIZE * c2), jnp.float32),
        ],
        compiler_params=pltpu.CompilerParams(
            dimension_semantics=("parallel",)),
    )(xcol, w1m, w2m, w3m, p1, p2, p3)

    return jnp.transpose(out, (0, 3, 1, 2))   # NHWC -> NCHW


def _ref_forward(x_nchw, params):
    """Pure-XLA reference of the same inference graph (for cross-checking)."""
    x = jnp.transpose(x_nchw, (0, 2, 3, 1)).astype(jnp.float32)
    for p in params:
        y = jax.lax.conv_general_dilated(
            x, p["w"], window_strides=(STRIDE, STRIDE),
            padding=((PAD, PAD), (PAD, PAD)),
            dimension_numbers=("NHWC", "HWIO", "NHWC"))
        y = jnp.maximum(y + p["b"], 0.0)
        y = y * p["scale"] + p["shift"]
        y = jax.lax.reduce_window(y, -jnp.inf, jax.lax.max,
                                  (1, 2, 2, 1), (1, 2, 2, 1), "VALID")
        x = y
    return jnp.transpose(x, (0, 3, 1, 2))


if __name__ == "__main__":
    key = jax.random.PRNGKey(0)
    kx, kp = jax.random.split(key)
    # 64x64 is the smallest square input for which all three stride-2 convs and
    # 2x2 max-pools of the module are valid (final feature map is 1x1).
    x = jax.random.normal(kx, (2, 3, 64, 64), jnp.float32)
    params = init_params(kp)

    out = jax.block_until_ready(cnn_forward(x, params))
    assert out.shape == (2, 64, 1, 1), out.shape
    assert bool(jnp.all(jnp.isfinite(out)))

    # Cross-check the fused Pallas kernel against a pure-XLA reference.
    ref = jax.block_until_ready(_ref_forward(x, params))
    err = float(jnp.max(jnp.abs(out - ref)))
    assert err < 5e-2, err

    print("KERNEL_OK")
</pallas_src>

<mosaic_0001>
module attributes {stable_mosaic.version = 11 : i64} {
  func.func @kernel(%arg0: i32, %arg1: memref<1x1024x128xf32, #tpu.memory_space<vmem>>, %arg2: memref<128x16xf32, #tpu.memory_space<vmem>>, %arg3: memref<400x32xf32, #tpu.memory_space<vmem>>, %arg4: memref<800x64xf32, #tpu.memory_space<vmem>>, %arg5: memref<3x16xf32, #tpu.memory_space<vmem>>, %arg6: memref<3x32xf32, #tpu.memory_space<vmem>>, %arg7: memref<3x64xf32, #tpu.memory_space<vmem>>, %arg8: memref<1x1x1x64xf32, #tpu.memory_space<vmem>>, %arg9: memref<2x20x10x16xf32, #tpu.memory_space<vmem>>, %arg10: memref<8x8x400xf32, #tpu.memory_space<vmem>>, %arg11: memref<2x8x4x32xf32, #tpu.memory_space<vmem>>, %arg12: memref<2x2x800xf32, #tpu.memory_space<vmem>>) attributes {dimension_semantics = [#tpu.dimension_semantics<parallel>], iteration_bounds = array<i64: 2>, scalar_prefetch = 0 : i64, scratch_operands = 4 : i64, tpu.core_type = #tpu.core_type<tc>, window_params = [{transform_indices = @transform_0, window_bounds = array<i64: 1, 1024, 128>}, {pipeline_mode = #tpu.pipeline_mode<synchronous>, transform_indices = @transform_1, window_bounds = array<i64: 128, 16>}, {pipeline_mode = #tpu.pipeline_mode<synchronous>, transform_indices = @transform_2, window_bounds = array<i64: 400, 32>}, {pipeline_mode = #tpu.pipeline_mode<synchronous>, transform_indices = @transform_3, window_bounds = array<i64: 800, 64>}, {pipeline_mode = #tpu.pipeline_mode<synchronous>, transform_indices = @transform_4, window_bounds = array<i64: 3, 16>}, {pipeline_mode = #tpu.pipeline_mode<synchronous>, transform_indices = @transform_5, window_bounds = array<i64: 3, 32>}, {pipeline_mode = #tpu.pipeline_mode<synchronous>, transform_indices = @transform_6, window_bounds = array<i64: 3, 64>}, {transform_indices = @transform_7, window_bounds = array<i64: 1, 1, 1, 64>}]} {
    %c0 = arith.constant 0 : index
    %c0_0 = arith.constant 0 : index
    %c0_1 = arith.constant 0 : index
    %0 = vector.load %arg1[%c0, %c0_0, %c0_1] : memref<1x1024x128xf32, #tpu.memory_space<vmem>>, vector<1x1024x128xf32>
    %1 = vector.shape_cast %0 : vector<1x1024x128xf32> to vector<1024x128xf32>
    %c0_2 = arith.constant 0 : index
    %c0_3 = arith.constant 0 : index
    %2 = vector.load %arg2[%c0_2, %c0_3] : memref<128x16xf32, #tpu.memory_space<vmem>>, vector<128x16xf32>
    %cst = arith.constant dense<0.000000e+00> : vector<1024x16xf32>
    %3 = tpu.matmul %1, %2, %cst {dimension_numbers = #tpu.dot_dimension_numbers<[1], [0], [0], [1], [0, 0, 1, 1], [], []>} : vector<1024x128xf32>, vector<128x16xf32>, vector<1024x16xf32> -> vector<1024x16xf32>
    %c0_4 = arith.constant 0 : index
    %c0_5 = arith.constant 0 : index
    %4 = vector.load %arg5[%c0_4, %c0_5] : memref<3x16xf32, #tpu.memory_space<vmem>>, vector<1x16xf32>
    %5 = vector.broadcast %4 : vector<1x16xf32> to vector<1024x16xf32>
    %6 = arith.addf %3, %5 : vector<1024x16xf32>
    %cst_6 = arith.constant 0.000000e+00 : f32
    %7 = vector.broadcast %cst_6 : f32 to vector<1024x16xf32>
    %8 = arith.maximumf %6, %7 : vector<1024x16xf32>
    %c1 = arith.constant 1 : index
    %c0_7 = arith.constant 0 : index
    %9 = vector.load %arg5[%c1, %c0_7] : memref<3x16xf32, #tpu.memory_space<vmem>>, vector<1x16xf32>
    %10 = vector.broadcast %9 : vector<1x16xf32> to vector<1024x16xf32>
    %11 = arith.mulf %8, %10 : vector<1024x16xf32>
    %c2 = arith.constant 2 : index
    %c0_8 = arith.constant 0 : index
    %12 = vector.load %arg5[%c2, %c0_8] : memref<3x16xf32, #tpu.memory_space<vmem>>, vector<1x16xf32>
    %13 = vector.broadcast %12 : vector<1x16xf32> to vector<1024x16xf32>
    %14 = arith.addf %11, %13 : vector<1024x16xf32>
    %15 = vector.shape_cast %14 : vector<1024x16xf32> to vector<16x2x32x16xf32>
    %16 = vector.extract_strided_slice %15 {offsets = [0, 0, 0, 0], sizes = [16, 1, 32, 16], strides = [1, 1, 1, 1]} : vector<16x2x32x16xf32> to vector<16x1x32x16xf32>
    %17 = vector.shape_cast %16 : vector<16x1x32x16xf32> to vector<16x32x16xf32>
    %18 = vector.extract_strided_slice %15 {offsets = [0, 1, 0, 0], sizes = [16, 1, 32, 16], strides = [1, 1, 1, 1]} : vector<16x2x32x16xf32> to vector<16x1x32x16xf32>
    %19 = vector.shape_cast %18 : vector<16x1x32x16xf32> to vector<16x32x16xf32>
    %20 = arith.maximumf %17, %19 : vector<16x32x16xf32>
    %21 = vector.shape_cast %20 : vector<16x32x16xf32> to vector<16x8x4x16xf32>
    %22 = vector.extract_strided_slice %21 {offsets = [0, 0, 0, 0], sizes = [16, 8, 1, 16], strides = [1, 1, 1, 1]} : vector<16x8x4x16xf32> to vector<16x8x1x16xf32>
    %23 = vector.shape_cast %22 : vector<16x8x1x16xf32> to vector<16x8x16xf32>
    %24 = vector.extract_strided_slice %21 {offsets = [0, 0, 1, 0], sizes = [16, 8, 1, 16], strides = [1, 1, 1, 1]} : vector<16x8x4x16xf32> to vector<16x8x1x16xf32>
    %25 = vector.shape_cast %24 : vector<16x8x1x16xf32> to vector<16x8x16xf32>
    %26 = arith.maximumf %23, %25 : vector<16x8x16xf32>
    %27 = vector.extract_strided_slice %21 {offsets = [0, 0, 2, 0], sizes = [16, 8, 1, 16], strides = [1, 1, 1, 1]} : vector<16x8x4x16xf32> to vector<16x8x1x16xf32>
    %28 = vector.shape_cast %27 : vector<16x8x1x16xf32> to vector<16x8x16xf32>
    %29 = vector.extract_strided_slice %21 {offsets = [0, 0, 3, 0], sizes = [16, 8, 1, 16], strides = [1, 1, 1, 1]} : vector<16x8x4x16xf32> to vector<16x8x1x16xf32>
    %30 = vector.shape_cast %29 : vector<16x8x1x16xf32> to vector<16x8x16xf32>
    %31 = arith.maximumf %28, %30 : vector<16x8x16xf32>
    %cst_9 = arith.constant 0.000000e+00 : f32
    %32 = vector.broadcast %cst_9 : f32 to vector<2x20x10x16xf32>
    %c0_10 = arith.constant 0 : index
    %c0_11 = arith.constant 0 : index
    %c0_12 = arith.constant 0 : index
    %c0_13 = arith.constant 0 : index
    %33 = vector.load %arg9[%c0_10, %c0_11, %c0_12, %c0_13] : memref<2x20x10x16xf32, #tpu.memory_space<vmem>>, vector<2x20x10x16xf32>
    tpu.vector_store %arg9[%c0_10, %c0_11, %c0_12, %c0_13], %32 {strides = array<i32>} : memref<2x20x10x16xf32, #tpu.memory_space<vmem>>, vector<2x20x10x16xf32>,
    %c0_14 = arith.constant 0 : index
    %c2_15 = arith.constant 2 : index
    %c1_16 = arith.constant 1 : index
    %c0_17 = arith.constant 0 : index
    %34 = vector.load %arg9[%c0_14, %c2_15, %c1_16, %c0_17] : memref<2x20x10x16xf32, #tpu.memory_space<vmem>>, vector<1x16x8x16xf32>
    %35 = vector.shape_cast %34 : vector<1x16x8x16xf32> to vector<16x8x16xf32>
    %36 = vector.shape_cast %26 : vector<16x8x16xf32> to vector<1x16x8x16xf32>
    tpu.vector_store %arg9[%c0_14, %c2_15, %c1_16, %c0_17], %36 {strides = array<i32>} : memref<2x20x10x16xf32, #tpu.memory_space<vmem>>, vector<1x16x8x16xf32>,
    %c1_18 = arith.constant 1 : index
    %c2_19 = arith.constant 2 : index
    %c1_20 = arith.constant 1 : index
    %c0_21 = arith.constant 0 : index
    %37 = vector.load %arg9[%c1_18, %c2_19, %c1_20, %c0_21] : memref<2x20x10x16xf32, #tpu.memory_space<vmem>>, vector<1x16x8x16xf32>
    %38 = vector.shape_cast %37 : vector<1x16x8x16xf32> to vector<16x8x16xf32>
    %39 = vector.shape_cast %31 : vector<16x8x16xf32> to vector<1x16x8x16xf32>
    tpu.vector_store %arg9[%c1_18, %c2_19, %c1_20, %c0_21], %39 {strides = array<i32>} : memref<2x20x10x16xf32, #tpu.memory_space<vmem>>, vector<1x16x8x16xf32>,
    %c0_22 = arith.constant 0 : index
    %c0_23 = arith.constant 0 : index
    %c0_24 = arith.constant 0 : index
    %c0_25 = arith.constant 0 : index
    %40 = vector.load %arg9[%c0_22, %c0_23, %c0_24, %c0_25] : memref<2x20x10x16xf32, #tpu.memory_space<vmem>>, vector<2x20x10x16xf32>
    %41 = vector.extract_strided_slice %40 {offsets = [0, 0, 0, 0], sizes = [1, 16, 10, 16], strides = [1, 1, 1, 1]} : vector<2x20x10x16xf32> to vector<1x16x10x16xf32>
    %42 = vector.shape_cast %41 : vector<1x16x10x16xf32> to vector<16x10x16xf32>
    %43 = vector.shape_cast %42 : vector<16x10x16xf32> to vector<8x2x10x16xf32>
    %44 = vector.extract_strided_slice %43 {offsets = [0, 0, 0, 0], sizes = [8, 1, 10, 16], strides = [1, 1, 1, 1]} : vector<8x2x10x16xf32> to vector<8x1x10x16xf32>
    %45 = vector.shape_cast %44 : vector<8x1x10x16xf32> to vector<8x10x16xf32>
    %46 = vector.extract_strided_slice %45 {offsets = [0, 0, 0], sizes = [8, 8, 16], strides = [1, 1, 1]} : vector<8x10x16xf32> to vector<8x8x16xf32>
    %c0_26 = arith.constant 0 : index
    %c0_27 = arith.constant 0 : index
    %c0_28 = arith.constant 0 : index
    %47 = vector.load %arg10[%c0_26, %c0_27, %c0_28] : memref<8x8x400xf32, #tpu.memory_space<vmem>>, vector<8x8x16xf32>
    tpu.vector_store %arg10[%c0_26, %c0_27, %c0_28], %46 {strides = array<i32>} : memref<8x8x400xf32, #tpu.memory_space<vmem>>, vector<8x8x16xf32>,
    %48 = vector.extract_strided_slice %40 {offsets = [1, 0, 0, 0], sizes = [1, 16, 10, 16], strides = [1, 1, 1, 1]} : vector<2x20x10x16xf32> to vector<1x16x10x16xf32>
    %49 = vector.shape_cast %48 : vector<1x16x10x16xf32> to vector<16x10x16xf32>
    %50 = vector.shape_cast %49 : vector<16x10x16xf32> to vector<8x2x10x16xf32>
    %51 = vector.extract_strided_slice %50 {offsets = [0, 0, 0, 0], sizes = [8, 1, 10, 16], strides = [1, 1, 1, 1]} : vector<8x2x10x16xf32> to vector<8x1x10x16xf32>
    %52 = vector.shape_cast %51 : vector<8x1x10x16xf32> to vector<8x10x16xf32>
    %53 = vector.extract_strided_slice %52 {offsets = [0, 0, 0], sizes = [8, 8, 16], strides = [1, 1, 1]} : vector<8x10x16xf32> to vector<8x8x16xf32>
    %c0_29 = arith.constant 0 : index
    %c0_30 = arith.constant 0 : index
    %c16 = arith.constant 16 : index
    %54 = vector.load %arg10[%c0_29, %c0_30, %c16] : memref<8x8x400xf32, #tpu.memory_space<vmem>>, vector<8x8x16xf32>
    tpu.vector_store %arg10[%c0_29, %c0_30, %c16], %53 {strides = array<i32>} : memref<8x8x400xf32, #tpu.memory_space<vmem>>, vector<8x8x16xf32>,
    %55 = vector.extract_strided_slice %40 {offsets = [0, 0, 0, 0], sizes = [1, 16, 10, 16], strides = [1, 1, 1, 1]} : vector<2x20x10x16xf32> to vector<1x16x10x16xf32>
    %56 = vector.shape_cast %55 : vector<1x16x10x16xf32> to vector<16x10x16xf32>
    %57 = vector.shape_cast %56 : vector<16x10x16xf32> to vector<8x2x10x16xf32>
    %58 = vector.extract_strided_slice %57 {offsets = [0, 0, 0, 0], sizes = [8, 1, 10, 16], strides = [1, 1, 1, 1]} : vector<8x2x10x16xf32> to vector<8x1x10x16xf32>
    %59 = vector.shape_cast %58 : vector<8x1x10x16xf32> to vector<8x10x16xf32>
    %60 = vector.extract_strided_slice %59 {offsets = [0, 1, 0], sizes = [8, 8, 16], strides = [1, 1, 1]} : vector<8x10x16xf32> to vector<8x8x16xf32>
    %c0_31 = arith.constant 0 : index
    %c0_32 = arith.constant 0 : index
    %c32 = arith.constant 32 : index
    %61 = vector.load %arg10[%c0_31, %c0_32, %c32] : memref<8x8x400xf32, #tpu.memory_space<vmem>>, vector<8x8x16xf32>
    tpu.vector_store %arg10[%c0_31, %c0_32, %c32], %60 {strides = array<i32>} : memref<8x8x400xf32, #tpu.memory_space<vmem>>, vector<8x8x16xf32>,
    %62 = vector.extract_strided_slice %40 {offsets = [1, 0, 0, 0], sizes = [1, 16, 10, 16], strides = [1, 1, 1, 1]} : vector<2x20x10x16xf32> to vector<1x16x10x16xf32>
    %63 = vector.shape_cast %62 : vector<1x16x10x16xf32> to vector<16x10x16xf32>
    %64 = vector.shape_cast %63 : vector<16x10x16xf32> to vector<8x2x10x16xf32>
    %65 = vector.extract_strided_slice %64 {offsets = [0, 0, 0, 0], sizes = [8, 1, 10, 16], strides = [1, 1, 1, 1]} : vector<8x2x10x16xf32> to vector<8x1x10x16xf32>
    %66 = vector.shape_cast %65 : vector<8x1x10x16xf32> to vector<8x10x16xf32>
    %67 = vector.extract_strided_slice %66 {offsets = [0, 1, 0], sizes = [8, 8, 16], strides = [1, 1, 1]} : vector<8x10x16xf32> to vector<8x8x16xf32>
    %c0_33 = arith.constant 0 : index
    %c0_34 = arith.constant 0 : index
    %c48 = arith.constant 48 : index
    %68 = vector.load %arg10[%c0_33, %c0_34, %c48] : memref<8x8x400xf32, #tpu.memory_space<vmem>>, vector<8x8x16xf32>
    tpu.vector_store %arg10[%c0_33, %c0_34, %c48], %67 {strides = array<i32>} : memref<8x8x400xf32, #tpu.memory_space<vmem>>, vector<8x8x16xf32>,
    %69 = vector.extract_strided_slice %40 {offsets = [0, 0, 0, 0], sizes = [1, 16, 10, 16], strides = [1, 1, 1, 1]} : vector<2x20x10x16xf32> to vector<1x16x10x16xf32>
    %70 = vector.shape_cast %69 : vector<1x16x10x16xf32> to vector<16x10x16xf32>
    %71 = vector.shape_cast %70 : vector<16x10x16xf32> to vector<8x2x10x16xf32>
    %72 = vector.extract_strided_slice %71 {offsets = [0, 0, 0, 0], sizes = [8, 1, 10, 16], strides = [1, 1, 1, 1]} : vector<8x2x10x16xf32> to vector<8x1x10x16xf32>
    %73 = vector.shape_cast %72 : vector<8x1x10x16xf32> to vector<8x10x16xf32>
    %74 = vector.extract_strided_slice %73 {offsets = [0, 2, 0], sizes = [8, 8, 16], strides = [1, 1, 1]} : vector<8x10x16xf32> to vector<8x8x16xf32>
    %c0_35 = arith.constant 0 : index
    %c0_36 = arith.constant 0 : index
    %c64 = arith.constant 64 : index
    %75 = vector.load %arg10[%c0_35, %c0_36, %c64] : memref<8x8x400xf32, #tpu.memory_space<vmem>>, vector<8x8x16xf32>
    tpu.vector_store %arg10[%c0_35, %c0_36, %c64], %74 {strides = array<i32>} : memref<8x8x400xf32, #tpu.memory_space<vmem>>, vector<8x8x16xf32>,
    %76 = vector.extract_strided_slice %40 {offsets = [0, 1, 0, 0], sizes = [1, 16, 10, 16], strides = [1, 1, 1, 1]} : vector<2x20x10x16xf32> to vector<1x16x10x16xf32>
    %77 = vector.shape_cast %76 : vector<1x16x10x16xf32> to vector<16x10x16xf32>
    %78 = vector.shape_cast %77 : vector<16x10x16xf32> to vector<8x2x10x16xf32>
    %79 = vector.extract_strided_slice %78 {offsets = [0, 0, 0, 0], sizes = [8, 1, 10, 16], strides = [1, 1, 1, 1]} : vector<8x2x10x16xf32> to vector<8x1x10x16xf32>
    %80 = vector.shape_cast %79 : vector<8x1x10x16xf32> to vector<8x10x16xf32>
    %81 = vector.extract_strided_slice %80 {offsets = [0, 0, 0], sizes = [8, 8, 16], strides = [1, 1, 1]} : vector<8x10x16xf32> to vector<8x8x16xf32>
    %c0_37 = arith.constant 0 : index
    %c0_38 = arith.constant 0 : index
    %c80 = arith.constant 80 : index
    %82 = vector.load %arg10[%c0_37, %c0_38, %c80] : memref<8x8x400xf32, #tpu.memory_space<vmem>>, vector<8x8x16xf32>
    tpu.vector_store %arg10[%c0_37, %c0_38, %c80], %81 {strides = array<i32>} : memref<8x8x400xf32, #tpu.memory_space<vmem>>, vector<8x8x16xf32>,
    %83 = vector.extract_strided_slice %40 {offsets = [1, 1, 0, 0], sizes = [1, 16, 10, 16], strides = [1, 1, 1, 1]} : vector<2x20x10x16xf32> to vector<1x16x10x16xf32>
    %84 = vector.shape_cast %83 : vector<1x16x10x16xf32> to vector<16x10x16xf32>
    %85 = vector.shape_cast %84 : vector<16x10x16xf32> to vector<8x2x10x16xf32>
    %86 = vector.extract_strided_slice %85 {offsets = [0, 0, 0, 0], sizes = [8, 1, 10, 16], strides = [1, 1, 1, 1]} : vector<8x2x10x16xf32> to vector<8x1x10x16xf32>
    %87 = vector.shape_cast %86 : vector<8x1x10x16xf32> to vector<8x10x16xf32>
    %88 = vector.extract_strided_slice %87 {offsets = [0, 0, 0], sizes = [8, 8, 16], strides = [1, 1, 1]} : vector<8x10x16xf32> to vector<8x8x16xf32>
    %c0_39 = arith.constant 0 : index
    %c0_40 = arith.constant 0 : index
    %c96 = arith.constant 96 : index
    %89 = vector.load %arg10[%c0_39, %c0_40, %c96] : memref<8x8x400xf32, #tpu.memory_space<vmem>>, vector<8x8x16xf32>
    tpu.vector_store %arg10[%c0_39, %c0_40, %c96], %88 {strides = array<i32>} : memref<8x8x400xf32, #tpu.memory_space<vmem>>, vector<8x8x16xf32>,
    %90 = vector.extract_strided_slice %40 {offsets = [0, 1, 0, 0], sizes = [1, 16, 10, 16], strides = [1, 1, 1, 1]} : vector<2x20x10x16xf32> to vector<1x16x10x16xf32>
    %91 = vector.shape_cast %90 : vector<1x16x10x16xf32> to vector<16x10x16xf32>
    %92 = vector.shape_cast %91 : vector<16x10x16xf32> to vector<8x2x10x16xf32>
    %93 = vector.extract_strided_slice %92 {offsets = [0, 0, 0, 0], sizes = [8, 1, 10, 16], strides = [1, 1, 1, 1]} : vector<8x2x10x16xf32> to vector<8x1x10x16xf32>
    %94 = vector.shape_cast %93 : vector<8x1x10x16xf32> to vector<8x10x16xf32>
    %95 = vector.extract_strided_slice %94 {offsets = [0, 1, 0], sizes = [8, 8, 16], strides = [1, 1, 1]} : vector<8x10x16xf32> to vector<8x8x16xf32>
    %c0_41 = arith.constant 0 : index
    %c0_42 = arith.constant 0 : index
    %c112 = arith.constant 112 : index
    %96 = vector.load %arg10[%c0_41, %c0_42, %c112] : memref<8x8x400xf32, #tpu.memory_space<vmem>>, vector<8x8x16xf32>
    tpu.vector_store %arg10[%c0_41, %c0_42, %c112], %95 {strides = array<i32>} : memref<8x8x400xf32, #tpu.memory_space<vmem>>, vector<8x8x16xf32>,
    %97 = vector.extract_strided_slice %40 {offsets = [1, 1, 0, 0], sizes = [1, 16, 10, 16], strides = [1, 1, 1, 1]} : vector<2x20x10x16xf32> to vector<1x16x10x16xf32>
    %98 = vector.shape_cast %97 : vector<1x16x10x16xf32> to vector<16x10x16xf32>
    %99 = vector.shape_cast %98 : vector<16x10x16xf32> to vector<8x2x10x16xf32>
    %100 = vector.extract_strided_slice %99 {offsets = [0, 0, 0, 0], sizes = [8, 1, 10, 16], strides = [1, 1, 1, 1]} : vector<8x2x10x16xf32> to vector<8x1x10x16xf32>
    %101 = vector.shape_cast %100 : vector<8x1x10x16xf32> to vector<8x10x16xf32>
    %102 = vector.extract_strided_slice %101 {offsets = [0, 1, 0], sizes = [8, 8, 16], strides = [1, 1, 1]} : vector<8x10x16xf32> to vector<8x8x16xf32>
    %c0_43 = arith.constant 0 : index
    %c0_44 = arith.constant 0 : index
    %c128 = arith.constant 128 : index
    %103 = vector.load %arg10[%c0_43, %c0_44, %c128] : memref<8x8x400xf32, #tpu.memory_space<vmem>>, vector<8x8x16xf32>
    tpu.vector_store %arg10[%c0_43, %c0_44, %c128], %102 {strides = array<i32>} : memref<8x8x400xf32, #tpu.memory_space<vmem>>, vector<8x8x16xf32>,
    %104 = vector.extract_strided_slice %40 {offsets = [0, 1, 0, 0], sizes = [1, 16, 10, 16], strides = [1, 1, 1, 1]} : vector<2x20x10x16xf32> to vector<1x16x10x16xf32>
    %105 = vector.shape_cast %104 : vector<1x16x10x16xf32> to vector<16x10x16xf32>
    %106 = vector.shape_cast %105 : vector<16x10x16xf32> to vector<8x2x10x16xf32>
    %107 = vector.extract_strided_slice %106 {offsets = [0, 0, 0, 0], sizes = [8, 1, 10, 16], strides = [1, 1, 1, 1]} : vector<8x2x10x16xf32> to vector<8x1x10x16xf32>
    %108 = vector.shape_cast %107 : vector<8x1x10x16xf32> to vector<8x10x16xf32>
    %109 = vector.extract_strided_slice %108 {offsets = [0, 2, 0], sizes = [8, 8, 16], strides = [1, 1, 1]} : vector<8x10x16xf32> to vector<8x8x16xf32>
    %c0_45 = arith.constant 0 : index
    %c0_46 = arith.constant 0 : index
    %c144 = arith.constant 144 : index
    %110 = vector.load %arg10[%c0_45, %c0_46, %c144] : memref<8x8x400xf32, #tpu.memory_space<vmem>>, vector<8x8x16xf32>
    tpu.vector_store %arg10[%c0_45, %c0_46, %c144], %109 {strides = array<i32>} : memref<8x8x400xf32, #tpu.memory_space<vmem>>, vector<8x8x16xf32>,
    %111 = vector.extract_strided_slice %40 {offsets = [0, 2, 0, 0], sizes = [1, 16, 10, 16], strides = [1, 1, 1, 1]} : vector<2x20x10x16xf32> to vector<1x16x10x16xf32>
    %112 = vector.shape_cast %111 : vector<1x16x10x16xf32> to vector<16x10x16xf32>
    %113 = vector.shape_cast %112 : vector<16x10x16xf32> to vector<8x2x10x16xf32>
    %114 = vector.extract_strided_slice %113 {offsets = [0, 0, 0, 0], sizes = [8, 1, 10, 16], strides = [1, 1, 1, 1]} : vector<8x2x10x16xf32> to vector<8x1x10x16xf32>
    %115 = vector.shape_cast %114 : vector<8x1x10x16xf32> to vector<8x10x16xf32>
    %116 = vector.extract_strided_slice %115 {offsets = [0, 0, 0], sizes = [8, 8, 16], strides = [1, 1, 1]} : vector<8x10x16xf32> to vector<8x8x16xf32>
    %c0_47 = arith.constant 0 : index
    %c0_48 = arith.constant 0 : index
    %c160 = arith.constant 160 : index
    %117 = vector.load %arg10[%c0_47, %c0_48, %c160] : memref<8x8x400xf32, #tpu.memory_space<vmem>>, vector<8x8x16xf32>
    tpu.vector_store %arg10[%c0_47, %c0_48, %c160], %116 {strides = array<i32>} : memref<8x8x400xf32, #tpu.memory_space<vmem>>, vector<8x8x16xf32>,
    %118 = vector.extract_strided_slice %40 {offsets = [1, 2, 0, 0], sizes = [1, 16, 10, 16], strides = [1, 1, 1, 1]} : vector<2x20x10x16xf32> to vector<1x16x10x16xf32>
    %119 = vector.shape_cast %118 : vector<1x16x10x16xf32> to vector<16x10x16xf32>
    %120 = vector.shape_cast %119 : vector<16x10x16xf32> to vector<8x2x10x16xf32>
    %121 = vector.extract_strided_slice %120 {offsets = [0, 0, 0, 0], sizes = [8, 1, 10, 16], strides = [1, 1, 1, 1]} : vector<8x2x10x16xf32> to vector<8x1x10x16xf32>
    %122 = vector.shape_cast %121 : vector<8x1x10x16xf32> to vector<8x10x16xf32>
    %123 = vector.extract_strided_slice %122 {offsets = [0, 0, 0], sizes = [8, 8, 16], strides = [1, 1, 1]} : vector<8x10x16xf32> to vector<8x8x16xf32>
    %c0_49 = arith.constant 0 : index
    %c0_50 = arith.constant 0 : index
    %c176 = arith.constant 176 : index
    %124 = vector.load %arg10[%c0_49, %c0_50, %c176] : memref<8x8x400xf32, #tpu.memory_space<vmem>>, vector<8x8x16xf32>
    tpu.vector_store %arg10[%c0_49, %c0_50, %c176], %123 {strides = array<i32>} : memref<8x8x400xf32, #tpu.memory_space<vmem>>, vector<8x8x16xf32>,
    %125 = vector.extract_strided_slice %40 {offsets = [0, 2, 0, 0], sizes = [1, 16, 10, 16], strides = [1, 1, 1, 1]} : vector<2x20x10x16xf32> to vector<1x16x10x16xf32>
    %126 = vector.shape_cast %125 : vector<1x16x10x16xf32> to vector<16x10x16xf32>
    %127 = vector.shape_cast %126 : vector<16x10x16xf32> to vector<8x2x10x16xf32>
    %128 = vector.extract_strided_slice %127 {offsets = [0, 0, 0, 0], sizes = [8, 1, 10, 16], strides = [1, 1, 1, 1]} : vector<8x2x10x16xf32> to vector<8x1x10x16xf32>
    %129 = vector.shape_cast %128 : vector<8x1x10x16xf32> to vector<8x10x16xf32>
    %130 = vector.extract_strided_slice %129 {offsets = [0, 1, 0], sizes = [8, 8, 16], strides = [1, 1, 1]} : vector<8x10x16xf32> to vector<8x8x16xf32>
    %c0_51 = arith.constant 0 : index
    %c0_52 = arith.constant 0 : index
    %c192 = arith.constant 192 : index
    %131 = vector.load %arg10[%c0_51, %c0_52, %c192] : memref<8x8x400xf32, #tpu.memory_space<vmem>>, vector<8x8x16xf32>
    tpu.vector_store %arg10[%c0_51, %c0_52, %c192], %130 {strides = array<i32>} : memref<8x8x400xf32, #tpu.memory_space<vmem>>, vector<8x8x16xf32>,
    %132 = vector.extract_strided_slice %40 {offsets = [1, 2, 0, 0], sizes = [1, 16, 10, 16], strides = [1, 1, 1, 1]} : vector<2x20x10x16xf32> to vector<1x16x10x16xf32>
    %133 = vector.shape_cast %132 : vector<1x16x10x16xf32> to vector<16x10x16xf32>
    %134 = vector.shape_cast %133 : vector<16x10x16xf32> to vector<8x2x10x16xf32>
    %135 = vector.extract_strided_slice %134 {offsets = [0, 0, 0, 0], sizes = [8, 1, 10, 16], strides = [1, 1, 1, 1]} : vector<8x2x10x16xf32> to vector<8x1x10x16xf32>
    %136 = vector.shape_cast %135 : vector<8x1x10x16xf32> to vector<8x10x16xf32>
    %137 = vector.extract_strided_slice %136 {offsets = [0, 1, 0], sizes = [8, 8, 16], strides = [1, 1, 1]} : vector<8x10x16xf32> to vector<8x8x16xf32>
    %c0_53 = arith.constant 0 : index
    %c0_54 = arith.constant 0 : index
    %c208 = arith.constant 208 : index
    %138 = vector.load %arg10[%c0_53, %c0_54, %c208] : memref<8x8x400xf32, #tpu.memory_space<vmem>>, vector<8x8x16xf32>
    tpu.vector_store %arg10[%c0_53, %c0_54, %c208], %137 {strides = array<i32>} : memref<8x8x400xf32, #tpu.memory_space<vmem>>, vector<8x8x16xf32>,
    %139 = vector.extract_strided_slice %40 {offsets = [0, 2, 0, 0], sizes = [1, 16, 10, 16], strides = [1, 1, 1, 1]} : vector<2x20x10x16xf32> to vector<1x16x10x16xf32>
    %140 = vector.shape_cast %139 : vector<1x16x10x16xf32> to vector<16x10x16xf32>
    %141 = vector.shape_cast %140 : vector<16x10x16xf32> to vector<8x2x10x16xf32>
    %142 = vector.extract_strided_slice %141 {offsets = [0, 0, 0, 0], sizes = [8, 1, 10, 16], strides = [1, 1, 1, 1]} : vector<8x2x10x16xf32> to vector<8x1x10x16xf32>
    %143 = vector.shape_cast %142 : vector<8x1x10x16xf32> to vector<8x10x16xf32>
    %144 = vector.extract_strided_slice %143 {offsets = [0, 2, 0], sizes = [8, 8, 16], strides = [1, 1, 1]} : vector<8x10x16xf32> to vector<8x8x16xf32>
    %c0_55 = arith.constant 0 : index
    %c0_56 = arith.constant 0 : index
    %c224 = arith.constant 224 : index
    %145 = vector.load %arg10[%c0_55, %c0_56, %c224] : memref<8x8x400xf32, #tpu.memory_space<vmem>>, vector<8x8x16xf32>
    tpu.vector_store %arg10[%c0_55, %c0_56, %c224], %144 {strides = array<i32>} : memref<8x8x400xf32, #tpu.memory_space<vmem>>, vector<8x8x16xf32>,
    %146 = vector.extract_strided_slice %40 {offsets = [0, 3, 0, 0], sizes = [1, 16, 10, 16], strides = [1, 1, 1, 1]} : vector<2x20x10x16xf32> to vector<1x16x10x16xf32>
    %147 = vector.shape_cast %146 : vector<1x16x10x16xf32> to vector<16x10x16xf32>
    %148 = vector.shape_cast %147 : vector<16x10x16xf32> to vector<8x2x10x16xf32>
    %149 = vector.extract_strided_slice %148 {offsets = [0, 0, 0, 0], sizes = [8, 1, 10, 16], strides = [1, 1, 1, 1]} : vector<8x2x10x16xf32> to vector<8x1x10x16xf32>
    %150 = vector.shape_cast %149 : vector<8x1x10x16xf32> to vector<8x10x16xf32>
    %151 = vector.extract_strided_slice %150 {offsets = [0, 0, 0], sizes = [8, 8, 16], strides = [1, 1, 1]} : vector<8x10x16xf32> to vector<8x8x16xf32>
    %c0_57 = arith.constant 0 : index
    %c0_58 = arith.constant 0 : index
    %c240 = arith.constant 240 : index
    %152 = vector.load %arg10[%c0_57, %c0_58, %c240] : memref<8x8x400xf32, #tpu.memory_space<vmem>>, vector<8x8x16xf32>
    tpu.vector_store %arg10[%c0_57, %c0_58, %c240], %151 {strides = array<i32>} : memref<8x8x400xf32, #tpu.memory_space<vmem>>, vector<8x8x16xf32>,
    %153 = vector.extract_strided_slice %40 {offsets = [1, 3, 0, 0], sizes = [1, 16, 10, 16], strides = [1, 1, 1, 1]} : vector<2x20x10x16xf32> to vector<1x16x10x16xf32>
    %154 = vector.shape_cast %153 : vector<1x16x10x16xf32> to vector<16x10x16xf32>
    %155 = vector.shape_cast %154 : vector<16x10x16xf32> to vector<8x2x10x16xf32>
    %156 = vector.extract_strided_slice %155 {offsets = [0, 0, 0, 0], sizes = [8, 1, 10, 16], strides = [1, 1, 1, 1]} : vector<8x2x10x16xf32> to vector<8x1x10x16xf32>
    %157 = vector.shape_cast %156 : vector<8x1x10x16xf32> to vector<8x10x16xf32>
    %158 = vector.extract_strided_slice %157 {offsets = [0, 0, 0], sizes = [8, 8, 16], strides = [1, 1, 1]} : vector<8x10x16xf32> to vector<8x8x16xf32>
    %c0_59 = arith.constant 0 : index
    %c0_60 = arith.constant 0 : index
    %c256 = arith.constant 256 : index
    %159 = vector.load %arg10[%c0_59, %c0_60, %c256] : memref<8x8x400xf32, #tpu.memory_space<vmem>>, vector<8x8x16xf32>
    tpu.vector_store %arg10[%c0_59, %c0_60, %c256], %158 {strides = array<i32>} : memref<8x8x400xf32, #tpu.memory_space<vmem>>, vector<8x8x16xf32>,
    %160 = vector.extract_strided_slice %40 {offsets = [0, 3, 0, 0], sizes = [1, 16, 10, 16], strides = [1, 1, 1, 1]} : vector<2x20x10x16xf32> to vector<1x16x10x16xf32>
    %161 = vector.shape_cast %160 : vector<1x16x10x16xf32> to vector<16x10x16xf32>
    %162 = vector.shape_cast %161 : vector<16x10x16xf32> to vector<8x2x10x16xf32>
    %163 = vector.extract_strided_slice %162 {offsets = [0, 0, 0, 0], sizes = [8, 1, 10, 16], strides = [1, 1, 1, 1]} : vector<8x2x10x16xf32> to vector<8x1x10x16xf32>
    %164 = vector.shape_cast %163 : vector<8x1x10x16xf32> to vector<8x10x16xf32>
    %165 = vector.extract_strided_slice %164 {offsets = [0, 1, 0], sizes = [8, 8, 16], strides = [1, 1, 1]} : vector<8x10x16xf32> to vector<8x8x16xf32>
    %c0_61 = arith.constant 0 : index
    %c0_62 = arith.constant 0 : index
    %c272 = arith.constant 272 : index
    %166 = vector.load %arg10[%c0_61, %c0_62, %c272] : memref<8x8x400xf32, #tpu.memory_space<vmem>>, vector<8x8x16xf32>
    tpu.vector_store %arg10[%c0_61, %c0_62, %c272], %165 {strides = array<i32>} : memref<8x8x400xf32, #tpu.memory_space<vmem>>, vector<8x8x16xf32>,
    %167 = vector.extract_strided_slice %40 {offsets = [1, 3, 0, 0], sizes = [1, 16, 10, 16], strides = [1, 1, 1, 1]} : vector<2x20x10x16xf32> to vector<1x16x10x16xf32>
    %168 = vector.shape_cast %167 : vector<1x16x10x16xf32> to vector<16x10x16xf32>
    %169 = vector.shape_cast %168 : vector<16x10x16xf32> to vector<8x2x10x16xf32>
    %170 = vector.extract_strided_slice %169 {offsets = [0, 0, 0, 0], sizes = [8, 1, 10, 16], strides = [1, 1, 1, 1]} : vector<8x2x10x16xf32> to vector<8x1x10x16xf32>
    %171 = vector.shape_cast %170 : vector<8x1x10x16xf32> to vector<8x10x16xf32>
    %172 = vector.extract_strided_slice %171 {offsets = [0, 1, 0], sizes = [8, 8, 16], strides = [1, 1, 1]} : vector<8x10x16xf32> to vector<8x8x16xf32>
    %c0_63 = arith.constant 0 : index
    %c0_64 = arith.constant 0 : index
    %c288 = arith.constant 288 : index
    %173 = vector.load %arg10[%c0_63, %c0_64, %c288] : memref<8x8x400xf32, #tpu.memory_space<vmem>>, vector<8x8x16xf32>
    tpu.vector_store %arg10[%c0_63, %c0_64, %c288], %172 {strides = array<i32>} : memref<8x8x400xf32, #tpu.memory_space<vmem>>, vector<8x8x16xf32>,
    %174 = vector.extract_strided_slice %40 {offsets = [0, 3, 0, 0], sizes = [1, 16, 10, 16], strides = [1, 1, 1, 1]} : vector<2x20x10x16xf32> to vector<1x16x10x16xf32>
    %175 = vector.shape_cast %174 : vector<1x16x10x16xf32> to vector<16x10x16xf32>
    %176 = vector.shape_cast %175 : vector<16x10x16xf32> to vector<8x2x10x16xf32>
    %177 = vector.extract_strided_slice %176 {offsets = [0, 0, 0, 0], sizes = [8, 1, 10, 16], strides = [1, 1, 1, 1]} : vector<8x2x10x16xf32> to vector<8x1x10x16xf32>
    %178 = vector.shape_cast %177 : vector<8x1x10x16xf32> to vector<8x10x16xf32>
    %179 = vector.extract_strided_slice %178 {offsets = [0, 2, 0], sizes = [8, 8, 16], strides = [1, 1, 1]} : vector<8x10x16xf32> to vector<8x8x16xf32>
    %c0_65 = arith.constant 0 : index
    %c0_66 = arith.constant 0 : index
    %c304 = arith.constant 304 : index
    %180 = vector.load %arg10[%c0_65, %c0_66, %c304] : memref<8x8x400xf32, #tpu.memory_space<vmem>>, vector<8x8x16xf32>
    tpu.vector_store %arg10[%c0_65, %c0_66, %c304], %179 {strides = array<i32>} : memref<8x8x400xf32, #tpu.memory_space<vmem>>, vector<8x8x16xf32>,
    %181 = vector.extract_strided_slice %40 {offsets = [0, 4, 0, 0], sizes = [1, 16, 10, 16], strides = [1, 1, 1, 1]} : vector<2x20x10x16xf32> to vector<1x16x10x16xf32>
    %182 = vector.shape_cast %181 : vector<1x16x10x16xf32> to vector<16x10x16xf32>
    %183 = vector.shape_cast %182 : vector<16x10x16xf32> to vector<8x2x10x16xf32>
    %184 = vector.extract_strided_slice %183 {offsets = [0, 0, 0, 0], sizes = [8, 1, 10, 16], strides = [1, 1, 1, 1]} : vector<8x2x10x16xf32> to vector<8x1x10x16xf32>
    %185 = vector.shape_cast %184 : vector<8x1x10x16xf32> to vector<8x10x16xf32>
    %186 = vector.extract_strided_slice %185 {offsets = [0, 0, 0], sizes = [8, 8, 16], strides = [1, 1, 1]} : vector<8x10x16xf32> to vector<8x8x16xf32>
    %c0_67 = arith.constant 0 : index
    %c0_68 = arith.constant 0 : index
    %c320 = arith.constant 320 : index
    %187 = vector.load %arg10[%c0_67, %c0_68, %c320] : memref<8x8x400xf32, #tpu.memory_space<vmem>>, vector<8x8x16xf32>
    tpu.vector_store %arg10[%c0_67, %c0_68, %c320], %186 {strides = array<i32>} : memref<8x8x400xf32, #tpu.memory_space<vmem>>, vector<8x8x16xf32>,
    %188 = vector.extract_strided_slice %40 {offsets = [1, 4, 0, 0], sizes = [1, 16, 10, 16], strides = [1, 1, 1, 1]} : vector<2x20x10x16xf32> to vector<1x16x10x16xf32>
    %189 = vector.shape_cast %188 : vector<1x16x10x16xf32> to vector<16x10x16xf32>
    %190 = vector.shape_cast %189 : vector<16x10x16xf32> to vector<8x2x10x16xf32>
    %191 = vector.extract_strided_slice %190 {offsets = [0, 0, 0, 0], sizes = [8, 1, 10, 16], strides = [1, 1, 1, 1]} : vector<8x2x10x16xf32> to vector<8x1x10x16xf32>
    %192 = vector.shape_cast %191 : vector<8x1x10x16xf32> to vector<8x10x16xf32>
    %193 = vector.extract_strided_slice %192 {offsets = [0, 0, 0], sizes = [8, 8, 16], strides = [1, 1, 1]} : vector<8x10x16xf32> to vector<8x8x16xf32>
    %c0_69 = arith.constant 0 : index
    %c0_70 = arith.constant 0 : index
    %c336 = arith.constant 336 : index
    %194 = vector.load %arg10[%c0_69, %c0_70, %c336] : memref<8x8x400xf32, #tpu.memory_space<vmem>>, vector<8x8x16xf32>
    tpu.vector_store %arg10[%c0_69, %c0_70, %c336], %193 {strides = array<i32>} : memref<8x8x400xf32, #tpu.memory_space<vmem>>, vector<8x8x16xf32>,
    %195 = vector.extract_strided_slice %40 {offsets = [0, 4, 0, 0], sizes = [1, 16, 10, 16], strides = [1, 1, 1, 1]} : vector<2x20x10x16xf32> to vector<1x16x10x16xf32>
    %196 = vector.shape_cast %195 : vector<1x16x10x16xf32> to vector<16x10x16xf32>
    %197 = vector.shape_cast %196 : vector<16x10x16xf32> to vector<8x2x10x16xf32>
    %198 = vector.extract_strided_slice %197 {offsets = [0, 0, 0, 0], sizes = [8, 1, 10, 16], strides = [1, 1, 1, 1]} : vector<8x2x10x16xf32> to vector<8x1x10x16xf32>
    %199 = vector.shape_cast %198 : vector<8x1x10x16xf32> to vector<8x10x16xf32>
    %200 = vector.extract_strided_slice %199 {offsets = [0, 1, 0], sizes = [8, 8, 16], strides = [1, 1, 1]} : vector<8x10x16xf32> to vector<8x8x16xf32>
    %c0_71 = arith.constant 0 : index
    %c0_72 = arith.constant 0 : index
    %c352 = arith.constant 352 : index
    %201 = vector.load %arg10[%c0_71, %c0_72, %c352] : memref<8x8x400xf32, #tpu.memory_space<vmem>>, vector<8x8x16xf32>
    tpu.vector_store %arg10[%c0_71, %c0_72, %c352], %200 {strides = array<i32>} : memref<8x8x400xf32, #tpu.memory_space<vmem>>, vector<8x8x16xf32>,
    %202 = vector.extract_strided_slice %40 {offsets = [1, 4, 0, 0], sizes = [1, 16, 10, 16], strides = [1, 1, 1, 1]} : vector<2x20x10x16xf32> to vector<1x16x10x16xf32>
    %203 = vector.shape_cast %202 : vector<1x16x10x16xf32> to vector<16x10x16xf32>
    %204 = vector.shape_cast %203 : vector<16x10x16xf32> to vector<8x2x10x16xf32>
    %205 = vector.extract_strided_slice %204 {offsets = [0, 0, 0, 0], sizes = [8, 1, 10, 16], strides = [1, 1, 1, 1]} : vector<8x2x10x16xf32> to vector<8x1x10x16xf32>
    %206 = vector.shape_cast %205 : vector<8x1x10x16xf32> to vector<8x10x16xf32>
    %207 = vector.extract_strided_slice %206 {offsets = [0, 1, 0], sizes = [8, 8, 16], strides = [1, 1, 1]} : vector<8x10x16xf32> to vector<8x8x16xf32>
    %c0_73 = arith.constant 0 : index
    %c0_74 = arith.constant 0 : index
    %c368 = arith.constant 368 : index
    %208 = vector.load %arg10[%c0_73, %c0_74, %c368] : memref<8x8x400xf32, #tpu.memory_space<vmem>>, vector<8x8x16xf32>
    tpu.vector_store %arg10[%c0_73, %c0_74, %c368], %207 {strides = array<i32>} : memref<8x8x400xf32, #tpu.memory_space<vmem>>, vector<8x8x16xf32>,
    %209 = vector.extract_strided_slice %40 {offsets = [0, 4, 0, 0], sizes = [1, 16, 10, 16], strides = [1, 1, 1, 1]} : vector<2x20x10x16xf32> to vector<1x16x10x16xf32>
    %210 = vector.shape_cast %209 : vector<1x16x10x16xf32> to vector<16x10x16xf32>
    %211 = vector.shape_cast %210 : vector<16x10x16xf32> to vector<8x2x10x16xf32>
    %212 = vector.extract_strided_slice %211 {offsets = [0, 0, 0, 0], sizes = [8, 1, 10, 16], strides = [1, 1, 1, 1]} : vector<8x2x10x16xf32> to vector<8x1x10x16xf32>
    %213 = vector.shape_cast %212 : vector<8x1x10x16xf32> to vector<8x10x16xf32>
    %214 = vector.extract_strided_slice %213 {offsets = [0, 2, 0], sizes = [8, 8, 16], strides = [1, 1, 1]} : vector<8x10x16xf32> to vector<8x8x16xf32>
    %c0_75 = arith.constant 0 : index
    %c0_76 = arith.constant 0 : index
    %c384 = arith.constant 384 : index
    %215 = vector.load %arg10[%c0_75, %c0_76, %c384] : memref<8x8x400xf32, #tpu.memory_space<vmem>>, vector<8x8x16xf32>
    tpu.vector_store %arg10[%c0_75, %c0_76, %c384], %214 {strides = array<i32>} : memref<8x8x400xf32, #tpu.memory_space<vmem>>, vector<8x8x16xf32>,
    %c0_77 = arith.constant 0 : index
    %c0_78 = arith.constant 0 : index
    %c0_79 = arith.constant 0 : index
    %216 = vector.load %arg10[%c0_77, %c0_78, %c0_79] : memref<8x8x400xf32, #tpu.memory_space<vmem>>, vector<8x8x400xf32>
    %217 = vector.shape_cast %216 : vector<8x8x400xf32> to vector<64x400xf32>
    %c0_80 = arith.constant 0 : index
    %c0_81 = arith.constant 0 : index
    %218 = vector.load %arg3[%c0_80, %c0_81] : memref<400x32xf32, #tpu.memory_space<vmem>>, vector<400x32xf32>
    %cst_82 = arith.constant dense<0.000000e+00> : vector<64x32xf32>
    %219 = tpu.matmul %217, %218, %cst_82 {dimension_numbers = #tpu.dot_dimension_numbers<[1], [0], [0], [1], [0, 0, 1, 1], [], []>} : vector<64x400xf32>, vector<400x32xf32>, vector<64x32xf32> -> vector<64x32xf32>
    %c0_83 = arith.constant 0 : index
    %c0_84 = arith.constant 0 : index
    %220 = vector.load %arg6[%c0_83, %c0_84] : memref<3x32xf32, #tpu.memory_space<vmem>>, vector<1x32xf32>
    %221 = vector.broadcast %220 : vector<1x32xf32> to vector<64x32xf32>
    %222 = arith.addf %219, %221 : vector<64x32xf32>
    %cst_85 = arith.constant 0.000000e+00 : f32
    %223 = vector.broadcast %cst_85 : f32 to vector<64x32xf32>
    %224 = arith.maximumf %222, %223 : vector<64x32xf32>
    %c1_86 = arith.constant 1 : index
    %c0_87 = arith.constant 0 : index
    %225 = vector.load %arg6[%c1_86, %c0_87] : memref<3x32xf32, #tpu.memory_space<vmem>>, vector<1x32xf32>
    %226 = vector.broadcast %225 : vector<1x32xf32> to vector<64x32xf32>
    %227 = arith.mulf %224, %226 : vector<64x32xf32>
    %c2_88 = arith.constant 2 : index
    %c0_89 = arith.constant 0 : index
    %228 = vector.load %arg6[%c2_88, %c0_89] : memref<3x32xf32, #tpu.memory_space<vmem>>, vector<1x32xf32>
    %229 = vector.broadcast %228 : vector<1x32xf32> to vector<64x32xf32>
    %230 = arith.addf %227, %229 : vector<64x32xf32>
    %231 = vector.shape_cast %230 : vector<64x32xf32> to vector<4x2x8x32xf32>
    %232 = vector.extract_strided_slice %231 {offsets = [0, 0, 0, 0], sizes = [4, 1, 8, 32], strides = [1, 1, 1, 1]} : vector<4x2x8x32xf32> to vector<4x1x8x32xf32>
    %233 = vector.shape_cast %232 : vector<4x1x8x32xf32> to vector<4x8x32xf32>
    %234 = vector.extract_strided_slice %231 {offsets = [0, 1, 0, 0], sizes = [4, 1, 8, 32], strides = [1, 1, 1, 1]} : vector<4x2x8x32xf32> to vector<4x1x8x32xf32>
    %235 = vector.shape_cast %234 : vector<4x1x8x32xf32> to vector<4x8x32xf32>
    %236 = arith.maximumf %233, %235 : vector<4x8x32xf32>
    %237 = vector.shape_cast %236 : vector<4x8x32xf32> to vector<4x2x4x32xf32>
    %238 = vector.extract_strided_slice %237 {offsets = [0, 0, 0, 0], sizes = [4, 2, 1, 32], strides = [1, 1, 1, 1]} : vector<4x2x4x32xf32> to vector<4x2x1x32xf32>
    %239 = vector.shape_cast %238 : vector<4x2x1x32xf32> to vector<4x2x32xf32>
    %240 = vector.extract_strided_slice %237 {offsets = [0, 0, 1, 0], sizes = [4, 2, 1, 32], strides = [1, 1, 1, 1]} : vector<4x2x4x32xf32> to vector<4x2x1x32xf32>
    %241 = vector.shape_cast %240 : vector<4x2x1x32xf32> to vector<4x2x32xf32>
    %242 = arith.maximumf %239, %241 : vector<4x2x32xf32>
    %243 = vector.extract_strided_slice %237 {offsets = [0, 0, 2, 0], sizes = [4, 2, 1, 32], strides = [1, 1, 1, 1]} : vector<4x2x4x32xf32> to vector<4x2x1x32xf32>
    %244 = vector.shape_cast %243 : vector<4x2x1x32xf32> to vector<4x2x32xf32>
    %245 = vector.extract_strided_slice %237 {offsets = [0, 0, 3, 0], sizes = [4, 2, 1, 32], strides = [1, 1, 1, 1]} : vector<4x2x4x32xf32> to vector<4x2x1x32xf32>
    %246 = vector.shape_cast %245 : vector<4x2x1x32xf32> to vector<4x2x32xf32>
    %247 = arith.maximumf %244, %246 : vector<4x2x32xf32>
    %cst_90 = arith.constant 0.000000e+00 : f32
    %248 = vector.broadcast %cst_90 : f32 to vector<2x8x4x32xf32>
    %c0_91 = arith.constant 0 : index
    %c0_92 = arith.constant 0 : index
    %c0_93 = arith.constant 0 : index
    %c0_94 = arith.constant 0 : index
    %249 = vector.load %arg11[%c0_91, %c0_92, %c0_93, %c0_94] : memref<2x8x4x32xf32, #tpu.memory_space<vmem>>, vector<2x8x4x32xf32>
    tpu.vector_store %arg11[%c0_91, %c0_92, %c0_93, %c0_94], %248 {strides = array<i32>} : memref<2x8x4x32xf32, #tpu.memory_space<vmem>>, vector<2x8x4x32xf32>,
    %c0_95 = arith.constant 0 : index
    %c2_96 = arith.constant 2 : index
    %c1_97 = arith.constant 1 : index
    %c0_98 = arith.constant 0 : index
    %250 = vector.load %arg11[%c0_95, %c2_96, %c1_97, %c0_98] : memref<2x8x4x32xf32, #tpu.memory_space<vmem>>, vector<1x4x2x32xf32>
    %251 = vector.shape_cast %250 : vector<1x4x2x32xf32> to vector<4x2x32xf32>
    %252 = vector.shape_cast %242 : vector<4x2x32xf32> to vector<1x4x2x32xf32>
    tpu.vector_store %arg11[%c0_95, %c2_96, %c1_97, %c0_98], %252 {strides = array<i32>} : memref<2x8x4x32xf32, #tpu.memory_space<vmem>>, vector<1x4x2x32xf32>,
    %c1_99 = arith.constant 1 : index
    %c2_100 = arith.constant 2 : index
    %c1_101 = arith.constant 1 : index
    %c0_102 = arith.constant 0 : index
    %253 = vector.load %arg11[%c1_99, %c2_100, %c1_101, %c0_102] : memref<2x8x4x32xf32, #tpu.memory_space<vmem>>, vector<1x4x2x32xf32>
    %254 = vector.shape_cast %253 : vector<1x4x2x32xf32> to vector<4x2x32xf32>
    %255 = vector.shape_cast %247 : vector<4x2x32xf32> to vector<1x4x2x32xf32>
    tpu.vector_store %arg11[%c1_99, %c2_100, %c1_101, %c0_102], %255 {strides = array<i32>} : memref<2x8x4x32xf32, #tpu.memory_space<vmem>>, vector<1x4x2x32xf32>,
    %c0_103 = arith.constant 0 : index
    %c0_104 = arith.constant 0 : index
    %c0_105 = arith.constant 0 : index
    %c0_106 = arith.constant 0 : index
    %256 = vector.load %arg11[%c0_103, %c0_104, %c0_105, %c0_106] : memref<2x8x4x32xf32, #tpu.memory_space<vmem>>, vector<2x8x4x32xf32>
    %257 = vector.extract_strided_slice %256 {offsets = [0, 0, 0, 0], sizes = [1, 4, 4, 32], strides = [1, 1, 1, 1]} : vector<2x8x4x32xf32> to vector<1x4x4x32xf32>
    %258 = vector.shape_cast %257 : vector<1x4x4x32xf32> to vector<4x4x32xf32>
    %259 = vector.shape_cast %258 : vector<4x4x32xf32> to vector<2x2x4x32xf32>
    %260 = vector.extract_strided_slice %259 {offsets = [0, 0, 0, 0], sizes = [2, 1, 4, 32], strides = [1, 1, 1, 1]} : vector<2x2x4x32xf32> to vector<2x1x4x32xf32>
    %261 = vector.shape_cast %260 : vector<2x1x4x32xf32> to vector<2x4x32xf32>
    %262 = vector.extract_strided_slice %261 {offsets = [0, 0, 0], sizes = [2, 2, 32], strides = [1, 1, 1]} : vector<2x4x32xf32> to vector<2x2x32xf32>
    %c0_107 = arith.constant 0 : index
    %c0_108 = arith.constant 0 : index
    %c0_109 = arith.constant 0 : index
    %263 = vector.load %arg12[%c0_107, %c0_108, %c0_109] : memref<2x2x800xf32, #tpu.memory_space<vmem>>, vector<2x2x32xf32>
    tpu.vector_store %arg12[%c0_107, %c0_108, %c0_109], %262 {strides = array<i32>} : memref<2x2x800xf32, #tpu.memory_space<vmem>>, vector<2x2x32xf32>,
    %264 = vector.extract_strided_slice %256 {offsets = [1, 0, 0, 0], sizes = [1, 4, 4, 32], strides = [1, 1, 1, 1]} : vector<2x8x4x32xf32> to vector<1x4x4x32xf32>
    %265 = vector.shape_cast %264 : vector<1x4x4x32xf32> to vector<4x4x32xf32>
    %266 = vector.shape_cast %265 : vector<4x4x32xf32> to vector<2x2x4x32xf32>
    %267 = vector.extract_strided_slice %266 {offsets = [0, 0, 0, 0], sizes = [2, 1, 4, 32], strides = [1, 1, 1, 1]} : vector<2x2x4x32xf32> to vector<2x1x4x32xf32>
    %268 = vector.shape_cast %267 : vector<2x1x4x32xf32> to vector<2x4x32xf32>
    %269 = vector.extract_strided_slice %268 {offsets = [0, 0, 0], sizes = [2, 2, 32], strides = [1, 1, 1]} : vector<2x4x32xf32> to vector<2x2x32xf32>
    %c0_110 = arith.constant 0 : index
    %c0_111 = arith.constant 0 : index
    %c32_112 = arith.constant 32 : index
    %270 = vector.load %arg12[%c0_110, %c0_111, %c32_112] : memref<2x2x800xf32, #tpu.memory_space<vmem>>, vector<2x2x32xf32>
    tpu.vector_store %arg12[%c0_110, %c0_111, %c32_112], %269 {strides = array<i32>} : memref<2x2x800xf32, #tpu.memory_space<vmem>>, vector<2x2x32xf32>,
    %271 = vector.extract_strided_slice %256 {offsets = [0, 0, 0, 0], sizes = [1, 4, 4, 32], strides = [1, 1, 1, 1]} : vector<2x8x4x32xf32> to vector<1x4x4x32xf32>
    %272 = vector.shape_cast %271 : vector<1x4x4x32xf32> to vector<4x4x32xf32>
    %273 = vector.shape_cast %272 : vector<4x4x32xf32> to vector<2x2x4x32xf32>
    %274 = vector.extract_strided_slice %273 {offsets = [0, 0, 0, 0], sizes = [2, 1, 4, 32], strides = [1, 1, 1, 1]} : vector<2x2x4x32xf32> to vector<2x1x4x32xf32>
    %275 = vector.shape_cast %274 : vector<2x1x4x32xf32> to vector<2x4x32xf32>
    %276 = vector.extract_strided_slice %275 {offsets = [0, 1, 0], sizes = [2, 2, 32], strides = [1, 1, 1]} : vector<2x4x32xf32> to vector<2x2x32xf32>
    %c0_113 = arith.constant 0 : index
    %c0_114 = arith.constant 0 : index
    %c64_115 = arith.constant 64 : index
    %277 = vector.load %arg12[%c0_113, %c0_114, %c64_115] : memref<2x2x800xf32, #tpu.memory_space<vmem>>, vector<2x2x32xf32>
    tpu.vector_store %arg12[%c0_113, %c0_114, %c64_115], %276 {strides = array<i32>} : memref<2x2x800xf32, #tpu.memory_space<vmem>>, vector<2x2x32xf32>,
    %278 = vector.extract_strided_slice %256 {offsets = [1, 0, 0, 0], sizes = [1, 4, 4, 32], strides = [1, 1, 1, 1]} : vector<2x8x4x32xf32> to vector<1x4x4x32xf32>
    %279 = vector.shape_cast %278 : vector<1x4x4x32xf32> to vector<4x4x32xf32>
    %280 = vector.shape_cast %279 : vector<4x4x32xf32> to vector<2x2x4x32xf32>
    %281 = vector.extract_strided_slice %280 {offsets = [0, 0, 0, 0], sizes = [2, 1, 4, 32], strides = [1, 1, 1, 1]} : vector<2x2x4x32xf32> to vector<2x1x4x32xf32>
    %282 = vector.shape_cast %281 : vector<2x1x4x32xf32> to vector<2x4x32xf32>
    %283 = vector.extract_strided_slice %282 {offsets = [0, 1, 0], sizes = [2, 2, 32], strides = [1, 1, 1]} : vector<2x4x32xf32> to vector<2x2x32xf32>
    %c0_116 = arith.constant 0 : index
    %c0_117 = arith.constant 0 : index
    %c96_118 = arith.constant 96 : index
    %284 = vector.load %arg12[%c0_116, %c0_117, %c96_118] : memref<2x2x800xf32, #tpu.memory_space<vmem>>, vector<2x2x32xf32>
    tpu.vector_store %arg12[%c0_116, %c0_117, %c96_118], %283 {strides = array<i32>} : memref<2x2x800xf32, #tpu.memory_space<vmem>>, vector<2x2x32xf32>,
    %285 = vector.extract_strided_slice %256 {offsets = [0, 0, 0, 0], sizes = [1, 4, 4, 32], strides = [1, 1, 1, 1]} : vector<2x8x4x32xf32> to vector<1x4x4x32xf32>
    %286 = vector.shape_cast %285 : vector<1x4x4x32xf32> to vector<4x4x32xf32>
    %287 = vector.shape_cast %286 : vector<4x4x32xf32> to vector<2x2x4x32xf32>
    %288 = vector.extract_strided_slice %287 {offsets = [0, 0, 0, 0], sizes = [2, 1, 4, 32], strides = [1, 1, 1, 1]} : vector<2x2x4x32xf32> to vector<2x1x4x32xf32>
    %289 = vector.shape_cast %288 : vector<2x1x4x32xf32> to vector<2x4x32xf32>
    %290 = vector.extract_strided_slice %289 {offsets = [0, 2, 0], sizes = [2, 2, 32], strides = [1, 1, 1]} : vector<2x4x32xf32> to vector<2x2x32xf32>
    %c0_119 = arith.constant 0 : index
    %c0_120 = arith.constant 0 : index
    %c128_121 = arith.constant 128 : index
    %291 = vector.load %arg12[%c0_119, %c0_120, %c128_121] : memref<2x2x800xf32, #tpu.memory_space<vmem>>, vector<2x2x32xf32>
    tpu.vector_store %arg12[%c0_119, %c0_120, %c128_121], %290 {strides = array<i32>} : memref<2x2x800xf32, #tpu.memory_space<vmem>>, vector<2x2x32xf32>,
    %292 = vector.extract_strided_slice %256 {offsets = [0, 1, 0, 0], sizes = [1, 4, 4, 32], strides = [1, 1, 1, 1]} : vector<2x8x4x32xf32> to vector<1x4x4x32xf32>
    %293 = vector.shape_cast %292 : vector<1x4x4x32xf32> to vector<4x4x32xf32>
    %294 = vector.shape_cast %293 : vector<4x4x32xf32> to vector<2x2x4x32xf32>
    %295 = vector.extract_strided_slice %294 {offsets = [0, 0, 0, 0], sizes = [2, 1, 4, 32], strides = [1, 1, 1, 1]} : vector<2x2x4x32xf32> to vector<2x1x4x32xf32>
    %296 = vector.shape_cast %295 : vector<2x1x4x32xf32> to vector<2x4x32xf32>
    %297 = vector.extract_strided_slice %296 {offsets = [0, 0, 0], sizes = [2, 2, 32], strides = [1, 1, 1]} : vector<2x4x32xf32> to vector<2x2x32xf32>
    %c0_122 = arith.constant 0 : index
    %c0_123 = arith.constant 0 : index
    %c160_124 = arith.constant 160 : index
    %298 = vector.load %arg12[%c0_122, %c0_123, %c160_124] : memref<2x2x800xf32, #tpu.memory_space<vmem>>, vector<2x2x32xf32>
    tpu.vector_store %arg12[%c0_122, %c0_123, %c160_124], %297 {strides = array<i32>} : memref<2x2x800xf32, #tpu.memory_space<vmem>>, vector<2x2x32xf32>,
    %299 = vector.extract_strided_slice %256 {offsets = [1, 1, 0, 0], sizes = [1, 4, 4, 32], strides = [1, 1, 1, 1]} : vector<2x8x4x32xf32> to vector<1x4x4x32xf32>
    %300 = vector.shape_cast %299 : vector<1x4x4x32xf32> to vector<4x4x32xf32>
    %301 = vector.shape_cast %300 : vector<4x4x32xf32> to vector<2x2x4x32xf32>
    %302 = vector.extract_strided_slice %301 {offsets = [0, 0, 0, 0], sizes = [2, 1, 4, 32], strides = [1, 1, 1, 1]} : vector<2x2x4x32xf32> to vector<2x1x4x32xf32>
    %303 = vector.shape_cast %302 : vector<2x1x4x32xf32> to vector<2x4x32xf32>
    %304 = vector.extract_strided_slice %303 {offsets = [0, 0, 0], sizes = [2, 2, 32], strides = [1, 1, 1]} : vector<2x4x32xf32> to vector<2x2x32xf32>
    %c0_125 = arith.constant 0 : index
    %c0_126 = arith.constant 0 : index
    %c192_127 = arith.constant 192 : index
    %305 = vector.load %arg12[%c0_125, %c0_126, %c192_127] : memref<2x2x800xf32, #tpu.memory_space<vmem>>, vector<2x2x32xf32>
    tpu.vector_store %arg12[%c0_125, %c0_126, %c192_127], %304 {strides = array<i32>} : memref<2x2x800xf32, #tpu.memory_space<vmem>>, vector<2x2x32xf32>,
    %306 = vector.extract_strided_slice %256 {offsets = [0, 1, 0, 0], sizes = [1, 4, 4, 32], strides = [1, 1, 1, 1]} : vector<2x8x4x32xf32> to vector<1x4x4x32xf32>
    %307 = vector.shape_cast %306 : vector<1x4x4x32xf32> to vector<4x4x32xf32>
    %308 = vector.shape_cast %307 : vector<4x4x32xf32> to vector<2x2x4x32xf32>
    %309 = vector.extract_strided_slice %308 {offsets = [0, 0, 0, 0], sizes = [2, 1, 4, 32], strides = [1, 1, 1, 1]} : vector<2x2x4x32xf32> to vector<2x1x4x32xf32>
    %310 = vector.shape_cast %309 : vector<2x1x4x32xf32> to vector<2x4x32xf32>
    %311 = vector.extract_strided_slice %310 {offsets = [0, 1, 0], sizes = [2, 2, 32], strides = [1, 1, 1]} : vector<2x4x32xf32> to vector<2x2x32xf32>
    %c0_128 = arith.constant 0 : index
    %c0_129 = arith.constant 0 : index
    %c224_130 = arith.constant 224 : index
    %312 = vector.load %arg12[%c0_128, %c0_129, %c224_130] : memref<2x2x800xf32, #tpu.memory_space<vmem>>, vector<2x2x32xf32>
    tpu.vector_store %arg12[%c0_128, %c0_129, %c224_130], %311 {strides = array<i32>} : memref<2x2x800xf32, #tpu.memory_space<vmem>>, vector<2x2x32xf32>,
    %313 = vector.extract_strided_slice %256 {offsets = [1, 1, 0, 0], sizes = [1, 4, 4, 32], strides = [1, 1, 1, 1]} : vector<2x8x4x32xf32> to vector<1x4x4x32xf32>
    %314 = vector.shape_cast %313 : vector<1x4x4x32xf32> to vector<4x4x32xf32>
    %315 = vector.shape_cast %314 : vector<4x4x32xf32> to vector<2x2x4x32xf32>
    %316 = vector.extract_strided_slice %315 {offsets = [0, 0, 0, 0], sizes = [2, 1, 4, 32], strides = [1, 1, 1, 1]} : vector<2x2x4x32xf32> to vector<2x1x4x32xf32>
    %317 = vector.shape_cast %316 : vector<2x1x4x32xf32> to vector<2x4x32xf32>
    %318 = vector.extract_strided_slice %317 {offsets = [0, 1, 0], sizes = [2, 2, 32], strides = [1, 1, 1]} : vector<2x4x32xf32> to vector<2x2x32xf32>
    %c0_131 = arith.constant 0 : index
    %c0_132 = arith.constant 0 : index
    %c256_133 = arith.constant 256 : index
    %319 = vector.load %arg12[%c0_131, %c0_132, %c256_133] : memref<2x2x800xf32, #tpu.memory_space<vmem>>, vector<2x2x32xf32>
    tpu.vector_store %arg12[%c0_131, %c0_132, %c256_133], %318 {strides = array<i32>} : memref<2x2x800xf32, #tpu.memory_space<vmem>>, vector<2x2x32xf32>,
    %320 = vector.extract_strided_slice %256 {offsets = [0, 1, 0, 0], sizes = [1, 4, 4, 32], strides = [1, 1, 1, 1]} : vector<2x8x4x32xf32> to vector<1x4x4x32xf32>
    %321 = vector.shape_cast %320 : vector<1x4x4x32xf32> to vector<4x4x32xf32>
    %322 = vector.shape_cast %321 : vector<4x4x32xf32> to vector<2x2x4x32xf32>
    %323 = vector.extract_strided_slice %322 {offsets = [0, 0, 0, 0], sizes = [2, 1, 4, 32], strides = [1, 1, 1, 1]} : vector<2x2x4x32xf32> to vector<2x1x4x32xf32>
    %324 = vector.shape_cast %323 : vector<2x1x4x32xf32> to vector<2x4x32xf32>
    %325 = vector.extract_strided_slice %324 {offsets = [0, 2, 0], sizes = [2, 2, 32], strides = [1, 1, 1]} : vector<2x4x32xf32> to vector<2x2x32xf32>
    %c0_134 = arith.constant 0 : index
    %c0_135 = arith.constant 0 : index
    %c288_136 = arith.constant 288 : index
    %326 = vector.load %arg12[%c0_134, %c0_135, %c288_136] : memref<2x2x800xf32, #tpu.memory_space<vmem>>, vector<2x2x32xf32>
    tpu.vector_store %arg12[%c0_134, %c0_135, %c288_136], %325 {strides = array<i32>} : memref<2x2x800xf32, #tpu.memory_space<vmem>>, vector<2x2x32xf32>,
    %327 = vector.extract_strided_slice %256 {offsets = [0, 2, 0, 0], sizes = [1, 4, 4, 32], strides = [1, 1, 1, 1]} : vector<2x8x4x32xf32> to vector<1x4x4x32xf32>
    %328 = vector.shape_cast %327 : vector<1x4x4x32xf32> to vector<4x4x32xf32>
    %329 = vector.shape_cast %328 : vector<4x4x32xf32> to vector<2x2x4x32xf32>
    %330 = vector.extract_strided_slice %329 {offsets = [0, 0, 0, 0], sizes = [2, 1, 4, 32], strides = [1, 1, 1, 1]} : vector<2x2x4x32xf32> to vector<2x1x4x32xf32>
    %331 = vector.shape_cast %330 : vector<2x1x4x32xf32> to vector<2x4x32xf32>
    %332 = vector.extract_strided_slice %331 {offsets = [0, 0, 0], sizes = [2, 2, 32], strides = [1, 1, 1]} : vector<2x4x32xf32> to vector<2x2x32xf32>
    %c0_137 = arith.constant 0 : index
    %c0_138 = arith.constant 0 : index
    %c320_139 = arith.constant 320 : index
    %333 = vector.load %arg12[%c0_137, %c0_138, %c320_139] : memref<2x2x800xf32, #tpu.memory_space<vmem>>, vector<2x2x32xf32>
    tpu.vector_store %arg12[%c0_137, %c0_138, %c320_139], %332 {strides = array<i32>} : memref<2x2x800xf32, #tpu.memory_space<vmem>>, vector<2x2x32xf32>,
    %334 = vector.extract_strided_slice %256 {offsets = [1, 2, 0, 0], sizes = [1, 4, 4, 32], strides = [1, 1, 1, 1]} : vector<2x8x4x32xf32> to vector<1x4x4x32xf32>
    %335 = vector.shape_cast %334 : vector<1x4x4x32xf32> to vector<4x4x32xf32>
    %336 = vector.shape_cast %335 : vector<4x4x32xf32> to vector<2x2x4x32xf32>
    %337 = vector.extract_strided_slice %336 {offsets = [0, 0, 0, 0], sizes = [2, 1, 4, 32], strides = [1, 1, 1, 1]} : vector<2x2x4x32xf32> to vector<2x1x4x32xf32>
    %338 = vector.shape_cast %337 : vector<2x1x4x32xf32> to vector<2x4x32xf32>
    %339 = vector.extract_strided_slice %338 {offsets = [0, 0, 0], sizes = [2, 2, 32], strides = [1, 1, 1]} : vector<2x4x32xf32> to vector<2x2x32xf32>
    %c0_140 = arith.constant 0 : index
    %c0_141 = arith.constant 0 : index
    %c352_142 = arith.constant 352 : index
    %340 = vector.load %arg12[%c0_140, %c0_141, %c352_142] : memref<2x2x800xf32, #tpu.memory_space<vmem>>, vector<2x2x32xf32>
    tpu.vector_store %arg12[%c0_140, %c0_141, %c352_142], %339 {strides = array<i32>} : memref<2x2x800xf32, #tpu.memory_space<vmem>>, vector<2x2x32xf32>,
    %341 = vector.extract_strided_slice %256 {offsets = [0, 2, 0, 0], sizes = [1, 4, 4, 32], strides = [1, 1, 1, 1]} : vector<2x8x4x32xf32> to vector<1x4x4x32xf32>
    %342 = vector.shape_cast %341 : vector<1x4x4x32xf32> to vector<4x4x32xf32>
    %343 = vector.shape_cast %342 : vector<4x4x32xf32> to vector<2x2x4x32xf32>
    %344 = vector.extract_strided_slice %343 {offsets = [0, 0, 0, 0], sizes = [2, 1, 4, 32], strides = [1, 1, 1, 1]} : vector<2x2x4x32xf32> to vector<2x1x4x32xf32>
    %345 = vector.shape_cast %344 : vector<2x1x4x32xf32> to vector<2x4x32xf32>
    %346 = vector.extract_strided_slice %345 {offsets = [0, 1, 0], sizes = [2, 2, 32], strides = [1, 1, 1]} : vector<2x4x32xf32> to vector<2x2x32xf32>
    %c0_143 = arith.constant 0 : index
    %c0_144 = arith.constant 0 : index
    %c384_145 = arith.constant 384 : index
    %347 = vector.load %arg12[%c0_143, %c0_144, %c384_145] : memref<2x2x800xf32, #tpu.memory_space<vmem>>, vector<2x2x32xf32>
    tpu.vector_store %arg12[%c0_143, %c0_144, %c384_145], %346 {strides = array<i32>} : memref<2x2x800xf32, #tpu.memory_space<vmem>>, vector<2x2x32xf32>,
    %348 = vector.extract_strided_slice %256 {offsets = [1, 2, 0, 0], sizes = [1, 4, 4, 32], strides = [1, 1, 1, 1]} : vector<2x8x4x32xf32> to vector<1x4x4x32xf32>
    %349 = vector.shape_cast %348 : vector<1x4x4x32xf32> to vector<4x4x32xf32>
    %350 = vector.shape_cast %349 : vector<4x4x32xf32> to vector<2x2x4x32xf32>
    %351 = vector.extract_strided_slice %350 {offsets = [0, 0, 0, 0], sizes = [2, 1, 4, 32], strides = [1, 1, 1, 1]} : vector<2x2x4x32xf32> to vector<2x1x4x32xf32>
    %352 = vector.shape_cast %351 : vector<2x1x4x32xf32> to vector<2x4x32xf32>
    %353 = vector.extract_strided_slice %352 {offsets = [0, 1, 0], sizes = [2, 2, 32], strides = [1, 1, 1]} : vector<2x4x32xf32> to vector<2x2x32xf32>
    %c0_146 = arith.constant 0 : index
    %c0_147 = arith.constant 0 : index
    %c416 = arith.constant 416 : index
    %354 = vector.load %arg12[%c0_146, %c0_147, %c416] : memref<2x2x800xf32, #tpu.memory_space<vmem>>, vector<2x2x32xf32>
    tpu.vector_store %arg12[%c0_146, %c0_147, %c416], %353 {strides = array<i32>} : memref<2x2x800xf32, #tpu.memory_space<vmem>>, vector<2x2x32xf32>,
    %355 = vector.extract_strided_slice %256 {offsets = [0, 2, 0, 0], sizes = [1, 4, 4, 32], strides = [1, 1, 1, 1]} : vector<2x8x4x32xf32> to vector<1x4x4x32xf32>
    %356 = vector.shape_cast %355 : vector<1x4x4x32xf32> to vector<4x4x32xf32>
    %357 = vector.shape_cast %356 : vector<4x4x32xf32> to vector<2x2x4x32xf32>
    %358 = vector.extract_strided_slice %357 {offsets = [0, 0, 0, 0], sizes = [2, 1, 4, 32], strides = [1, 1, 1, 1]} : vector<2x2x4x32xf32> to vector<2x1x4x32xf32>
    %359 = vector.shape_cast %358 : vector<2x1x4x32xf32> to vector<2x4x32xf32>
    %360 = vector.extract_strided_slice %359 {offsets = [0, 2, 0], sizes = [2, 2, 32], strides = [1, 1, 1]} : vector<2x4x32xf32> to vector<2x2x32xf32>
    %c0_148 = arith.constant 0 : index
    %c0_149 = arith.constant 0 : index
    %c448 = arith.constant 448 : index
    %361 = vector.load %arg12[%c0_148, %c0_149, %c448] : memref<2x2x800xf32, #tpu.memory_space<vmem>>, vector<2x2x32xf32>
    tpu.vector_store %arg12[%c0_148, %c0_149, %c448], %360 {strides = array<i32>} : memref<2x2x800xf32, #tpu.memory_space<vmem>>, vector<2x2x32xf32>,
    %362 = vector.extract_strided_slice %256 {offsets = [0, 3, 0, 0], sizes = [1, 4, 4, 32], strides = [1, 1, 1, 1]} : vector<2x8x4x32xf32> to vector<1x4x4x32xf32>
    %363 = vector.shape_cast %362 : vector<1x4x4x32xf32> to vector<4x4x32xf32>
    %364 = vector.shape_cast %363 : vector<4x4x32xf32> to vector<2x2x4x32xf32>
    %365 = vector.extract_strided_slice %364 {offsets = [0, 0, 0, 0], sizes = [2, 1, 4, 32], strides = [1, 1, 1, 1]} : vector<2x2x4x32xf32> to vector<2x1x4x32xf32>
    %366 = vector.shape_cast %365 : vector<2x1x4x32xf32> to vector<2x4x32xf32>
    %367 = vector.extract_strided_slice %366 {offsets = [0, 0, 0], sizes = [2, 2, 32], strides = [1, 1, 1]} : vector<2x4x32xf32> to vector<2x2x32xf32>
    %c0_150 = arith.constant 0 : index
    %c0_151 = arith.constant 0 : index
    %c480 = arith.constant 480 : index
    %368 = vector.load %arg12[%c0_150, %c0_151, %c480] : memref<2x2x800xf32, #tpu.memory_space<vmem>>, vector<2x2x32xf32>
    tpu.vector_store %arg12[%c0_150, %c0_151, %c480], %367 {strides = array<i32>} : memref<2x2x800xf32, #tpu.memory_space<vmem>>, vector<2x2x32xf32>,
    %369 = vector.extract_strided_slice %256 {offsets = [1, 3, 0, 0], sizes = [1, 4, 4, 32], strides = [1, 1, 1, 1]} : vector<2x8x4x32xf32> to vector<1x4x4x32xf32>
    %370 = vector.shape_cast %369 : vector<1x4x4x32xf32> to vector<4x4x32xf32>
    %371 = vector.shape_cast %370 : vector<4x4x32xf32> to vector<2x2x4x32xf32>
    %372 = vector.extract_strided_slice %371 {offsets = [0, 0, 0, 0], sizes = [2, 1, 4, 32], strides = [1, 1, 1, 1]} : vector<2x2x4x32xf32> to vector<2x1x4x32xf32>
    %373 = vector.shape_cast %372 : vector<2x1x4x32xf32> to vector<2x4x32xf32>
    %374 = vector.extract_strided_slice %373 {offsets = [0, 0, 0], sizes = [2, 2, 32], strides = [1, 1, 1]} : vector<2x4x32xf32> to vector<2x2x32xf32>
    %c0_152 = arith.constant 0 : index
    %c0_153 = arith.constant 0 : index
    %c512 = arith.constant 512 : index
    %375 = vector.load %arg12[%c0_152, %c0_153, %c512] : memref<2x2x800xf32, #tpu.memory_space<vmem>>, vector<2x2x32xf32>
    tpu.vector_store %arg12[%c0_152, %c0_153, %c512], %374 {strides = array<i32>} : memref<2x2x800xf32, #tpu.memory_space<vmem>>, vector<2x2x32xf32>,
    %376 = vector.extract_strided_slice %256 {offsets = [0, 3, 0, 0], sizes = [1, 4, 4, 32], strides = [1, 1, 1, 1]} : vector<2x8x4x32xf32> to vector<1x4x4x32xf32>
    %377 = vector.shape_cast %376 : vector<1x4x4x32xf32> to vector<4x4x32xf32>
    %378 = vector.shape_cast %377 : vector<4x4x32xf32> to vector<2x2x4x32xf32>
    %379 = vector.extract_strided_slice %378 {offsets = [0, 0, 0, 0], sizes = [2, 1, 4, 32], strides = [1, 1, 1, 1]} : vector<2x2x4x32xf32> to vector<2x1x4x32xf32>
    %380 = vector.shape_cast %379 : vector<2x1x4x32xf32> to vector<2x4x32xf32>
    %381 = vector.extract_strided_slice %380 {offsets = [0, 1, 0], sizes = [2, 2, 32], strides = [1, 1, 1]} : vector<2x4x32xf32> to vector<2x2x32xf32>
    %c0_154 = arith.constant 0 : index
    %c0_155 = arith.constant 0 : index
    %c544 = arith.constant 544 : index
    %382 = vector.load %arg12[%c0_154, %c0_155, %c544] : memref<2x2x800xf32, #tpu.memory_space<vmem>>, vector<2x2x32xf32>
    tpu.vector_store %arg12[%c0_154, %c0_155, %c544], %381 {strides = array<i32>} : memref<2x2x800xf32, #tpu.memory_space<vmem>>, vector<2x2x32xf32>,
    %383 = vector.extract_strided_slice %256 {offsets = [1, 3, 0, 0], sizes = [1, 4, 4, 32], strides = [1, 1, 1, 1]} : vector<2x8x4x32xf32> to vector<1x4x4x32xf32>
    %384 = vector.shape_cast %383 : vector<1x4x4x32xf32> to vector<4x4x32xf32>
    %385 = vector.shape_cast %384 : vector<4x4x32xf32> to vector<2x2x4x32xf32>
    %386 = vector.extract_strided_slice %385 {offsets = [0, 0, 0, 0], sizes = [2, 1, 4, 32], strides = [1, 1, 1, 1]} : vector<2x2x4x32xf32> to vector<2x1x4x32xf32>
    %387 = vector.shape_cast %386 : vector<2x1x4x32xf32> to vector<2x4x32xf32>
    %388 = vector.extract_strided_slice %387 {offsets = [0, 1, 0], sizes = [2, 2, 32], strides = [1, 1, 1]} : vector<2x4x32xf32> to vector<2x2x32xf32>
    %c0_156 = arith.constant 0 : index
    %c0_157 = arith.constant 0 : index
    %c576 = arith.constant 576 : index
    %389 = vector.load %arg12[%c0_156, %c0_157, %c576] : memref<2x2x800xf32, #tpu.memory_space<vmem>>, vector<2x2x32xf32>
    tpu.vector_store %arg12[%c0_156, %c0_157, %c576], %388 {strides = array<i32>} : memref<2x2x800xf32, #tpu.memory_space<vmem>>, vector<2x2x32xf32>,
    %390 = vector.extract_strided_slice %256 {offsets = [0, 3, 0, 0], sizes = [1, 4, 4, 32], strides = [1, 1, 1, 1]} : vector<2x8x4x32xf32> to vector<1x4x4x32xf32>
    %391 = vector.shape_cast %390 : vector<1x4x4x32xf32> to vector<4x4x32xf32>
    %392 = vector.shape_cast %391 : vector<4x4x32xf32> to vector<2x2x4x32xf32>
    %393 = vector.extract_strided_slice %392 {offsets = [0, 0, 0, 0], sizes = [2, 1, 4, 32], strides = [1, 1, 1, 1]} : vector<2x2x4x32xf32> to vector<2x1x4x32xf32>
    %394 = vector.shape_cast %393 : vector<2x1x4x32xf32> to vector<2x4x32xf32>
    %395 = vector.extract_strided_slice %394 {offsets = [0, 2, 0], sizes = [2, 2, 32], strides = [1, 1, 1]} : vector<2x4x32xf32> to vector<2x2x32xf32>
    %c0_158 = arith.constant 0 : index
    %c0_159 = arith.constant 0 : index
    %c608 = arith.constant 608 : index
    %396 = vector.load %arg12[%c0_158, %c0_159, %c608] : memref<2x2x800xf32, #tpu.memory_space<vmem>>, vector<2x2x32xf32>
    tpu.vector_store %arg12[%c0_158, %c0_159, %c608], %395 {strides = array<i32>} : memref<2x2x800xf32, #tpu.memory_space<vmem>>, vector<2x2x32xf32>,
    %397 = vector.extract_strided_slice %256 {offsets = [0, 4, 0, 0], sizes = [1, 4, 4, 32], strides = [1, 1, 1, 1]} : vector<2x8x4x32xf32> to vector<1x4x4x32xf32>
    %398 = vector.shape_cast %397 : vector<1x4x4x32xf32> to vector<4x4x32xf32>
    %399 = vector.shape_cast %398 : vector<4x4x32xf32> to vector<2x2x4x32xf32>
    %400 = vector.extract_strided_slice %399 {offsets = [0, 0, 0, 0], sizes = [2, 1, 4, 32], strides = [1, 1, 1, 1]} : vector<2x2x4x32xf32> to vector<2x1x4x32xf32>
    %401 = vector.shape_cast %400 : vector<2x1x4x32xf32> to vector<2x4x32xf32>
    %402 = vector.extract_strided_slice %401 {offsets = [0, 0, 0], sizes = [2, 2, 32], strides = [1, 1, 1]} : vector<2x4x32xf32> to vector<2x2x32xf32>
    %c0_160 = arith.constant 0 : index
    %c0_161 = arith.constant 0 : index
    %c640 = arith.constant 640 : index
    %403 = vector.load %arg12[%c0_160, %c0_161, %c640] : memref<2x2x800xf32, #tpu.memory_space<vmem>>, vector<2x2x32xf32>
    tpu.vector_store %arg12[%c0_160, %c0_161, %c640], %402 {strides = array<i32>} : memref<2x2x800xf32, #tpu.memory_space<vmem>>, vector<2x2x32xf32>,
    %404 = vector.extract_strided_slice %256 {offsets = [1, 4, 0, 0], sizes = [1, 4, 4, 32], strides = [1, 1, 1, 1]} : vector<2x8x4x32xf32> to vector<1x4x4x32xf32>
    %405 = vector.shape_cast %404 : vector<1x4x4x32xf32> to vector<4x4x32xf32>
    %406 = vector.shape_cast %405 : vector<4x4x32xf32> to vector<2x2x4x32xf32>
    %407 = vector.extract_strided_slice %406 {offsets = [0, 0, 0, 0], sizes = [2, 1, 4, 32], strides = [1, 1, 1, 1]} : vector<2x2x4x32xf32> to vector<2x1x4x32xf32>
    %408 = vector.shape_cast %407 : vector<2x1x4x32xf32> to vector<2x4x32xf32>
    %409 = vector.extract_strided_slice %408 {offsets = [0, 0, 0], sizes = [2, 2, 32], strides = [1, 1, 1]} : vector<2x4x32xf32> to vector<2x2x32xf32>
    %c0_162 = arith.constant 0 : index
    %c0_163 = arith.constant 0 : index
    %c672 = arith.constant 672 : index
    %410 = vector.load %arg12[%c0_162, %c0_163, %c672] : memref<2x2x800xf32, #tpu.memory_space<vmem>>, vector<2x2x32xf32>
    tpu.vector_store %arg12[%c0_162, %c0_163, %c672], %409 {strides = array<i32>} : memref<2x2x800xf32, #tpu.memory_space<vmem>>, vector<2x2x32xf32>,
    %411 = vector.extract_strided_slice %256 {offsets = [0, 4, 0, 0], sizes = [1, 4, 4, 32], strides = [1, 1, 1, 1]} : vector<2x8x4x32xf32> to vector<1x4x4x32xf32>
    %412 = vector.shape_cast %411 : vector<1x4x4x32xf32> to vector<4x4x32xf32>
    %413 = vector.shape_cast %412 : vector<4x4x32xf32> to vector<2x2x4x32xf32>
    %414 = vector.extract_strided_slice %413 {offsets = [0, 0, 0, 0], sizes = [2, 1, 4, 32], strides = [1, 1, 1, 1]} : vector<2x2x4x32xf32> to vector<2x1x4x32xf32>
    %415 = vector.shape_cast %414 : vector<2x1x4x32xf32> to vector<2x4x32xf32>
    %416 = vector.extract_strided_slice %415 {offsets = [0, 1, 0], sizes = [2, 2, 32], strides = [1, 1, 1]} : vector<2x4x32xf32> to vector<2x2x32xf32>
    %c0_164 = arith.constant 0 : index
    %c0_165 = arith.constant 0 : index
    %c704 = arith.constant 704 : index
    %417 = vector.load %arg12[%c0_164, %c0_165, %c704] : memref<2x2x800xf32, #tpu.memory_space<vmem>>, vector<2x2x32xf32>
    tpu.vector_store %arg12[%c0_164, %c0_165, %c704], %416 {strides = array<i32>} : memref<2x2x800xf32, #tpu.memory_space<vmem>>, vector<2x2x32xf32>,
    %418 = vector.extract_strided_slice %256 {offsets = [1, 4, 0, 0], sizes = [1, 4, 4, 32], strides = [1, 1, 1, 1]} : vector<2x8x4x32xf32> to vector<1x4x4x32xf32>
    %419 = vector.shape_cast %418 : vector<1x4x4x32xf32> to vector<4x4x32xf32>
    %420 = vector.shape_cast %419 : vector<4x4x32xf32> to vector<2x2x4x32xf32>
    %421 = vector.extract_strided_slice %420 {offsets = [0, 0, 0, 0], sizes = [2, 1, 4, 32], strides = [1, 1, 1, 1]} : vector<2x2x4x32xf32> to vector<2x1x4x32xf32>
    %422 = vector.shape_cast %421 : vector<2x1x4x32xf32> to vector<2x4x32xf32>
    %423 = vector.extract_strided_slice %422 {offsets = [0, 1, 0], sizes = [2, 2, 32], strides = [1, 1, 1]} : vector<2x4x32xf32> to vector<2x2x32xf32>
    %c0_166 = arith.constant 0 : index
    %c0_167 = arith.constant 0 : index
    %c736 = arith.constant 736 : index
    %424 = vector.load %arg12[%c0_166, %c0_167, %c736] : memref<2x2x800xf32, #tpu.memory_space<vmem>>, vector<2x2x32xf32>
    tpu.vector_store %arg12[%c0_166, %c0_167, %c736], %423 {strides = array<i32>} : memref<2x2x800xf32, #tpu.memory_space<vmem>>, vector<2x2x32xf32>,
    %425 = vector.extract_strided_slice %256 {offsets = [0, 4, 0, 0], sizes = [1, 4, 4, 32], strides = [1, 1, 1, 1]} : vector<2x8x4x32xf32> to vector<1x4x4x32xf32>
    %426 = vector.shape_cast %425 : vector<1x4x4x32xf32> to vector<4x4x32xf32>
    %427 = vector.shape_cast %426 : vector<4x4x32xf32> to vector<2x2x4x32xf32>
    %428 = vector.extract_strided_slice %427 {offsets = [0, 0, 0, 0], sizes = [2, 1, 4, 32], strides = [1, 1, 1, 1]} : vector<2x2x4x32xf32> to vector<2x1x4x32xf32>
    %429 = vector.shape_cast %428 : vector<2x1x4x32xf32> to vector<2x4x32xf32>
    %430 = vector.extract_strided_slice %429 {offsets = [0, 2, 0], sizes = [2, 2, 32], strides = [1, 1, 1]} : vector<2x4x32xf32> to vector<2x2x32xf32>
    %c0_168 = arith.constant 0 : index
    %c0_169 = arith.constant 0 : index
    %c768 = arith.constant 768 : index
    %431 = vector.load %arg12[%c0_168, %c0_169, %c768] : memref<2x2x800xf32, #tpu.memory_space<vmem>>, vector<2x2x32xf32>
    tpu.vector_store %arg12[%c0_168, %c0_169, %c768], %430 {strides = array<i32>} : memref<2x2x800xf32, #tpu.memory_space<vmem>>, vector<2x2x32xf32>,
    %c0_170 = arith.constant 0 : index
    %c0_171 = arith.constant 0 : index
    %c0_172 = arith.constant 0 : index
    %432 = vector.load %arg12[%c0_170, %c0_171, %c0_172] : memref<2x2x800xf32, #tpu.memory_space<vmem>>, vector<2x2x800xf32>
    %433 = vector.shape_cast %432 : vector<2x2x800xf32> to vector<4x800xf32>
    %c0_173 = arith.constant 0 : index
    %c0_174 = arith.constant 0 : index
    %434 = vector.load %arg4[%c0_173, %c0_174] : memref<800x64xf32, #tpu.memory_space<vmem>>, vector<800x64xf32>
    %cst_175 = arith.constant dense<0.000000e+00> : vector<4x64xf32>
    %435 = tpu.matmul %433, %434, %cst_175 {dimension_numbers = #tpu.dot_dimension_numbers<[1], [0], [0], [1], [0, 0, 1, 1], [], []>} : vector<4x800xf32>, vector<800x64xf32>, vector<4x64xf32> -> vector<4x64xf32>
    %c0_176 = arith.constant 0 : index
    %c0_177 = arith.constant 0 : index
    %436 = vector.load %arg7[%c0_176, %c0_177] : memref<3x64xf32, #tpu.memory_space<vmem>>, vector<1x64xf32>
    %437 = vector.broadcast %436 : vector<1x64xf32> to vector<4x64xf32>
    %438 = arith.addf %435, %437 : vector<4x64xf32>
    %cst_178 = arith.constant 0.000000e+00 : f32
    %439 = vector.broadcast %cst_178 : f32 to vector<4x64xf32>
    %440 = arith.maximumf %438, %439 : vector<4x64xf32>
    %c1_179 = arith.constant 1 : index
    %c0_180 = arith.constant 0 : index
    %441 = vector.load %arg7[%c1_179, %c0_180] : memref<3x64xf32, #tpu.memory_space<vmem>>, vector<1x64xf32>
    %442 = vector.broadcast %441 : vector<1x64xf32> to vector<4x64xf32>
    %443 = arith.mulf %440, %442 : vector<4x64xf32>
    %c2_181 = arith.constant 2 : index
    %c0_182 = arith.constant 0 : index
    %444 = vector.load %arg7[%c2_181, %c0_182] : memref<3x64xf32, #tpu.memory_space<vmem>>, vector<1x64xf32>
    %445 = vector.broadcast %444 : vector<1x64xf32> to vector<4x64xf32>
    %446 = arith.addf %443, %445 : vector<4x64xf32>
    %447 = vector.shape_cast %446 : vector<4x64xf32> to vector<1x2x2x64xf32>
    %448 = vector.extract_strided_slice %447 {offsets = [0, 0, 0, 0], sizes = [1, 1, 2, 64], strides = [1, 1, 1, 1]} : vector<1x2x2x64xf32> to vector<1x1x2x64xf32>
    %449 = vector.shape_cast %448 : vector<1x1x2x64xf32> to vector<1x2x64xf32>
    %450 = vector.extract_strided_slice %447 {offsets = [0, 1, 0, 0], sizes = [1, 1, 2, 64], strides = [1, 1, 1, 1]} : vector<1x2x2x64xf32> to vector<1x1x2x64xf32>
    %451 = vector.shape_cast %450 : vector<1x1x2x64xf32> to vector<1x2x64xf32>
    %452 = arith.maximumf %449, %451 : vector<1x2x64xf32>
    %453 = vector.shape_cast %452 : vector<1x2x64xf32> to vector<1x1x2x64xf32>
    %454 = vector.extract_strided_slice %453 {offsets = [0, 0, 0, 0], sizes = [1, 1, 1, 64], strides = [1, 1, 1, 1]} : vector<1x1x2x64xf32> to vector<1x1x1x64xf32>
    %455 = vector.shape_cast %454 : vector<1x1x1x64xf32> to vector<1x1x64xf32>
    %456 = vector.extract_strided_slice %453 {offsets = [0, 0, 1, 0], sizes = [1, 1, 1, 64], strides = [1, 1, 1, 1]} : vector<1x1x2x64xf32> to vector<1x1x1x64xf32>
    %457 = vector.shape_cast %456 : vector<1x1x1x64xf32> to vector<1x1x64xf32>
    %458 = arith.maximumf %455, %457 : vector<1x1x64xf32>
    %c0_183 = arith.constant 0 : index
    %c0_184 = arith.constant 0 : index
    %c0_185 = arith.constant 0 : index
    %c0_186 = arith.constant 0 : index
    %459 = vector.load %arg8[%c0_183, %c0_184, %c0_185, %c0_186] : memref<1x1x1x64xf32, #tpu.memory_space<vmem>>, vector<1x1x1x64xf32>
    %460 = vector.shape_cast %459 : vector<1x1x1x64xf32> to vector<1x1x64xf32>
    %461 = vector.shape_cast %458 : vector<1x1x64xf32> to vector<1x1x1x64xf32>
    tpu.vector_store %arg8[%c0_183, %c0_184, %c0_185, %c0_186], %461 {strides = array<i32>} : memref<1x1x1x64xf32, #tpu.memory_space<vmem>>, vector<1x1x1x64xf32>,
    return
  }
  func.func @transform_0(%arg0: i32) -> (i32, i32, i32) {
    %c0_i32 = arith.constant 0 : i32
    %c0_i32_0 = arith.constant 0 : i32
    %c0_i32_1 = arith.constant 0 : i32
    return %arg0, %c0_i32, %c0_i32_0 : i32, i32, i32
  }
  func.func @transform_1(%arg0: i32) -> (i32, i32) {
    %c0_i32 = arith.constant 0 : i32
    %c0_i32_0 = arith.constant 0 : i32
    %c0_i32_1 = arith.constant 0 : i32
    return %c0_i32, %c0_i32_0 : i32, i32
  }
  func.func @transform_2(%arg0: i32) -> (i32, i32) {
    %c0_i32 = arith.constant 0 : i32
    %c0_i32_0 = arith.constant 0 : i32
    %c0_i32_1 = arith.constant 0 : i32
    return %c0_i32, %c0_i32_0 : i32, i32
  }
  func.func @transform_3(%arg0: i32) -> (i32, i32) {
    %c0_i32 = arith.constant 0 : i32
    %c0_i32_0 = arith.constant 0 : i32
    %c0_i32_1 = arith.constant 0 : i32
    return %c0_i32, %c0_i32_0 : i32, i32
  }
  func.func @transform_4(%arg0: i32) -> (i32, i32) {
    %c0_i32 = arith.constant 0 : i32
    %c0_i32_0 = arith.constant 0 : i32
    %c0_i32_1 = arith.constant 0 : i32
    return %c0_i32, %c0_i32_0 : i32, i32
  }
  func.func @transform_5(%arg0: i32) -> (i32, i32) {
    %c0_i32 = arith.constant 0 : i32
    %c0_i32_0 = arith.constant 0 : i32
    %c0_i32_1 = arith.constant 0 : i32
    return %c0_i32, %c0_i32_0 : i32, i32
  }
  func.func @transform_6(%arg0: i32) -> (i32, i32) {
    %c0_i32 = arith.constant 0 : i32
    %c0_i32_0 = arith.constant 0 : i32
    %c0_i32_1 = arith.constant 0 : i32
    return %c0_i32, %c0_i32_0 : i32, i32
  }
  func.func @transform_7(%arg0: i32) -> (i32, i32, i32, i32) {
    %c0_i32 = arith.constant 0 : i32
    %c0_i32_0 = arith.constant 0 : i32
    %c0_i32_1 = arith.constant 0 : i32
    %c0_i32_2 = arith.constant 0 : i32
    return %arg0, %c0_i32, %c0_i32_0, %c0_i32_1 : i32, i32, i32, i32
  }
}

</mosaic_0001>

<bundles_post_ra>
// kernel: cnn_forward.1
= control target key start
LH: loop header
LB: loop body
LE: loop exit
PB: predicated region body
PF: predicated region fallthrough
CT: control target
= control target key end

     0   :  { %12 = vsyncpa [#allocation7], 0  ;;  %s10703_s0 = inlined_call_operand.vmem [shape: f32[2,1024,128], index: 0, kind: input, shape index: {}]   ;;  %s10704_s1 = inlined_call_operand.vmem [shape: f32[128,16], index: 1, kind: input, shape index: {}]   ;;  %s10705_s2 = inlined_call_operand.vmem [shape: f32[400,32], index: 2, kind: input, shape index: {}]   ;;  %s10706_s3 = inlined_call_operand.vmem [shape: f32[800,64], index: 3, kind: input, shape index: {}]   ;;  %s10707_s4 = inlined_call_operand.vmem [shape: f32[3,16], index: 4, kind: input, shape index: {}]   ;;  %s10708_s5 = inlined_call_operand.vmem [shape: f32[3,32], index: 5, kind: input, shape index: {}]   ;;  %s10709_s6 = inlined_call_operand.vmem [shape: f32[3,64], index: 6, kind: input, shape index: {}]   ;;  %s10710_s7 = inlined_call_operand.hbm [shape: f32[2,1,1,64], index: 7, kind: output, shape index: {}]  }
   0x1   :  { %14 = vsyncpa [#allocation7 + $0x1], 0  ;;  %s7261_s24 = smov 0   ;;  %s7263_s25 = smov 0  }
   0x2   :  { %s7265_s26 = smov 0   ;;  %s7267_s27 = smov 0  }
   0x3 LB: > { %s7282_s28 = sadd.s32 4294967295, %s7208_s27   ;;  %s6318_s29 = sadd.s32 4294967294, %s7208_s27   ;;  %s7208_s27 = sphi %s7267_s27, %s10846_s27   ;;  %s7204_s26 = sphi %s7265_s26, %s10845_s26   ;;  %s7200_s25 = sphi %s7263_s25, %s10844_s25   ;;  %s7196_s24 = sphi %s7261_s24, %s10843_s24  }
   0x4   : > { %s7286_s30 = sadd.s32 1, %s7208_s27   ;;  %s179_s8 = sadd.s32 1, %s7204_s26 }
   0x5   : > { %s176_s9 = ssub.s32 %s7208_s27, %s7286_s30  ;;  %p189_p0 = scmp.ne.s32.totalorder %s7204_s26, %s7200_s25 }
   0x6   : > { %p177_p1 = scmp.eq.s32.totalorder %s176_s9, 0  ;;  %p190_p2 = scmp.eq.s32.totalorder %s7282_s28, 1 }
   0x7   : > { %p195_p3 = scmp.ne.s32.totalorder %s7200_s25, %s7196_s24  ;;  %p196_p4 = scmp.eq.s32.totalorder %s6318_s29, 1 }
   0x8   : > { %s7297_s10 = scalar_select %p177_p1, %s7204_s26, %s179_s8  }
   0x9   : > { %p7299_p5 = por %p190_p2, %p189_p0  ;;  %p7303_p6 = por %p196_p4, %p195_p3 }
   0xa   : > { %p6321_p7 = scmp.ge.s32.totalorder %s7208_s27, 1  ;;  %p240_p8 = scmp.lt.s32.totalorder %s7208_s27, 3 }
   0xc   : > { %p241_p9 = pnand %p6321_p7, %p240_p8 }
   0xe   : > { %244 = sbr.rel (%p241_p9) target bundleno = 1547 (0x60b), region = 48 }
  0x13   : > { %v419_v0 = vld [vmem:[%s10704_s1 + $0x78] sm:$0xff]  ;;  %v418_v1 = vld [vmem:[%s10704_s1 + $0x70] sm:$0xff]  ;;  %v417_v2 = vld [vmem:[%s10704_s1 + $0x68] sm:$0xff]  ;;  %p271_p10 = scmp.lt.s32.totalorder %s7282_s28, 1  ;;  %vm2292_vm0 = vcmask 130048   ;;  %vm10727_vm1 = vcmask 123904  }
  0x14   : > { %6815 = vmatprep.subr.mxu0 %v419_v0  ;;  %7050 = vmatprep.subr.mxu1 %v419_v0  ;;  %v416_v3 = vld [vmem:[%s10704_s1 + $0x60] sm:$0xff]  ;;  %v415_v4 = vld [vmem:[%s10704_s1 + $0x58] sm:$0xff]  ;;  %v414_v5 = vld [vmem:[%s10704_s1 + $0x50] sm:$0xff]  ;;  %vm3981_vm2 = vcmask 1046528   ;;  %s10713_s22 = smov 32   ;;  %vm10725_vm3 = vcmask 1045504  }
  0x15   : > { %6816 = vmatpush3.msra.mxu0 %v419_v0  ;;  %7066 = vmatpush3.msra.mxu1 %v419_v0  ;;  %v413_v6 = vld [vmem:[%s10704_s1 + $0x48] sm:$0xff]  ;;  %v412_v7 = vld [vmem:[%s10704_s1 + $0x40] sm:$0xff]  ;;  %v411_v8 = vld [vmem:[%s10704_s1 + $0x38] sm:$0xff]  ;;  %s272_s23 = scalar_select %p271_p10, %s7282_s28, 1  ;;  %vm3014_vm4 = vcmask 1041409   ;;  %vm10730_vm5 = vcmask 1043459  }
  0x16   : > { %6817 = vmatprep.subr.mxu0 %v418_v1  ;;  %7051 = vmatprep.subr.mxu1 %v418_v1  ;;  %v410_v9 = vld [vmem:[%s10704_s1 + $0x30] sm:$0xff]  ;;  %v409_v10 = vld [vmem:[%s10704_s1 + $0x28] sm:$0xff]  ;;  %v408_v11 = vld [vmem:[%s10704_s1 + $0x20] sm:$0xff]  ;;  %s7213_s29 = smov 64   ;;  %s7214_s8 = smov 80   ;;  %vm3016_vm6 = vcmask 1042434  }
  0x17   : > { %6818 = vmatpush3.msra.mxu0 %v418_v1  ;;  %7067 = vmatpush3.msra.mxu1 %v418_v1  ;;  %v407_v12 = vld [vmem:[%s10704_s1 + $0x18] sm:$0xff]  ;;  %v406_v13 = vld [vmem:[%s10704_s1 + $0x10] sm:$0xff]  ;;  %s6504_s14 = sshll.u32 %s272_s23, 10  ;;  %v405_v14 = vld [vmem:[%s10704_s1 + $0x8] sm:$0xff]  ;;  %s7212_s23 = smov 48   ;;  %vm3020_vm7 = vcmask 1044484  }
  0x18   : > { %6819 = vmatprep.subr.mxu0 %v417_v2  ;;  %7052 = vmatprep.subr.mxu1 %v417_v2  ;;  %s7359_s19 = scalar_lea.vmem %s10703_s0, %s6504_s14  ;;  %v404_v15 = vld [vmem:[%s10704_s1] sm:$0xff]  ;;  %s7215_s9 = smov 16   ;;  %vm3022_vm8 = vcmask 1045509   ;;  %vm3024_vm9 = vcmask 1046534   ;;  %vm3026_vm10 = vcmask 1047559   ;;  %vm10728_vm11 = vcmask 130050  }
  0x19   : > { %6820 = vmatpush3.msra.mxu0 %v417_v2  ;;  %7068 = vmatpush3.msra.mxu1 %v417_v2  ;;  %v276_v16 = vld [vmem:[%s7359_s19] sm:$0xff]  ;;  %v277_v18 = vld [vmem:[%s7359_s19 + $0x8] sm:$0xff]  ;;  %v278_v20 = vld [vmem:[%s7359_s19 + $0x10] sm:$0xff]  ;;  %s7216_s13 = smov 96   ;;  %s7217_s14 = smov 112   ;;  %vm3956_vm12 = vcmask 261248  }
  0x1a   : > { %6821 = vmatprep.subr.mxu0 %v416_v3  ;;  %7053 = vmatprep.subr.mxu1 %v416_v3  ;;  %v376_v17 = vld [vmem:[%s7359_s19 + $0x320] sm:$0xff]  ;;  %v377_v19 = vld [vmem:[%s7359_s19 + $0x328] sm:$0xff]  ;;  %v378_v21 = vld [vmem:[%s7359_s19 + $0x330] sm:$0xff]  ;;  %s10754_s16 = smov 32   ;;  %vm4030_vm13 = vcmask 392448   ;;  %vm4095_vm14 = vcmask 523648  }
  0x1b   : > { %6822 = vmatpush3.msra.mxu0 %v416_v3  ;;  %7069 = vmatpush3.msra.mxu1 %v416_v3  ;;  %v279_v22 = vld [vmem:[%s7359_s19 + $0x18] sm:$0xff]  ;;  %v280_v24 = vld [vmem:[%s7359_s19 + $0x20] sm:$0xff]  ;;  %v281_v26 = vld [vmem:[%s7359_s19 + $0x28] sm:$0xff]  ;;  %vm10729_vm15 = vcmask 654848  }
  0x1c   : > { %6823 = vmatprep.subr.mxu0 %v415_v4  ;;  %7054 = vmatprep.subr.mxu1 %v415_v4  ;;  %v379_v23 = vld [vmem:[%s7359_s19 + $0x338] sm:$0xff]  ;;  %v380_v25 = vld [vmem:[%s7359_s19 + $0x340] sm:$0xff]  ;;  %v381_v27 = vld [vmem:[%s7359_s19 + $0x348] sm:$0xff] }
  0x1d   : > { %6824 = vmatpush3.msra.mxu0 %v415_v4  ;;  %7070 = vmatpush3.msra.mxu1 %v415_v4  ;;  %v282_v28 = vld [vmem:[%s7359_s19 + $0x30] sm:$0xff]  ;;  %v283_v30 = vld [vmem:[%s7359_s19 + $0x38] sm:$0xff]  ;;  %v284_v32 = vld [vmem:[%s7359_s19 + $0x40] sm:$0xff] }
  0x1e   : > { %6825 = vmatprep.subr.mxu0 %v414_v5  ;;  %7055 = vmatprep.subr.mxu1 %v414_v5  ;;  %v382_v29 = vld [vmem:[%s7359_s19 + $0x350] sm:$0xff]  ;;  %v383_v31 = vld [vmem:[%s7359_s19 + $0x358] sm:$0xff]  ;;  %v384_v33 = vld [vmem:[%s7359_s19 + $0x360] sm:$0xff] }
  0x1f   : > { %6826 = vmatpush3.msra.mxu0 %v414_v5  ;;  %7071 = vmatpush3.msra.mxu1 %v414_v5  ;;  %v285_v34 = vld [vmem:[%s7359_s19 + $0x48] sm:$0xff]  ;;  %v286_v36 = vld [vmem:[%s7359_s19 + $0x50] sm:$0xff]  ;;  %v287_v38 = vld [vmem:[%s7359_s19 + $0x58] sm:$0xff] }
  0x20   : > { %6827 = vmatprep.subr.mxu0 %v413_v6  ;;  %7056 = vmatprep.subr.mxu1 %v413_v6  ;;  %v385_v35 = vld [vmem:[%s7359_s19 + $0x368] sm:$0xff]  ;;  %v386_v37 = vld [vmem:[%s7359_s19 + $0x370] sm:$0xff]  ;;  %v387_v39 = vld [vmem:[%s7359_s19 + $0x378] sm:$0xff] }
  0x21   : > { %6828 = vmatpush3.msra.mxu0 %v413_v6  ;;  %7072 = vmatpush3.msra.mxu1 %v413_v6  ;;  %v288_v40 = vld [vmem:[%s7359_s19 + $0x60] sm:$0xff]  ;;  %v289_v42 = vld [vmem:[%s7359_s19 + $0x68] sm:$0xff]  ;;  %v290_v44 = vld [vmem:[%s7359_s19 + $0x70] sm:$0xff] }
  0x22   : > { %6829 = vmatprep.subr.mxu0 %v412_v7  ;;  %7057 = vmatprep.subr.mxu1 %v412_v7  ;;  %v388_v41 = vld [vmem:[%s7359_s19 + $0x380] sm:$0xff]  ;;  %v389_v43 = vld [vmem:[%s7359_s19 + $0x388] sm:$0xff]  ;;  %v390_v45 = vld [vmem:[%s7359_s19 + $0x390] sm:$0xff] }
  0x23   : > { %6830 = vmatpush3.msra.mxu0 %v412_v7  ;;  %7073 = vmatpush3.msra.mxu1 %v412_v7  ;;  %v291_v46 = vld [vmem:[%s7359_s19 + $0x78] sm:$0xff]  ;;  %v292_v48 = vld [vmem:[%s7359_s19 + $0x80] sm:$0xff]  ;;  %v293_v50 = vld [vmem:[%s7359_s19 + $0x88] sm:$0xff] }
  0x24   : > { %6831 = vmatprep.subr.mxu0 %v411_v8  ;;  %7058 = vmatprep.subr.mxu1 %v411_v8  ;;  %v391_v47 = vld [vmem:[%s7359_s19 + $0x398] sm:$0xff]  ;;  %v392_v49 = vld [vmem:[%s7359_s19 + $0x3a0] sm:$0xff]  ;;  %v393_v51 = vld [vmem:[%s7359_s19 + $0x3a8] sm:$0xff] }
  0x25   : > { %6832 = vmatpush3.msra.mxu0 %v411_v8  ;;  %7074 = vmatpush3.msra.mxu1 %v411_v8  ;;  %v294_v52 = vld [vmem:[%s7359_s19 + $0x90] sm:$0xff]  ;;  %v295_v54 = vld [vmem:[%s7359_s19 + $0x98] sm:$0xff]  ;;  %v296_v56 = vld [vmem:[%s7359_s19 + $0xa0] sm:$0xff] }
  0x26   : > { %6833 = vmatprep.subr.mxu0 %v410_v9  ;;  %7059 = vmatprep.subr.mxu1 %v410_v9  ;;  %v394_v53 = vld [vmem:[%s7359_s19 + $0x3b0] sm:$0xff]  ;;  %v395_v55 = vld [vmem:[%s7359_s19 + $0x3b8] sm:$0xff]  ;;  %v396_v57 = vld [vmem:[%s7359_s19 + $0x3c0] sm:$0xff] }
  0x27   : > { %6834 = vmatpush3.msra.mxu0 %v410_v9  ;;  %7075 = vmatpush3.msra.mxu1 %v410_v9  ;;  %v297_v58 = vld [vmem:[%s7359_s19 + $0xa8] sm:$0xff]  ;;  %v298_v60 = vld [vmem:[%s7359_s19 + $0xb0] sm:$0xff]  ;;  %v299_v62 = vld [vmem:[%s7359_s19 + $0xb8] sm:$0xff] }
  0x28   : > { %6835 = vmatprep.subr.mxu0 %v409_v10  ;;  %7060 = vmatprep.subr.mxu1 %v409_v10  ;;  %v397_v59 = vld [vmem:[%s7359_s19 + $0x3c8] sm:$0xff]  ;;  %v398_v61 = vld [vmem:[%s7359_s19 + $0x3d0] sm:$0xff]  ;;  %v399_v63 = vld [vmem:[%s7359_s19 + $0x3d8] sm:$0xff] }
  0x29   : > { %6836 = vmatpush3.msra.mxu0 %v409_v10  ;;  %7076 = vmatpush3.msra.mxu1 %v409_v10  ;;  %v300_v0 = vld [vmem:[%s7359_s19 + $0xc0] sm:$0xff]  ;;  %v301_v2 = vld [vmem:[%s7359_s19 + $0xc8] sm:$0xff]  ;;  %v302_v4 = vld [vmem:[%s7359_s19 + $0xd0] sm:$0xff] }
  0x2a   : > { %6837 = vmatprep.subr.mxu0 %v408_v11  ;;  %7061 = vmatprep.subr.mxu1 %v408_v11  ;;  %v400_v1 = vld [vmem:[%s7359_s19 + $0x3e0] sm:$0xff]  ;;  %v401_v3 = vld [vmem:[%s7359_s19 + $0x3e8] sm:$0xff]  ;;  %v402_v5 = vld [vmem:[%s7359_s19 + $0x3f0] sm:$0xff] }
  0x2b   : > { %6838 = vmatpush3.msra.mxu0 %v408_v11  ;;  %7077 = vmatpush3.msra.mxu1 %v408_v11  ;;  %v303_v6 = vld [vmem:[%s7359_s19 + $0xd8] sm:$0xff]  ;;  %v304_v8 = vld [vmem:[%s7359_s19 + $0xe0] sm:$0xff]  ;;  %v305_v9 = vld [vmem:[%s7359_s19 + $0xe8] sm:$0xff] }
  0x2c   : > { %6839 = vmatprep.subr.mxu0 %v407_v12  ;;  %7062 = vmatprep.subr.mxu1 %v407_v12  ;;  %v403_v7 = vld [vmem:[%s7359_s19 + $0x3f8] sm:$0xff]  ;;  %v306_v10 = vld [vmem:[%s7359_s19 + $0xf0] sm:$0xff] }
  0x2d   : > { %6840 = vmatpush3.msra.mxu0 %v407_v12  ;;  %7078 = vmatpush3.msra.mxu1 %v407_v12  ;;  %v307_v11 = vld [vmem:[%s7359_s19 + $0xf8] sm:$0xff]  ;;  %v308_v12 = vld [vmem:[%s7359_s19 + $0x100] sm:$0xff] }
  0x2e   : > { %6841 = vmatprep.subr.mxu0 %v406_v13  ;;  %7063 = vmatprep.subr.mxu1 %v406_v13 }
  0x2f   : > { %6842 = vmatpush3.msra.mxu0 %v406_v13  ;;  %7079 = vmatpush3.msra.mxu1 %v406_v13  ;;  %v309_v13 = vld [vmem:[%s7359_s19 + $0x108] sm:$0xff] }
  0x30   : > { %6843 = vmatprep.subr.mxu0 %v405_v14  ;;  %7064 = vmatprep.subr.mxu1 %v405_v14 }
  0x31   : > { %6844 = vmatpush3.msra.mxu0 %v405_v14  ;;  %7080 = vmatpush3.msra.mxu1 %v405_v14  ;;  %v310_v14 = vld [vmem:[%s7359_s19 + $0x110] sm:$0xff] }
  0x32   : > { %6845 = vmatprep.subr.mxu0 %v404_v15  ;;  %7065 = vmatprep.subr.mxu1 %v404_v15 }
  0x33   : > { %6846 = vmatpush3.msra.mxu0 %v404_v15  ;;  %7081 = vmatpush3.msra.mxu1 %v404_v15  ;;  %v311_v15 = vld [vmem:[%s7359_s19 + $0x118] sm:$0xff] }
  0x34   : > { %6847 = vmatprep.mubr.f32.mxu0 %v276_v16  ;;  %6997 = vmatprep.mubr.f32.mxu1 %v376_v17  ;;  %v312_v16 = vld [vmem:[%s7359_s19 + $0x120] sm:$0xff]  ;;  %v313_v17 = vld [vmem:[%s7359_s19 + $0x128] sm:$0xff] }
  0x35   : > { %6848 = vmatmul.mubr.f32.vlgmr.msra.gmra.mxu0 %v277_v18  ;;  %6998 = vmatmul.mubr.f32.vlgmr.msra.gmra.mxu1 %v377_v19  ;;  %v7431_v18 = vld [vmem:[%s7359_s19 + $0x130] sm:$0xff]  ;;  %v10711_v19 = vmov 0.0  }
  0x36   : > { %6850 = vmatprep.mubr.f32.mxu0 %v278_v20  ;;  %7000 = vmatprep.mubr.f32.mxu1 %v378_v21  ;;  %2338 = vst.msk [vmem:[#allocation2 + $0x160] sm:$0xff] %vm2292_vm0, %v10711_v19  ;;  %2293 = vst.msk [vmem:[#allocation2] sm:$0xff] %vm2292_vm0, %v10711_v19  ;;  %v315_v20 = vld [vmem:[%s7359_s19 + $0x138] sm:$0xff]  ;;  %v316_v21 = vld [vmem:[%s7359_s19 + $0x140] sm:$0xff] }
  0x37   : > { %2339 = vst.msk [vmem:[#allocation2 + $0x168] sm:$0x3] %vm10727_vm1, %v10711_v19  ;;  %2295 = vst.msk [vmem:[#allocation2 + $0x8] sm:$0x3] %vm10727_vm1, %v10711_v19 }
  0x38   : > { %2296 = vst.msk [vmem:[#allocation2 + $0x10] sm:$0xff] %vm2292_vm0, %v10711_v19  ;;  %2298 = vst.msk [vmem:[#allocation2 + $0x20] sm:$0xff] %vm2292_vm0, %v10711_v19 }
  0x39   : > { %6851 = vmatmul.mubr.f32.gmra.mxu0 %v279_v22  ;;  %7001 = vmatmul.mubr.f32.gmra.mxu1 %v379_v23  ;;  %2297 = vst.msk [vmem:[#allocation2 + $0x18] sm:$0x3] %vm10727_vm1, %v10711_v19  ;;  %2299 = vst.msk [vmem:[#allocation2 + $0x28] sm:$0x3] %vm10727_vm1, %v10711_v19  ;;  %v317_v22 = vld [vmem:[%s7359_s19 + $0x148] sm:$0xff]  ;;  %v318_v23 = vld [vmem:[%s7359_s19 + $0x150] sm:$0xff] }
  0x3a   : > { %6853 = vmatprep.mubr.f32.mxu0 %v280_v24  ;;  %7003 = vmatprep.mubr.f32.mxu1 %v380_v25  ;;  %2300 = vst.msk [vmem:[#allocation2 + $0x30] sm:$0xff] %vm2292_vm0, %v10711_v19  ;;  %2302 = vst.msk [vmem:[#allocation2 + $0x40] sm:$0xff] %vm2292_vm0, %v10711_v19  ;;  %v319_v24 = vld [vmem:[%s7359_s19 + $0x158] sm:$0xff]  ;;  %v320_v25 = vld [vmem:[%s7359_s19 + $0x160] sm:$0xff] }
  0x3b   : > { %2301 = vst.msk [vmem:[#allocation2 + $0x38] sm:$0x3] %vm10727_vm1, %v10711_v19  ;;  %2303 = vst.msk [vmem:[#allocation2 + $0x48] sm:$0x3] %vm10727_vm1, %v10711_v19 }
  0x3c   : > { %2304 = vst.msk [vmem:[#allocation2 + $0x50] sm:$0xff] %vm2292_vm0, %v10711_v19  ;;  %2306 = vst.msk [vmem:[#allocation2 + $0x60] sm:$0xff] %vm2292_vm0, %v10711_v19 }
  0x3d   : > { %6854 = vmatmul.mubr.f32.gmra.mxu0 %v281_v26  ;;  %7004 = vmatmul.mubr.f32.gmra.mxu1 %v381_v27  ;;  %2305 = vst.msk [vmem:[#allocation2 + $0x58] sm:$0x3] %vm10727_vm1, %v10711_v19  ;;  %2307 = vst.msk [vmem:[#allocation2 + $0x68] sm:$0x3] %vm10727_vm1, %v10711_v19  ;;  %v321_v26 = vld [vmem:[%s7359_s19 + $0x168] sm:$0xff]  ;;  %v322_v27 = vld [vmem:[%s7359_s19 + $0x170] sm:$0xff] }
  0x3e   : > { %6856 = vmatprep.mubr.f32.mxu0 %v282_v28  ;;  %7006 = vmatprep.mubr.f32.mxu1 %v382_v29  ;;  %2308 = vst.msk [vmem:[#allocation2 + $0x70] sm:$0xff] %vm2292_vm0, %v10711_v19  ;;  %2310 = vst.msk [vmem:[#allocation2 + $0x80] sm:$0xff] %vm2292_vm0, %v10711_v19  ;;  %v323_v28 = vld [vmem:[%s7359_s19 + $0x178] sm:$0xff]  ;;  %v324_v29 = vld [vmem:[%s7359_s19 + $0x180] sm:$0xff] }
  0x3f   : > { %2309 = vst.msk [vmem:[#allocation2 + $0x78] sm:$0x3] %vm10727_vm1, %v10711_v19  ;;  %2311 = vst.msk [vmem:[#allocation2 + $0x88] sm:$0x3] %vm10727_vm1, %v10711_v19 }
  0x40   : > { %2312 = vst.msk [vmem:[#allocation2 + $0x90] sm:$0xff] %vm2292_vm0, %v10711_v19  ;;  %2314 = vst.msk [vmem:[#allocation2 + $0xa0] sm:$0xff] %vm2292_vm0, %v10711_v19 }
  0x41   : > { %6857 = vmatmul.mubr.f32.gmra.mxu0 %v283_v30  ;;  %7007 = vmatmul.mubr.f32.gmra.mxu1 %v383_v31  ;;  %2313 = vst.msk [vmem:[#allocation2 + $0x98] sm:$0x3] %vm10727_vm1, %v10711_v19  ;;  %2315 = vst.msk [vmem:[#allocation2 + $0xa8] sm:$0x3] %vm10727_vm1, %v10711_v19  ;;  %v3840_v30 = vld [vmem:[#allocation2] sm:$0xff] }
  0x42   : > { %6859 = vmatprep.mubr.f32.mxu0 %v284_v32  ;;  %7009 = vmatprep.mubr.f32.mxu1 %v384_v33  ;;  %2316 = vst.msk [vmem:[#allocation2 + $0xb0] sm:$0xff] %vm2292_vm0, %v10711_v19  ;;  %2318 = vst.msk [vmem:[#allocation2 + $0xc0] sm:$0xff] %vm2292_vm0, %v10711_v19  ;;  %v3841_v31 = vld [vmem:[#allocation2 + $0x8] sm:$0x3]  ;;  %v3982_v32 = vrot.slane %v3840_v30, 1 }
  0x43   : > { %2317 = vst.msk [vmem:[#allocation2 + $0xb8] sm:$0x3] %vm10727_vm1, %v10711_v19  ;;  %2319 = vst.msk [vmem:[#allocation2 + $0xc8] sm:$0x3] %vm10727_vm1, %v10711_v19  ;;  %v3983_v33 = vrot.slane %v3841_v31, 1 }
  0x44   : > { %2320 = vst.msk [vmem:[#allocation2 + $0xd0] sm:$0xff] %vm2292_vm0, %v10711_v19  ;;  %2322 = vst.msk [vmem:[#allocation2 + $0xe0] sm:$0xff] %vm2292_vm0, %v10711_v19 }
  0x45   : > { %6860 = vmatmul.mubr.f32.gmra.mxu0 %v285_v34  ;;  %7010 = vmatmul.mubr.f32.gmra.mxu1 %v385_v35  ;;  %2321 = vst.msk [vmem:[#allocation2 + $0xd8] sm:$0x3] %vm10727_vm1, %v10711_v19  ;;  %2323 = vst.msk [vmem:[#allocation2 + $0xe8] sm:$0x3] %vm10727_vm1, %v10711_v19  ;;  %v325_v34 = vld [vmem:[%s7359_s19 + $0x188] sm:$0xff]  ;;  %v326_v35 = vld [vmem:[%s7359_s19 + $0x190] sm:$0xff] }
  0x46   : > { %6862 = vmatprep.mubr.f32.mxu0 %v286_v36  ;;  %7012 = vmatprep.mubr.f32.mxu1 %v386_v37  ;;  %2324 = vst.msk [vmem:[#allocation2 + $0xf0] sm:$0xff] %vm2292_vm0, %v10711_v19  ;;  %2326 = vst.msk [vmem:[#allocation2 + $0x100] sm:$0xff] %vm2292_vm0, %v10711_v19  ;;  %v3984_v36 = vsel %vm3981_vm2, %v3982_v32, %v3983_v33  ;;  %v327_v37 = vld [vmem:[%s7359_s19 + $0x198] sm:$0xff]  ;;  %v368_v32 = vld [vmem:[%s7359_s19 + $0x2e0] sm:$0xff] }
  0x47   : > { %2325 = vst.msk [vmem:[#allocation2 + $0xf8] sm:$0x3] %vm10727_vm1, %v10711_v19  ;;  %2327 = vst.msk [vmem:[#allocation2 + $0x108] sm:$0x3] %vm10727_vm1, %v10711_v19  ;;  %4006 = vrot.lane.b32.xlu1 %v3984_v36, %s10713_s22  ;;  %v369_v33 = vld [vmem:[%s7359_s19 + $0x2e8] sm:$0xff]  ;;  %v372_v36 = vld [vmem:[%s7359_s19 + $0x300] sm:$0xff] }
  0x48   : > { %2328 = vst.msk [vmem:[#allocation2 + $0x110] sm:$0xff] %vm2292_vm0, %v10711_v19  ;;  %2330 = vst.msk [vmem:[#allocation2 + $0x120] sm:$0xff] %vm2292_vm0, %v10711_v19 }
  0x49   : > { %6863 = vmatmul.mubr.f32.gmra.mxu0 %v287_v38  ;;  %7013 = vmatmul.mubr.f32.gmra.mxu1 %v387_v39  ;;  %2329 = vst.msk [vmem:[#allocation2 + $0x118] sm:$0x3] %vm10727_vm1, %v10711_v19  ;;  %2331 = vst.msk [vmem:[#allocation2 + $0x128] sm:$0x3] %vm10727_vm1, %v10711_v19  ;;  %v328_v38 = vld [vmem:[%s7359_s19 + $0x1a0] sm:$0xff] }
  0x4a   : > { %6865 = vmatprep.mubr.f32.mxu0 %v288_v40  ;;  %7015 = vmatprep.mubr.f32.mxu1 %v388_v41  ;;  %2334 = vst.msk [vmem:[#allocation2 + $0x140] sm:$0xff] %vm2292_vm0, %v10711_v19  ;;  %2336 = vst.msk [vmem:[#allocation2 + $0x150] sm:$0xff] %vm2292_vm0, %v10711_v19 }
  0x4b   : > { %2335 = vst.msk [vmem:[#allocation2 + $0x148] sm:$0x3] %vm10727_vm1, %v10711_v19  ;;  %2337 = vst.msk [vmem:[#allocation2 + $0x158] sm:$0x3] %vm10727_vm1, %v10711_v19 }
  0x4c   : > { %2340 = vst.msk [vmem:[#allocation2 + $0x170] sm:$0xff] %vm2292_vm0, %v10711_v19  ;;  %2342 = vst.msk [vmem:[#allocation2 + $0x180] sm:$0xff] %vm2292_vm0, %v10711_v19 }
  0x4d   : > { %6866 = vmatmul.mubr.f32.gmra.mxu0 %v289_v42  ;;  %7016 = vmatmul.mubr.f32.gmra.mxu1 %v389_v43  ;;  %2341 = vst.msk [vmem:[#allocation2 + $0x178] sm:$0x3] %vm10727_vm1, %v10711_v19  ;;  %2343 = vst.msk [vmem:[#allocation2 + $0x188] sm:$0x3] %vm10727_vm1, %v10711_v19  ;;  %v329_v43 = vld [vmem:[%s7359_s19 + $0x1a8] sm:$0xff] }
  0x4e   : > { %6868 = vmatprep.mubr.f32.mxu0 %v290_v44  ;;  %7018 = vmatprep.mubr.f32.mxu1 %v390_v45  ;;  %2344 = vst.msk [vmem:[#allocation2 + $0x190] sm:$0xff] %vm2292_vm0, %v10711_v19  ;;  %2346 = vst.msk [vmem:[#allocation2 + $0x1a0] sm:$0xff] %vm2292_vm0, %v10711_v19  ;;  %v330_v45 = vld [vmem:[%s7359_s19 + $0x1b0] sm:$0xff] }
  0x4f   : > { %2345 = vst.msk [vmem:[#allocation2 + $0x198] sm:$0x3] %vm10727_vm1, %v10711_v19  ;;  %2347 = vst.msk [vmem:[#allocation2 + $0x1a8] sm:$0x3] %vm10727_vm1, %v10711_v19 }
  0x50   : > { %2348 = vst.msk [vmem:[#allocation2 + $0x1b0] sm:$0xff] %vm2292_vm0, %v10711_v19  ;;  %2350 = vst.msk [vmem:[#allocation2 + $0x1c0] sm:$0xff] %vm2292_vm0, %v10711_v19 }
  0x51   : > { %6869 = vmatmul.mubr.f32.gmra.mxu0 %v291_v46  ;;  %7019 = vmatmul.mubr.f32.gmra.mxu1 %v391_v47  ;;  %2349 = vst.msk [vmem:[#allocation2 + $0x1b8] sm:$0x3] %vm10727_vm1, %v10711_v19  ;;  %2351 = vst.msk [vmem:[#allocation2 + $0x1c8] sm:$0x3] %vm10727_vm1, %v10711_v19  ;;  %v3878_v39 = vld [vmem:[#allocation2 + $0x140] sm:$0xff]  ;;  %v331_v46 = vld [vmem:[%s7359_s19 + $0x1b8] sm:$0xff] }
  0x52   : > { %6871 = vmatprep.mubr.f32.mxu0 %v292_v48  ;;  %7021 = vmatprep.mubr.f32.mxu1 %v392_v49  ;;  %2352 = vst.msk [vmem:[#allocation2 + $0x1d0] sm:$0xff] %vm2292_vm0, %v10711_v19  ;;  %2354 = vst.msk [vmem:[#allocation2 + $0x1e0] sm:$0xff] %vm2292_vm0, %v10711_v19  ;;  %v3879_v40 = vld [vmem:[#allocation2 + $0x148] sm:$0x3]  ;;  %v4047_v41 = vrot.slane %v3878_v39, 1  ;;  %v4105_v47 = vrot.slane %v3840_v30, 2 }
  0x53   : > { %2353 = vst.msk [vmem:[#allocation2 + $0x1d8] sm:$0x3] %vm10727_vm1, %v10711_v19  ;;  %2355 = vst.msk [vmem:[#allocation2 + $0x1e8] sm:$0x3] %vm10727_vm1, %v10711_v19  ;;  %v4048_v42 = vrot.slane %v3879_v40, 1  ;;  %v4106_v48 = vrot.slane %v3841_v31, 2  ;;  %3932 = vrot.lane.b32.xlu0 %v3878_v39, %s7215_s9  ;;  %v2502_v40 = vlaneseq }
  0x54   : > { %2356 = vst.msk [vmem:[#allocation2 + $0x1f0] sm:$0xff] %vm2292_vm0, %v10711_v19  ;;  %2358 = vst.msk [vmem:[#allocation2 + $0x200] sm:$0xff] %vm2292_vm0, %v10711_v19  ;;  %v332_v49 = vld [vmem:[%s7359_s19 + $0x1c0] sm:$0xff]  ;;  %v367_v31 = vld [vmem:[%s7359_s19 + $0x2d8] sm:$0xff] }
  0x55   : > { %6872 = vmatmul.mubr.f32.gmra.mxu0 %v293_v50  ;;  %7022 = vmatmul.mubr.f32.gmra.mxu1 %v393_v51  ;;  %2357 = vst.msk [vmem:[#allocation2 + $0x1f8] sm:$0x3] %vm10727_vm1, %v10711_v19  ;;  %2359 = vst.msk [vmem:[#allocation2 + $0x208] sm:$0x3] %vm10727_vm1, %v10711_v19  ;;  %v4049_v44 = vsel %vm3981_vm2, %v4047_v41, %v4048_v42  ;;  %v4107_v50 = vsel %vm10725_vm3, %v4105_v47, %v4106_v48  ;;  %v333_v51 = vld [vmem:[%s7359_s19 + $0x1c8] sm:$0xff]  ;;  %v374_v39 = vld [vmem:[%s7359_s19 + $0x310] sm:$0xff] }
  0x56   : > { %6874 = vmatprep.mubr.f32.mxu0 %v294_v52  ;;  %7024 = vmatprep.mubr.f32.mxu1 %v394_v53  ;;  %2360 = vst.msk [vmem:[#allocation2 + $0x210] sm:$0xff] %vm2292_vm0, %v10711_v19  ;;  %2362 = vst.msk [vmem:[#allocation2 + $0x220] sm:$0xff] %vm2292_vm0, %v10711_v19  ;;  %v334_v52 = vld [vmem:[%s7359_s19 + $0x1d0] sm:$0xff]  ;;  %v335_v53 = vld [vmem:[%s7359_s19 + $0x1d8] sm:$0xff] }
  0x57   : > { %2361 = vst.msk [vmem:[#allocation2 + $0x218] sm:$0x3] %vm10727_vm1, %v10711_v19  ;;  %2363 = vst.msk [vmem:[#allocation2 + $0x228] sm:$0x3] %vm10727_vm1, %v10711_v19  ;;  %4071 = vrot.lane.b32.xlu1 %v4049_v44, %s7212_s23 }
  0x58   : > { %2364 = vst.msk [vmem:[#allocation2 + $0x230] sm:$0xff] %vm2292_vm0, %v10711_v19  ;;  %2366 = vst.msk [vmem:[#allocation2 + $0x240] sm:$0xff] %vm2292_vm0, %v10711_v19 }
  0x59   : > { %6875 = vmatmul.mubr.f32.gmra.mxu0 %v295_v54  ;;  %7025 = vmatmul.mubr.f32.gmra.mxu1 %v395_v55  ;;  %2365 = vst.msk [vmem:[#allocation2 + $0x238] sm:$0x3] %vm10727_vm1, %v10711_v19  ;;  %2367 = vst.msk [vmem:[#allocation2 + $0x248] sm:$0x3] %vm10727_vm1, %v10711_v19  ;;  %v336_v54 = vld [vmem:[%s7359_s19 + $0x1e0] sm:$0xff]  ;;  %v337_v55 = vld [vmem:[%s7359_s19 + $0x1e8] sm:$0xff] }
  0x5a   : > { %6877 = vmatprep.mubr.f32.mxu0 %v296_v56  ;;  %7027 = vmatprep.mubr.f32.mxu1 %v396_v57  ;;  %2368 = vst.msk [vmem:[#allocation2 + $0x250] sm:$0xff] %vm2292_vm0, %v10711_v19  ;;  %2370 = vst.msk [vmem:[#allocation2 + $0x260] sm:$0xff] %vm2292_vm0, %v10711_v19  ;;  %v338_v56 = vld [vmem:[%s7359_s19 + $0x1f0] sm:$0xff]  ;;  %v339_v57 = vld [vmem:[%s7359_s19 + $0x1f8] sm:$0xff] }
  0x5b   : > { %2369 = vst.msk [vmem:[#allocation2 + $0x258] sm:$0x3] %vm10727_vm1, %v10711_v19  ;;  %2371 = vst.msk [vmem:[#allocation2 + $0x268] sm:$0x3] %vm10727_vm1, %v10711_v19  ;;  %4129 = vrot.lane.b32.xlu1 %v4107_v50, %s7213_s29 }
  0x5c   : > { %3916 = vst.msk [vmem:[#allocation3] sm:$0xff] %vm2292_vm0, %v3840_v30  ;;  %v366_v30 = vld [vmem:[%s7359_s19 + $0x2d0] sm:$0xff] }
  0x5d   : > { %6878 = vmatmul.mubr.f32.gmra.mxu0 %v297_v58  ;;  %7028 = vmatmul.mubr.f32.gmra.mxu1 %v397_v59  ;;  %v340_v58 = vld [vmem:[%s7359_s19 + $0x200] sm:$0xff]  ;;  %v3842_v59 = vld [vmem:[#allocation2 + $0x10] sm:$0xff] }
  0x5e   : > { %6880 = vmatprep.mubr.f32.mxu0 %v298_v60  ;;  %7030 = vmatprep.mubr.f32.mxu1 %v398_v61  ;;  %v341_v60 = vld [vmem:[%s7359_s19 + $0x208] sm:$0xff]  ;;  %v342_v61 = vld [vmem:[%s7359_s19 + $0x210] sm:$0xff] }
  0x5f   : > { %4170 = vrot.lane.b32.xlu1 %v3842_v59, %s7214_s8 }
  0x61   : > { %6881 = vmatmul.mubr.f32.gmra.mxu0 %v299_v62  ;;  %7031 = vmatmul.mubr.f32.gmra.mxu1 %v399_v63  ;;  %v7622_v62 = vld [vmem:[#allocation2 + $0x150] sm:$0xff]  ;;  %v343_v63 = vld [vmem:[%s7359_s19 + $0x218] sm:$0xff] }
  0x62   : > { %6883 = vmatprep.mubr.f32.mxu0 %v300_v0  ;;  %7033 = vmatprep.mubr.f32.mxu1 %v400_v1  ;;  %v344_v0 = vld [vmem:[%s7359_s19 + $0x220] sm:$0xff]  ;;  %v345_v1 = vld [vmem:[%s7359_s19 + $0x228] sm:$0xff] }
  0x63   : > { %4211 = vrot.lane.b32.xlu1 %v7622_v62, %s7216_s13 }
  0x65   : > { %6884 = vmatmul.mubr.f32.gmra.mxu0 %v301_v2  ;;  %7034 = vmatmul.mubr.f32.gmra.mxu1 %v401_v3  ;;  %v346_v2 = vld [vmem:[%s7359_s19 + $0x230] sm:$0xff]  ;;  %v347_v3 = vld [vmem:[%s7359_s19 + $0x238] sm:$0xff] }
  0x66   : > { %6886 = vmatprep.mubr.f32.mxu0 %v302_v4  ;;  %7036 = vmatprep.mubr.f32.mxu1 %v402_v5  ;;  %v4252_v4 = vrot.slane %v3842_v59, 1  ;;  %v4357_v5 = vrot.slane %v3842_v59, 2 }
  0x69   : > { %6887 = vmatmul.mubr.f32.gmra.mxu0 %v303_v6  ;;  %7037 = vmatmul.mubr.f32.gmra.mxu1 %v403_v7  ;;  %v348_v6 = vld [vmem:[%s7359_s19 + $0x240] sm:$0xff]  ;;  %v3843_v7 = vld [vmem:[#allocation2 + $0x18] sm:$0x3] }
  0x6a   : > { %6889 = vmatprep.mubr.f32.mxu0 %v304_v8  ;;  %v4358_v8 = vrot.slane %v3843_v7, 2 }
  0x6d   : > { %6890 = vmatmul.mubr.f32.gmra.mxu0 %v305_v9  ;;  %v4253_v9 = vrot.slane %v3843_v7, 1 }
  0x6e   : > { %6892 = vmatprep.mubr.f32.mxu0 %v306_v10  ;;  %v349_v10 = vld [vmem:[%s7359_s19 + $0x248] sm:$0xff] }
  0x71   : > { %6893 = vmatmul.mubr.f32.gmra.mxu0 %v307_v11  ;;  %v4359_v11 = vsel %vm10725_vm3, %v4357_v5, %v4358_v8 }
  0x72   : > { %6895 = vmatprep.mubr.f32.mxu0 %v308_v12  ;;  %v4254_v12 = vsel %vm3981_vm2, %v4252_v4, %v4253_v9  ;;  %4381 = vrot.lane.b32.xlu0 %v4359_v11, %s7215_s9 }
  0x73   : > { %4276 = vrot.lane.b32.xlu1 %v4254_v12, %s7217_s14 }
  0x75   : > { %6896 = vmatmul.mubr.f32.gmra.mxu0 %v309_v13  ;;  %v350_v13 = vld [vmem:[%s7359_s19 + $0x250] sm:$0xff] }
  0x76   : > { %6898 = vmatprep.mubr.f32.mxu0 %v310_v14  ;;  %v351_v14 = vld [vmem:[%s7359_s19 + $0x258] sm:$0xff] }
  0x79   : > { %6899 = vmatmul.mubr.f32.gmra.mxu0 %v311_v15  ;;  %v352_v15 = vld [vmem:[%s7359_s19 + $0x260] sm:$0xff] }
  0x7a   : > { %6901 = vmatprep.mubr.f32.mxu0 %v312_v16  ;;  %v353_v16 = vld [vmem:[%s7359_s19 + $0x268] sm:$0xff] }
  0x7d   : > { %6902 = vmatmul.mubr.f32.gmra.mxu0 %v313_v17  ;;  %v354_v17 = vld [vmem:[%s7359_s19 + $0x270] sm:$0xff] }
  0x7e   : > { %6904 = vmatprep.mubr.f32.mxu0 %v7431_v18  ;;  %v355_v18 = vld [vmem:[%s7359_s19 + $0x278] sm:$0xff] }
  0x81   : > { %6905 = vmatmul.mubr.f32.gmra.mxu0 %v315_v20  ;;  %v356_v20 = vld [vmem:[%s7359_s19 + $0x280] sm:$0xff] }
  0x82   : > { %6907 = vmatprep.mubr.f32.mxu0 %v316_v21  ;;  %v357_v21 = vld [vmem:[%s7359_s19 + $0x288] sm:$0xff] }
  0x85   : > { %6908 = vmatmul.mubr.f32.gmra.mxu0 %v317_v22  ;;  %v358_v22 = vld [vmem:[%s7359_s19 + $0x290] sm:$0xff] }
  0x86   : > { %6910 = vmatprep.mubr.f32.mxu0 %v318_v23  ;;  %v359_v23 = vld [vmem:[%s7359_s19 + $0x298] sm:$0xff] }
  0x89   : > { %6911 = vmatmul.mubr.f32.gmra.mxu0 %v319_v24  ;;  %v360_v24 = vld [vmem:[%s7359_s19 + $0x2a0] sm:$0xff] }
  0x8a   : > { %6913 = vmatprep.mubr.f32.mxu0 %v320_v25  ;;  %v361_v25 = vld [vmem:[%s7359_s19 + $0x2a8] sm:$0xff] }
  0x8d   : > { %6914 = vmatmul.mubr.f32.gmra.mxu0 %v321_v26  ;;  %v362_v26 = vld [vmem:[%s7359_s19 + $0x2b0] sm:$0xff] }
  0x8e   : > { %6916 = vmatprep.mubr.f32.mxu0 %v322_v27  ;;  %v363_v27 = vld [vmem:[%s7359_s19 + $0x2b8] sm:$0xff] }
  0x91   : > { %6917 = vmatmul.mubr.f32.gmra.mxu0 %v323_v28  ;;  %v364_v28 = vld [vmem:[%s7359_s19 + $0x2c0] sm:$0xff] }
  0x92   : > { %6919 = vmatprep.mubr.f32.mxu0 %v324_v29  ;;  %v365_v29 = vld [vmem:[%s7359_s19 + $0x2c8] sm:$0xff] }
  0x95   : > { %6920 = vmatmul.mubr.f32.gmra.mxu0 %v325_v34  ;;  %v370_v34 = vld [vmem:[%s7359_s19 + $0x2f0] sm:$0xff] }
  0x96   : > { %6922 = vmatprep.mubr.f32.mxu0 %v326_v35  ;;  %v371_v35 = vld [vmem:[%s7359_s19 + $0x2f8] sm:$0xff] }
  0x99   : > { %6923 = vmatmul.mubr.f32.gmra.mxu0 %v327_v37  ;;  %v373_v37 = vld [vmem:[%s7359_s19 + $0x308] sm:$0xff] }
  0x9a   : > { %6925 = vmatprep.mubr.f32.mxu0 %v328_v38  ;;  %v7665_v38 = vld [vmem:[%s10707_s4] ss:$0 sm:$0xff] }
  0x9d   : > { %6926 = vmatmul.mubr.f32.gmra.mxu0 %v329_v43 }
  0x9e   : > { %6928 = vmatprep.mubr.f32.mxu0 %v330_v45  ;;  %v375_v45 = vld [vmem:[%s7359_s19 + $0x318] sm:$0xff] }
  0xa1   : > { %6929 = vmatmul.mubr.f32.gmra.mxu0 %v331_v46  ;;  %v7674_v46 = vld [vmem:[%s10707_s4 + $0x1] ss:$0 sm:$0xff] }
  0xa2   : > { %6931 = vmatprep.mubr.f32.mxu0 %v332_v49  ;;  %v7676_v49 = vshrl.u32 %v2502_v40, 7 }
  0xa4   : > { %10733 = vst [vmem:[#allocation9_spill] sm:$0xff] %v7676_v49 }
  0xa5   : > { %6932 = vmatmul.mubr.f32.gmra.mxu0 %v333_v51 }
  0xa6   : > { %6934 = vmatprep.mubr.f32.mxu0 %v334_v52 }
  0xa9   : > { %6935 = vmatmul.mubr.f32.gmra.mxu0 %v335_v53 }
  0xaa   : > { %6937 = vmatprep.mubr.f32.mxu0 %v336_v54 }
  0xad   : > { %6938 = vmatmul.mubr.f32.gmra.mxu0 %v337_v55 }
  0xae   : > { %6940 = vmatprep.mubr.f32.mxu0 %v338_v56 }
  0xb1   : > { %6941 = vmatmul.mubr.f32.gmra.mxu0 %v339_v57 }
  0xb2   : > { %6943 = vmatprep.mubr.f32.mxu0 %v340_v58  ;;  %v7684_v58 = vld [vmem:[%s10707_s4 + $0x2] ss:$0 sm:$0xff] }
  0xb5   : > { %6944 = vmatmul.mubr.f32.gmra.mxu0 %v341_v60 }
  0xb6   : > { %6946 = vmatprep.mubr.f32.mxu0 %v342_v61 }
  0xb9   : > { %6947 = vmatmul.mubr.f32.gmra.mxu0 %v343_v63 }
  0xba   : > { %6949 = vmatprep.mubr.f32.mxu0 %v344_v0 }
  0xbd   : > { %6950 = vmatmul.mubr.f32.gmra.mxu0 %v345_v1  ;;  %v7689_v1 = vsub.s32 0, %v7676_v49 }
  0xbe   : > { %6952 = vmatprep.mubr.f32.mxu0 %v346_v2  ;;  %v7692_v2 = vsub.s32 2, %v7676_v49 }
  0xc1   : > { %6953 = vmatmul.mubr.f32.gmra.mxu0 %v347_v3 }
  0xc2   : > { %6955 = vmatprep.mubr.f32.mxu0 %v348_v6 }
  0xc5   : > { %6956 = vmatmul.mubr.f32.gmra.mxu0 %v349_v10 }
  0xc6   : > { %6958 = vmatprep.mubr.f32.mxu0 %v350_v13 }
  0xc9   : > { %6959 = vmatmul.mubr.f32.gmra.mxu0 %v351_v14 }
  0xca   : > { %6961 = vmatprep.mubr.f32.mxu0 %v352_v15 }
  0xcd   : > { %6962 = vmatmul.mubr.f32.gmra.mxu0 %v353_v16 }
  0xce   : > { %6964 = vmatprep.mubr.f32.mxu0 %v354_v17 }
  0xd1   : > { %6965 = vmatmul.mubr.f32.gmra.mxu0 %v355_v18 }
  0xd2   : > { %6967 = vmatprep.mubr.f32.mxu0 %v356_v20 }
  0xd5   : > { %6968 = vmatmul.mubr.f32.gmra.mxu0 %v357_v21 }
  0xd6   : > { %6970 = vmatprep.mubr.f32.mxu0 %v358_v22 }
  0xd9   : > { %6971 = vmatmul.mubr.f32.gmra.mxu0 %v359_v23 }
  0xda   : > { %6973 = vmatprep.mubr.f32.mxu0 %v360_v24 }
  0xdd   : > { %6974 = vmatmul.mubr.f32.gmra.mxu0 %v361_v25 }
  0xde   : > { %6976 = vmatprep.mubr.f32.mxu0 %v362_v26 }
  0xe1   : > { %6977 = vmatmul.mubr.f32.gmra.mxu0 %v363_v27 }
  0xe2   : > { %6979 = vmatprep.mubr.f32.mxu0 %v364_v28 }
  0xe5   : > { %6980 = vmatmul.mubr.f32.gmra.mxu0 %v365_v29 }
  0xe6   : > { %6982 = vmatprep.mubr.f32.mxu0 %v366_v30 }
  0xe9   : > { %6983 = vmatmul.mubr.f32.gmra.mxu0 %v367_v31 }
  0xea   : > { %6985 = vmatprep.mubr.f32.mxu0 %v368_v32 }
  0xed   : > { %6986 = vmatmul.mubr.f32.gmra.mxu0 %v369_v33 }
  0xee   : > { %6988 = vmatprep.mubr.f32.mxu0 %v370_v34 }
  0xf1   : > { %6989 = vmatmul.mubr.f32.gmra.mxu0 %v371_v35 }
  0xf2   : > { %6991 = vmatprep.mubr.f32.mxu0 %v372_v36 }
  0xf5   : > { %v6849_v41 = vpop.f32.mrf.mxu0  ;;  %6992 = vmatmul.mubr.f32.gmra.mxu0 %v373_v37  ;;  %v6999_v42 = vpop.f32.mrf.mxu1 }
  0xf6   : > { %v497_v43 = vadd.f32 %v6849_v41, %v7665_v38  ;;  %v997_v44 = vadd.f32 %v6999_v42, %v7665_v38  ;;  %6994 = vmatprep.mubr.f32.mxu0 %v374_v39 }
  0xf7   : > { %v491_v47 = vpop.f32.mrf.mxu0  ;;  %v991_v48 = vpop.f32.mrf.mxu1 }
  0xf8   : > { %v1131_v50 = vmax.f32 %v497_v43, 0.0  ;;  %v1231_v51 = vmax.f32 %v997_v44, 0.0  ;;  %v492_v52 = vadd.f32 %v7665_v38, %v491_v47  ;;  %v992_v53 = vadd.f32 %v7665_v38, %v991_v48 }
  0xf9   : > { %v6852_v54 = vpop.f32.mrf.mxu0  ;;  %6995 = vmatmul.mubr.f32.gmra.mxu0 %v375_v45  ;;  %v7002_v55 = vpop.f32.mrf.mxu1 }
  0xfa   : > { %v1264_v56 = vmul.f32 %v7674_v46, %v1131_v50  ;;  %v1130_v57 = vmax.f32 %v492_v52, 0.0  ;;  %v1364_v59 = vmul.f32 %v7674_v46, %v1231_v51  ;;  %v1230_v60 = vmax.f32 %v992_v53, 0.0 }
  0xfb   : > { %v507_v61 = vadd.f32 %v6852_v54, %v7665_v38  ;;  %v501_v63 = vpop.f32.mrf.mxu0  ;;  %v1001_v0 = vpop.f32.mrf.mxu1  ;;  %v7696_v5 = vadd.f32 %v7002_v55, %v7665_v38 }
  0xfc   : > { %v1263_v3 = vmul.f32 %v7674_v46, %v1130_v57  ;;  %v502_v6 = vadd.f32 %v7665_v38, %v501_v63  ;;  %v1397_v9 = vadd.f32 %v7684_v58, %v1264_v56  ;;  %v7704_v13 = vadd.f32 %v7684_v58, %v1364_v59 }
  0xfd   : > { %v1133_v4 = vmax.f32 %v507_v61, 0.0  ;;  %10734 = vst [vmem:[#allocation10_spill] sm:$0xff] %v7696_v5  ;;  %v6855_v7 = vpop.f32.mrf.mxu0  ;;  %v7005_v8 = vpop.f32.mrf.mxu1  ;;  %v1363_v14 = vmul.f32 %v7674_v46, %v1230_v60  ;;  %v7714_v27 = vadd.f32 %v7665_v38, %v1001_v0 }
  0xfe   : > { %v517_v10 = vadd.f32 %v6855_v7, %v7665_v38  ;;  %v1017_v11 = vadd.f32 %v7005_v8, %v7665_v38  ;;  %10735 = vst [vmem:[#allocation11_spill] sm:$0xff] %v7704_v13  ;;  %v1132_v16 = vmax.f32 %v502_v6, 0.0  ;;  %v1396_v24 = vadd.f32 %v7684_v58, %v1263_v3 }
  0xff   : > { %v1266_v15 = vmul.f32 %v7674_v46, %v1133_v4  ;;  %v511_v17 = vpop.f32.mrf.mxu0  ;;  %v1011_v18 = vpop.f32.mrf.mxu1  ;;  %10736 = vst [vmem:[#allocation12_spill] sm:$0xff] %v7714_v27  ;;  %v7719_v34 = vadd.f32 %v7684_v58, %v1363_v14 }
 0x100   : > { %v1135_v20 = vmax.f32 %v517_v10, 0.0  ;;  %v1235_v21 = vmax.f32 %v1017_v11, 0.0  ;;  %v512_v22 = vadd.f32 %v7665_v38, %v511_v17  ;;  %v1012_v23 = vadd.f32 %v7665_v38, %v1011_v18 }
 0x101   : > { %v1265_v26 = vmul.f32 %v7674_v46, %v1132_v16  ;;  %v6858_v28 = vpop.f32.mrf.mxu0  ;;  %v7008_v29 = vpop.f32.mrf.mxu1  ;;  %10737 = vst [vmem:[#allocation13_spill] sm:$0xff] %v7719_v34  ;;  %v1399_v35 = vadd.f32 %v7684_v58, %v1266_v15 }
 0x102   : > { %v1268_v30 = vmul.f32 %v7674_v46, %v1135_v20  ;;  %v1368_v31 = vmul.f32 %v7674_v46, %v1235_v21  ;;  %v1134_v32 = vmax.f32 %v512_v22, 0.0  ;;  %v1234_v33 = vmax.f32 %v1012_v23, 0.0 }
 0x103   : > { %v527_v36 = vadd.f32 %v6858_v28, %v7665_v38  ;;  %v1027_v37 = vadd.f32 %v7008_v29, %v7665_v38  ;;  %v521_v39 = vpop.f32.mrf.mxu0  ;;  %v1398_v40 = vadd.f32 %v7684_v58, %v1265_v26  ;;  %v1021_v44 = vpop.f32.mrf.mxu1 }
 0x104   : > { %v1401_v41 = vadd.f32 %v7684_v58, %v1268_v30  ;;  %v1267_v42 = vmul.f32 %v7674_v46, %v1134_v32  ;;  %v1367_v43 = vmul.f32 %v7674_v46, %v1234_v33  ;;  %v522_v48 = vadd.f32 %v7665_v38, %v521_v39 }
 0x105   : > { %v1137_v45 = vmax.f32 %v527_v36, 0.0  ;;  %v1237_v47 = vmax.f32 %v1027_v37, 0.0  ;;  %v1022_v50 = vadd.f32 %v7665_v38, %v1021_v44  ;;  %v6861_v51 = vpop.f32.mrf.mxu0  ;;  %v7731_v53 = vadd.f32 %v7684_v58, %v1368_v31  ;;  %v7011_v29 = vpop.f32.mrf.mxu1 }
 0x106   : > { %v1525_v52 = vmax.f32 %v1397_v9, %v1401_v41  ;;  %v1400_v54 = vadd.f32 %v7684_v58, %v1267_v42  ;;  %v537_v55 = vadd.f32 %v6861_v51, %v7665_v38  ;;  %v1136_v59 = vmax.f32 %v522_v48, 0.0 }
 0x107   : > { %v1270_v56 = vmul.f32 %v7674_v46, %v1137_v45  ;;  %v1370_v57 = vmul.f32 %v7674_v46, %v1237_v47  ;;  %v1236_v60 = vmax.f32 %v1022_v50, 0.0  ;;  %v7737_v61 = vpop.f32.mrf.mxu0  ;;  %v7740_v6 = vadd.f32 %v7684_v58, %v1367_v43 }
 0x108   : > { %v1653_v63 = vcombine.high %v1525_v52, %v1525_v52  ;;  %v6329_v0 = vrot.slane %v1525_v52, 9  ;;  %v1524_v3 = vmax.f32 %v1396_v24, %v1400_v54  ;;  %v1139_v4 = vmax.f32 %v537_v55, 0.0 }
 0x109   : > { %v1403_v7 = vadd.f32 %v7684_v58, %v1270_v56  ;;  %v1269_v8 = vmul.f32 %v7674_v46, %v1136_v59  ;;  %v1369_v9 = vmul.f32 %v7674_v46, %v1236_v60  ;;  %v7745_v10 = vpop.f32.mrf.mxu0  ;;  %v7748_v18 = vadd.f32 %v7684_v58, %v1370_v57 }
 0x10a   : > { %v6330_v11 = vrot.slane %v1653_v63, 9  ;;  %v2166_v14 = vmax.f32 %v1525_v52, %v6329_v0  ;;  %v1652_v15 = vcombine.high %v1524_v3, %v1524_v3  ;;  %v6327_v16 = vrot.slane %v1524_v3, 9  ;;  %v1031_v52 = vpop.f32.mrf.mxu1 }
 0x10b   : > { %v1527_v17 = vmax.f32 %v1399_v35, %v1403_v7  ;;  %v1402_v20 = vadd.f32 %v7684_v58, %v1269_v8  ;;  %v7752_v21 = vadd.f32 %v7684_v58, %v1369_v9  ;;  %v7754_v22 = vpop.f32.mrf.mxu0  ;;  %v7758_v28 = vmul.f32 %v7674_v46, %v1139_v4 }
 0x10c   : > { %v2167_v23 = vmax.f32 %v1653_v63, %v6330_v11  ;;  %v2513_v24 = vrot.slane %v2166_v14, %v7689_v1  ;;  %v6328_v26 = vrot.slane %v1652_v15, 9  ;;  %v2164_v30 = vmax.f32 %v1524_v3, %v6327_v16 }
 0x10d   : > { %v1655_v31 = vcombine.high %v1527_v17, %v1527_v17  ;;  %v6333_v32 = vrot.slane %v1527_v17, 9  ;;  %v1526_v33 = vmax.f32 %v1398_v40, %v1402_v20  ;;  %v7760_v35 = vpop.f32.mrf.mxu0  ;;  %v3177_v37 = vrot.slane %v2166_v14, %v7692_v2  ;;  %v7014_v20 = vpop.f32.mrf.mxu1 }
 0x10e   : > { %v2517_v36 = vrot.slane %v2167_v23, %v7689_v1  ;;  %v3181_v39 = vrot.slane %v2167_v23, %v7692_v2  ;;  %v2165_v41 = vmax.f32 %v1652_v15, %v6328_v26  ;;  %v2505_v42 = vrot.slane %v2164_v30, %v7689_v1 }
 0x10f   : > { %v3169_v43 = vrot.slane %v2164_v30, %v7692_v2  ;;  %v6334_v44 = vrot.slane %v1655_v31, 9  ;;  %v2170_v45 = vmax.f32 %v1527_v17, %v6333_v32  ;;  %v7767_v47 = vpop.f32.mrf.mxu0  ;;  %v1654_v50 = vcombine.high %v1526_v33, %v1526_v33 }
 0x110   : > { %v2509_v40 = vrot.slane %v2165_v41, %v7689_v1  ;;  %v3173_v48 = vrot.slane %v2165_v41, %v7692_v2  ;;  %v6331_v51 = vrot.slane %v1526_v33, 9  ;;  %v1037_v57 = vadd.f32 %v7011_v29, %v7665_v38 }
 0x111   : > { %v2171_v54 = vmax.f32 %v1655_v31, %v6334_v44  ;;  %v2529_v55 = vrot.slane %v2170_v45, %v7689_v1  ;;  %v3193_v56 = vrot.slane %v2170_v45, %v7692_v2  ;;  %v7774_v59 = vpop.f32.mrf.mxu0  ;;  %v6332_v0 = vrot.slane %v1654_v50, 9 }
 0x112   : > { %v3015_v60 = vsel %vm3014_vm4, %v2509_v40, %v2505_v42  ;;  %v3678_v63 = vsel %vm10730_vm5, %v3173_v48, %v3169_v43  ;;  %v2168_v3 = vmax.f32 %v1526_v33, %v6331_v51  ;;  %v1239_v26 = vmax.f32 %v1037_v57, 0.0  ;;  %v1041_v48 = vpop.f32.mrf.mxu1 }
 0x113   : > { %v3017_v4 = vsel %vm3016_vm6, %v2513_v24, %v3015_v60  ;;  %v3679_v7 = vsel %vm3020_vm7, %v3177_v37, %v3678_v63  ;;  %v2533_v8 = vrot.slane %v2171_v54, %v7689_v1  ;;  %v3197_v9 = vrot.slane %v2171_v54, %v7692_v2  ;;  %v7782_v11 = vpop.f32.mrf.mxu0 }
 0x114   : > { %v2169_v14 = vmax.f32 %v1654_v50, %v6332_v0  ;;  %v2521_v15 = vrot.slane %v2168_v3, %v7689_v1  ;;  %v3019_v16 = vsel %vm10730_vm5, %v2517_v36, %v3017_v4  ;;  %v3185_v17 = vrot.slane %v2168_v3, %v7692_v2 }
 0x115   : > { %v3683_v23 = vsel %vm3014_vm4, %v3197_v9, %v3193_v56  ;;  %v3680_v24 = vsel %vm3022_vm8, %v3181_v39, %v3679_v7  ;;  %v532_v29 = vadd.f32 %v7665_v38, %v7737_v61  ;;  %v7791_v30 = vpop.f32.mrf.mxu0  ;;  %v1372_v37 = vmul.f32 %v7674_v46, %v1239_v26 }
 0x116   : > { %3809 = vst.msk [vmem:[#allocation2 + $0x167] sm:$0x3] %vm10727_vm1, %v3683_v23  ;;  %v2525_v31 = vrot.slane %v2169_v14, %v7689_v1  ;;  %v3021_v32 = vsel %vm3020_vm7, %v2521_v15, %v3019_v16  ;;  %v3189_v33 = vrot.slane %v2169_v14, %v7692_v2  ;;  %v3681_v36 = vsel %vm3024_vm9, %v3185_v17, %v3680_v24 }
 0x117   : > { %v1138_v41 = vmax.f32 %v532_v29, 0.0  ;;  %v1032_v39 = vadd.f32 %v7665_v38, %v1031_v52  ;;  %v547_v61 = vadd.f32 %v7745_v10, %v7665_v38  ;;  %v7802_v42 = vpop.f32.mrf.mxu0  ;;  %v1047_v45 = vadd.f32 %v7014_v20, %v7665_v38 }
 0x118   : > { %v3023_v43 = vsel %vm3022_vm8, %v2525_v31, %v3021_v32  ;;  %v3682_v44 = vsel %vm3026_vm10, %v3189_v33, %v3681_v36  ;;  %v542_v40 = vadd.f32 %v7665_v38, %v7754_v22  ;;  %v1505_v51 = vadd.f32 %v7684_v58, %v1372_v37  ;;  %v7017_v33 = vpop.f32.mrf.mxu1 }
 0x119   : > { %v3025_v50 = vsel %vm3024_vm9, %v2529_v55, %v3023_v43  ;;  %3808 = vst.msk [vmem:[#allocation2 + $0x15f] sm:$0xfc] %vm10728_vm11, %v3682_v44  ;;  %v1271_v10 = vmul.f32 %v7674_v46, %v1138_v41  ;;  %v1238_v52 = vmax.f32 %v1032_v39, 0.0  ;;  %v7813_v54 = vpop.f32.mrf.mxu0  ;;  %v1141_v57 = vmax.f32 %v547_v61, 0.0 }
 0x11a   : > { %v3027_v56 = vsel %vm3026_vm10, %v2533_v8, %v3025_v50  ;;  %v1241_v60 = vmax.f32 %v1047_v45, 0.0  ;;  %v1140_v63 = vmax.f32 %v542_v40, 0.0  ;;  %v1405_v22 = vadd.f32 %v7684_v58, %v7758_v28 }
 0x11b   : > { %3150 = vst.msk [vmem:[#allocation2 + $0x21] sm:$0xff] %vm2292_vm0, %v3027_v56  ;;  %v1577_v55 = vmax.f32 %v7731_v53, %v1505_v51  ;;  %v1371_v0 = vmul.f32 %v7674_v46, %v1238_v52  ;;  %v1042_v3 = vadd.f32 %v7665_v38, %v1041_v48  ;;  %v7822_v4 = vpop.f32.mrf.mxu0  ;;  %v1274_v7 = vmul.f32 %v7674_v46, %v1141_v57 }
 0x11c   : > { %v1374_v8 = vmul.f32 %v7674_v46, %v1241_v60  ;;  %v1273_v9 = vmul.f32 %v7674_v46, %v1140_v63  ;;  %v557_v14 = vadd.f32 %v7760_v35, %v7665_v38  ;;  %v7833_v20 = vadd.f32 %v7684_v58, %v1271_v10 }
 0x11d   : > { %v1705_v15 = vcombine.high %v1577_v55, %v1577_v55  ;;  %v6433_v16 = vrot.slane %v1577_v55, 9  ;;  %v1504_v28 = vadd.f32 %v7684_v58, %v1371_v0  ;;  %v1240_v53 = vmax.f32 %v1042_v3, 0.0  ;;  %v7830_v17 = vpop.f32.mrf.mxu0 }
 0x11e   : > { %v7836_v23 = vadd.f32 %v7684_v58, %v1274_v7  ;;  %v1507_v24 = vadd.f32 %v7684_v58, %v1374_v8  ;;  %v1143_v26 = vmax.f32 %v557_v14, 0.0  ;;  %v7845_v41 = vadd.f32 %v7684_v58, %v1273_v9 }
 0x11f   : > { %v6434_v29 = vrot.slane %v1705_v15, 9  ;;  %v2270_v31 = vmax.f32 %v1577_v55, %v6433_v16  ;;  %v1576_v35 = vmax.f32 %v7740_v6, %v1504_v28  ;;  %v1373_v32 = vmul.f32 %v7674_v46, %v1240_v53  ;;  %v7841_v36 = vpop.f32.mrf.mxu0 }
 0x120   : > { %v1579_v37 = vmax.f32 %v7748_v18, %v1507_v24  ;;  %v1276_v39 = vmul.f32 %v7674_v46, %v1143_v26  ;;  %v7849_v61 = vadd.f32 %v7017_v33, %v7665_v38  ;;  %v7851_v43 = vld [vmem:[#allocation2 + $0x160] sm:$0xff]  ;;  %v7856_v40 = vadd.f32 %v7665_v38, %v7767_v47 }
 0x121   : > { %v2271_v44 = vmax.f32 %v1705_v15, %v6434_v29  ;;  %v2929_v6 = vrot.slane %v2270_v31, %v7689_v1  ;;  %v1704_v45 = vcombine.high %v1576_v35, %v1576_v35  ;;  %3934 = vrot.lane.b32.xlu1 %v7851_v43, %s7215_s9  ;;  %v7860_v18 = vpop.f32.mrf.mxu0  ;;  %v6431_v48 = vrot.slane %v1576_v35, 9  ;;  %4447 = vrot.lane.b32.xlu0 %v7851_v43, %s7212_s23  ;;  %v1051_v29 = vpop.f32.mrf.mxu1 }
 0x122   : > { %v1707_v50 = vcombine.high %v1579_v37, %v1579_v37  ;;  %v6437_v51 = vrot.slane %v1579_v37, 9  ;;  %v1506_v10 = vadd.f32 %v7684_v58, %v1373_v32  ;;  %v7865_v52 = vld [vmem:[#allocation2 + $0x20] sm:$0xff]  ;;  %v3593_v47 = vrot.slane %v2270_v31, %v7692_v2 }
 0x123   : > { %v2933_v56 = vrot.slane %v2271_v44, %v7689_v1  ;;  %v6432_v57 = vrot.slane %v1704_v45, 9  ;;  %v1409_v60 = vadd.f32 %v7684_v58, %v1276_v39  ;;  %v7870_v63 = vpop.f32.mrf.mxu0  ;;  %3917 = vst.msk [vmem:[#allocation3 + $0x20] sm:$0xff] %vm2292_vm0, %v7865_v52  ;;  %v2268_v55 = vmax.f32 %v1576_v35, %v6431_v48 }
 0x124   : > { %v6438_v0 = vrot.slane %v1707_v50, 9  ;;  %v2274_v3 = vmax.f32 %v1579_v37, %v6437_v51  ;;  %v1578_v7 = vmax.f32 %v7752_v21, %v1506_v10  ;;  %v3597_v8 = vrot.slane %v2271_v44, %v7692_v2 }
 0x125   : > { %v2269_v9 = vmax.f32 %v1704_v45, %v6432_v57  ;;  %v1529_v14 = vmax.f32 %v1405_v22, %v1409_v60  ;;  %v1243_v15 = vmax.f32 %v7849_v61, 0.0  ;;  %4414 = vrot.lane.b32.xlu1 %v7865_v52, %s10713_s22  ;;  %v7879_v16 = vpop.f32.mrf.mxu0  ;;  %v2921_v28 = vrot.slane %v2268_v55, %v7689_v1 }
 0x126   : > { %v3585_v53 = vrot.slane %v2268_v55, %v7692_v2  ;;  %v2275_v24 = vmax.f32 %v1707_v50, %v6438_v0  ;;  %v1142_v26 = vmax.f32 %v7856_v40, 0.0  ;;  %v2945_v22 = vrot.slane %v2274_v3, %v7689_v1  ;;  %v7020_v55 = vpop.f32.mrf.mxu1 }
 0x127   : > { %v2925_v21 = vrot.slane %v2269_v9, %v7689_v1  ;;  %v3589_v31 = vrot.slane %v2269_v9, %v7692_v2  ;;  %v1706_v35 = vcombine.high %v1578_v7, %v1578_v7  ;;  %v7887_v32 = vpop.f32.mrf.mxu0  ;;  %v3609_v33 = vrot.slane %v2274_v3, %v7692_v2 }
 0x128   : > { %v3613_v37 = vrot.slane %v2275_v24, %v7692_v2  ;;  %v6435_v39 = vrot.slane %v1578_v7, 9  ;;  %v1657_v61 = vcombine.high %v1529_v14, %v1529_v14  ;;  %v6337_v48 = vrot.slane %v1529_v14, 9 }
 0x129   : > { %v3112_v44 = vsel %vm3014_vm4, %v2925_v21, %v2921_v28  ;;  %v3756_v45 = vsel %vm10730_vm5, %v3589_v31, %v3585_v53  ;;  %v6436_v40 = vrot.slane %v1706_v35, 9  ;;  %v7893_v50 = vpop.f32.mrf.mxu0  ;;  %v2949_v21 = vrot.slane %v2275_v24, %v7689_v1 }
 0x12a   : > { %v3113_v51 = vsel %vm3016_vm6, %v2929_v6, %v3112_v44  ;;  %v3757_v10 = vsel %vm3020_vm7, %v3593_v47, %v3756_v45  ;;  %v3761_v57 = vsel %vm3014_vm4, %v3613_v37, %v3609_v33  ;;  %v2272_v60 = vmax.f32 %v1578_v7, %v6435_v39  ;;  %v1061_v44 = vpop.f32.mrf.mxu1 }
 0x12b   : > { %3835 = vst.msk [vmem:[#allocation2 + $0x237] sm:$0x3] %vm10727_vm1, %v3761_v57  ;;  %v2273_v0 = vmax.f32 %v1706_v35, %v6436_v40  ;;  %v3114_v3 = vsel %vm10730_vm5, %v2933_v56, %v3113_v51  ;;  %v3758_v9 = vsel %vm3022_vm8, %v3597_v8, %v3757_v10  ;;  %v6338_v28 = vrot.slane %v1657_v61, 9  ;;  %v7901_v53 = vpop.f32.mrf.mxu0 }
 0x12c   : > { %v2937_v6 = vrot.slane %v2272_v60, %v7689_v1  ;;  %v3601_v47 = vrot.slane %v2272_v60, %v7692_v2  ;;  %v7906_v31 = vmax.f32 %v1529_v14, %v6337_v48  ;;  %v1275_v56 = vmul.f32 %v7674_v46, %v1142_v26 }
 0x12d   : > { %v2941_v7 = vrot.slane %v2273_v0, %v7689_v1  ;;  %v3605_v33 = vrot.slane %v2273_v0, %v7692_v2  ;;  %v7910_v35 = vmax.f32 %v1657_v61, %v6338_v28  ;;  %v7913_v8 = vpop.f32.mrf.mxu0  ;;  %v1376_v14 = vmul.f32 %v7674_v46, %v1243_v15 }
 0x12e   : > { %v3115_v37 = vsel %vm3020_vm7, %v2937_v6, %v3114_v3  ;;  %v3759_v24 = vsel %vm3024_vm9, %v3601_v47, %v3758_v9  ;;  %v2545_v39 = vrot.slane %v7906_v31, %v7689_v1  ;;  %v3209_v26 = vrot.slane %v7906_v31, %v7692_v2  ;;  %v7023_v47 = vpop.f32.mrf.mxu1 }
 0x12f   : > { %v3116_v45 = vsel %vm3022_vm8, %v2941_v7, %v3115_v37  ;;  %v3760_v40 = vsel %vm3026_vm10, %v3605_v33, %v3759_v24  ;;  %v2549_v61 = vrot.slane %v7910_v35, %v7689_v1  ;;  %v7926_v48 = vpop.f32.mrf.mxu0  ;;  %v3213_v15 = vrot.slane %v7910_v35, %v7692_v2 }
 0x130   : > { %v3117_v51 = vsel %vm3024_vm9, %v2945_v22, %v3116_v45  ;;  %3834 = vst.msk [vmem:[#allocation2 + $0x22f] sm:$0xfc] %vm10728_vm11, %v3760_v40  ;;  %v1408_v10 = vadd.f32 %v7684_v58, %v1275_v56  ;;  %v1052_v57 = vadd.f32 %v7665_v38, %v1051_v29  ;;  %v567_v0 = vadd.f32 %v7774_v59, %v7665_v38 }
 0x131   : > { %v3118_v60 = vsel %vm3026_vm10, %v2949_v21, %v3117_v51  ;;  %v1067_v3 = vadd.f32 %v7020_v55, %v7665_v38  ;;  %v562_v9 = vadd.f32 %v7665_v38, %v7782_v11  ;;  %v1062_v6 = vadd.f32 %v7665_v38, %v1061_v44  ;;  %v7945_v21 = vpop.f32.mrf.mxu0 }
 0x132   : > { %3163 = vst.msk [vmem:[#allocation2 + $0xf1] sm:$0xff] %vm2292_vm0, %v3118_v60  ;;  %v1528_v22 = vmax.f32 %v7833_v20, %v1408_v10  ;;  %v1242_v28 = vmax.f32 %v1052_v57, 0.0  ;;  %v577_v29 = vadd.f32 %v7791_v30, %v7665_v38  ;;  %v1145_v7 = vmax.f32 %v567_v0, 0.0 }
 0x133   : > { %v1245_v59 = vmax.f32 %v1067_v3, 0.0  ;;  %v1144_v33 = vmax.f32 %v562_v9, 0.0  ;;  %v1077_v55 = vadd.f32 %v7023_v47, %v7665_v38  ;;  %v1244_v24 = vmax.f32 %v1062_v6, 0.0  ;;  %v7954_v60 = vpop.f32.mrf.mxu0  ;;  %v1071_v6 = vpop.f32.mrf.mxu1 }
 0x134   : > { %v1656_v56 = vcombine.high %v1528_v22, %v1528_v22  ;;  %v6335_v11 = vrot.slane %v1528_v22, 9  ;;  %v1375_v37 = vmul.f32 %v7674_v46, %v1242_v28  ;;  %v1278_v20 = vmul.f32 %v7674_v46, %v1145_v7 }
 0x135   : > { %v1378_v44 = vmul.f32 %v7674_v46, %v1245_v59  ;;  %v1277_v45 = vmul.f32 %v7674_v46, %v1144_v33  ;;  %v1147_v30 = vmax.f32 %v577_v29, 0.0  ;;  %v1509_v40 = vadd.f32 %v7684_v58, %v1376_v14 }
 0x136   : > { %v6336_v51 = vrot.slane %v1656_v56, 9  ;;  %v2172_v10 = vmax.f32 %v1528_v22, %v6335_v11  ;;  %v1377_v57 = vmul.f32 %v7674_v46, %v1244_v24  ;;  %v7957_v0 = vadd.f32 %v7684_v58, %v1375_v37 }
 0x137   : > { %v1411_v3 = vadd.f32 %v7684_v58, %v1278_v20  ;;  %v7961_v9 = vadd.f32 %v7684_v58, %v1378_v44  ;;  %v1410_v28 = vadd.f32 %v7684_v58, %v1277_v45  ;;  %v7964_v29 = vld [vmem:[#allocation2 + $0x230] sm:$0xff]  ;;  %v1280_v7 = vmul.f32 %v7674_v46, %v1147_v30  ;;  %v7981_v45 = vpop.f32.mrf.mxu0 }
 0x138   : > { %10738 = vst [vmem:[#allocation14_spill] sm:$0xff] %v7964_v29  ;;  %v2173_v14 = vmax.f32 %v1656_v56, %v6336_v51  ;;  %v2537_v22 = vrot.slane %v2172_v10, %v7689_v1  ;;  %v3201_v47 = vrot.slane %v2172_v10, %v7692_v2  ;;  %4625 = vst.msk [vmem:[#allocation3 + $0xd0] sm:$0xff] %vm2292_vm0, %v7964_v29  ;;  %v1247_v37 = vmax.f32 %v1077_v55, 0.0 }
 0x139   : > { %v1531_v59 = vmax.f32 %v7836_v23, %v1411_v3  ;;  %v1530_v33 = vmax.f32 %v7845_v41, %v1410_v28  ;;  %v7974_v11 = vadd.f32 %v7684_v58, %v1377_v57  ;;  %v572_v20 = vadd.f32 %v7665_v38, %v7802_v42 }
 0x13a   : > { %v2541_v24 = vrot.slane %v2173_v14, %v7689_v1  ;;  %v3205_v56 = vrot.slane %v2173_v14, %v7692_v2  ;;  %v1072_v44 = vadd.f32 %v7665_v38, %v1071_v6  ;;  %v1380_v55 = vmul.f32 %v7674_v46, %v1247_v37  ;;  %v8001_v37 = vpop.f32.mrf.mxu0 }
 0x13b   : > { %v1659_v30 = vcombine.high %v1531_v59, %v1531_v59  ;;  %v6341_v51 = vrot.slane %v1531_v59, 9  ;;  %v1658_v23 = vcombine.high %v1530_v33, %v1530_v33  ;;  %v6339_v10 = vrot.slane %v1530_v33, 9 }
 0x13c   : > { %v3028_v41 = vsel %vm3014_vm4, %v2541_v24, %v2537_v22  ;;  %v3684_v57 = vsel %vm10730_vm5, %v3205_v56, %v3201_v47  ;;  %v1146_v3 = vmax.f32 %v572_v20, 0.0  ;;  %v7999_v47 = vadd.f32 %v7684_v58, %v1280_v7 }
 0x13d   : > { %v3029_v42 = vsel %vm3016_vm6, %v2545_v39, %v3028_v41  ;;  %v3685_v28 = vsel %vm3020_vm7, %v3209_v26, %v3684_v57  ;;  %v6342_v6 = vrot.slane %v1659_v30, 9  ;;  %v2178_v14 = vmax.f32 %v1531_v59, %v6341_v51 }
 0x13e   : > { %v6340_v25 = vrot.slane %v1658_v23, 9  ;;  %v2176_v12 = vmax.f32 %v1530_v33, %v6339_v10  ;;  %v3030_v22 = vsel %vm10730_vm5, %v2549_v61, %v3029_v42  ;;  %v3686_v31 = vsel %vm3022_vm8, %v3213_v15, %v3685_v28  ;;  %v7026_v10 = vpop.f32.mrf.mxu1 }
 0x13f   : > { %v2179_v39 = vmax.f32 %v1659_v30, %v6342_v6  ;;  %v2561_v24 = vrot.slane %v2178_v14, %v7689_v1  ;;  %v1513_v26 = vadd.f32 %v7684_v58, %v1380_v55  ;;  %v3225_v59 = vrot.slane %v2178_v14, %v7692_v2 }
 0x140   : > { %v2177_v33 = vmax.f32 %v1658_v23, %v6340_v25  ;;  %v2553_v61 = vrot.slane %v2176_v12, %v7689_v1  ;;  %v3217_v7 = vrot.slane %v2176_v12, %v7692_v2  ;;  %v1279_v30 = vmul.f32 %v7674_v46, %v1146_v3  ;;  %v8018_v25 = vpop.f32.mrf.mxu0 }
 0x141   : > { %v3229_v56 = vrot.slane %v2179_v39, %v7692_v2  ;;  %v1581_v20 = vmax.f32 %v1509_v40, %v1513_v26  ;;  %v1246_v51 = vmax.f32 %v1072_v44, 0.0  ;;  %v2565_v23 = vrot.slane %v2179_v39, %v7689_v1 }
 0x142   : > { %v2557_v35 = vrot.slane %v2177_v33, %v7689_v1  ;;  %v3031_v15 = vsel %vm3020_vm7, %v2553_v61, %v3030_v22  ;;  %v3221_v41 = vrot.slane %v2177_v33, %v7692_v2  ;;  %v3687_v57 = vsel %vm3024_vm9, %v3217_v7, %v3686_v31  ;;  %v1081_v31 = vpop.f32.mrf.mxu1  ;;  %v8037_v7 = vpop.f32.mrf.mxu0 }
 0x143   : > { %v3689_v12 = vsel %vm3014_vm4, %v3229_v56, %v3225_v59  ;;  %v1709_v55 = vcombine.high %v1581_v20, %v1581_v20  ;;  %v6441_v40 = vrot.slane %v1581_v20, 9  ;;  %v1379_v42 = vmul.f32 %v7674_v46, %v1246_v51 }
 0x144   : > { %3811 = vst.msk [vmem:[#allocation2 + $0x177] sm:$0x3] %vm10727_vm1, %v3689_v12  ;;  %v3032_v44 = vsel %vm3022_vm8, %v2557_v35, %v3031_v15  ;;  %v3688_v3 = vsel %vm3026_vm10, %v3221_v41, %v3687_v57  ;;  %v587_v28 = vadd.f32 %v7813_v54, %v7665_v38  ;;  %v1087_v39 = vadd.f32 %v7026_v10, %v7665_v38 }
 0x145   : > { %v3033_v6 = vsel %vm3024_vm9, %v2561_v24, %v3032_v44  ;;  %3810 = vst.msk [vmem:[#allocation2 + $0x16f] sm:$0xfc] %vm10728_vm11, %v3688_v3  ;;  %v6442_v14 = vrot.slane %v1709_v55, 9  ;;  %v8030_v22 = vmax.f32 %v1581_v20, %v6441_v40  ;;  %v1512_v59 = vadd.f32 %v7684_v58, %v1379_v42  ;;  %v8060_v40 = vpop.f32.mrf.mxu0 }
 0x146   : > { %v3034_v26 = vsel %vm3026_vm10, %v2565_v23, %v3033_v6  ;;  %v1149_v33 = vmax.f32 %v587_v28, 0.0  ;;  %v582_v61 = vadd.f32 %v7665_v38, %v7822_v4  ;;  %v8045_v56 = vadd.f32 %v7684_v58, %v1279_v30 }
 0x147   : > { %3151 = vst.msk [vmem:[#allocation2 + $0x31] sm:$0xff] %vm2292_vm0, %v3034_v26  ;;  %v8040_v54 = vmax.f32 %v1709_v55, %v6442_v14  ;;  %v2961_v24 = vrot.slane %v8030_v22, %v7689_v1  ;;  %v1249_v20 = vmax.f32 %v1087_v39, 0.0  ;;  %v1580_v51 = vmax.f32 %v7957_v0, %v1512_v59 }
 0x148   : > { %v1282_v10 = vmul.f32 %v7674_v46, %v1149_v33  ;;  %v1148_v35 = vmax.f32 %v582_v61, 0.0  ;;  %v1082_v4 = vadd.f32 %v7665_v38, %v1081_v31  ;;  %v3625_v41 = vrot.slane %v8030_v22, %v7692_v2 }
 0x149   : > { %v2965_v15 = vrot.slane %v8040_v54, %v7689_v1  ;;  %v1382_v57 = vmul.f32 %v7674_v46, %v1249_v20  ;;  %v597_v30 = vadd.f32 %v7830_v17, %v7665_v38  ;;  %v3629_v23 = vrot.slane %v8040_v54, %v7692_v2 }
 0x14a   : > { %v1708_v0 = vcombine.high %v1580_v51, %v1580_v51  ;;  %v6439_v12 = vrot.slane %v1580_v51, 9  ;;  %v1281_v55 = vmul.f32 %v7674_v46, %v1148_v35  ;;  %v1248_v3 = vmax.f32 %v1082_v4, 0.0 }
 0x14b   : > { %v1515_v44 = vadd.f32 %v7684_v58, %v1382_v57  ;;  %v1151_v42 = vmax.f32 %v597_v30, 0.0  ;;  %v592_v28 = vadd.f32 %v7665_v38, %v7841_v36  ;;  %v1415_v17 = vadd.f32 %v7684_v58, %v1282_v10 }
 0x14c   : > { %v6440_v6 = vrot.slane %v1708_v0, 9  ;;  %v2276_v14 = vmax.f32 %v1580_v51, %v6439_v12  ;;  %v8067_v22 = vadd.f32 %v7684_v58, %v1281_v55  ;;  %v8069_v39 = vld [vmem:[#allocation2 + $0x170] sm:$0xff]  ;;  %v1381_v26 = vmul.f32 %v7674_v46, %v1248_v3  ;;  %v8080_v51 = vpop.f32.mrf.mxu0 }
 0x14d   : > { %v1583_v31 = vmax.f32 %v7961_v9, %v1515_v44  ;;  %v1284_v59 = vmul.f32 %v7674_v46, %v1151_v42  ;;  %v1150_v33 = vmax.f32 %v592_v28, 0.0  ;;  %4619 = vst.msk [vmem:[#allocation3 + $0x10] sm:$0xff] %vm2292_vm0, %v8069_v39  ;;  %v607_v20 = vadd.f32 %v7860_v18, %v7665_v38 }
 0x14e   : > { %v2277_v36 = vmax.f32 %v1708_v0, %v6440_v6  ;;  %v2953_v61 = vrot.slane %v2276_v14, %v7689_v1  ;;  %v3617_v54 = vrot.slane %v2276_v14, %v7692_v2  ;;  %v1514_v35 = vadd.f32 %v7684_v58, %v1381_v26  ;;  %v8093_v26 = vpop.f32.mrf.mxu0 }
 0x14f   : > { %v1711_v10 = vcombine.high %v1583_v31, %v1583_v31  ;;  %v6445_v9 = vrot.slane %v1583_v31, 9  ;;  %v1417_v4 = vadd.f32 %v7684_v58, %v1284_v59  ;;  %v1283_v0 = vmul.f32 %v7674_v46, %v1150_v33 }
 0x150   : > { %v2957_v57 = vrot.slane %v2277_v36, %v7689_v1  ;;  %v3621_v30 = vrot.slane %v2277_v36, %v7692_v2  ;;  %v1153_v12 = vmax.f32 %v607_v20, 0.0  ;;  %v1582_v3 = vmax.f32 %v7974_v11, %v1514_v35 }
 0x151   : > { %v6446_v55 = vrot.slane %v1711_v10, 9  ;;  %v2282_v44 = vmax.f32 %v1583_v31, %v6445_v9  ;;  %v1533_v18 = vmax.f32 %v7999_v47, %v1417_v4  ;;  %v1416_v6 = vadd.f32 %v7684_v58, %v1283_v0 }
 0x152   : > { %v3119_v42 = vsel %vm3014_vm4, %v2957_v57, %v2953_v61  ;;  %v3762_v28 = vsel %vm10730_vm5, %v3621_v30, %v3617_v54  ;;  %v1286_v14 = vmul.f32 %v7674_v46, %v1153_v12  ;;  %v1710_v47 = vcombine.high %v1582_v3, %v1582_v3 }
 0x153   : > { %v3120_v59 = vsel %vm3016_vm6, %v2961_v24, %v3119_v42  ;;  %v3763_v33 = vsel %vm3020_vm7, %v3625_v41, %v3762_v28  ;;  %v2283_v36 = vmax.f32 %v1711_v10, %v6446_v55  ;;  %v2977_v31 = vrot.slane %v2282_v44, %v7689_v1  ;;  %v8104_v10 = vpop.f32.mrf.mxu0 }
 0x154   : > { %v3641_v11 = vrot.slane %v2282_v44, %v7692_v2  ;;  %v6443_v20 = vrot.slane %v1582_v3, 9  ;;  %v3121_v61 = vsel %vm10730_vm5, %v2965_v15, %v3120_v59  ;;  %v3764_v35 = vsel %vm3022_vm8, %v3629_v23, %v3763_v33 }
 0x155   : > { %v2981_v54 = vrot.slane %v2283_v36, %v7689_v1  ;;  %v3645_v9 = vrot.slane %v2283_v36, %v7692_v2  ;;  %v1661_v4 = vcombine.high %v1533_v18, %v1533_v18  ;;  %v6444_v57 = vrot.slane %v1710_v47, 9 }
 0x156   : > { %v2280_v24 = vmax.f32 %v1582_v3, %v6443_v20  ;;  %v6345_v30 = vrot.slane %v1533_v18, 9  ;;  %v1532_v41 = vmax.f32 %v8045_v56, %v1416_v6  ;;  %v1419_v55 = vadd.f32 %v7684_v58, %v1286_v14 }
 0x157   : > { %v3767_v0 = vsel %vm3014_vm4, %v3645_v9, %v3641_v11  ;;  %v6346_v12 = vrot.slane %v1661_v4, 9  ;;  %v602_v15 = vadd.f32 %v7665_v38, %v7870_v63  ;;  %v2281_v44 = vmax.f32 %v1710_v47, %v6444_v57  ;;  %v8119_v63 = vpop.f32.mrf.mxu0 }
 0x158   : > { %3837 = vst.msk [vmem:[#allocation2 + $0x247] sm:$0x3] %vm10727_vm1, %v3767_v0  ;;  %v2969_v23 = vrot.slane %v2280_v24, %v7689_v1  ;;  %v3633_v3 = vrot.slane %v2280_v24, %v7692_v2  ;;  %v2182_v42 = vmax.f32 %v1533_v18, %v6345_v30  ;;  %v1660_v56 = vcombine.high %v1532_v41, %v1532_v41  ;;  %v3883_v0 = vld [vmem:[#allocation2 + $0x168] sm:$0x3] }
 0x159   : > { %v8113_v28 = vmax.f32 %v1661_v4, %v6346_v12  ;;  %v6343_v6 = vrot.slane %v1532_v41, 9  ;;  %v1535_v59 = vmax.f32 %v1415_v17, %v1419_v55  ;;  %v2973_v33 = vrot.slane %v2281_v44, %v7689_v1 }
 0x15a   : > { %v3122_v14 = vsel %vm3020_vm7, %v2969_v23, %v3121_v61  ;;  %v3637_v36 = vrot.slane %v2281_v44, %v7692_v2  ;;  %v3765_v38 = vsel %vm3024_vm9, %v3633_v3, %v3764_v35  ;;  %v2577_v11 = vrot.slane %v2182_v42, %v7689_v1  ;;  %v8133_v23 = vpop.f32.mrf.mxu0 }
 0x15b   : > { %v2581_v18 = vrot.slane %v8113_v28, %v7689_v1  ;;  %v3241_v47 = vrot.slane %v2182_v42, %v7692_v2  ;;  %v4050_v20 = vrot.slane %v7851_v43, 1  ;;  %v3123_v17 = vsel %vm3022_vm8, %v2973_v33, %v3122_v14 }
 0x15c   : > { %v3766_v9 = vsel %vm3026_vm10, %v3637_v36, %v3765_v38  ;;  %v6344_v61 = vrot.slane %v1660_v56, 9  ;;  %v2180_v4 = vmax.f32 %v1532_v41, %v6343_v6  ;;  %v3124_v57 = vsel %vm3024_vm9, %v2977_v31, %v3123_v17  ;;  %v8146_v6 = vld [vmem:[%s10707_s4] ss:$0 sm:$0xff] }
 0x15d   : > { %3836 = vst.msk [vmem:[#allocation2 + $0x23f] sm:$0xfc] %vm10728_vm11, %v3766_v9  ;;  %v1663_v35 = vcombine.high %v1535_v59, %v1535_v59  ;;  %v6349_v24 = vrot.slane %v1535_v59, 9  ;;  %v1152_v30 = vmax.f32 %v602_v15, 0.0  ;;  %v3125_v12 = vsel %vm3026_vm10, %v2981_v54, %v3124_v57 }
 0x15e   : > { %v2181_v55 = vmax.f32 %v1660_v56, %v6344_v61  ;;  %v2569_v44 = vrot.slane %v2180_v4, %v7689_v1  ;;  %v3233_v43 = vrot.slane %v2180_v4, %v7692_v2  ;;  %3164 = vst.msk [vmem:[#allocation2 + $0x101] sm:$0xff] %vm2292_vm0, %v3125_v12  ;;  %v3245_v31 = vrot.slane %v8113_v28, %v7692_v2  ;;  %v3845_v61 = vld [vmem:[#allocation2 + $0x28] sm:$0x3]  ;;  %v8160_v4 = vpop.f32.mrf.mxu0 }
 0x15f   : > { %v6350_v41 = vrot.slane %v1663_v35, 9  ;;  %v8138_v3 = vmax.f32 %v1535_v59, %v6349_v24  ;;  %v1285_v15 = vmul.f32 %v7674_v46, %v1152_v30  ;;  %v4051_v56 = vrot.slane %v3883_v0, 1 }
 0x160   : > { %v2573_v42 = vrot.slane %v2181_v55, %v7689_v1  ;;  %v3237_v54 = vrot.slane %v2181_v55, %v7692_v2  ;;  %v617_v33 = vadd.f32 %v8146_v6, %v7879_v16  ;;  %v612_v59 = vadd.f32 %v8146_v6, %v7887_v32 }
 0x161   : > { %v8150_v14 = vmax.f32 %v1663_v35, %v6350_v41  ;;  %v3257_v28 = vrot.slane %v8138_v3, %v7692_v2  ;;  %v1418_v46 = vadd.f32 %v7684_v58, %v1285_v15  ;;  %v4052_v17 = vsel %vm3981_vm2, %v4050_v20, %v4051_v56  ;;  %v8186_v41 = vpop.f32.mrf.mxu0 }
 0x162   : > { %v3035_v36 = vsel %vm3014_vm4, %v2573_v42, %v2569_v44  ;;  %v3690_v38 = vsel %vm10730_vm5, %v3237_v54, %v3233_v43  ;;  %v1155_v9 = vmax.f32 %v617_v33, 0.0  ;;  %v2593_v58 = vrot.slane %v8138_v3, %v7689_v1  ;;  %4519 = vrot.lane.b32.xlu0 %v4052_v17, %s7214_s8  ;;  %4073 = vrot.lane.b32.xlu1 %v4052_v17, %s7212_s23  ;;  %v8191_v3 = vld [vmem:[%s10707_s4 + $0x2] ss:$0 sm:$0xff] }
 0x163   : > { %v3036_v16 = vsel %vm3016_vm6, %v2577_v11, %v3035_v36  ;;  %v3691_v57 = vsel %vm3020_vm7, %v3241_v47, %v3690_v38  ;;  %v3261_v32 = vrot.slane %v8150_v14, %v7692_v2  ;;  %v2597_v35 = vrot.slane %v8150_v14, %v7689_v1  ;;  %v8176_v11 = vld [vmem:[%s10707_s4 + $0x1] ss:$0 sm:$0xff] }
 0x164   : > { %v1534_v20 = vmax.f32 %v8067_v22, %v1418_v46  ;;  %v3037_v24 = vsel %vm10730_vm5, %v2581_v18, %v3036_v16  ;;  %v1288_v47 = vmul.f32 %v8176_v11, %v1155_v9  ;;  %v1154_v0 = vmax.f32 %v612_v59, 0.0  ;;  %v8208_v16 = vpop.f32.mrf.mxu0 }
 0x165   : > { %v3695_v30 = vsel %vm3014_vm4, %v3261_v32, %v3257_v28  ;;  %v3985_v12 = vrot.slane %v7865_v52, 1  ;;  %v3986_v55 = vrot.slane %v3845_v61, 1  ;;  %v3692_v18 = vsel %vm3022_vm8, %v3245_v31, %v3691_v57 }
 0x166   : > { %3813 = vst.msk [vmem:[#allocation2 + $0x187] sm:$0x3] %vm10727_vm1, %v3695_v30  ;;  %v1662_v22 = vcombine.high %v1534_v20, %v1534_v20  ;;  %v6347_v44 = vrot.slane %v1534_v20, 9  ;;  %v627_v43 = vadd.f32 %v8146_v6, %v7893_v50  ;;  %v1421_v15 = vadd.f32 %v8191_v3, %v1288_v47 }
 0x167   : > { %v3987_v42 = vsel %vm3981_vm2, %v3985_v12, %v3986_v55  ;;  %v622_v54 = vadd.f32 %v8146_v6, %v7901_v53  ;;  %v4108_v56 = vrot.slane %v7865_v52, 2  ;;  %v4109_v28 = vrot.slane %v3845_v61, 2 }
 0x168   : > { %v6348_v31 = vrot.slane %v1662_v22, 9  ;;  %v2184_v33 = vmax.f32 %v1534_v20, %v6347_v44  ;;  %4483 = vrot.lane.b32.xlu0 %v3987_v42, %s7213_s29  ;;  %v1157_v50 = vmax.f32 %v627_v43, 0.0  ;;  %4008 = vrot.lane.b32.xlu1 %v3987_v42, %s10713_s22  ;;  %v1287_v46 = vmul.f32 %v8176_v11, %v1154_v0  ;;  %v8222_v44 = vld [vmem:[#allocation2 + $0xf0] sm:$0xff]  ;;  %v8224_v43 = vld [vmem:[#allocation2 + $0xf8] sm:$0x3] }
 0x169   : > { %v1156_v59 = vmax.f32 %v622_v54, 0.0  ;;  %v637_v36 = vadd.f32 %v8146_v6, %v7913_v8  ;;  %v632_v38 = vadd.f32 %v8146_v6, %v7926_v48  ;;  %v4110_v57 = vsel %vm10725_vm3, %v4108_v56, %v4109_v28  ;;  %v8231_v56 = vpop.f32.mrf.mxu0 }
 0x16a   : > { %v2185_v53 = vmax.f32 %v1662_v22, %v6348_v31  ;;  %v2585_v52 = vrot.slane %v2184_v33, %v7689_v1  ;;  %v3249_v17 = vrot.slane %v2184_v33, %v7692_v2  ;;  %v1290_v9 = vmul.f32 %v8176_v11, %v1157_v50 }
 0x16b   : > { %v1289_v61 = vmul.f32 %v8176_v11, %v1156_v59  ;;  %v1159_v32 = vmax.f32 %v637_v36, 0.0  ;;  %v1158_v20 = vmax.f32 %v632_v38, 0.0  ;;  %v1420_v0 = vadd.f32 %v8191_v3, %v1287_v46 }
 0x16c   : > { %v2589_v8 = vrot.slane %v2185_v53, %v7689_v1  ;;  %v3038_v47 = vsel %vm3020_vm7, %v2585_v52, %v3037_v24  ;;  %v3253_v48 = vrot.slane %v2185_v53, %v7692_v2  ;;  %v3693_v30 = vsel %vm3024_vm9, %v3249_v17, %v3692_v18  ;;  %4554 = vrot.lane.b32.xlu0 %v4110_v57, %s7216_s13 }
 0x16d   : > { %v1423_v12 = vadd.f32 %v8191_v3, %v1290_v9  ;;  %v1292_v55 = vmul.f32 %v8176_v11, %v1159_v32  ;;  %v1291_v22 = vmul.f32 %v8176_v11, %v1158_v20  ;;  %4131 = vrot.lane.b32.xlu1 %v4110_v57, %s7213_s29  ;;  %v1422_v42 = vadd.f32 %v8191_v3, %v1289_v61 }
 0x16e   : > { %v3039_v24 = vsel %vm3022_vm8, %v2589_v8, %v3038_v47  ;;  %v3694_v18 = vsel %vm3026_vm10, %v3253_v48, %v3693_v30  ;;  %v647_v54 = vadd.f32 %v8146_v6, %v7945_v21  ;;  %v642_v28 = vadd.f32 %v8146_v6, %v7954_v60 }
 0x16f   : > { %v3040_v31 = vsel %vm3024_vm9, %v2593_v58, %v3039_v24  ;;  %3812 = vst.msk [vmem:[#allocation2 + $0x17f] sm:$0xfc] %vm10728_vm11, %v3694_v18  ;;  %v1425_v33 = vadd.f32 %v8191_v3, %v1292_v55  ;;  %v1424_v50 = vadd.f32 %v8191_v3, %v1291_v22  ;;  %v4378_v58 = vrot.slane %v8222_v44, 2 }
 0x170   : > { %v3041_v46 = vsel %vm3026_vm10, %v2597_v35, %v3040_v31  ;;  %4225 = vrot.lane.b32.xlu0 %v7964_v29, %s7216_s13  ;;  %v1161_v21 = vmax.f32 %v647_v54, 0.0  ;;  %v4379_v59 = vrot.slane %v8224_v43, 2  ;;  %v1160_v53 = vmax.f32 %v642_v28, 0.0  ;;  %v8275_v28 = vld [vmem:[#allocation2 + $0x30] sm:$0xff] }
 0x171   : > { %3152 = vst.msk [vmem:[#allocation2 + $0x41] sm:$0xff] %vm2292_vm0, %v3041_v46  ;;  %v1537_v36 = vmax.f32 %v1421_v15, %v1425_v33  ;;  %v1536_v38 = vmax.f32 %v1420_v0, %v1424_v50  ;;  %4599 = vrot.lane.b32.xlu1 %v8222_v44, %s7217_s14  ;;  %v657_v60 = vadd.f32 %v8146_v6, %v7981_v45  ;;  %v8260_v15 = vpop.f32.mrf.mxu0 }
 0x172   : > { %v1294_v14 = vmul.f32 %v8176_v11, %v1161_v21  ;;  %v8254_v35 = vsel %vm10725_vm3, %v4378_v58, %v4379_v59  ;;  %v652_v52 = vadd.f32 %v8146_v6, %v8001_v37  ;;  %v667_v17 = vadd.f32 %v8146_v6, %v8018_v25 }
 0x173   : > { %10739 = vst [vmem:[#allocation15_spill] sm:$0xff] %v8254_v35  ;;  %v1665_v9 = vcombine.high %v1537_v36, %v1537_v36  ;;  %v6353_v61 = vrot.slane %v1537_v36, 9  ;;  %v1664_v57 = vcombine.high %v1536_v38, %v1536_v38  ;;  %v6351_v32 = vrot.slane %v1536_v38, 9  ;;  %v8271_v18 = vpop.f32.mrf.mxu0 }
 0x174   : > { %v1427_v20 = vadd.f32 %v8191_v3, %v1294_v14  ;;  %v1293_v45 = vmul.f32 %v8176_v11, %v1160_v53  ;;  %4395 = vrot.lane.b32.xlu0 %v8254_v35, %s7215_s9  ;;  %v1163_v8 = vmax.f32 %v657_v60, 0.0  ;;  %v1162_v47 = vmax.f32 %v652_v52, 0.0 }
 0x175   : > { %v6354_v48 = vrot.slane %v1665_v9, 9  ;;  %v2190_v37 = vmax.f32 %v1537_v36, %v6353_v61  ;;  %v6352_v30 = vrot.slane %v1664_v57, 9  ;;  %v2188_v0 = vmax.f32 %v1536_v38, %v6351_v32  ;;  %4184 = vrot.lane.b32.xlu1 %v8222_v44, %s7214_s8 }
 0x176   : > { %v1539_v25 = vmax.f32 %v1423_v12, %v1427_v20  ;;  %v1426_v55 = vadd.f32 %v8191_v3, %v1293_v45  ;;  %v1296_v22 = vmul.f32 %v8176_v11, %v1163_v8  ;;  %v1295_v24 = vmul.f32 %v8176_v11, %v1162_v47 }
 0x177   : > { %v2191_v54 = vmax.f32 %v1665_v9, %v6354_v48  ;;  %v2609_v31 = vrot.slane %v2190_v37, %v7689_v1  ;;  %v3273_v33 = vrot.slane %v2190_v37, %v7692_v2  ;;  %v2189_v50 = vmax.f32 %v1664_v57, %v6352_v30  ;;  %v8292_v57 = vpop.f32.mrf.mxu0 }
 0x178   : > { %v2601_v46 = vrot.slane %v2188_v0, %v7689_v1  ;;  %v3265_v12 = vrot.slane %v2188_v0, %v7692_v2  ;;  %v1667_v21 = vcombine.high %v1539_v25, %v1539_v25  ;;  %v6357_v58 = vrot.slane %v1539_v25, 9  ;;  %4587 = vrot.lane.b32.xlu0 %v8275_v28, %s7217_s14  ;;  %v8281_v59 = vld [vmem:[#allocation2 + $0x40] sm:$0xff] }
 0x179   : > { %v2613_v36 = vrot.slane %v2191_v54, %v7689_v1  ;;  %v3277_v38 = vrot.slane %v2191_v54, %v7692_v2  ;;  %v2605_v53 = vrot.slane %v2189_v50, %v7689_v1  ;;  %v3269_v60 = vrot.slane %v2189_v50, %v7692_v2  ;;  %3918 = vst.msk [vmem:[#allocation3 + $0x40] sm:$0xff] %vm2292_vm0, %v8281_v59 }
 0x17a   : > { %v6358_v14 = vrot.slane %v1667_v21, 9  ;;  %v2194_v52 = vmax.f32 %v1539_v25, %v6357_v58  ;;  %v1538_v9 = vmax.f32 %v1422_v42, %v1426_v55  ;;  %v8290_v61 = vadd.f32 %v8191_v3, %v1296_v22 }
 0x17b   : > { %v3042_v32 = vsel %vm3014_vm4, %v2605_v53, %v2601_v46  ;;  %v3696_v20 = vsel %vm10730_vm5, %v3269_v60, %v3265_v12  ;;  %v8297_v45 = vadd.f32 %v8191_v3, %v1295_v24  ;;  %v1165_v8 = vmax.f32 %v667_v17, 0.0  ;;  %v7029_v60 = vpop.f32.mrf.mxu1 }
 0x17c   : > { %v3043_v47 = vsel %vm3016_vm6, %v2609_v31, %v3042_v32  ;;  %v3697_v48 = vsel %vm3020_vm7, %v3273_v33, %v3696_v20  ;;  %v2195_v37 = vmax.f32 %v1667_v21, %v6358_v14  ;;  %v2625_v42 = vrot.slane %v2194_v52, %v7689_v1  ;;  %v8308_v31 = vpop.f32.mrf.mxu0  ;;  %v3885_v21 = vld [vmem:[#allocation2 + $0x178] sm:$0x3] }
 0x17d   : > { %v3289_v30 = vrot.slane %v2194_v52, %v7692_v2  ;;  %v1666_v0 = vcombine.high %v1538_v9, %v1538_v9  ;;  %v6355_v25 = vrot.slane %v1538_v9, 9  ;;  %v3044_v55 = vsel %vm10730_vm5, %v2613_v36, %v3043_v47 }
 0x17e   : > { %v2629_v22 = vrot.slane %v2195_v37, %v7689_v1  ;;  %v3293_v54 = vrot.slane %v2195_v37, %v7692_v2  ;;  %v3698_v24 = vsel %vm3022_vm8, %v3277_v38, %v3697_v48  ;;  %v1298_v17 = vmul.f32 %v8176_v11, %v1165_v8  ;;  %v8329_v8 = vpop.f32.mrf.mxu0 }
 0x17f   : > { %v6356_v33 = vrot.slane %v1666_v0, 9  ;;  %v2192_v50 = vmax.f32 %v1538_v9, %v6355_v25  ;;  %v662_v46 = vadd.f32 %v8146_v6, %v8037_v7  ;;  %v4273_v12 = vrot.slane %v8222_v44, 1 }
 0x180   : > { %v3701_v58 = vsel %vm3014_vm4, %v3293_v54, %v3289_v30  ;;  %v8315_v36 = vadd.f32 %v8191_v3, %v1298_v17  ;;  %v4274_v53 = vrot.slane %v8224_v43, 1  ;;  %v4320_v38 = vrot.slane %v8069_v39, 1  ;;  %v1091_v17 = vpop.f32.mrf.mxu1 }
 0x181   : > { %3815 = vst.msk [vmem:[#allocation2 + $0x197] sm:$0x3] %vm10727_vm1, %v3701_v58  ;;  %v2193_v14 = vmax.f32 %v1666_v0, %v6356_v33  ;;  %v2617_v52 = vrot.slane %v2192_v50, %v7689_v1  ;;  %v3281_v7 = vrot.slane %v2192_v50, %v7692_v2  ;;  %v1164_v9 = vmax.f32 %v662_v46, 0.0 }
 0x182   : > { %v8323_v44 = vsel %vm3981_vm2, %v4273_v12, %v4274_v53  ;;  %v4321_v32 = vrot.slane %v3885_v21, 1  ;;  %v677_v20 = vadd.f32 %v8146_v6, %v8060_v40  ;;  %v672_v43 = vadd.f32 %v8146_v6, %v8080_v51  ;;  %v8339_v51 = vld [vmem:[#allocation2 + $0x38] sm:$0x3]  ;;  %v8354_v53 = vpop.f32.mrf.mxu0 }
 0x183   : > { %10740 = vst [vmem:[#allocation16_spill] sm:$0xff] %v8323_v44  ;;  %v2621_v47 = vrot.slane %v2193_v14, %v7689_v1  ;;  %v3045_v48 = vsel %vm3020_vm7, %v2617_v52, %v3044_v55  ;;  %v3285_v37 = vrot.slane %v2193_v14, %v7692_v2  ;;  %v3699_v30 = vsel %vm3024_vm9, %v3281_v7, %v3698_v24 }
 0x184   : > { %4290 = vrot.lane.b32.xlu1 %v8323_v44, %s7217_s14  ;;  %v1297_v0 = vmul.f32 %v8176_v11, %v1164_v9  ;;  %v4322_v40 = vsel %vm3981_vm2, %v4320_v38, %v4321_v32  ;;  %v1167_v25 = vmax.f32 %v677_v20, 0.0  ;;  %v1166_v54 = vmax.f32 %v672_v43, 0.0  ;;  %v7032_v32 = vpop.f32.mrf.mxu1 }
 0x185   : > { %v3046_v33 = vsel %vm3022_vm8, %v2621_v47, %v3045_v48  ;;  %v3700_v55 = vsel %vm3026_vm10, %v3285_v37, %v3699_v30  ;;  %4350 = vst.msk [vmem:[#allocation3 + $0x28] sm:$0xff] %vm2292_vm0, %v4322_v40  ;;  %4668 = vrot.lane.b32.xlu0 %v4322_v40, %s10713_s22  ;;  %v1097_v24 = vadd.f32 %v8146_v6, %v7029_v60  ;;  %v4360_v50 = vrot.slane %v8275_v28, 2 }
 0x186   : > { %v3047_v46 = vsel %vm3024_vm9, %v2625_v42, %v3046_v33  ;;  %3814 = vst.msk [vmem:[#allocation2 + $0x18f] sm:$0xfc] %vm10728_vm11, %v3700_v55  ;;  %v8350_v12 = vadd.f32 %v8191_v3, %v1297_v0  ;;  %v1300_v21 = vmul.f32 %v8176_v11, %v1167_v25  ;;  %v1299_v58 = vmul.f32 %v8176_v11, %v1166_v54  ;;  %v8374_v0 = vpop.f32.mrf.mxu0 }
 0x187   : > { %v3048_v38 = vsel %vm3026_vm10, %v2629_v22, %v3047_v46  ;;  %v1251_v14 = vmax.f32 %v1097_v24, 0.0  ;;  %v4361_v60 = vrot.slane %v8339_v51, 2  ;;  %v687_v42 = vadd.f32 %v8146_v6, %v8093_v26 }
 0x188   : > { %4213 = vrot.lane.b32.xlu1 %v8069_v39, %s7216_s13  ;;  %3153 = vst.msk [vmem:[#allocation2 + $0x51] sm:$0xff] %vm2292_vm0, %v3048_v38  ;;  %v1433_v52 = vadd.f32 %v8191_v3, %v1300_v21  ;;  %v1432_v7 = vadd.f32 %v8191_v3, %v1299_v58  ;;  %v1092_v9 = vadd.f32 %v8146_v6, %v1091_v17 }
 0x189   : > { %v682_v22 = vadd.f32 %v8146_v6, %v8104_v10  ;;  %v1384_v20 = vmul.f32 %v8176_v11, %v1251_v14  ;;  %v4362_v39 = vsel %vm10725_vm3, %v4360_v50, %v4361_v60  ;;  %v1169_v43 = vmax.f32 %v687_v42, 0.0  ;;  %v8391_v42 = vpop.f32.mrf.mxu0 }
 0x18a   : > { %v1107_v47 = vadd.f32 %v8146_v6, %v7032_v32  ;;  %v1541_v26 = vmax.f32 %v8290_v61, %v1433_v52  ;;  %v1540_v48 = vmax.f32 %v8297_v45, %v1432_v7  ;;  %4383 = vrot.lane.b32.xlu0 %v4362_v39, %s7215_s9  ;;  %v1250_v37 = vmax.f32 %v1092_v9, 0.0 }
 0x18b   : > { %v1168_v30 = vmax.f32 %v682_v22, 0.0  ;;  %v8377_v10 = vadd.f32 %v8191_v3, %v1384_v20  ;;  %v1302_v40 = vmul.f32 %v8176_v11, %v1169_v43  ;;  %v697_v61 = vadd.f32 %v8146_v6, %v8119_v63  ;;  %v1101_v63 = vpop.f32.mrf.mxu1 }
 0x18c   : > { %v1253_v25 = vmax.f32 %v1107_v47, 0.0  ;;  %4172 = vrot.lane.b32.xlu1 %v8275_v28, %s7214_s8  ;;  %v1669_v54 = vcombine.high %v1541_v26, %v1541_v26  ;;  %v6361_v45 = vrot.slane %v1541_v26, 9  ;;  %v1668_v17 = vcombine.high %v1540_v48, %v1540_v48 }
 0x18d   : > { %v6359_v33 = vrot.slane %v1540_v48, 9  ;;  %v1435_v55 = vadd.f32 %v8191_v3, %v1302_v40  ;;  %v1383_v24 = vmul.f32 %v8176_v11, %v1250_v37  ;;  %v1301_v50 = vmul.f32 %v8176_v11, %v1168_v30  ;;  %v8388_v21 = vld [vmem:[#allocation2 + $0x190] sm:$0xff]  ;;  %v8407_v37 = vld [vmem:[#allocation2 + $0x240] sm:$0xff] }
 0x18e   : > { %v1386_v46 = vmul.f32 %v8176_v11, %v1253_v25  ;;  %v6362_v58 = vrot.slane %v1669_v54, 9  ;;  %v2198_v38 = vmax.f32 %v1541_v26, %v6361_v45  ;;  %v6360_v14 = vrot.slane %v1668_v17, 9  ;;  %4703 = vrot.lane.b32.xlu0 %v4362_v39, %s7212_s23  ;;  %4620 = vst.msk [vmem:[#allocation3 + $0x30] sm:$0xff] %vm2292_vm0, %v8388_v21  ;;  %v7035_v45 = vpop.f32.mrf.mxu1 }
 0x18f   : > { %v2196_v60 = vmax.f32 %v1540_v48, %v6359_v33  ;;  %v1543_v52 = vmax.f32 %v8315_v36, %v1435_v55  ;;  %v8397_v7 = vadd.f32 %v8191_v3, %v1383_v24  ;;  %v1434_v9 = vadd.f32 %v8191_v3, %v1301_v50 }
 0x190   : > { %v8401_v22 = vadd.f32 %v8191_v3, %v1386_v46  ;;  %v2199_v32 = vmax.f32 %v1669_v54, %v6362_v58  ;;  %v2641_v20 = vrot.slane %v2198_v38, %v7689_v1  ;;  %v3305_v39 = vrot.slane %v2198_v38, %v7692_v2 }
 0x191   : > { %v2197_v43 = vmax.f32 %v1668_v17, %v6360_v14  ;;  %v2633_v47 = vrot.slane %v2196_v60, %v7689_v1  ;;  %v3297_v26 = vrot.slane %v2196_v60, %v7692_v2  ;;  %v1671_v48 = vcombine.high %v1543_v52, %v1543_v52  ;;  %v8415_v17 = vpop.f32.mrf.mxu0 }
 0x192   : > { %v6365_v36 = vrot.slane %v1543_v52, 9  ;;  %v2645_v30 = vrot.slane %v2199_v32, %v7689_v1  ;;  %v3309_v40 = vrot.slane %v2199_v32, %v7692_v2  ;;  %4461 = vrot.lane.b32.xlu0 %v8407_v37, %s7212_s23  ;;  %v1542_v24 = vmax.f32 %v8350_v12, %v1434_v9 }
 0x193   : > { %v2637_v25 = vrot.slane %v2197_v43, %v7689_v1  ;;  %v3301_v54 = vrot.slane %v2197_v43, %v7692_v2  ;;  %v6366_v33 = vrot.slane %v1671_v48, 9  ;;  %v1171_v50 = vmax.f32 %v697_v61, 0.0 }
 0x194   : > { %v2202_v55 = vmax.f32 %v1543_v52, %v6365_v36  ;;  %v1102_v38 = vadd.f32 %v8146_v6, %v1101_v63  ;;  %v692_v14 = vadd.f32 %v8146_v6, %v8133_v23  ;;  %v8426_v52 = vld [vmem:[#allocation2 + $0x100] sm:$0xff]  ;;  %v1670_v61 = vcombine.high %v1542_v24, %v1542_v24  ;;  %v8432_v23 = vpop.f32.mrf.mxu0 }
 0x195   : > { %v3049_v46 = vsel %vm3014_vm4, %v2637_v25, %v2633_v47  ;;  %v3702_v58 = vsel %vm10730_vm5, %v3301_v54, %v3297_v26  ;;  %v2203_v43 = vmax.f32 %v1671_v48, %v6366_v33  ;;  %v6363_v9 = vrot.slane %v1542_v24, 9  ;;  %v1111_v26 = vpop.f32.mrf.mxu1 }
 0x196   : > { %v3050_v60 = vsel %vm3016_vm6, %v2641_v20, %v3049_v46  ;;  %v3703_v32 = vsel %vm3020_vm7, %v3305_v39, %v3702_v58  ;;  %v2657_v19 = vrot.slane %v2202_v55, %v7689_v1  ;;  %v3321_v12 = vrot.slane %v2202_v55, %v7692_v2  ;;  %4428 = vrot.lane.b32.xlu0 %v8426_v52, %s10713_s22 }
 0x197   : > { %v3051_v47 = vsel %vm10730_vm5, %v2645_v30, %v3050_v60  ;;  %v2661_v63 = vrot.slane %v2203_v43, %v7689_v1  ;;  %v3325_v20 = vrot.slane %v2203_v43, %v7692_v2  ;;  %v3704_v39 = vsel %vm3022_vm8, %v3309_v40, %v3703_v32 }
 0x198   : > { %v1304_v48 = vmul.f32 %v8176_v11, %v1171_v50  ;;  %v6364_v36 = vrot.slane %v1670_v61, 9  ;;  %v2200_v25 = vmax.f32 %v1542_v24, %v6363_v9  ;;  %v1252_v54 = vmax.f32 %v1102_v38, 0.0  ;;  %v7038_v38 = vpop.f32.mrf.mxu1 }
 0x199   : > { %v1170_v33 = vmax.f32 %v692_v14, 0.0  ;;  %v3707_v30 = vsel %vm3014_vm4, %v3325_v20, %v3321_v12  ;;  %v1117_v46 = vadd.f32 %v8146_v6, %v7035_v45  ;;  %v4255_v58 = vrot.slane %v8275_v28, 1  ;;  %v8448_v14 = vpop.f32.mrf.mxu0 }
 0x19a   : > { %v8440_v55 = vadd.f32 %v8191_v3, %v1304_v48  ;;  %3817 = vst.msk [vmem:[#allocation2 + $0x1a7] sm:$0x3] %vm10727_vm1, %v3707_v30  ;;  %v2201_v60 = vmax.f32 %v1670_v61, %v6364_v36  ;;  %v2649_v40 = vrot.slane %v2200_v25, %v7689_v1  ;;  %v3313_v50 = vrot.slane %v2200_v25, %v7692_v2  ;;  %v1121_v30 = vpop.f32.mrf.mxu1 }
 0x19b   : > { %v1385_v24 = vmul.f32 %v8176_v11, %v1252_v54  ;;  %v1303_v32 = vmul.f32 %v8176_v11, %v1170_v33  ;;  %v1255_v43 = vmax.f32 %v1117_v46, 0.0  ;;  %v4256_v12 = vrot.slane %v8339_v51, 1  ;;  %v8471_v46 = vpop.f32.mrf.mxu0 }
 0x19c   : > { %v2653_v28 = vrot.slane %v2201_v60, %v7689_v1  ;;  %v3052_v61 = vsel %vm3020_vm7, %v2649_v40, %v3051_v47  ;;  %v3317_v9 = vrot.slane %v2201_v60, %v7692_v2  ;;  %v3705_v20 = vsel %vm3024_vm9, %v3313_v50, %v3704_v39 }
 0x19d   : > { %v8458_v48 = vadd.f32 %v8191_v3, %v1385_v24  ;;  %v8461_v36 = vadd.f32 %v8191_v3, %v1303_v32  ;;  %v1388_v25 = vmul.f32 %v8176_v11, %v1255_v43  ;;  %v4257_v51 = vsel %vm3981_vm2, %v4255_v58, %v4256_v12 }
 0x19e   : > { %v3053_v54 = vsel %vm3022_vm8, %v2653_v28, %v3052_v61  ;;  %v3706_v33 = vsel %vm3026_vm10, %v3317_v9, %v3705_v20  ;;  %4278 = vrot.lane.b32.xlu1 %v4257_v51, %s7217_s14  ;;  %v707_v47 = vadd.f32 %v8146_v6, %v8160_v4  ;;  %v1112_v39 = vadd.f32 %v8146_v6, %v1111_v26  ;;  %v8490_v9 = vpop.f32.mrf.mxu0 }
 0x19f   : > { %v3054_v60 = vsel %vm3024_vm9, %v2657_v19, %v3053_v54  ;;  %3816 = vst.msk [vmem:[#allocation2 + $0x19f] sm:$0xfc] %vm10728_vm11, %v3706_v33  ;;  %v1521_v58 = vadd.f32 %v8191_v3, %v1388_v25  ;;  %v702_v40 = vadd.f32 %v8146_v6, %v8186_v41  ;;  %v1127_v50 = vadd.f32 %v8146_v6, %v7038_v38 }
 0x1a0   : > { %v3055_v24 = vsel %vm3026_vm10, %v2661_v63, %v3054_v60  ;;  %v1173_v32 = vmax.f32 %v707_v47, 0.0  ;;  %v1254_v4 = vmax.f32 %v1112_v39, 0.0  ;;  %v717_v26 = vadd.f32 %v8146_v6, %v8208_v16 }
 0x1a1   : > { %3154 = vst.msk [vmem:[#allocation2 + $0x61] sm:$0xff] %vm2292_vm0, %v3055_v24  ;;  %v1585_v19 = vmax.f32 %v8377_v10, %v1521_v58  ;;  %v1172_v43 = vmax.f32 %v702_v40, 0.0  ;;  %v1257_v12 = vmax.f32 %v1127_v50, 0.0  ;;  %v1122_v28 = vadd.f32 %v8146_v6, %v1121_v30  ;;  %v8508_v40 = vld [vmem:[#allocation2 + $0x180] sm:$0xff]  ;;  %v4939_v50 = vld [vmem:[%s10705_s2 + $0x78] sm:$0xff] }
 0x1a2   : > { %v1306_v61 = vmul.f32 %v8176_v11, %v1173_v32  ;;  %v1387_v41 = vmul.f32 %v8176_v11, %v1254_v4  ;;  %4631 = vrot.lane.b32.xlu1 %v4257_v51, %s7215_s9  ;;  %v1175_v63 = vmax.f32 %v717_v26, 0.0  ;;  %v712_v38 = vadd.f32 %v8146_v6, %v8231_v56  ;;  %v4955_v56 = vld [vmem:[%s10705_s2 + $0xf8] sm:$0xff] }
 0x1a3   : > { %v1713_v16 = vcombine.high %v1585_v19, %v1585_v19  ;;  %v6449_v20 = vrot.slane %v1585_v19, 9  ;;  %v1305_v10 = vmul.f32 %v8176_v11, %v1172_v43  ;;  %v1390_v25 = vmul.f32 %v8176_v11, %v1257_v12  ;;  %6649 = vmatprep.subr.mxu1 %v4955_v56  ;;  %v4954_v43 = vld [vmem:[%s10705_s2 + $0xf0] sm:$0xff] }
 0x1a4   : > { %v8495_v54 = vadd.f32 %v8191_v3, %v1306_v61  ;;  %v1520_v33 = vadd.f32 %v8191_v3, %v1387_v41  ;;  %v1308_v47 = vmul.f32 %v8176_v11, %v1175_v63  ;;  %v1256_v51 = vmax.f32 %v1122_v28, 0.0  ;;  %6650 = vmatpush3.msra.mxu1 %v4939_v50  ;;  %v8530_v41 = vpop.permute.xlu1 %4006  ;;  %v4938_v63 = vld [vmem:[%s10705_s2 + $0x70] sm:$0xff] }
 0x1a5   : > { %v6450_v39 = vrot.slane %v1713_v16, 9  ;;  %v8502_v30 = vmax.f32 %v1585_v19, %v6449_v20  ;;  %v8505_v60 = vadd.f32 %v8191_v3, %v1305_v10  ;;  %v1523_v58 = vadd.f32 %v8191_v3, %v1390_v25  ;;  %v8518_v19 = vpop.f32.mrf.mxu0  ;;  %6651 = vmatprep.subr.mxu1 %v4954_v43  ;;  %v4952_v43 = vld [vmem:[%s10705_s2 + $0xe0] sm:$0xff] }
 0x1a6   : > { %v1584_v24 = vmax.f32 %v8397_v7, %v1520_v33  ;;  %v1441_v32 = vadd.f32 %v8191_v3, %v1308_v47  ;;  %v1389_v4 = vmul.f32 %v8176_v11, %v1256_v51  ;;  %v1174_v26 = vmax.f32 %v712_v38, 0.0  ;;  %4769 = vrot.lane.b32.xlu1 %v8508_v40, %s7214_s8  ;;  %6652 = vmatpush3.msra.mxu1 %v4938_v63 }
 0x1a7   : > { %v8523_v12 = vmax.f32 %v1713_v16, %v6450_v39  ;;  %v1587_v61 = vmax.f32 %v8401_v22, %v1523_v58  ;;  %v4953_v22 = vld [vmem:[%s10705_s2 + $0xe8] sm:$0xff] }
 0x1a8   : > { %v1712_v38 = vcombine.high %v1584_v24, %v1584_v24  ;;  %v6447_v20 = vrot.slane %v1584_v24, 9  ;;  %v1545_v16 = vmax.f32 %v8440_v55, %v1441_v32  ;;  %v1522_v10 = vadd.f32 %v8191_v3, %v1389_v4  ;;  %v8537_v25 = vld [vmem:[#allocation2 + $0x60] sm:$0xff]  ;;  %6653 = vmatprep.subr.mxu1 %v4953_v22  ;;  %v4937_v55 = vld [vmem:[%s10705_s2 + $0x68] sm:$0xff]  ;;  %v8553_v4 = vpop.f32.mrf.mxu0 }
 0x1a9   : > { %v2997_v33 = vrot.slane %v8523_v12, %v7689_v1  ;;  %v3661_v47 = vrot.slane %v8523_v12, %v7692_v2  ;;  %v1715_v51 = vcombine.high %v1587_v61, %v1587_v61  ;;  %v6453_v56 = vrot.slane %v1587_v61, 9  ;;  %3919 = vst.msk [vmem:[#allocation3 + $0x60] sm:$0xff] %vm2292_vm0, %v8537_v25  ;;  %6654 = vmatpush3.msra.mxu1 %v4937_v55  ;;  %v4936_v12 = vld [vmem:[%s10705_s2 + $0x60] sm:$0xff]  ;;  %v4935_v55 = vld [vmem:[%s10705_s2 + $0x58] sm:$0xff] }
 0x1aa   : > { %v6448_v39 = vrot.slane %v1712_v38, 9  ;;  %v2284_v58 = vmax.f32 %v1584_v24, %v6447_v20  ;;  %v1673_v50 = vcombine.high %v1545_v16, %v1545_v16  ;;  %v6369_v32 = vrot.slane %v1545_v16, 9  ;;  %4736 = vrot.lane.b32.xlu1 %v8281_v59, %s7213_s29  ;;  %v4951_v24 = vld [vmem:[%s10705_s2 + $0xd8] sm:$0xff]  ;;  %6655 = vmatprep.subr.mxu1 %v4952_v43 }
 0x1ab   : > { %v6454_v63 = vrot.slane %v1715_v51, 9  ;;  %v8564_v20 = vmax.f32 %v1587_v61, %v6453_v56  ;;  %v1586_v22 = vmax.f32 %v8458_v48, %v1522_v10  ;;  %v1307_v45 = vmul.f32 %v8176_v11, %v1174_v26  ;;  %6656 = vmatpush3.msra.mxu1 %v4936_v12  ;;  %v8581_v10 = vpop.permute.xlu1 %4071 }
 0x1ac   : > { %v2285_v28 = vmax.f32 %v1712_v38, %v6448_v39  ;;  %v2985_v7 = vrot.slane %v2284_v58, %v7689_v1  ;;  %v3649_v49 = vrot.slane %v2284_v58, %v7692_v2  ;;  %v6370_v35 = vrot.slane %v1673_v50, 9  ;;  %6657 = vmatprep.subr.mxu1 %v4951_v24 }
 0x1ad   : > { %v8573_v44 = vmax.f32 %v1715_v51, %v6454_v63  ;;  %v3673_v48 = vrot.slane %v8564_v20, %v7692_v2  ;;  %v8579_v26 = vmax.f32 %v1545_v16, %v6369_v32  ;;  %v1714_v58 = vcombine.high %v1586_v22, %v1586_v22  ;;  %v8587_v51 = vpop.f32.mrf.mxu0  ;;  %6658 = vmatpush3.msra.mxu1 %v4935_v55  ;;  %v3911_v63 = vld [vmem:[#allocation2 + $0x248] sm:$0x3] }
 0x1ae   : > { %v2989_v38 = vrot.slane %v2285_v28, %v7689_v1  ;;  %v3653_v56 = vrot.slane %v2285_v28, %v7692_v2  ;;  %v8585_v39 = vmax.f32 %v1673_v50, %v6370_v35  ;;  %v10742_v32 = vrot.slane %v8502_v30, %v7692_v2 }
 0x1af   : > { %v3013_v43 = vrot.slane %v8573_v44, %v7689_v1  ;;  %v3677_v16 = vrot.slane %v8573_v44, %v7692_v2  ;;  %v10741_v44 = vrot.slane %v8502_v30, %v7689_v1  ;;  %v6452_v24 = vrot.slane %v1714_v58, 9 }
 0x1b0   : > { %v3126_v28 = vsel %vm3014_vm4, %v2989_v38, %v2985_v7  ;;  %v3768_v35 = vsel %vm10730_vm5, %v3653_v56, %v3649_v49  ;;  %v6451_v49 = vrot.slane %v1586_v22, 9  ;;  %v8612_v38 = vld [vmem:[#allocation2 + $0x108] sm:$0x3]  ;;  %v4950_v56 = vld [vmem:[%s10705_s2 + $0xd0] sm:$0xff]  ;;  %v1440_v30 = vadd.f32 %v8191_v3, %v1307_v45 }
 0x1b1   : > { %v3127_v55 = vsel %vm3016_vm6, %v10741_v44, %v3126_v28  ;;  %v3769_v12 = vsel %vm3020_vm7, %v10742_v32, %v3768_v35  ;;  %v3773_v7 = vsel %vm3014_vm4, %v3677_v16, %v3673_v48  ;;  %v8621_v44 = vpop.f32.mrf.mxu0  ;;  %6659 = vmatprep.subr.mxu1 %v4950_v56  ;;  %v4934_v48 = vld [vmem:[%s10705_s2 + $0x50] sm:$0xff]  ;;  %v4517_v32 = vrot.slane %v3911_v63, 1  ;;  %v4949_v45 = vld [vmem:[%s10705_s2 + $0xc8] sm:$0xff] }
 0x1b2   : > { %3839 = vst.msk [vmem:[#allocation2 + $0x257] sm:$0x3] %vm10727_vm1, %v3773_v7  ;;  %v3128_v50 = vsel %vm10730_vm5, %v2997_v33, %v3127_v55  ;;  %v3770_v28 = vsel %vm3022_vm8, %v3661_v47, %v3769_v12  ;;  %v2288_v16 = vmax.f32 %v1586_v22, %v6451_v49  ;;  %v727_v35 = vadd.f32 %v8146_v6, %v8260_v15  ;;  %v8630_v33 = vpop.permute.xlu1 %4129 }
 0x1b3   : > { %v722_v7 = vadd.f32 %v8146_v6, %v8271_v18  ;;  %6660 = vmatpush3.msra.mxu1 %v4934_v48  ;;  %v2289_v47 = vmax.f32 %v1714_v58, %v6452_v24  ;;  %v1544_v12 = vmax.f32 %v8461_v36, %v1440_v30  ;;  %v4480_v55 = vrot.slane %v8426_v52, 1  ;;  %v8649_v30 = vpop.f32.mrf.mxu0 }
 0x1b4   : > { %v4481_v22 = vrot.slane %v8612_v38, 1  ;;  %6661 = vmatprep.subr.mxu1 %v4949_v45  ;;  %v3001_v15 = vrot.slane %v2288_v16, %v7689_v1  ;;  %v3665_v63 = vrot.slane %v2288_v16, %v7692_v2  ;;  %v10743_v18 = vrot.slane %v8407_v37, 1 }
 0x1b5   : > { %v1177_v56 = vmax.f32 %v727_v35, 0.0  ;;  %v3005_v48 = vrot.slane %v2289_v47, %v7689_v1  ;;  %v3669_v58 = vrot.slane %v2289_v47, %v7692_v2  ;;  %v1672_v36 = vcombine.high %v1544_v12, %v1544_v12 }
 0x1b6   : > { %v8643_v49 = vsel %vm3981_vm2, %v10743_v18, %v4517_v32  ;;  %v6367_v24 = vrot.slane %v1544_v12, 9  ;;  %v3129_v45 = vsel %vm3020_vm7, %v3001_v15, %v3128_v50  ;;  %v3771_v16 = vsel %vm3024_vm9, %v3665_v63, %v3770_v28  ;;  %v8666_v63 = vpop.permute.xlu1 %4170 }
 0x1b7   : > { %10744 = vst [vmem:[#allocation17_spill] sm:$0xff] %v8643_v49  ;;  %4533 = vrot.lane.b32.xlu0 %v8643_v49, %s7214_s8  ;;  %v1310_v37 = vmul.f32 %v8176_v11, %v1177_v56  ;;  %v1176_v32 = vmax.f32 %v722_v7, 0.0  ;;  %v3130_v35 = vsel %vm3022_vm8, %v3005_v48, %v3129_v45  ;;  %v3772_v18 = vsel %vm3026_vm10, %v3669_v58, %v3771_v16  ;;  %v3887_v7 = vld [vmem:[#allocation2 + $0x188] sm:$0x3]  ;;  %v4932_v16 = vld [vmem:[%s10705_s2 + $0x40] sm:$0xff] }
 0x1b8   : > { %v6368_v61 = vrot.slane %v1672_v36, 9  ;;  %v2204_v47 = vmax.f32 %v1544_v12, %v6367_v24  ;;  %v10745_v34 = vrot.slane %v8564_v20, %v7689_v1  ;;  %3838 = vst.msk [vmem:[#allocation2 + $0x24f] sm:$0xfc] %vm10728_vm11, %v3772_v18  ;;  %v8664_v15 = vsel %vm3981_vm2, %v4480_v55, %v4481_v22  ;;  %v4933_v55 = vld [vmem:[%s10705_s2 + $0x48] sm:$0xff] }
 0x1b9   : > { %v1443_v50 = vadd.f32 %v8191_v3, %v1310_v37  ;;  %v1309_v28 = vmul.f32 %v8176_v11, %v1176_v32  ;;  %10746 = vst [vmem:[#allocation18_spill] sm:$0xff] %v8664_v15  ;;  %6662 = vmatpush3.msra.mxu1 %v4933_v55  ;;  %v4053_v24 = vrot.slane %v8508_v40, 1  ;;  %v4054_v45 = vrot.slane %v3887_v7, 1 }
 0x1ba   : > { %v3131_v49 = vsel %vm3024_vm9, %v10745_v34, %v3130_v35  ;;  %v2205_v12 = vmax.f32 %v1672_v36, %v6368_v61  ;;  %v2665_v48 = vrot.slane %v2204_v47, %v7689_v1  ;;  %v3329_v20 = vrot.slane %v2204_v47, %v7692_v2  ;;  %v8673_v34 = vpop.f32.mrf.mxu0 }
 0x1bb   : > { %v3132_v56 = vsel %vm3026_vm10, %v3013_v43, %v3131_v49  ;;  %4497 = vrot.lane.b32.xlu0 %v8664_v15, %s7213_s29  ;;  %v1547_v22 = vmax.f32 %v8495_v54, %v1443_v50  ;;  %v1442_v43 = vadd.f32 %v8191_v3, %v1309_v28  ;;  %v737_v61 = vadd.f32 %v8146_v6, %v8292_v57  ;;  %v4948_v54 = vld [vmem:[%s10705_s2 + $0xc0] sm:$0xff] }
 0x1bc   : > { %3165 = vst.msk [vmem:[#allocation2 + $0x111] sm:$0xff] %vm2292_vm0, %v3132_v56  ;;  %v732_v49 = vadd.f32 %v8146_v6, %v8308_v31  ;;  %v2669_v58 = vrot.slane %v2205_v12, %v7689_v1  ;;  %v3333_v36 = vrot.slane %v2205_v12, %v7692_v2  ;;  %6663 = vmatprep.subr.mxu1 %v4948_v54  ;;  %v8700_v50 = vpop.f32.mrf.mxu0  ;;  %v4947_v54 = vld [vmem:[%s10705_s2 + $0xb8] sm:$0xff] }
 0x1bd   : > { %v1675_v57 = vcombine.high %v1547_v22, %v1547_v22  ;;  %v6373_v37 = vrot.slane %v1547_v22, 9  ;;  %v1546_v6 = vmax.f32 %v8505_v60, %v1442_v43  ;;  %v1179_v31 = vmax.f32 %v737_v61, 0.0  ;;  %6664 = vmatpush3.msra.mxu1 %v4932_v16  ;;  %v4931_v16 = vld [vmem:[%s10705_s2 + $0x38] sm:$0xff] }
 0x1be   : > { %v3056_v32 = vsel %vm3014_vm4, %v2669_v58, %v2665_v48  ;;  %v3708_v35 = vsel %vm10730_vm5, %v3333_v36, %v3329_v20  ;;  %v1178_v18 = vmax.f32 %v732_v49, 0.0  ;;  %v8698_v47 = vsel %vm3981_vm2, %v4053_v24, %v4054_v45  ;;  %v8714_v20 = vpop.permute.xlu1 %4211  ;;  %6665 = vmatprep.subr.mxu1 %v4947_v54 }
 0x1bf   : > { %v10747_v28 = vrot.slane %v8579_v26, %v7689_v1  ;;  %v10748_v60 = vrot.slane %v8579_v26, %v7692_v2  ;;  %v6374_v12 = vrot.slane %v1675_v57, 9  ;;  %v8710_v48 = vmax.f32 %v1547_v22, %v6373_v37  ;;  %4521 = vrot.lane.b32.xlu1 %v8698_v47, %s7214_s8  ;;  %6666 = vmatpush3.msra.mxu1 %v4931_v16 }
 0x1c0   : > { %v1674_v43 = vcombine.high %v1546_v6, %v1546_v6  ;;  %v6371_v61 = vrot.slane %v1546_v6, 9  ;;  %v10749_v49 = vrot.slane %v8585_v39, %v7689_v1  ;;  %v10750_v36 = vrot.slane %v8585_v39, %v7692_v2 }
 0x1c1   : > { %v3057_v7 = vsel %vm3016_vm6, %v10747_v28, %v3056_v32  ;;  %v3709_v56 = vsel %vm3020_vm7, %v10748_v60, %v3708_v35  ;;  %v8721_v26 = vmax.f32 %v1675_v57, %v6374_v12  ;;  %v3353_v22 = vrot.slane %v8710_v48, %v7692_v2  ;;  %v4946_v57 = vld [vmem:[%s10705_s2 + $0xb0] sm:$0xff] }
 0x1c2   : > { %v3058_v58 = vsel %vm10730_vm5, %v10749_v49, %v3057_v7  ;;  %v3710_v24 = vsel %vm3022_vm8, %v10750_v36, %v3709_v56  ;;  %v1312_v45 = vmul.f32 %v8176_v11, %v1179_v31  ;;  %v2689_v37 = vrot.slane %v8710_v48, %v7689_v1  ;;  %v8742_v31 = vpop.f32.mrf.mxu0  ;;  %v4930_v28 = vld [vmem:[%s10705_s2 + $0x30] sm:$0xff]  ;;  %6667 = vmatprep.subr.mxu1 %v4946_v57  ;;  %v8776_v36 = vld [vmem:[#allocation2 + $0x48] sm:$0x3] }
 0x1c3   : > { %v6372_v39 = vrot.slane %v1674_v43, 9  ;;  %v2208_v32 = vmax.f32 %v1546_v6, %v6371_v61  ;;  %v4551_v35 = vrot.slane %v8426_v52, 2  ;;  %v2693_v7 = vrot.slane %v8721_v26, %v7689_v1  ;;  %4841 = vrot.lane.b32.xlu1 %v8698_v47, %s7217_s14  ;;  %v8755_v52 = vpop.permute.xlu0 %3932  ;;  %6668 = vmatpush3.msra.mxu1 %v4930_v28 }
 0x1c4   : > { %v3357_v60 = vrot.slane %v8721_v26, %v7692_v2  ;;  %v1311_v56 = vmul.f32 %v8176_v11, %v1178_v18  ;;  %v4552_v12 = vrot.slane %v8612_v38, 2  ;;  %v8760_v49 = vadd.f32 %v8191_v3, %v1312_v45  ;;  %v4945_v11 = vld [vmem:[%s10705_s2 + $0xa8] sm:$0xff]  ;;  %v8778_v45 = vpop.permute.xlu1 %4276  ;;  %3957 = vst.msk [vmem:[#allocation3] sm:$0xff] %vm3956_vm12, %v8755_v52 }
 0x1c5   : > { %v2209_v6 = vmax.f32 %v1674_v43, %v6372_v39  ;;  %v2681_v48 = vrot.slane %v2208_v32, %v7689_v1  ;;  %v3345_v61 = vrot.slane %v2208_v32, %v7692_v2  ;;  %v8770_v43 = vld [vmem:[%s10707_s4] ss:$0 sm:$0xff]  ;;  %6669 = vmatprep.subr.mxu1 %v4945_v11  ;;  %v8817_v11 = vld [vmem:[%s10707_s4 + $0x1] ss:$0 sm:$0xff]  ;;  %4031 = vst.msk [vmem:[#allocation3] sm:$0xff] %vm4030_vm13, %v8530_v41 }
 0x1c6   : > { %v3713_v38 = vsel %vm3014_vm4, %v3357_v60, %v3353_v22  ;;  %v4553_v18 = vsel %vm10725_vm3, %v4551_v35, %v4552_v12  ;;  %v747_v26 = vadd.f32 %v8770_v43, %v8329_v8  ;;  %v742_v3 = vadd.f32 %v8770_v43, %v8354_v53  ;;  %v4929_v22 = vld [vmem:[%s10705_s2 + $0x28] sm:$0xff]  ;;  %v8790_v53 = vpop.f32.mrf.mxu0  ;;  %v4944_v39 = vld [vmem:[%s10705_s2 + $0xa0] sm:$0xff]  ;;  %4096 = vst.msk [vmem:[#allocation3] sm:$0xff] %vm4095_vm14, %v8581_v10 }
 0x1c7   : > { %3819 = vst.msk [vmem:[#allocation2 + $0x1b7] sm:$0x3] %vm10727_vm1, %v3713_v38  ;;  %v2685_v54 = vrot.slane %v2209_v6, %v7689_v1  ;;  %v3059_v16 = vsel %vm3020_vm7, %v2681_v48, %v3058_v58  ;;  %v3349_v8 = vrot.slane %v2209_v6, %v7692_v2  ;;  %v3711_v57 = vsel %vm3024_vm9, %v3345_v61, %v3710_v24  ;;  %v4928_v24 = vld [vmem:[%s10705_s2 + $0x20] sm:$0xff] }
 0x1c8   : > { %4890 = vst.msk [vmem:[#allocation3 + $0xd8] sm:$0xff] %vm2292_vm0, %v4553_v18  ;;  %4568 = vrot.lane.b32.xlu0 %v4553_v18, %s7216_s13  ;;  %v1181_v32 = vmax.f32 %v747_v26, 0.0  ;;  %v1180_v35 = vmax.f32 %v742_v3, 0.0  ;;  %v757_v28 = vadd.f32 %v8770_v43, %v8374_v0  ;;  %v752_v58 = vadd.f32 %v8770_v43, %v8391_v42  ;;  %6670 = vmatpush3.msra.mxu1 %v4929_v22  ;;  %v8811_v0 = vld [vmem:[%s10707_s4 + $0x2] ss:$0 sm:$0xff]  ;;  %v8820_v26 = vpop.permute.xlu0 %4381 }
 0x1c9   : > { %v3060_v60 = vsel %vm3022_vm8, %v2685_v54, %v3059_v16  ;;  %v3712_v12 = vsel %vm3026_vm10, %v3349_v8, %v3711_v57  ;;  %v4111_v6 = vrot.slane %v8281_v59, 2  ;;  %v4112_v48 = vrot.slane %v8776_v36, 2  ;;  %10751 = vst [vmem:[#allocation19_spill] sm:$0xff] %v8820_v26  ;;  %6671 = vmatprep.subr.mxu1 %v4944_v39  ;;  %v8831_v16 = vpop.f32.mrf.mxu0  ;;  %v4927_v8 = vld [vmem:[%s10705_s2 + $0x18] sm:$0xff]  ;;  %4154 = vst.msk [vmem:[#allocation3] sm:$0xff] %vm10729_vm15, %v8630_v33 }
 0x1ca   : > { %v3061_v61 = vsel %vm3024_vm9, %v2689_v37, %v3060_v60  ;;  %3818 = vst.msk [vmem:[#allocation2 + $0x1af] sm:$0xfc] %vm10728_vm11, %v3712_v12  ;;  %v1444_v42 = vadd.f32 %v8811_v0, %v1311_v56  ;;  %v1314_v38 = vmul.f32 %v8817_v11, %v1181_v32  ;;  %v1183_v18 = vmax.f32 %v757_v28, 0.0  ;;  %v4943_v37 = vld [vmem:[%s10705_s2 + $0x98] sm:$0xff]  ;;  %6672 = vmatpush3.msra.mxu1 %v4928_v24  ;;  %v8844_v32 = vpop.permute.xlu1 %3934 }
 0x1cb   : > { %v3062_v3 = vsel %vm3026_vm10, %v2693_v7, %v3061_v61  ;;  %v1182_v56 = vmax.f32 %v752_v58, 0.0  ;;  %v4113_v22 = vsel %vm10725_vm3, %v4111_v6, %v4112_v48  ;;  %v767_v54 = vadd.f32 %v8770_v43, %v8415_v17  ;;  %6673 = vmatprep.subr.mxu1 %v4943_v37  ;;  %3958 = vst.msk [vmem:[#allocation3 + $0x20] sm:$0xff] %vm3956_vm12, %v8844_v32 }
 0x1cc   : > { %4449 = vrot.lane.b32.xlu0 %v8508_v40, %s7212_s23  ;;  %3155 = vst.msk [vmem:[#allocation2 + $0x71] sm:$0xff] %vm2292_vm0, %v3062_v3  ;;  %v1447_v7 = vadd.f32 %v8811_v0, %v1314_v38  ;;  %v1313_v57 = vmul.f32 %v8817_v11, %v1180_v35  ;;  %v1316_v39 = vmul.f32 %v8817_v11, %v1183_v18  ;;  %4884 = vst.msk [vmem:[#allocation3 + $0x18] sm:$0xff] %vm2292_vm0, %v4113_v22  ;;  %v8861_v18 = vpop.f32.mrf.mxu0 }
 0x1cd   : > { %4556 = vrot.lane.b32.xlu1 %v4113_v22, %s7216_s13  ;;  %v762_v17 = vadd.f32 %v8770_v43, %v8432_v23  ;;  %v1315_v28 = vmul.f32 %v8817_v11, %v1182_v56  ;;  %v1185_v58 = vmax.f32 %v767_v54, 0.0  ;;  %v777_v24 = vadd.f32 %v8770_v43, %v8448_v14  ;;  %6674 = vmatpush3.msra.mxu1 %v4927_v8  ;;  %v4942_v23 = vld [vmem:[%s10705_s2 + $0x90] sm:$0xff]  ;;  %v8874_v54 = vpop.permute.xlu0 %4447 }
 0x1ce   : > { %v772_v35 = vadd.f32 %v8770_v43, %v8471_v46  ;;  %v1449_v60 = vadd.f32 %v8811_v0, %v1316_v39  ;;  %v3988_v6 = vrot.slane %v8281_v59, 1  ;;  %v3989_v48 = vrot.slane %v8776_v36, 1  ;;  %6675 = vmatprep.subr.mxu1 %v4942_v23  ;;  %v4926_v36 = vld [vmem:[%s10705_s2 + $0x10] sm:$0xff]  ;;  %10752 = vst [vmem:[#allocation20_spill] sm:$0xff] %v8874_v54  ;;  %v8900_v23 = vpop.f32.mrf.mxu0 }
 0x1cf   : > { %v1184_v12 = vmax.f32 %v762_v17, 0.0  ;;  %v1448_v61 = vadd.f32 %v8811_v0, %v1315_v28  ;;  %v1318_v14 = vmul.f32 %v8817_v11, %v1185_v58  ;;  %v1187_v46 = vmax.f32 %v777_v24, 0.0  ;;  %6676 = vmatpush3.msra.mxu1 %v4926_v36 }
 0x1d0   : > { %3936 = vrot.lane.b32.xlu0 %v8508_v40, %s7215_s9  ;;  %v1186_v38 = vmax.f32 %v772_v35, 0.0  ;;  %v1446_v37 = vadd.f32 %v8811_v0, %v1313_v57  ;;  %v1549_v3 = vmax.f32 %v8760_v49, %v1449_v60  ;;  %v8872_v40 = vadd.f32 %v8770_v43, %v8490_v9  ;;  %v4941_v49 = vld [vmem:[%s10705_s2 + $0x88] sm:$0xff]  ;;  %v8893_v35 = vpop.permute.xlu1 %4414 }
 0x1d1   : > { %v1317_v56 = vmul.f32 %v8817_v11, %v1184_v12  ;;  %4133 = vrot.lane.b32.xlu1 %v4113_v22, %s7213_s29  ;;  %v1548_v39 = vmax.f32 %v1444_v42, %v1448_v61  ;;  %v1451_v17 = vadd.f32 %v8811_v0, %v1318_v14  ;;  %v8879_v28 = vsel %vm3981_vm2, %v3988_v6, %v3989_v48  ;;  %v8881_v57 = vld [vmem:[#allocation2 + $0x1b0] sm:$0xff]  ;;  %v4925_v9 = vld [vmem:[%s10705_s2 + $0x8] sm:$0xff] }
 0x1d2   : > { %v1677_v22 = vcombine.high %v1549_v3, %v1549_v3  ;;  %v6377_v58 = vrot.slane %v1549_v3, 9  ;;  %v1320_v24 = vmul.f32 %v8817_v11, %v1187_v46  ;;  %4621 = vst.msk [vmem:[#allocation3 + $0x50] sm:$0xff] %vm2292_vm0, %v8881_v57  ;;  %10753 = vst [vmem:[#allocation21_spill] sm:$0xff] %v8893_v35  ;;  %6677 = vmatprep.subr.mxu1 %v4941_v49  ;;  %v1189_v36 = vmax.f32 %v8872_v40, 0.0 }
 0x1d3   : > { %v1450_v42 = vadd.f32 %v8811_v0, %v1317_v56  ;;  %v1676_v60 = vcombine.high %v1548_v39, %v1548_v39  ;;  %v6375_v12 = vrot.slane %v1548_v39, 9  ;;  %v1551_v6 = vmax.f32 %v1447_v7, %v1451_v17  ;;  %6678 = vmatpush3.msra.mxu1 %v4925_v9  ;;  %v4940_v7 = vld [vmem:[%s10705_s2 + $0x80] sm:$0xff]  ;;  %v3874_v9 = vld [vmem:[#allocation2 + $0x110] sm:$0xff] }
 0x1d4   : > { %4416 = vrot.lane.b32.xlu0 %v8281_v59, %s10754_s16  ;;  %v8898_v48 = vmul.f32 %v8817_v11, %v1186_v38  ;;  %v6378_v61 = vrot.slane %v1677_v22, 9  ;;  %v2214_v14 = vmax.f32 %v1549_v3, %v6377_v58  ;;  %v4924_v59 = vld [vmem:[%s10705_s2] sm:$0xff]  ;;  %6679 = vmatprep.subr.mxu1 %v4940_v7  ;;  %v8932_v29 = vadd.f32 %v8811_v0, %v1320_v24 }
 0x1d5   : > { %v1550_v46 = vmax.f32 %v1446_v37, %v1450_v42  ;;  %4805 = vrot.lane.b32.xlu1 %v8879_v28, %s7216_s13  ;;  %v6376_v38 = vrot.slane %v1676_v60, 9  ;;  %v2212_v56 = vmax.f32 %v1548_v39, %v6375_v12  ;;  %v1679_v17 = vcombine.high %v1551_v6, %v1551_v6  ;;  %v8913_v42 = vpop.permute.xlu0 %4519  ;;  %6680 = vmatpush3.msra.mxu1 %v4924_v59  ;;  %v8919_v39 = vpop.f32.mrf.mxu0 }
 0x1d6   : > { %v6381_v49 = vrot.slane %v1551_v6, 9  ;;  %v2215_v37 = vmax.f32 %v1677_v22, %v6378_v61  ;;  %v2705_v3 = vrot.slane %v2214_v14, %v7689_v1  ;;  %v3369_v58 = vrot.slane %v2214_v14, %v7692_v2  ;;  %10755 = vst [vmem:[#allocation22_spill] sm:$0xff] %v8913_v42 }
 0x1d7   : > { %v1678_v40 = vcombine.high %v1550_v46, %v1550_v46  ;;  %v2213_v55 = vmax.f32 %v1676_v60, %v6376_v38  ;;  %v2697_v8 = vrot.slane %v2212_v56, %v7689_v1  ;;  %v3361_v15 = vrot.slane %v2212_v56, %v7692_v2  ;;  %v8925_v60 = vpop.permute.xlu1 %4073 }
 0x1d8   : > { %v6382_v27 = vrot.slane %v1679_v17, 9  ;;  %4075 = vrot.lane.b32.xlu0 %v8698_v47, %s7212_s23  ;;  %v10756_v22 = vmov 0.0   ;;  %v2709_v12 = vrot.slane %v2215_v37, %v7689_v1  ;;  %v3373_v61 = vrot.slane %v2215_v37, %v7692_v2 }
 0x1d9   : > { %5108 = vmatprep.subr.mxu1 %v10756_v22  ;;  %v2218_v14 = vmax.f32 %v1551_v6, %v6381_v49  ;;  %v6379_v7 = vrot.slane %v1550_v46, 9  ;;  %4601 = vrot.lane.b32.xlu1 %v3874_v9, %s7217_s14  ;;  %v2701_v59 = vrot.slane %v2213_v55, %v7689_v1  ;;  %v3365_v38 = vrot.slane %v2213_v55, %v7692_v2 }
 0x1da   : > { %v2219_v56 = vmax.f32 %v1679_v17, %v6382_v27  ;;  %v6380_v47 = vrot.slane %v1678_v40, 9  ;;  %v1322_v37 = vmul.f32 %v8817_v11, %v1189_v36  ;;  %v8940_v27 = vpop.f32.mrf.mxu0  ;;  %v8942_v55 = vpop.permute.xlu0 %4483 }
 0x1db   : > { %v2721_v5 = vrot.slane %v2218_v14, %v7689_v1  ;;  %v3385_v22 = vrot.slane %v2218_v14, %v7692_v2  ;;  %v2216_v13 = vmax.f32 %v1550_v46, %v6379_v7  ;;  %v3063_v6 = vsel %vm3014_vm4, %v2701_v59, %v2697_v8  ;;  %10757 = vst [vmem:[#allocation23_spill] sm:$0xff] %v8942_v55 }
 0x1dc   : > { %v3714_v49 = vsel %vm10730_vm5, %v3365_v38, %v3361_v15  ;;  %v3389_v9 = vrot.slane %v2219_v56, %v7692_v2  ;;  %4485 = vrot.lane.b32.xlu0 %v8879_v28, %s7213_s29  ;;  %v3064_v46 = vsel %vm3016_vm6, %v2705_v3, %v3063_v6  ;;  %v2217_v17 = vmax.f32 %v1678_v40, %v6380_v47  ;;  %v8958_v38 = vpop.permute.xlu1 %4008  ;;  %v8970_v47 = vpop.f32.mrf.mxu0 }
 0x1dd   : > { %v3715_v24 = vsel %vm3020_vm7, %v3369_v58, %v3714_v49  ;;  %v2713_v8 = vrot.slane %v2216_v13, %v7689_v1  ;;  %4215 = vrot.lane.b32.xlu1 %v8388_v21, %s7216_s13  ;;  %v3065_v36 = vsel %vm10730_vm5, %v2709_v12, %v3064_v46  ;;  %v3377_v14 = vrot.slane %v2216_v13, %v7692_v2 }
 0x1de   : > { %v3719_v15 = vsel %vm3014_vm4, %v3389_v9, %v3385_v22  ;;  %v3716_v7 = vsel %vm3022_vm8, %v3373_v61, %v3715_v24  ;;  %v2725_v59 = vrot.slane %v2219_v56, %v7689_v1  ;;  %v2717_v3 = vrot.slane %v2217_v17, %v7689_v1  ;;  %v8968_v56 = vld [vmem:[#allocation2 + $0x50] sm:$0xff]  ;;  %4032 = vst.msk [vmem:[#allocation3 + $0x20] sm:$0xff] %vm4030_vm13, %v8958_v38 }
 0x1df   : > { %3821 = vst.msk [vmem:[#allocation2 + $0x1c7] sm:$0x3] %vm10727_vm1, %v3719_v15  ;;  %v3066_v58 = vsel %vm3020_vm7, %v2713_v8, %v3065_v36  ;;  %v3381_v40 = vrot.slane %v2217_v17, %v7692_v2  ;;  %v3717_v22 = vsel %vm3024_vm9, %v3377_v14, %v3716_v7  ;;  %v1452_v12 = vadd.f32 %v8811_v0, %v8898_v48 }
 0x1e0   : > { %v1455_v13 = vadd.f32 %v8811_v0, %v1322_v37  ;;  %v782_v61 = vadd.f32 %v8770_v43, %v8518_v19  ;;  %4010 = vrot.lane.b32.xlu0 %v8879_v28, %s10754_s16  ;;  %v3067_v6 = vsel %vm3022_vm8, %v2717_v3, %v3066_v58  ;;  %v797_v9 = vadd.f32 %v8770_v43, %v8553_v4  ;;  %v3889_v19 = vld [vmem:[#allocation2 + $0x198] sm:$0x3]  ;;  %v8980_v37 = vpop.permute.xlu0 %4554 }
 0x1e1   : > { %v3718_v49 = vsel %vm3026_vm10, %v3381_v40, %v3717_v22  ;;  %v792_v48 = vadd.f32 %v8770_v43, %v8587_v51  ;;  %4589 = vrot.lane.b32.xlu1 %v8968_v56, %s7217_s14  ;;  %10758 = vst [vmem:[#allocation24_spill] sm:$0xff] %v8980_v37  ;;  %v3068_v28 = vsel %vm3024_vm9, %v2721_v5, %v3067_v6  ;;  %v4323_v24 = vrot.slane %v8388_v21, 1  ;;  %v8994_v21 = vpop.f32.mrf.mxu0  ;;  %v9004_v40 = vpop.permute.xlu1 %4131 }
 0x1e2   : > { %3820 = vst.msk [vmem:[#allocation2 + $0x1bf] sm:$0xfc] %vm10728_vm11, %v3718_v49  ;;  %v1188_v46 = vmax.f32 %v782_v61, 0.0  ;;  %v807_v17 = vadd.f32 %v8770_v43, %v8621_v44  ;;  %v3069_v4 = vsel %vm3026_vm10, %v2725_v59, %v3068_v28  ;;  %v1191_v8 = vmax.f32 %v797_v9, 0.0 }
 0x1e3   : > { %v1190_v51 = vmax.f32 %v792_v48, 0.0  ;;  %v802_v15 = vadd.f32 %v8770_v43, %v8649_v30  ;;  %3156 = vst.msk [vmem:[#allocation2 + $0x81] sm:$0xff] %vm2292_vm0, %v3069_v4  ;;  %v4324_v14 = vrot.slane %v3889_v19, 1  ;;  %v817_v7 = vadd.f32 %v8770_v43, %v8673_v34  ;;  %v9002_v30 = vld [vmem:[#allocation2 + $0x58] sm:$0x3]  ;;  %v9020_v4 = vpop.f32.mrf.mxu0 }
 0x1e4   : > { %v1321_v36 = vmul.f32 %v8817_v11, %v1188_v46  ;;  %v1193_v5 = vmax.f32 %v807_v17, 0.0  ;;  %v1324_v44 = vmul.f32 %v8817_v11, %v1191_v8  ;;  %v812_v58 = vadd.f32 %v8770_v43, %v8700_v50  ;;  %v9014_v19 = vpop.permute.xlu0 %4225  ;;  %4097 = vst.msk [vmem:[#allocation3 + $0x20] sm:$0xff] %vm4095_vm14, %v8925_v60 }
 0x1e5   : > { %v1323_v59 = vmul.f32 %v8817_v11, %v1190_v51  ;;  %v1192_v3 = vmax.f32 %v802_v15, 0.0  ;;  %4174 = vrot.lane.b32.xlu1 %v8968_v56, %s7214_s8  ;;  %v4325_v61 = vsel %vm3981_vm2, %v4323_v24, %v4324_v14  ;;  %v1195_v6 = vmax.f32 %v817_v7, 0.0  ;;  %10759 = vst [vmem:[#allocation25_spill] sm:$0xff] %v9014_v19  ;;  %4155 = vst.msk [vmem:[#allocation3 + $0x20] sm:$0xff] %vm10729_vm15, %v9004_v40 }
 0x1e6   : > { %v1454_v22 = vadd.f32 %v8811_v0, %v1321_v36  ;;  %v1326_v34 = vmul.f32 %v8817_v11, %v1193_v5  ;;  %v1457_v49 = vadd.f32 %v8811_v0, %v1324_v44  ;;  %4351 = vst.msk [vmem:[#allocation3 + $0x48] sm:$0xff] %vm2292_vm0, %v4325_v61  ;;  %4670 = vrot.lane.b32.xlu0 %v4325_v61, %s10754_s16  ;;  %v1194_v48 = vmax.f32 %v812_v58, 0.0 }
 0x1e7   : > { %v1456_v9 = vadd.f32 %v8811_v0, %v1323_v59  ;;  %v1325_v50 = vmul.f32 %v8817_v11, %v1192_v3  ;;  %v1328_v46 = vmul.f32 %v8817_v11, %v1195_v6  ;;  %v4363_v24 = vrot.slane %v8968_v56, 2 }
 0x1e8   : > { %v1459_v28 = vadd.f32 %v8811_v0, %v1326_v34  ;;  %v4364_v17 = vrot.slane %v9002_v30, 2  ;;  %v1553_v8 = vmax.f32 %v8932_v29, %v1457_v49  ;;  %v1327_v36 = vmul.f32 %v8817_v11, %v1194_v48  ;;  %v9035_v29 = vpop.permute.xlu1 %4599 }
 0x1e9   : > { %v1552_v51 = vmax.f32 %v1452_v12, %v1456_v9  ;;  %v1458_v15 = vadd.f32 %v8811_v0, %v1325_v50  ;;  %v9026_v14 = vadd.f32 %v8811_v0, %v1328_v46  ;;  %v827_v44 = vadd.f32 %v8770_v43, %v8742_v31  ;;  %10760 = vst [vmem:[#allocation26_spill] sm:$0xff] %v9035_v29  ;;  %v9042_v9 = vpop.f32.mrf.mxu0  ;;  %v9046_v46 = vpop.permute.xlu0 %4395 }
 0x1ea   : > { %v1555_v5 = vmax.f32 %v1455_v13, %v1459_v28  ;;  %v9029_v7 = vsel %vm10725_vm3, %v4363_v24, %v4364_v17  ;;  %v1681_v59 = vcombine.high %v1553_v8, %v1553_v8  ;;  %v6385_v3 = vrot.slane %v1553_v8, 9  ;;  %v9037_v12 = vld [vmem:[#allocation2 + $0x80] sm:$0xff]  ;;  %10762 = vst [vmem:[#allocation28_spill] sm:$0xff] %v9046_v46 }
 0x1eb   : > { %v1680_v58 = vcombine.high %v1552_v51, %v1552_v51  ;;  %v6383_v34 = vrot.slane %v1552_v51, 9  ;;  %4385 = vrot.lane.b32.xlu0 %v9029_v7, %s7215_s9  ;;  %10761 = vst [vmem:[#allocation27_spill] sm:$0xff] %v9037_v12  ;;  %v1554_v6 = vmax.f32 %v1454_v22, %v1458_v15  ;;  %v9040_v49 = vadd.f32 %v8811_v0, %v1327_v36 }
 0x1ec   : > { %v1683_v13 = vcombine.high %v1555_v5, %v1555_v5  ;;  %v6389_v61 = vrot.slane %v1555_v5, 9  ;;  %3920 = vst.msk [vmem:[#allocation3 + $0x80] sm:$0xff] %vm2292_vm0, %v9037_v12  ;;  %v6386_v31 = vrot.slane %v1681_v59, 9  ;;  %v2222_v50 = vmax.f32 %v1553_v8, %v6385_v3 }
 0x1ed   : > { %v6384_v48 = vrot.slane %v1680_v58, 9  ;;  %v2220_v28 = vmax.f32 %v1552_v51, %v6383_v34  ;;  %v1682_v19 = vcombine.high %v1554_v6, %v1554_v6  ;;  %v6387_v29 = vrot.slane %v1554_v6, 9  ;;  %v9053_v51 = vpop.f32.mrf.mxu0 }
 0x1ee   : > { %v6390_v24 = vrot.slane %v1683_v13, 9  ;;  %v2226_v17 = vmax.f32 %v1555_v5, %v6389_v61  ;;  %v2223_v37 = vmax.f32 %v1681_v59, %v6386_v31  ;;  %v2737_v22 = vrot.slane %v2222_v50, %v7689_v1  ;;  %v9059_v61 = vpop.permute.xlu1 %4184 }
 0x1ef   : > { %v3401_v15 = vrot.slane %v2222_v50, %v7692_v2  ;;  %v2221_v36 = vmax.f32 %v1680_v58, %v6384_v48  ;;  %v2729_v42 = vrot.slane %v2220_v28, %v7689_v1  ;;  %v3393_v12 = vrot.slane %v2220_v28, %v7692_v2  ;;  %10763 = vst [vmem:[#allocation29_spill] sm:$0xff] %v9059_v61  ;;  %v9071_v26 = vpop.f32.mrf.mxu0 }
 0x1f0   : > { %v2227_v55 = vmax.f32 %v1683_v13, %v6390_v24  ;;  %v2753_v8 = vrot.slane %v2226_v17, %v7689_v1  ;;  %v2741_v3 = vrot.slane %v2223_v37, %v7689_v1  ;;  %v3405_v5 = vrot.slane %v2223_v37, %v7692_v2  ;;  %v9066_v37 = vpop.permute.xlu0 %4587 }
 0x1f1   : > { %v2733_v59 = vrot.slane %v2221_v36, %v7689_v1  ;;  %v3397_v34 = vrot.slane %v2221_v36, %v7692_v2  ;;  %v3417_v31 = vrot.slane %v2226_v17, %v7692_v2  ;;  %v6388_v50 = vrot.slane %v1682_v19, 9  ;;  %v9073_v17 = vld [vmem:[#allocation2 + $0x250] sm:$0xff] }
 0x1f2   : > { %v2757_v58 = vrot.slane %v2227_v55, %v7689_v1  ;;  %v3421_v13 = vrot.slane %v2227_v55, %v7692_v2  ;;  %v2224_v24 = vmax.f32 %v1554_v6, %v6387_v29  ;;  %v1197_v46 = vmax.f32 %v827_v44, 0.0  ;;  %4626 = vst.msk [vmem:[#allocation3 + $0xf0] sm:$0xff] %vm2292_vm0, %v9073_v17 }
 0x1f3   : > { %v3070_v48 = vsel %vm3014_vm4, %v2733_v59, %v2729_v42  ;;  %v3720_v28 = vsel %vm10730_vm5, %v3397_v34, %v3393_v12  ;;  %v2225_v35 = vmax.f32 %v1682_v19, %v6388_v50  ;;  %v9091_v59 = vld [vmem:[#allocation2 + $0x1a0] sm:$0xff]  ;;  %v3891_v34 = vld [vmem:[#allocation2 + $0x1a8] sm:$0x3] }
 0x1f4   : > { %v3071_v54 = vsel %vm3016_vm6, %v2737_v22, %v3070_v48  ;;  %v3721_v36 = vsel %vm3020_vm7, %v3401_v15, %v3720_v28  ;;  %v3725_v61 = vsel %vm3014_vm4, %v3421_v13, %v3417_v31  ;;  %v2745_v42 = vrot.slane %v2224_v24, %v7689_v1  ;;  %v9100_v13 = vpop.f32.mrf.mxu0  ;;  %v9109_v28 = vld [vmem:[#allocation2 + $0x68] sm:$0x3] }
 0x1f5   : > { %3823 = vst.msk [vmem:[#allocation2 + $0x1d7] sm:$0x3] %vm10727_vm1, %v3725_v61  ;;  %v3072_v55 = vsel %vm10730_vm5, %v2741_v3, %v3071_v54  ;;  %v3409_v44 = vrot.slane %v2224_v24, %v7692_v2  ;;  %v3722_v29 = vsel %vm3022_vm8, %v3405_v5, %v3721_v36  ;;  %v2749_v12 = vrot.slane %v2225_v35, %v7689_v1 }
 0x1f6   : > { %v3413_v19 = vrot.slane %v2225_v35, %v7692_v2  ;;  %v1330_v6 = vmul.f32 %v8817_v11, %v1197_v46  ;;  %v822_v22 = vadd.f32 %v8770_v43, %v8790_v53  ;;  %v3073_v15 = vsel %vm3020_vm7, %v2745_v42, %v3072_v55  ;;  %v9093_v61 = vpop.permute.xlu1 %4290 }
 0x1f7   : > { %v3723_v54 = vsel %vm3024_vm9, %v3409_v44, %v3722_v29  ;;  %v4258_v3 = vrot.slane %v8968_v56, 1  ;;  %v4259_v5 = vrot.slane %v9002_v30, 1  ;;  %v3074_v35 = vsel %vm3022_vm8, %v2749_v12, %v3073_v15  ;;  %v9111_v24 = vpop.permute.xlu0 %4668  ;;  %v9131_v15 = vpop.f32.mrf.mxu0 }
 0x1f8   : > { %v3724_v46 = vsel %vm3026_vm10, %v3413_v19, %v3723_v54  ;;  %v9098_v31 = vadd.f32 %v8811_v0, %v1330_v6  ;;  %v1196_v53 = vmax.f32 %v822_v22, 0.0  ;;  %v3075_v50 = vsel %vm3024_vm9, %v2753_v8, %v3074_v35 }
 0x1f9   : > { %3822 = vst.msk [vmem:[#allocation2 + $0x1cf] sm:$0xfc] %vm10728_vm11, %v3724_v46  ;;  %v4260_v56 = vsel %vm3981_vm2, %v4258_v3, %v4259_v5  ;;  %v837_v30 = vadd.f32 %v8770_v43, %v8831_v16  ;;  %v832_v48 = vadd.f32 %v8770_v43, %v8861_v18  ;;  %v3076_v36 = vsel %vm3026_vm10, %v2757_v58, %v3075_v50 }
 0x1fa   : > { %v1329_v42 = vmul.f32 %v8817_v11, %v1196_v53  ;;  %4280 = vrot.lane.b32.xlu1 %v4260_v56, %s7217_s14  ;;  %4633 = vrot.lane.b32.xlu0 %v4260_v56, %s7215_s9  ;;  %v4056_v8 = vrot.slane %v9091_v59, 1  ;;  %v4057_v55 = vrot.slane %v3891_v34, 1  ;;  %3157 = vst.msk [vmem:[#allocation2 + $0x91] sm:$0xff] %vm2292_vm0, %v3076_v36  ;;  %v847_v18 = vadd.f32 %v8770_v43, %v8900_v23  ;;  %v9123_v58 = vpop.permute.xlu1 %4213 }
 0x1fb   : > { %v1199_v16 = vmax.f32 %v837_v30, 0.0  ;;  %v1198_v44 = vmax.f32 %v832_v48, 0.0  ;;  %v842_v29 = vadd.f32 %v8770_v43, %v8919_v39  ;;  %v4114_v6 = vrot.slane %v8537_v25, 2 }
 0x1fc   : > { %v1462_v12 = vadd.f32 %v8811_v0, %v1329_v42  ;;  %v9127_v19 = vsel %vm3981_vm2, %v4056_v8, %v4057_v55  ;;  %v4115_v22 = vrot.slane %v9109_v28, 2  ;;  %v1201_v3 = vmax.f32 %v847_v18, 0.0  ;;  %v4384_v46 = vpop.permute.xlu0 %4383 }
 0x1fd   : > { %v1332_v54 = vmul.f32 %v8817_v11, %v1199_v16  ;;  %v1331_v23 = vmul.f32 %v8817_v11, %v1198_v44  ;;  %v1200_v5 = vmax.f32 %v842_v29, 0.0  ;;  %v857_v34 = vadd.f32 %v8770_v43, %v8940_v27  ;;  %4406 = vst.msk [vmem:[#allocation3 + $0x28] sm:$0xff] %vm3956_vm12, %v4384_v46 }
 0x1fe   : > { %4523 = vrot.lane.b32.xlu1 %v9127_v19, %s7214_s8  ;;  %4705 = vrot.lane.b32.xlu0 %v9029_v7, %s7212_s23  ;;  %v4116_v39 = vsel %vm10725_vm3, %v4114_v6, %v4115_v22  ;;  %v852_v35 = vadd.f32 %v8770_v43, %v8970_v47  ;;  %v1334_v56 = vmul.f32 %v8817_v11, %v1201_v3  ;;  %v9154_v7 = vpop.f32.mrf.mxu0  ;;  %v4173_v32 = vpop.permute.xlu1 %4172  ;;  %vm10726_vm3 = vcmask 786048  }
 0x1ff   : > { %v1465_v53 = vadd.f32 %v8811_v0, %v1332_v54  ;;  %v1464_v50 = vadd.f32 %v8811_v0, %v1331_v23  ;;  %v1333_v30 = vmul.f32 %v8817_v11, %v1200_v5  ;;  %4885 = vst.msk [vmem:[#allocation3 + $0x38] sm:$0xff] %vm2292_vm0, %v4116_v39  ;;  %v1203_v27 = vmax.f32 %v857_v34, 0.0 }
 0x200   : > { %v1202_v47 = vmax.f32 %v852_v35, 0.0  ;;  %v9156_v48 = vld [vmem:[#allocation2 + $0x1d0] sm:$0xff]  ;;  %v1467_v8 = vadd.f32 %v8811_v0, %v1334_v56  ;;  %4195 = vst.msk [vmem:[#allocation3] sm:$0xff] %vm10726_vm3, %v8666_v63  ;;  %v9190_v60 = vpop.f32.mrf.mxu0  ;;  %4196 = vst.msk [vmem:[#allocation3 + $0x20] sm:$0xff] %vm10726_vm3, %v4173_v32  ;;  %vm4235_vm3 = vcmask 917248  }
 0x201   : > { %v1557_v36 = vmax.f32 %v9026_v14, %v1465_v53  ;;  %v1556_v42 = vmax.f32 %v9040_v49, %v1464_v50  ;;  %v1466_v52 = vadd.f32 %v8811_v0, %v1333_v30  ;;  %4622 = vst.msk [vmem:[#allocation3 + $0x70] sm:$0xff] %vm2292_vm0, %v9156_v48  ;;  %v1336_v14 = vmul.f32 %v8817_v11, %v1203_v27 }
 0x202   : > { %4558 = vrot.lane.b32.xlu1 %v4116_v39, %s7216_s13  ;;  %4451 = vrot.lane.b32.xlu0 %v9091_v59, %s7212_s23  ;;  %v1335_v49 = vmul.f32 %v8817_v11, %v1202_v47  ;;  %v1559_v44 = vmax.f32 %v9098_v31, %v1467_v8  ;;  %v9200_v56 = vpop.f32.mrf.mxu0  ;;  %4236 = vst.msk [vmem:[#allocation3] sm:$0xff] %vm4235_vm3, %v8714_v20  ;;  %4237 = vst.msk [vmem:[#allocation3 + $0x20] sm:$0xff] %vm4235_vm3, %v9123_v58 }
 0x203   : > { %v1685_v41 = vcombine.high %v1557_v36, %v1557_v36  ;;  %v6393_v38 = vrot.slane %v1557_v36, 9  ;;  %v1684_v55 = vcombine.high %v1556_v42, %v1556_v42  ;;  %v6391_v16 = vrot.slane %v1556_v42, 9 }
 0x204   : > { %v1558_v18 = vmax.f32 %v1462_v12, %v1466_v52  ;;  %v9183_v10 = vadd.f32 %v8811_v0, %v1336_v14  ;;  %v9186_v29 = vadd.f32 %v8811_v0, %v1335_v49  ;;  %v1687_v54 = vcombine.high %v1559_v44, %v1559_v44 }
 0x205   : > { %v6394_v33 = vrot.slane %v1685_v41, 9  ;;  %v2230_v6 = vmax.f32 %v1557_v36, %v6393_v38  ;;  %v6392_v22 = vrot.slane %v1684_v55, 9  ;;  %v2228_v40 = vmax.f32 %v1556_v42, %v6391_v16 }
 0x206   : > { %v6397_v31 = vrot.slane %v1559_v44, 9  ;;  %v1686_v12 = vcombine.high %v1558_v18, %v1558_v18  ;;  %v6395_v23 = vrot.slane %v1558_v18, 9  ;;  %4135 = vrot.lane.b32.xlu1 %v4116_v39, %s7213_s29  ;;  %3938 = vrot.lane.b32.xlu0 %v9091_v59, %s7215_s9  ;;  %v6398_v53 = vrot.slane %v1687_v54, 9 }
 0x207   : > { %v2231_v3 = vmax.f32 %v1685_v41, %v6394_v33  ;;  %v2769_v63 = vrot.slane %v2230_v6, %v7689_v1  ;;  %v3433_v5 = vrot.slane %v2230_v6, %v7692_v2  ;;  %v2229_v34 = vmax.f32 %v1684_v55, %v6392_v22  ;;  %v9214_v41 = vld [vmem:[#allocation2 + $0x70] sm:$0xff] }
 0x208   : > { %v2761_v35 = vrot.slane %v2228_v40, %v7689_v1  ;;  %v3425_v46 = vrot.slane %v2228_v40, %v7692_v2  ;;  %v2234_v50 = vmax.f32 %v1559_v44, %v6397_v31  ;;  %v2235_v36 = vmax.f32 %v1687_v54, %v6398_v53  ;;  %v3881_v40 = vld [vmem:[#allocation2 + $0x158] sm:$0x3] }
 0x209   : > { %v2773_v30 = vrot.slane %v2231_v3, %v7689_v1  ;;  %v3437_v39 = vrot.slane %v2231_v3, %v7692_v2  ;;  %v2765_v27 = vrot.slane %v2229_v34, %v7689_v1  ;;  %v3429_v47 = vrot.slane %v2229_v34, %v7692_v2 }
 0x20a   : > { %v2785_v42 = vrot.slane %v2234_v50, %v7689_v1  ;;  %v3449_v8 = vrot.slane %v2234_v50, %v7692_v2  ;;  %v6396_v52 = vrot.slane %v1686_v12, 9  ;;  %4217 = vrot.lane.b32.xlu1 %v8881_v57, %s7216_s13  ;;  %4771 = vrot.lane.b32.xlu0 %v9091_v59, %s7214_s8  ;;  %v2232_v49 = vmax.f32 %v1558_v18, %v6395_v23  ;;  %v9222_v59 = vpop.f32.mrf.mxu0 }
 0x20b   : > { %v3077_v32 = vsel %vm3014_vm4, %v2765_v27, %v2761_v35  ;;  %v3726_v14 = vsel %vm10730_vm5, %v3429_v47, %v3425_v46  ;;  %v2789_v16 = vrot.slane %v2235_v36, %v7689_v1  ;;  %v3453_v44 = vrot.slane %v2235_v36, %v7692_v2 }
 0x20c   : > { %v3078_v38 = vsel %vm3016_vm6, %v2769_v63, %v3077_v32  ;;  %v3727_v55 = vsel %vm3020_vm7, %v3433_v5, %v3726_v14  ;;  %v2233_v18 = vmax.f32 %v1686_v12, %v6396_v52  ;;  %v2777_v33 = vrot.slane %v2232_v49, %v7689_v1  ;;  %v9245_v35 = vpop.f32.mrf.mxu0  ;;  %v3893_v52 = vld [vmem:[#allocation2 + $0x1b8] sm:$0x3]  ;;  %v10765_v14 = vld [vmem:[#allocation19_spill] sm:$0xff] }
 0x20d   : > { %v3079_v6 = vsel %vm10730_vm5, %v2773_v30, %v3078_v38  ;;  %v3441_v22 = vrot.slane %v2232_v49, %v7692_v2  ;;  %v3731_v54 = vsel %vm3014_vm4, %v3453_v44, %v3449_v8  ;;  %v3728_v31 = vsel %vm3022_vm8, %v3437_v39, %v3727_v55  ;;  %v10766_v44 = vld [vmem:[#allocation21_spill] sm:$0xff] }
 0x20e   : > { %v867_v20 = vadd.f32 %v8770_v43, %v8994_v21  ;;  %v862_v23 = vadd.f32 %v8770_v43, %v9020_v4  ;;  %4591 = vrot.lane.b32.xlu1 %v9214_v41, %s7217_s14  ;;  %3825 = vst.msk [vmem:[#allocation2 + $0x1e7] sm:$0x3] %vm10727_vm1, %v3731_v54  ;;  %v2781_v58 = vrot.slane %v2233_v18, %v7689_v1  ;;  %v4326_v4 = vrot.slane %v8881_v57, 1  ;;  %v9280_v49 = vpop.f32.mrf.mxu0 }
 0x20f   : > { %v3080_v12 = vsel %vm3020_vm7, %v2777_v33, %v3079_v6  ;;  %v3445_v3 = vrot.slane %v2233_v18, %v7692_v2  ;;  %v3729_v63 = vsel %vm3024_vm9, %v3441_v22, %v3728_v31  ;;  %4418 = vrot.lane.b32.xlu0 %v8537_v25, %s10754_s16  ;;  %v4318_v34 = vrot.slane %v3881_v40, 1  ;;  %v10767_v22 = vld [vmem:[#allocation20_spill] sm:$0xff] }
 0x210   : > { %v1205_v21 = vmax.f32 %v867_v20, 0.0  ;;  %v1204_v5 = vmax.f32 %v862_v23, 0.0  ;;  %v3081_v46 = vsel %vm3022_vm8, %v2781_v58, %v3080_v12  ;;  %vm4300_vm1 = vcmask 1048448   ;;  %v4279_v36 = vpop.permute.xlu1 %4278 }
 0x211   : > { %v3730_v53 = vsel %vm3026_vm10, %v3445_v3, %v3729_v63  ;;  %v877_v50 = vadd.f32 %v8770_v43, %v9042_v9  ;;  %v3082_v30 = vsel %vm3024_vm9, %v2785_v42, %v3081_v46  ;;  %v10764_v57 = vrot.slane %v7622_v62, 1  ;;  %4301 = vst.msk [vmem:[#allocation3] sm:$0xff] %vm4300_vm1, %v8778_v45  ;;  %4302 = vst.msk [vmem:[#allocation3 + $0x20] sm:$0xff] %vm4300_vm1, %v4279_v36  ;;  %v10769_v63 = vld [vmem:[#allocation22_spill] sm:$0xff] }
 0x212   : > { %3824 = vst.msk [vmem:[#allocation2 + $0x1df] sm:$0xfc] %vm10728_vm11, %v3730_v53  ;;  %v1338_v39 = vmul.f32 %v8817_v11, %v1205_v21  ;;  %v1337_v27 = vmul.f32 %v8817_v11, %v1204_v5  ;;  %4176 = vrot.lane.b32.xlu1 %v9214_v41, %s7214_s8  ;;  %v3083_v9 = vsel %vm3026_vm10, %v2789_v16, %v3082_v30  ;;  %vm10770_vm11 = vcmask 786048   ;;  %v9304_v21 = vpop.f32.mrf.mxu0  ;;  %v4704_v5 = vpop.permute.xlu0 %4703 }
 0x213   : > { %v4319_v47 = vsel %vm3981_vm2, %v10764_v57, %v4318_v34  ;;  %v1207_v42 = vmax.f32 %v877_v50, 0.0  ;;  %v872_v8 = vadd.f32 %v8770_v43, %v9053_v51  ;;  %v887_v62 = vadd.f32 %v8770_v43, %v9071_v26  ;;  %4738 = vrot.lane.b32.xlu0 %v8537_v25, %s7213_s29  ;;  %3158 = vst.msk [vmem:[#allocation2 + $0xa1] sm:$0xff] %vm2292_vm0, %v3083_v9 }
 0x214   : > { %4349 = vst.msk [vmem:[#allocation3 + $0x8] sm:$0xff] %vm2292_vm0, %v4319_v47  ;;  %v1471_v45 = vadd.f32 %v8811_v0, %v1338_v39  ;;  %v1470_v32 = vadd.f32 %v8811_v0, %v1337_v27  ;;  %v882_v51 = vadd.f32 %v8770_v43, %v9100_v13  ;;  %v897_v26 = vadd.f32 %v8770_v43, %v9131_v15  ;;  %v4632_v40 = vpop.permute.xlu1 %4631 }
 0x215   : > { %4405 = vst.msk [vmem:[#allocation3 + $0x8] sm:$0xff] %vm3956_vm12, %v10765_v14  ;;  %v1340_v38 = vmul.f32 %v8817_v11, %v1207_v42  ;;  %v1206_v55 = vmax.f32 %v872_v8, 0.0  ;;  %v1209_v16 = vmax.f32 %v887_v62, 0.0  ;;  %v892_v18 = vadd.f32 %v8770_v43, %v9154_v7  ;;  %v10768_v7 = vld [vmem:[#allocation23_spill] sm:$0xff]  ;;  %4655 = vst.msk [vmem:[#allocation3 + $0x10] sm:$0xff] %vm3956_vm12, %v4632_v40 }
 0x216   : > { %4438 = vst.msk [vmem:[#allocation3 + $0x8] sm:$0xff] %vm4030_vm13, %v10766_v44  ;;  %v1208_v33 = vmax.f32 %v882_v51, 0.0  ;;  %v1211_v6 = vmax.f32 %v897_v26, 0.0  ;;  %v4327_v13 = vrot.slane %v3893_v52, 1  ;;  %v907_v15 = vadd.f32 %v8770_v43, %v9190_v60  ;;  %4692 = vst.msk [vmem:[#allocation3 + $0x10] sm:$0xff] %vm4030_vm13, %v9111_v24 }
 0x217   : > { %4471 = vst.msk [vmem:[#allocation3 + $0x8] sm:$0xff] %vm4095_vm14, %v10767_v22  ;;  %v1473_v54 = vadd.f32 %v8811_v0, %v1340_v38  ;;  %v1339_v31 = vmul.f32 %v8817_v11, %v1206_v55  ;;  %v1342_v20 = vmul.f32 %v8817_v11, %v1209_v16  ;;  %v1210_v23 = vmax.f32 %v892_v18, 0.0  ;;  %4077 = vrot.lane.b32.xlu0 %v9127_v19, %s7212_s23 }
 0x218   : > { %4507 = vst.msk [vmem:[#allocation3 + $0x8] sm:$0xff] %vm10729_vm15, %v10768_v7  ;;  %v1341_v58 = vmul.f32 %v8817_v11, %v1208_v33  ;;  %v1344_v60 = vmul.f32 %v8817_v11, %v1211_v6  ;;  %v4328_v12 = vsel %vm3981_vm2, %v4326_v4, %v4327_v13  ;;  %v1213_v3 = vmax.f32 %v907_v15, 0.0  ;;  %v10771_v4 = vld [vmem:[#allocation24_spill] sm:$0xff]  ;;  %v4770_v27 = vpop.permute.xlu1 %4769  ;;  %v9349_v13 = vpop.permute.xlu0 %4461 }
 0x219   : > { %4543 = vst.msk [vmem:[#allocation3 + $0x8] sm:$0xff] %vm10770_vm11, %v10769_v63  ;;  %v1561_v34 = vmax.f32 %v9183_v10, %v1473_v54  ;;  %v1472_v46 = vadd.f32 %v8811_v0, %v1339_v31  ;;  %v1475_v53 = vadd.f32 %v8811_v0, %v1342_v20  ;;  %v1343_v50 = vmul.f32 %v8817_v11, %v1210_v23 }
 0x21a   : > { %4352 = vst.msk [vmem:[#allocation3 + $0x68] sm:$0xff] %vm2292_vm0, %v4328_v12  ;;  %4672 = vrot.lane.b32.xlu1 %v4328_v12, %s10754_s16  ;;  %v1474_v30 = vadd.f32 %v8811_v0, %v1341_v58  ;;  %v9319_v24 = vadd.f32 %v8811_v0, %v1344_v60  ;;  %v1346_v10 = vmul.f32 %v8817_v11, %v1213_v3  ;;  %v9331_v42 = vld [vmem:[#allocation2 + $0xa0] sm:$0xff] }
 0x21b   : > { %4578 = vst.msk [vmem:[#allocation3 + $0x8] sm:$0xff] %vm4235_vm3, %v10771_v4  ;;  %v9324_v39 = vadd.f32 %v8770_v43, %v9200_v56  ;;  %v1689_v57 = vcombine.high %v1561_v34, %v1561_v34  ;;  %v6401_v47 = vrot.slane %v1561_v34, 9  ;;  %v1560_v36 = vmax.f32 %v9186_v29, %v1472_v46  ;;  %4843 = vrot.lane.b32.xlu0 %v9127_v19, %s7217_s14  ;;  %v9340_v56 = vpop.f32.mrf.mxu0  ;;  %v4892_v12 = vld [vmem:[#allocation3] sm:$0xff] }
 0x21c   : > { %4727 = vst.msk [vmem:[#allocation3 + $0x10] sm:$0xff] %vm4095_vm14, %v4704_v5  ;;  %v1563_v9 = vmax.f32 %v1471_v45, %v1475_v53  ;;  %v1562_v8 = vmax.f32 %v1470_v32, %v1474_v30  ;;  %v9334_v11 = vadd.f32 %v8811_v0, %v1343_v50  ;;  %v9337_v43 = vadd.f32 %v8811_v0, %v1346_v10  ;;  %v4737_v26 = vpop.permute.xlu1 %4736  ;;  %v3855_v30 = vld [vmem:[#allocation2 + $0x78] sm:$0x3] }
 0x21d   : > { %4611 = vst.msk [vmem:[#allocation3 + $0x8] sm:$0xff] %vm4300_vm1, %v9066_v37  ;;  %v1212_v37 = vmax.f32 %v9324_v39, 0.0  ;;  %v6402_v29 = vrot.slane %v1689_v57, 9  ;;  %v2238_v62 = vmax.f32 %v1561_v34, %v6401_v47  ;;  %v1688_v52 = vcombine.high %v1560_v36, %v1560_v36  ;;  %v9347_v22 = vpop.f32.mrf.mxu0 }
 0x21e   : > { %3921 = vst.msk [vmem:[#allocation3 + $0xa0] sm:$0xff] %vm2292_vm0, %v9331_v42  ;;  %v6399_v19 = vrot.slane %v1560_v36, 9  ;;  %v1691_v45 = vcombine.high %v1563_v9, %v1563_v9  ;;  %v6405_v14 = vrot.slane %v1563_v9, 9  ;;  %v1690_v32 = vcombine.high %v1562_v8, %v1562_v8 }
 0x21f   : > { %v6403_v51 = vrot.slane %v1562_v8, 9  ;;  %v2239_v38 = vmax.f32 %v1689_v57, %v6402_v29  ;;  %v2801_v0 = vrot.slane %v2238_v62, %v7689_v1  ;;  %v3465_v55 = vrot.slane %v2238_v62, %v7692_v2  ;;  %4760 = vst.msk [vmem:[#allocation3 + $0x10] sm:$0xff] %vm10729_vm15, %v4737_v26  ;;  %v6984_v10 = vpop.f32.mrf.mxu0  ;;  %v9374_v29 = vld [vmem:[%s10707_s4 + $0x1] ss:$0 sm:$0xff] }
 0x220   : > { %v6400_v16 = vrot.slane %v1688_v52, 9  ;;  %v2236_v44 = vmax.f32 %v1560_v36, %v6399_v19  ;;  %v6406_v18 = vrot.slane %v1691_v45, 9  ;;  %v2242_v33 = vmax.f32 %v1563_v9, %v6405_v14  ;;  %4793 = vst.msk [vmem:[#allocation3 + $0x10] sm:$0xff] %vm10770_vm11, %v4770_v27 }
 0x221   : > { %v6404_v6 = vrot.slane %v1690_v32, 9  ;;  %v2805_v15 = vrot.slane %v2239_v38, %v7689_v1  ;;  %v3469_v40 = vrot.slane %v2239_v38, %v7692_v2  ;;  %v2240_v31 = vmax.f32 %v1562_v8, %v6403_v51  ;;  %v9388_v38 = vld [vmem:[%s10707_s4 + $0x2] ss:$0 sm:$0xff] }
 0x222   : > { %v2237_v54 = vmax.f32 %v1688_v52, %v6400_v16  ;;  %v2793_v23 = vrot.slane %v2236_v44, %v7689_v1  ;;  %v3457_v7 = vrot.slane %v2236_v44, %v7692_v2  ;;  %v2243_v58 = vmax.f32 %v1691_v45, %v6406_v18  ;;  %v9377_v52 = vpop.permute.xlu0 %4428  ;;  %v9400_v16 = vpop.f32.mrf.mxu0 }
 0x223   : > { %v2817_v60 = vrot.slane %v2242_v33, %v7689_v1  ;;  %v3481_v5 = vrot.slane %v2242_v33, %v7692_v2  ;;  %v2241_v34 = vmax.f32 %v1690_v32, %v6404_v6  ;;  %v2809_v50 = vrot.slane %v2240_v31, %v7689_v1 }
 0x224   : > { %v4893_v20 = vld [vmem:[#allocation3 + $0x8] sm:$0xff]  ;;  %v2797_v3 = vrot.slane %v2237_v54, %v7689_v1  ;;  %v3461_v63 = vrot.slane %v2237_v54, %v7692_v2  ;;  %v2821_v46 = vrot.slane %v2243_v58, %v7689_v1  ;;  %v3485_v53 = vrot.slane %v2243_v58, %v7692_v2 }
 0x225   : > { %5067 = vmatprep.mubr.f32.mxu1 %v4893_v20  ;;  %v3473_v4 = vrot.slane %v2240_v31, %v7692_v2  ;;  %v2813_v57 = vrot.slane %v2241_v34, %v7689_v1  ;;  %v3477_v47 = vrot.slane %v2241_v34, %v7692_v2  ;;  %v1345_v62 = vmul.f32 %v9374_v29, %v1212_v37 }
 0x226   : > { %5068 = vmatmul.mubr.f32.vlgmr.msra.gmra.mxu1 %v4892_v12  ;;  %v3084_v39 = vsel %vm3014_vm4, %v2797_v3, %v2793_v23  ;;  %v3732_v27 = vsel %vm10730_vm5, %v3461_v63, %v3457_v7  ;;  %v3737_v8 = vsel %vm3014_vm4, %v3485_v53, %v3481_v5  ;;  %vm10772_vm11 = vcmask 123904   ;;  %v3909_v7 = vld [vmem:[#allocation2 + $0x238] sm:$0x3] }
 0x227   : > { %v3085_v36 = vsel %vm3016_vm6, %v2801_v0, %v3084_v39  ;;  %v3733_v9 = vsel %vm3020_vm7, %v3465_v55, %v3732_v27  ;;  %3827 = vst.msk [vmem:[#allocation2 + $0x1f7] sm:$0x3] %vm10772_vm11, %v3737_v8  ;;  %v4261_v14 = vrot.slane %v9214_v41, 1  ;;  %v4262_v32 = vrot.slane %v3855_v30, 1  ;;  %v9396_v0 = vld [vmem:[%s10707_s4] ss:$0 sm:$0xff] }
 0x228   : > { %v3086_v19 = vsel %vm10730_vm5, %v2805_v15, %v3085_v36  ;;  %v3734_v45 = vsel %vm3022_vm8, %v3469_v40, %v3733_v9  ;;  %v9391_v37 = vadd.f32 %v9388_v38, %v1345_v62  ;;  %v917_v55 = vadd.f32 %v9396_v0, %v9222_v59  ;;  %v10775_v27 = vld [vmem:[#allocation14_spill] sm:$0xff] }
 0x229   : > { %v3087_v51 = vsel %vm3020_vm7, %v2809_v50, %v3086_v19  ;;  %v3735_v26 = vsel %vm3024_vm9, %v3473_v4, %v3734_v45  ;;  %v4263_v33 = vsel %vm3981_vm2, %v4261_v14, %v4262_v32  ;;  %v912_v6 = vadd.f32 %v9396_v0, %v9245_v35  ;;  %v4534_v3 = vpop.permute.xlu0 %4533 }
 0x22a   : > { %v3088_v44 = vsel %vm3022_vm8, %v2813_v57, %v3087_v51  ;;  %v3736_v18 = vsel %vm3026_vm10, %v3477_v47, %v3735_v26  ;;  %vm10773_vm11 = vcmask 130050   ;;  %4282 = vrot.lane.b32.xlu1 %v4263_v33, %s7217_s14  ;;  %v1215_v40 = vmax.f32 %v917_v55, 0.0 }
 0x22b   : > { %v3089_v15 = vsel %vm3024_vm9, %v2817_v60, %v3088_v44  ;;  %3826 = vst.msk [vmem:[#allocation2 + $0x1ef] sm:$0xfc] %vm10773_vm11, %v3736_v18  ;;  %v3991_v59 = vrot.slane %v8537_v25, 1  ;;  %v3992_v54 = vrot.slane %v9109_v28, 1  ;;  %v1214_v20 = vmax.f32 %v912_v6, 0.0  ;;  %v9421_v28 = vpop.f32.mrf.mxu0 }
 0x22c   : > { %v3090_v31 = vsel %vm3026_vm10, %v2821_v46, %v3089_v15  ;;  %v927_v23 = vadd.f32 %v9396_v0, %v9280_v49  ;;  %v922_v35 = vadd.f32 %v9396_v0, %v9304_v21  ;;  %v1348_v58 = vmul.f32 %v9374_v29, %v1215_v40 }
 0x22d   : > { %3159 = vst.msk [vmem:[#allocation2 + $0xb1] sm:$0xff] %vm2292_vm0, %v3090_v31  ;;  %v3993_v60 = vsel %vm3981_vm2, %v3991_v59, %v3992_v54  ;;  %v4366_v25 = vrot.slane %v9214_v41, 2  ;;  %v4367_v12 = vrot.slane %v3855_v30, 2  ;;  %v1347_v63 = vmul.f32 %v9374_v29, %v1214_v20  ;;  %v9444_v8 = vpop.f32.mrf.mxu0  ;;  %v4498_v26 = vpop.permute.xlu0 %4497 }
 0x22e   : > { %4487 = vrot.lane.b32.xlu0 %v3993_v60, %s7213_s29  ;;  %v1217_v49 = vmax.f32 %v927_v23, 0.0  ;;  %v1216_v5 = vmax.f32 %v922_v35, 0.0  ;;  %v937_v21 = vadd.f32 %v9396_v0, %v9340_v56  ;;  %v1481_v34 = vadd.f32 %v9388_v38, %v1348_v58  ;;  %4635 = vrot.lane.b32.xlu1 %v4263_v33, %s7215_s9 }
 0x22f   : > { %vm10774_vm11 = vcmask 1045504   ;;  %v4339_v41 = vrot.slane %v3909_v7, 1  ;;  %v932_v53 = vadd.f32 %v9396_v0, %v9347_v22  ;;  %v1480_v50 = vadd.f32 %v9388_v38, %v1347_v63  ;;  %v9474_v31 = vpop.f32.mrf.mxu0 }
 0x230   : > { %v9430_v46 = vsel %vm10774_vm11, %v4366_v25, %v4367_v12  ;;  %v1350_v4 = vmul.f32 %v9374_v29, %v1217_v49  ;;  %v1349_v30 = vmul.f32 %v9374_v29, %v1216_v5  ;;  %v1219_v39 = vmax.f32 %v937_v21, 0.0 }
 0x231   : > { %v1565_v56 = vmax.f32 %v9319_v24, %v1481_v34  ;;  %v10776_v57 = vrot.slane %v10775_v27, 1  ;;  %v1218_v36 = vmax.f32 %v932_v53, 0.0  ;;  %v947_v9 = vadd.f32 %v9396_v0, %v6984_v10  ;;  %v10777_v10 = vld [vmem:[#allocation28_spill] sm:$0xff]  ;;  %v9466_v6 = vpop.permute.xlu1 %4521 }
 0x232   : > { %v1564_v22 = vmax.f32 %v9334_v11, %v1480_v50  ;;  %v1483_v62 = vadd.f32 %v9388_v38, %v1350_v4  ;;  %v1482_v19 = vadd.f32 %v9388_v38, %v1349_v30  ;;  %4012 = vrot.lane.b32.xlu0 %v3993_v60, %s10754_s16  ;;  %v1352_v24 = vmul.f32 %v9374_v29, %v1219_v39  ;;  %v9453_v45 = vld [vmem:[#allocation2 + $0x1f0] sm:$0xff] }
 0x233   : > { %v9441_v47 = vsel %vm3981_vm2, %v10776_v57, %v4339_v41  ;;  %v1693_v14 = vcombine.high %v1565_v56, %v1565_v56  ;;  %v6409_v32 = vrot.slane %v1565_v56, 9  ;;  %4707 = vrot.lane.b32.xlu1 %v9430_v46, %s7212_s23  ;;  %v1351_v11 = vmul.f32 %v9374_v29, %v1218_v36  ;;  %4623 = vst.msk [vmem:[#allocation3 + $0x90] sm:$0xff] %vm2292_vm0, %v9453_v45  ;;  %v961_v41 = vpop.f32.mrf.mxu0  ;;  %v10779_v36 = vld [vmem:[#allocation27_spill] sm:$0xff] }
 0x234   : > { %4356 = vst.msk [vmem:[#allocation3 + $0xe8] sm:$0xff] %vm2292_vm0, %v9441_v47  ;;  %v1221_v51 = vmax.f32 %v947_v9, 0.0  ;;  %v1692_v55 = vcombine.high %v1564_v22, %v1564_v22  ;;  %v6407_v44 = vrot.slane %v1564_v22, 9  ;;  %v1567_v18 = vmax.f32 %v9337_v43, %v1483_v62 }
 0x235   : > { %4412 = vst.msk [vmem:[#allocation3 + $0xe8] sm:$0xff] %vm3956_vm12, %v10777_v10  ;;  %v1566_v33 = vmax.f32 %v9391_v37, %v1482_v19  ;;  %v6410_v15 = vrot.slane %v1693_v14, 9  ;;  %v2246_v40 = vmax.f32 %v1565_v56, %v6409_v32  ;;  %v9469_v59 = vadd.f32 %v9388_v38, %v1352_v24 }
 0x236   : > { %4445 = vst.msk [vmem:[#allocation3 + $0xe8] sm:$0xff] %vm4030_vm13, %v9377_v52  ;;  %v9472_v54 = vadd.f32 %v9388_v38, %v1351_v11  ;;  %v6408_v43 = vrot.slane %v1692_v55, 9  ;;  %v2244_v37 = vmax.f32 %v1564_v22, %v6407_v44  ;;  %v1695_v20 = vcombine.high %v1567_v18, %v1567_v18  ;;  %v9478_v52 = vld [vmem:[#allocation2 + $0x1c0] sm:$0xff]  ;;  %4807 = vrot.lane.b32.xlu0 %v3993_v60, %s7216_s13  ;;  %v6993_v11 = vpop.f32.mrf.mxu0 }
 0x237   : > { %4478 = vst.msk [vmem:[#allocation3 + $0xe8] sm:$0xff] %vm4095_vm14, %v9349_v13  ;;  %v6413_v23 = vrot.slane %v1567_v18, 9  ;;  %v2247_v35 = vmax.f32 %v1693_v14, %v6410_v15  ;;  %v2833_v7 = vrot.slane %v2246_v40, %v7689_v1  ;;  %v3497_v58 = vrot.slane %v2246_v40, %v7692_v2  ;;  %4773 = vrot.lane.b32.xlu1 %v9478_v52, %s7214_s8 }
 0x238   : > { %4514 = vst.msk [vmem:[#allocation3 + $0xe8] sm:$0xff] %vm10729_vm15, %v4498_v26  ;;  %v1694_v25 = vcombine.high %v1566_v33, %v1566_v33  ;;  %vm10778_vm11 = vcmask 786048   ;;  %v2245_v13 = vmax.f32 %v1692_v55, %v6408_v43  ;;  %v2825_v12 = vrot.slane %v2244_v37, %v7689_v1 }
 0x239   : > { %4550 = vst.msk [vmem:[#allocation3 + $0xe8] sm:$0xff] %vm10778_vm11, %v4534_v3  ;;  %v3489_v63 = vrot.slane %v2244_v37, %v7692_v2  ;;  %v6414_v49 = vrot.slane %v1695_v20, 9  ;;  %v2837_v60 = vrot.slane %v2247_v35, %v7689_v1  ;;  %v3501_v5 = vrot.slane %v2247_v35, %v7692_v2  ;;  %v9495_v3 = vpop.permute.xlu1 %4841 }
 0x23a   : > { %v2250_v21 = vmax.f32 %v1567_v18, %v6413_v23  ;;  %v6411_v34 = vrot.slane %v1566_v33, 9  ;;  %v2829_v53 = vrot.slane %v2245_v13, %v7689_v1  ;;  %v3493_v50 = vrot.slane %v2245_v13, %v7692_v2  ;;  %4387 = vrot.lane.b32.xlu0 %v9430_v46, %s7215_s9  ;;  %v4569_v9 = vpop.permute.xlu0 %4568  ;;  %v3895_v18 = vld [vmem:[#allocation2 + $0x1c8] sm:$0x3] }
 0x23b   : > { %v2251_v4 = vmax.f32 %v1695_v20, %v6414_v49  ;;  %v6412_v30 = vrot.slane %v1694_v25, 9  ;;  %v1354_v57 = vmul.f32 %v9374_v29, %v1221_v51  ;;  %4740 = vrot.lane.b32.xlu1 %v10779_v36, %s7213_s29  ;;  %4585 = vst.msk [vmem:[#allocation3 + $0xe8] sm:$0xff] %vm4235_vm3, %v4569_v9  ;;  %vm10780_vm11 = vcmask 123904   ;;  %v971_v49 = vpop.f32.mrf.mxu0 }
 0x23c   : > { %v2849_v39 = vrot.slane %v2250_v21, %v7689_v1  ;;  %v3513_v56 = vrot.slane %v2250_v21, %v7692_v2  ;;  %v2248_v27 = vmax.f32 %v1566_v33, %v6411_v34  ;;  %v3091_v22 = vsel %vm3014_vm4, %v2829_v53, %v2825_v12 }
 0x23d   : > { %v3738_v62 = vsel %vm10730_vm5, %v3493_v50, %v3489_v63  ;;  %v2853_v19 = vrot.slane %v2251_v4, %v7689_v1  ;;  %v3517_v46 = vrot.slane %v2251_v4, %v7692_v2  ;;  %v3092_v24 = vsel %vm3016_vm6, %v2833_v7, %v3091_v22  ;;  %v6996_v22 = vpop.f32.mrf.mxu0 }
 0x23e   : > { %v3739_v14 = vsel %vm3020_vm7, %v3497_v58, %v3738_v62  ;;  %v2249_v32 = vmax.f32 %v1694_v25, %v6412_v30  ;;  %v2841_v10 = vrot.slane %v2248_v27, %v7689_v1  ;;  %v3093_v26 = vsel %vm10730_vm5, %v2837_v60, %v3092_v24  ;;  %4453 = vrot.lane.b32.xlu0 %v9478_v52, %s7212_s23  ;;  %v4450_v37 = vpop.permute.xlu0 %4449 }
 0x23f   : > { %v3743_v51 = vsel %vm3014_vm4, %v3517_v46, %v3513_v56  ;;  %v3505_v55 = vrot.slane %v2248_v27, %v7692_v2  ;;  %v3740_v44 = vsel %vm3022_vm8, %v3501_v5, %v3739_v14  ;;  %v9521_v43 = vadd.f32 %v9388_v38, %v1354_v57  ;;  %v9530_v58 = vpop.permute.xlu1 %4556  ;;  %v9550_v56 = vld [vmem:[#allocation2 + $0x88] sm:$0x3] }
 0x240   : > { %3829 = vst.msk [vmem:[#allocation2 + $0x207] sm:$0x3] %vm10780_vm11, %v3743_v51  ;;  %v2845_v33 = vrot.slane %v2249_v32, %v7689_v1  ;;  %v3094_v15 = vsel %vm3020_vm7, %v2841_v10, %v3093_v26  ;;  %v3509_v40 = vrot.slane %v2249_v32, %v7692_v2  ;;  %v942_v23 = vadd.f32 %v9396_v0, %v9400_v16 }
 0x241   : > { %v3741_v20 = vsel %vm3024_vm9, %v3505_v55, %v3740_v44  ;;  %v957_v35 = vadd.f32 %v9396_v0, %v9421_v28  ;;  %v952_v7 = vadd.f32 %v9396_v0, %v9444_v8  ;;  %v4059_v12 = vrot.slane %v9478_v52, 1 }
 0x242   : > { %v3095_v25 = vsel %vm3022_vm8, %v2845_v33, %v3094_v15  ;;  %v3742_v13 = vsel %vm3026_vm10, %v3509_v40, %v3741_v20  ;;  %v4060_v63 = vrot.slane %v3895_v18, 1  ;;  %vm10781_vm11 = vcmask 130050   ;;  %3940 = vrot.lane.b32.xlu0 %v9478_v52, %s7215_s9  ;;  %v3937_v50 = vpop.permute.xlu0 %3936 }
 0x243   : > { %v3096_v60 = vsel %vm3024_vm9, %v2849_v39, %v3095_v25  ;;  %3828 = vst.msk [vmem:[#allocation2 + $0x1ff] sm:$0xfc] %vm10781_vm11, %v3742_v13  ;;  %v1220_v16 = vmax.f32 %v942_v23, 0.0  ;;  %v1223_v5 = vmax.f32 %v957_v35, 0.0  ;;  %v1222_v28 = vmax.f32 %v952_v7, 0.0 }
 0x244   : > { %v3097_v8 = vsel %vm3026_vm10, %v2853_v19, %v3096_v60  ;;  %v4061_v21 = vsel %vm3981_vm2, %v4059_v12, %v4060_v63  ;;  %v967_v34 = vadd.f32 %v9396_v0, %v9474_v31  ;;  %v962_v53 = vadd.f32 %v9396_v0, %v961_v41  ;;  %3959 = vst.msk [vmem:[#allocation3 + $0x40] sm:$0xff] %vm3956_vm12, %v3937_v50  ;;  %v9553_v31 = vpop.permute.xlu1 %4133 }
 0x245   : > { %3160 = vst.msk [vmem:[#allocation2 + $0xc1] sm:$0xff] %vm2292_vm0, %v3097_v8  ;;  %v1353_v4 = vmul.f32 %v9374_v29, %v1220_v16  ;;  %v1356_v30 = vmul.f32 %v9374_v29, %v1223_v5  ;;  %v1355_v39 = vmul.f32 %v9374_v29, %v1222_v28  ;;  %4525 = vrot.lane.b32.xlu1 %v4061_v21, %s7214_s8  ;;  %v4117_v9 = vrot.slane %v10779_v36, 2 }
 0x246   : > { %v977_v52 = vadd.f32 %v9396_v0, %v6993_v11  ;;  %v1225_v41 = vmax.f32 %v967_v34, 0.0  ;;  %v1224_v27 = vmax.f32 %v962_v53, 0.0  ;;  %v972_v57 = vadd.f32 %v9396_v0, %v971_v49  ;;  %4420 = vrot.lane.b32.xlu0 %v10779_v36, %s10754_s16  ;;  %v4417_v51 = vpop.permute.xlu0 %4416 }
 0x247   : > { %v1486_v62 = vadd.f32 %v9388_v38, %v1353_v4  ;;  %v1489_v19 = vadd.f32 %v9388_v38, %v1356_v30  ;;  %v1488_v46 = vadd.f32 %v9388_v38, %v1355_v39  ;;  %v4118_v11 = vrot.slane %v9550_v56, 2  ;;  %4439 = vst.msk [vmem:[#allocation3 + $0x28] sm:$0xff] %vm4030_vm13, %v4417_v51 }
 0x248   : > { %v1227_v24 = vmax.f32 %v977_v52, 0.0  ;;  %v1358_v14 = vmul.f32 %v9374_v29, %v1225_v41  ;;  %v1357_v32 = vmul.f32 %v9374_v29, %v1224_v27  ;;  %v1226_v10 = vmax.f32 %v972_v57, 0.0  ;;  %v4806_v33 = vpop.permute.xlu1 %4805  ;;  %4472 = vst.msk [vmem:[#allocation3 + $0x28] sm:$0xff] %vm4095_vm14, %v4450_v37 }
 0x249   : > { %v1569_v26 = vmax.f32 %v9469_v59, %v1489_v19  ;;  %v1568_v55 = vmax.f32 %v9472_v54, %v1488_v46  ;;  %4845 = vrot.lane.b32.xlu1 %v4061_v21, %s7217_s14  ;;  %v9570_v18 = vadd.f32 %v9396_v0, %v6996_v22  ;;  %vm10782_vm11 = vcmask 1045504   ;;  %4829 = vst.msk [vmem:[#allocation3 + $0x10] sm:$0xff] %vm4235_vm3, %v4806_v33 }
 0x24a   : > { %v1360_v44 = vmul.f32 %v9374_v29, %v1227_v24  ;;  %v1491_v15 = vadd.f32 %v9388_v38, %v1358_v14  ;;  %v1490_v40 = vadd.f32 %v9388_v38, %v1357_v32  ;;  %v1359_v20 = vmul.f32 %v9374_v29, %v1226_v10  ;;  %4079 = vrot.lane.b32.xlu0 %v4061_v21, %s7212_s23  ;;  %v4076_v63 = vpop.permute.xlu0 %4075 }
 0x24b   : > { %v4119_v59 = vsel %vm10782_vm11, %v4117_v9, %v4118_v11  ;;  %v1697_v54 = vcombine.high %v1569_v26, %v1569_v26  ;;  %v6417_v23 = vrot.slane %v1569_v26, 9  ;;  %v1696_v35 = vcombine.high %v1568_v55, %v1568_v55  ;;  %4865 = vst.msk [vmem:[#allocation3 + $0x10] sm:$0xff] %vm4300_vm1, %v9495_v3 }
 0x24c   : > { %v6415_v7 = vrot.slane %v1568_v55, 9  ;;  %4886 = vst.msk [vmem:[#allocation3 + $0x58] sm:$0xff] %vm2292_vm0, %v4119_v59  ;;  %v1571_v25 = vmax.f32 %v9521_v43, %v1491_v15  ;;  %v1570_v13 = vmax.f32 %v1486_v62, %v1490_v40  ;;  %v1493_v12 = vadd.f32 %v9388_v38, %v1360_v44  ;;  %v9588_v49 = vld [vmem:[#allocation2 + $0xc0] sm:$0xff]  ;;  %v4602_v8 = vpop.permute.xlu1 %4601 }
 0x24d   : > { %v9586_v37 = vadd.f32 %v9388_v38, %v1359_v20  ;;  %v6418_v60 = vrot.slane %v1697_v54, 9  ;;  %v2254_v16 = vmax.f32 %v1569_v26, %v6417_v23  ;;  %v6416_v5 = vrot.slane %v1696_v35, 9  ;;  %4560 = vrot.lane.b32.xlu1 %v4119_v59, %s7216_s13  ;;  %3922 = vst.msk [vmem:[#allocation3 + $0xc0] sm:$0xff] %vm2292_vm0, %v9588_v49 }
 0x24e   : > { %v2252_v28 = vmax.f32 %v1568_v55, %v6415_v7  ;;  %v1699_v3 = vcombine.high %v1571_v25, %v1571_v25  ;;  %v6421_v43 = vrot.slane %v1571_v25, 9  ;;  %v1698_v21 = vcombine.high %v1570_v13, %v1570_v13  ;;  %4618 = vst.msk [vmem:[#allocation3 + $0xe8] sm:$0xff] %vm4300_vm1, %v4602_v8  ;;  %v4486_v57 = vpop.permute.xlu0 %4485  ;;  %v10784_v55 = vld [vmem:[#allocation11_spill] sm:$0xff] }
 0x24f   : > { %v6419_v34 = vrot.slane %v1570_v13, 9  ;;  %v2255_v53 = vmax.f32 %v1697_v54, %v6418_v60  ;;  %v2865_v50 = vrot.slane %v2254_v16, %v7689_v1  ;;  %v3529_v4 = vrot.slane %v2254_v16, %v7692_v2  ;;  %4508 = vst.msk [vmem:[#allocation3 + $0x28] sm:$0xff] %vm10729_vm15, %v4486_v57  ;;  %v981_v60 = vpop.f32.mrf.mxu0 }
 0x250   : > { %v2253_v30 = vmax.f32 %v1696_v35, %v6416_v5  ;;  %v2857_v39 = vrot.slane %v2252_v28, %v7689_v1  ;;  %v3521_v52 = vrot.slane %v2252_v28, %v7692_v2  ;;  %v6422_v41 = vrot.slane %v1699_v3, 9  ;;  %v4216_v46 = vpop.permute.xlu1 %4215 }
 0x251   : > { %v2258_v27 = vmax.f32 %v1571_v25, %v6421_v43  ;;  %v2869_v9 = vrot.slane %v2255_v53, %v7689_v1  ;;  %v3533_v22 = vrot.slane %v2255_v53, %v7692_v2  ;;  %4137 = vrot.lane.b32.xlu1 %v4119_v59, %s7213_s29  ;;  %v6420_v10 = vrot.slane %v1698_v21, 9 }
 0x252   : > { %v2861_v62 = vrot.slane %v2253_v30, %v7689_v1  ;;  %v3525_v19 = vrot.slane %v2253_v30, %v7692_v2  ;;  %v2259_v24 = vmax.f32 %v1699_v3, %v6422_v41  ;;  %vm10783_vm11 = vcmask 786048   ;;  %v4011_v59 = vpop.permute.xlu0 %4010  ;;  %v10786_v3 = vld [vmem:[#allocation10_spill] sm:$0xff] }
 0x253   : > { %v2881_v14 = vrot.slane %v2258_v27, %v7689_v1  ;;  %v3545_v32 = vrot.slane %v2258_v27, %v7692_v2  ;;  %4544 = vst.msk [vmem:[#allocation3 + $0x28] sm:$0xff] %vm10783_vm11, %v9466_v6  ;;  %v2256_v26 = vmax.f32 %v1570_v13, %v6419_v34  ;;  %v1573_v44 = vmax.f32 %v1493_v12, %v10784_v55 }
 0x254   : > { %v3098_v11 = vsel %vm3014_vm4, %v2861_v62, %v2857_v39  ;;  %v3744_v51 = vsel %vm10730_vm5, %v3525_v19, %v3521_v52  ;;  %4579 = vst.msk [vmem:[#allocation3 + $0x28] sm:$0xff] %vm4235_vm3, %v9530_v58  ;;  %v2885_v40 = vrot.slane %v2259_v24, %v7689_v1  ;;  %v3549_v20 = vrot.slane %v2259_v24, %v7692_v2  ;;  %v4590_v7 = vpop.permute.xlu1 %4589  ;;  %v3897_v24 = vld [vmem:[#allocation2 + $0x1d8] sm:$0x3] }
 0x255   : > { %v3099_v33 = vsel %vm3016_vm6, %v2865_v50, %v3098_v11  ;;  %v3745_v15 = vsel %vm3020_vm7, %v3529_v4, %v3744_v51  ;;  %v2257_v6 = vmax.f32 %v1698_v21, %v6420_v10  ;;  %v2873_v54 = vrot.slane %v2256_v26, %v7689_v1  ;;  %4033 = vst.msk [vmem:[#allocation3 + $0x40] sm:$0xff] %vm4030_vm13, %v4011_v59  ;;  %v10790_v50 = vld [vmem:[#allocation13_spill] sm:$0xff] }
 0x256   : > { %v3100_v23 = vsel %vm10730_vm5, %v2869_v9, %v3099_v33  ;;  %v3537_v35 = vrot.slane %v2256_v26, %v7692_v2  ;;  %v3749_v58 = vsel %vm3014_vm4, %v3549_v20, %v3545_v32  ;;  %v3746_v25 = vsel %vm3022_vm8, %v3533_v22, %v3745_v15  ;;  %4098 = vst.msk [vmem:[#allocation3 + $0x40] sm:$0xff] %vm4095_vm14, %v4076_v63  ;;  %v10788_v63 = vld [vmem:[#allocation12_spill] sm:$0xff] }
 0x257   : > { %v1701_v13 = vcombine.high %v1573_v44, %v1573_v44  ;;  %v6425_v12 = vrot.slane %v1573_v44, 9  ;;  %4612 = vst.msk [vmem:[#allocation3 + $0x28] sm:$0xff] %vm4300_vm1, %v4590_v7  ;;  %vm10785_vm11 = vcmask 123904   ;;  %v2877_v16 = vrot.slane %v2257_v6, %v7689_v1 }
 0x258   : > { %3831 = vst.msk [vmem:[#allocation2 + $0x217] sm:$0x3] %vm10785_vm11, %v3749_v58  ;;  %v3101_v5 = vsel %vm3020_vm7, %v2873_v54, %v3100_v23  ;;  %v3541_v28 = vrot.slane %v2257_v6, %v7692_v2  ;;  %v3747_v8 = vsel %vm3024_vm9, %v3537_v35, %v3746_v25  ;;  %v10787_v43 = vmax.f32 %v10786_v3, 0.0  ;;  %v9650_v32 = vpop.permute.xlu0 %4670  ;;  %v4896_v23 = vld [vmem:[#allocation3 + $0x20] sm:$0xff] }
 0x259   : > { %4156 = vst.msk [vmem:[#allocation3 + $0x40] sm:$0xff] %vm10729_vm15, %v9553_v31  ;;  %v10789_v34 = vmax.f32 %v10788_v63, 0.0  ;;  %v1572_v4 = vmax.f32 %v9586_v37, %v10790_v50  ;;  %v1229_v30 = vmax.f32 %v9570_v18, 0.0  ;;  %v3102_v39 = vsel %vm3022_vm8, %v2877_v16, %v3101_v5  ;;  %v4175_v31 = vpop.permute.xlu1 %4174  ;;  %v3858_v63 = vld [vmem:[#allocation2 + $0x90] sm:$0xff] }
 0x25a   : > { %v1366_v21 = vmul.f32 %v9374_v29, %v10787_v43  ;;  %v3748_v52 = vsel %vm3026_vm10, %v3541_v28, %v3747_v8  ;;  %v982_v41 = vadd.f32 %v9396_v0, %v981_v60  ;;  %v3103_v27 = vsel %vm3024_vm9, %v2881_v14, %v3102_v39 }
 0x25b   : > { %v1365_v53 = vmul.f32 %v9374_v29, %v10789_v34  ;;  %vm10791_vm11 = vcmask 130050   ;;  %v6426_v57 = vrot.slane %v1701_v13, 9  ;;  %v2262_v9 = vmax.f32 %v1573_v44, %v6425_v12 }
 0x25c   : > { %3830 = vst.msk [vmem:[#allocation2 + $0x20f] sm:$0xfc] %vm10791_vm11, %v3748_v52  ;;  %v3994_v22 = vrot.slane %v10779_v36, 1  ;;  %vm10792_vm15 = vcmask 786048   ;;  %v3104_v37 = vsel %vm3026_vm10, %v2885_v40, %v3103_v27  ;;  %v1700_v18 = vcombine.high %v1572_v4, %v1572_v4 }
 0x25d   : > { %4197 = vst.msk [vmem:[#allocation3 + $0x40] sm:$0xff] %vm10792_vm15, %v4175_v31  ;;  %v6423_v62 = vrot.slane %v1572_v4, 9  ;;  %v1362_v19 = vmul.f32 %v9374_v29, %v1229_v30  ;;  %v1499_v0 = vadd.f32 %v9388_v38, %v1366_v21  ;;  %v1498_v14 = vadd.f32 %v9388_v38, %v1365_v53  ;;  %v4386_v54 = vpop.permute.xlu0 %4385  ;;  %v3859_v30 = vld [vmem:[#allocation2 + $0x98] sm:$0x3] }
 0x25e   : > { %4238 = vst.msk [vmem:[#allocation3 + $0x40] sm:$0xff] %vm4235_vm3, %v4216_v46  ;;  %v1228_v36 = vmax.f32 %v982_v41, 0.0  ;;  %v3995_v10 = vrot.slane %v9550_v56, 1  ;;  %v6424_v11 = vrot.slane %v1700_v18, 9  ;;  %v4329_v55 = vrot.slane %v9156_v48, 1  ;;  %v4897_v44 = vld [vmem:[#allocation3 + $0x28] sm:$0xff] }
 0x25f   : > { %3161 = vst.msk [vmem:[#allocation2 + $0xd1] sm:$0xff] %vm2292_vm0, %v3104_v37  ;;  %v2260_v51 = vmax.f32 %v1572_v4, %v6423_v62  ;;  %v1495_v26 = vadd.f32 %v9388_v38, %v1362_v19  ;;  %v2263_v33 = vmax.f32 %v1701_v13, %v6426_v57  ;;  %v4330_v40 = vrot.slane %v3897_v24, 1  ;;  %5072 = vmatprep.mubr.f32.mxu1 %v4897_v44  ;;  %v9687_v41 = vld [vmem:[#allocation2 + $0xa8] sm:$0x3] }
 0x260   : > { %v1361_v15 = vmul.f32 %v9374_v29, %v1228_v36  ;;  %v3996_v46 = vsel %vm3981_vm2, %v3994_v22, %v3995_v10  ;;  %v2897_v20 = vrot.slane %v2262_v9, %v7689_v1  ;;  %v2261_v59 = vmax.f32 %v1700_v18, %v6424_v11  ;;  %4407 = vst.msk [vmem:[#allocation3 + $0x48] sm:$0xff] %vm3956_vm12, %v4386_v54 }
 0x261   : > { %v2889_v6 = vrot.slane %v2260_v51, %v7689_v1  ;;  %v1575_v56 = vmax.f32 %v1495_v26, %v1499_v0  ;;  %4809 = vrot.lane.b32.xlu1 %v3996_v46, %s7216_s13  ;;  %v3553_v35 = vrot.slane %v2260_v51, %v7692_v2  ;;  %4489 = vrot.lane.b32.xlu0 %v3996_v46, %s7213_s29  ;;  %v4370_v37 = vrot.slane %v3859_v30, 2 }
 0x262   : > { %v1494_v7 = vadd.f32 %v9388_v38, %v1361_v15  ;;  %v4331_v29 = vsel %vm3981_vm2, %v4329_v55, %v4330_v40  ;;  %5073 = vmatmul.mubr.f32.gmra.mxu1 %v4896_v23  ;;  %v2893_v58 = vrot.slane %v2261_v59, %v7689_v1  ;;  %v3557_v25 = vrot.slane %v2261_v59, %v7692_v2  ;;  %v3898_v40 = vld [vmem:[#allocation2 + $0x1e0] sm:$0xff] }
 0x263   : > { %v1703_v13 = vcombine.high %v1575_v56, %v1575_v56  ;;  %v6429_v12 = vrot.slane %v1575_v56, 9  ;;  %4353 = vst.msk [vmem:[#allocation3 + $0x88] sm:$0xff] %vm2292_vm0, %v4331_v29  ;;  %v9672_v60 = vld [vmem:[#allocation2 + $0x210] sm:$0xff]  ;;  %v2901_v16 = vrot.slane %v2263_v33, %v7689_v1  ;;  %v3561_v38 = vrot.slane %v2262_v9, %v7692_v2 }
 0x264   : > { %v3565_v5 = vrot.slane %v2263_v33, %v7692_v2  ;;  %v1574_v28 = vmax.f32 %v1494_v7, %v1498_v14  ;;  %4624 = vst.msk [vmem:[#allocation3 + $0xb0] sm:$0xff] %vm2292_vm0, %v9672_v60  ;;  %v3105_v8 = vsel %vm3014_vm4, %v2893_v58, %v2889_v6  ;;  %v3750_v3 = vsel %vm10730_vm5, %v3557_v25, %v3553_v35  ;;  %v3901_v14 = vld [vmem:[#allocation2 + $0x1f8] sm:$0x3]  ;;  %v9714_v35 = vld [vmem:[#allocation2 + $0xc8] sm:$0x3] }
 0x265   : > { %v6430_v43 = vrot.slane %v1703_v13, 9  ;;  %v2266_v21 = vmax.f32 %v1575_v56, %v6429_v12  ;;  %4219 = vrot.lane.b32.xlu1 %v9156_v48, %s7216_s13  ;;  %v3106_v34 = vsel %vm3016_vm6, %v2897_v20, %v3105_v8  ;;  %v3751_v53 = vsel %vm3020_vm7, %v3561_v38, %v3750_v3  ;;  %4014 = vrot.lane.b32.xlu0 %v3996_v46, %s10754_s16  ;;  %v3899_v20 = vld [vmem:[#allocation2 + $0x1e8] sm:$0x3] }
 0x266   : > { %v1702_v50 = vcombine.high %v1574_v28, %v1574_v28  ;;  %v6427_v4 = vrot.slane %v1574_v28, 9  ;;  %v3107_v52 = vsel %vm10730_vm5, %v2901_v16, %v3106_v34  ;;  %v3752_v57 = vsel %vm3022_vm8, %v3565_v5, %v3751_v53  ;;  %v3905_v5 = vld [vmem:[#allocation2 + $0x218] sm:$0x3] }
 0x267   : > { %v2267_v39 = vmax.f32 %v1703_v13, %v6430_v43  ;;  %v4369_v48 = vrot.slane %v3858_v63, 2  ;;  %v3577_v9 = vrot.slane %v2266_v21, %v7692_v2  ;;  %v4120_v18 = vrot.slane %v9331_v42, 2 }
 0x268   : > { %v6428_v31 = vrot.slane %v1702_v50, 9  ;;  %v2264_v27 = vmax.f32 %v1574_v28, %v6427_v4  ;;  %v4121_v0 = vrot.slane %v9687_v41, 2  ;;  %v4264_v10 = vrot.slane %v3858_v63, 1 }
 0x269   : > { %v3581_v22 = vrot.slane %v2267_v39, %v7692_v2  ;;  %4593 = vrot.lane.b32.xlu1 %v3858_v63, %s7217_s14  ;;  %4674 = vrot.lane.b32.xlu0 %v4331_v29, %s10754_s16  ;;  %v4265_v11 = vrot.slane %v3859_v30, 1  ;;  %v4332_v51 = vrot.slane %v9453_v45, 1  ;;  %vm10793_vm15 = vcmask 123904  }
 0x26a   : > { %v2265_v62 = vmax.f32 %v1702_v50, %v6428_v31  ;;  %v2905_v19 = vrot.slane %v2264_v27, %v7689_v1  ;;  %v3569_v24 = vrot.slane %v2264_v27, %v7692_v2  ;;  %v2913_v15 = vrot.slane %v2266_v21, %v7689_v1 }
 0x26b   : > { %v3755_v36 = vsel %vm3014_vm4, %v3581_v22, %v3577_v9  ;;  %vm10794_vm11 = vcmask 1045504   ;;  %v4333_v6 = vrot.slane %v3901_v14, 1  ;;  %v2917_v56 = vrot.slane %v2267_v39, %v7689_v1  ;;  %v3862_v9 = vld [vmem:[#allocation2 + $0xb0] sm:$0xff]  ;;  %v3863_v14 = vld [vmem:[#allocation2 + $0xb8] sm:$0x3] }
 0x26c   : > { %3833 = vst.msk [vmem:[#allocation2 + $0x227] sm:$0x3] %vm10793_vm15, %v3755_v36  ;;  %v2909_v26 = vrot.slane %v2265_v62, %v7689_v1  ;;  %v3108_v55 = vsel %vm3020_vm7, %v2905_v19, %v3107_v52  ;;  %v3573_v44 = vrot.slane %v2265_v62, %v7692_v2  ;;  %v3753_v33 = vsel %vm3024_vm9, %v3569_v24, %v3752_v57  ;;  %vm10795_vm5 = vmmov %vm10794_vm11  ;;  %v4281_v16 = vpop.permute.xlu1 %4280  ;;  %v4634_v38 = vpop.permute.xlu0 %4633  ;;  %v9779_v62 = vld [vmem:[#allocation2 + $0x128] sm:$0x3] }
 0x26d   : > { %4178 = vrot.lane.b32.xlu1 %v3858_v63, %s7214_s8  ;;  %v4371_v46 = vsel %vm10794_vm11, %v4369_v48, %v4370_v37  ;;  %v4122_v59 = vsel %vm10795_vm5, %v4120_v18, %v4121_v0  ;;  %vm10796_vm15 = vcmask 130050   ;;  %v9719_v29 = vsel %vm3981_vm2, %v4332_v51, %v4333_v6  ;;  %4303 = vst.msk [vmem:[#allocation3 + $0x40] sm:$0xff] %vm4300_vm1, %v4281_v16  ;;  %v9776_v37 = vld [vmem:[#allocation2 + $0x120] sm:$0xff]  ;;  %v3903_v6 = vld [vmem:[#allocation2 + $0x208] sm:$0x3] }
 0x26e   : > { %v3109_v54 = vsel %vm3022_vm8, %v2909_v26, %v3108_v55  ;;  %v3754_v23 = vsel %vm3026_vm10, %v3573_v44, %v3753_v33  ;;  %4389 = vrot.lane.b32.xlu0 %v4371_v46, %s7215_s9  ;;  %4887 = vst.msk [vmem:[#allocation3 + $0x78] sm:$0xff] %vm2292_vm0, %v4122_v59  ;;  %v4266_v25 = vsel %vm3981_vm2, %v4264_v10, %v4265_v11  ;;  %v4062_v13 = vrot.slane %v3898_v40, 1  ;;  %vm10797_vm8 = vmmov %vm10795_vm5 }
 0x26f   : > { %v3110_v7 = vsel %vm3024_vm9, %v2913_v15, %v3109_v54  ;;  %3832 = vst.msk [vmem:[#allocation2 + $0x21f] sm:$0xfc] %vm10796_vm15, %v3754_v23  ;;  %v4063_v12 = vrot.slane %v3899_v20, 1  ;;  %v4123_v28 = vrot.slane %v9588_v49, 2  ;;  %v4124_v8 = vrot.slane %v9714_v35, 2 }
 0x270   : > { %v3111_v58 = vsel %vm3026_vm10, %v2917_v56, %v3110_v7  ;;  %4354 = vst.msk [vmem:[#allocation3 + $0xa8] sm:$0xff] %vm2292_vm0, %v9719_v29  ;;  %v4335_v3 = vrot.slane %v9672_v60, 1  ;;  %v4336_v21 = vrot.slane %v3905_v5, 1  ;;  %v4706_v34 = vpop.permute.xlu0 %4705  ;;  %v4873_v18 = vrot.slane %v9776_v37, 2  ;;  %vm10798_vm10 = vmmov %vm10795_vm5 }
 0x271   : > { %3162 = vst.msk [vmem:[#allocation2 + $0xe1] sm:$0xff] %vm2292_vm0, %v3111_v58  ;;  %4284 = vrot.lane.b32.xlu1 %v4266_v25, %s7217_s14  ;;  %v9736_v43 = vsel %vm10795_vm5, %v4123_v28, %v4124_v8  ;;  %v4064_v63 = vsel %vm3981_vm2, %v4062_v13, %v4063_v12  ;;  %v4874_v24 = vrot.slane %v9779_v62, 2  ;;  %vm10799_vm11 = vcmask 654848  }
 0x272   : > { %4656 = vst.msk [vmem:[#allocation3 + $0x30] sm:$0xff] %vm3956_vm12, %v4634_v38  ;;  %4637 = vrot.lane.b32.xlu0 %v4266_v25, %s7215_s9  ;;  %v9744_v53 = vsel %vm3981_vm2, %v4335_v3, %v4336_v21  ;;  %vm10800_vm15 = vcmask 786048   ;;  %v4267_v10 = vrot.slane %v3862_v9, 1  ;;  %v4268_v11 = vrot.slane %v3863_v14, 1 }
 0x273   : > { %4693 = vst.msk [vmem:[#allocation3 + $0x30] sm:$0xff] %vm4030_vm13, %v9650_v32  ;;  %v9747_v32 = vpop.permute.xlu1 %4523  ;;  %v3997_v55 = vrot.slane %v9331_v42, 1  ;;  %v3998_v44 = vrot.slane %v9687_v41, 1  ;;  %v4372_v33 = vrot.slane %v3862_v9, 2  ;;  %v4373_v15 = vrot.slane %v3863_v14, 2  ;;  %v3902_v41 = vld [vmem:[#allocation2 + $0x200] sm:$0xff] }
 0x274   : > { %4888 = vst.msk [vmem:[#allocation3 + $0x98] sm:$0xff] %vm2292_vm0, %v9736_v43  ;;  %4355 = vst.msk [vmem:[#allocation3 + $0xc8] sm:$0xff] %vm2292_vm0, %v9744_v53  ;;  %v4452_v50 = vpop.permute.xlu0 %4451  ;;  %v4269_v26 = vsel %vm3981_vm2, %v4267_v10, %v4268_v11  ;;  %v4065_v54 = vrot.slane %v3902_v41, 1  ;;  %v4066_v23 = vrot.slane %v3903_v6, 1  ;;  %v4900_v8 = vld [vmem:[#allocation3 + $0x40] sm:$0xff]  ;;  %v4000_v3 = vrot.slane %v9588_v49, 1 }
 0x275   : > { %4527 = vrot.lane.b32.xlu1 %v4064_v63, %s7214_s8  ;;  %4728 = vst.msk [vmem:[#allocation3 + $0x30] sm:$0xff] %vm4095_vm14, %v4706_v34  ;;  %v4001_v21 = vrot.slane %v9714_v35, 1  ;;  %v3866_v35 = vld [vmem:[#allocation2 + $0xd0] sm:$0xff]  ;;  %v4969_v14 = vld [vmem:[%s10705_s2 + $0x168] sm:$0xff] }
 0x276   : > { %4709 = vrot.lane.b32.xlu0 %v4371_v46, %s7212_s23  ;;  %v4067_v58 = vsel %vm3981_vm2, %v4065_v54, %v4066_v23  ;;  %v4962_v54 = vld [vmem:[%s10705_s2 + $0x130] sm:$0xff]  ;;  %v4961_v23 = vld [vmem:[%s10705_s2 + $0x128] sm:$0xff] }
 0x277   : > { %v9764_v27 = vpop.permute.xlu1 %4558 }
 0x278   : > { %v9751_v4 = vld [vmem:[#allocation2 + $0xe0] sm:$0xff]  ;;  %v9753_v30 = vld [vmem:[#allocation2 + $0xe8] sm:$0x3]  ;;  %v3939_v57 = vpop.permute.xlu0 %3938 }
 0x279   : > { %4562 = vrot.lane.b32.xlu1 %v4122_v59, %s7216_s13  ;;  %v4126_v39 = vrot.slane %v9751_v4, 2  ;;  %v4127_v52 = vrot.slane %v9753_v30, 2  ;;  %3923 = vst.msk [vmem:[#allocation3 + $0xe0] sm:$0xff] %vm2292_vm0, %v9751_v4  ;;  %v4003_v6 = vrot.slane %v9751_v4, 1 }
 0x27a   : > { %4455 = vrot.lane.b32.xlu0 %v3898_v40, %s7212_s23  ;;  %3960 = vst.msk [vmem:[#allocation3 + $0x60] sm:$0xff] %vm3956_vm12, %v3939_v57  ;;  %v4270_v57 = vrot.slane %v3866_v35, 1 }
 0x27b   : > { %v9762_v31 = vsel %vm10797_vm8, %v4126_v39, %v4127_v52  ;;  %v9774_v22 = vpop.permute.xlu1 %4135  ;;  %vm10801_vm8 = vmmov %vm10799_vm11  ;;  %v4375_v52 = vrot.slane %v3866_v35, 2 }
 0x27c   : > { %4889 = vst.msk [vmem:[#allocation3 + $0xb8] sm:$0xff] %vm2292_vm0, %v9762_v31  ;;  %v4772_v48 = vpop.permute.xlu0 %4771 }
 0x27d   : > { %4139 = vrot.lane.b32.xlu1 %v4122_v59, %s7213_s29  ;;  %v4374_v59 = vsel %vm10795_vm5, %v4372_v33, %v4373_v15  ;;  %vm10805_vm5 = vmmov %vm10801_vm8  ;;  %v4965_v15 = vld [vmem:[%s10705_s2 + $0x148] sm:$0xff] }
 0x27e   : > { %3942 = vrot.lane.b32.xlu0 %v3898_v40, %s7215_s9 }
 0x27f   : > { %v4218_v0 = vpop.permute.xlu1 %4217 }
 0x281   : > { %4221 = vrot.lane.b32.xlu1 %v9453_v45, %s7216_s13  ;;  %v4419_v19 = vpop.permute.xlu0 %4418  ;;  %v4875_v45 = vsel %vm10798_vm10, %v4873_v18, %v4874_v24  ;;  %vm10802_vm10 = vmmov %vm10800_vm15  ;;  %v9865_v18 = vld [vmem:[#allocation2 + $0x220] sm:$0xff]  ;;  %v3907_v24 = vld [vmem:[#allocation2 + $0x228] sm:$0x3] }
 0x282   : > { %4775 = vrot.lane.b32.xlu0 %v3898_v40, %s7214_s8  ;;  %4440 = vst.msk [vmem:[#allocation3 + $0x48] sm:$0xff] %vm4030_vm13, %v4419_v19  ;;  %v3999_v40 = vsel %vm3981_vm2, %v3997_v55, %v3998_v44  ;;  %v10808_v19 = vmov 0.0   ;;  %v4966_v55 = vld [vmem:[%s10705_s2 + $0x150] sm:$0xff] }
 0x283   : > { %4473 = vst.msk [vmem:[#allocation3 + $0x48] sm:$0xff] %vm4095_vm14, %v4452_v50  ;;  %v4592_v51 = vpop.permute.xlu1 %4591 }
 0x284   : > { %4891 = vst.msk [vmem:[#allocation3 + $0xf8] sm:$0xff] %vm2292_vm0, %v4875_v45  ;;  %v4068_v45 = vrot.slane %v9865_v18, 1 }
 0x285   : > { %4595 = vrot.lane.b32.xlu1 %v3862_v9, %s7217_s14  ;;  %v4739_v36 = vpop.permute.xlu0 %4738 }
 0x286   : > { %4422 = vrot.lane.b32.xlu0 %v9331_v42, %s10754_s16  ;;  %4761 = vst.msk [vmem:[#allocation3 + $0x30] sm:$0xff] %vm10799_vm11, %v4739_v36  ;;  %vm10803_vm11 = vmmov %vm10801_vm8  ;;  %v4069_v36 = vrot.slane %v3907_v24, 1  ;;  %v3913_v24 = vld [vmem:[#allocation2 + $0x258] sm:$0x3] }
 0x287   : > { %4794 = vst.msk [vmem:[#allocation3 + $0x30] sm:$0xff] %vm10800_vm15, %v4772_v48  ;;  %v4177_v46 = vpop.permute.xlu1 %4176  ;;  %vm10804_vm15 = vmmov %vm10802_vm10 }
 0x288   : > { %v9881_v11 = vsel %vm3981_vm2, %v4068_v45, %v4069_v36  ;;  %v4665_v36 = vrot.slane %v9073_v17, 1 }
 0x289   : > { %4180 = vrot.lane.b32.xlu1 %v3862_v9, %s7214_s8  ;;  %v4078_v20 = vpop.permute.xlu0 %4077 }
 0x28a   : > { %4742 = vrot.lane.b32.xlu0 %v9331_v42, %s7213_s29 }
 0x28c   : > { %v4673_v42 = vpop.permute.xlu1 %4672 }
 0x28d   : > { %4676 = vrot.lane.b32.xlu1 %v9719_v29, %s10754_s16  ;;  %v4844_v56 = vpop.permute.xlu0 %4843 }
 0x28e   : > { %4081 = vrot.lane.b32.xlu0 %v4064_v63, %s7212_s23 }
 0x291   : > { %4286 = vrot.lane.b32.xlu1 %v4269_v26, %s7217_s14 }
 0x292   : > { %4847 = vrot.lane.b32.xlu0 %v4064_v63, %s7217_s14 }
 0x295   : > { %4639 = vrot.lane.b32.xlu1 %v4269_v26, %s7215_s9  ;;  %v4967_v26 = vld [vmem:[%s10705_s2 + $0x158] sm:$0xff] }
 0x296   : > { %4491 = vrot.lane.b32.xlu0 %v3999_v40, %s7213_s29 }
 0x299   : > { %4711 = vrot.lane.b32.xlu1 %v4374_v59, %s7212_s23 }
 0x29a   : > { %4016 = vrot.lane.b32.xlu0 %v3999_v40, %s10754_s16 }
 0x29c   : > { %v4283_v7 = vpop.permute.xlu1 %4282 }
 0x29d   : > { %4777 = vrot.lane.b32.xlu1 %v3902_v41, %s7214_s8 }
 0x29e   : > { %4811 = vrot.lane.b32.xlu0 %v3999_v40, %s7216_s13 }
 0x2a0   : > { %v4488_v29 = vpop.permute.xlu0 %4487  ;;  %v4636_v25 = vpop.permute.xlu1 %4635 }
 0x2a1   : > { %4744 = vrot.lane.b32.xlu1 %v9588_v49, %s7213_s29  ;;  %4509 = vst.msk [vmem:[#allocation3 + $0x48] sm:$0xff] %vm10801_vm8, %v4488_v29  ;;  %vm10806_vm8 = vmmov %vm10802_vm10  ;;  %v10812_v29 = vld [vmem:[#allocation15_spill] sm:$0xff] }
 0x2a2   : > { %4391 = vrot.lane.b32.xlu0 %v4374_v59, %s7215_s9  ;;  %4657 = vst.msk [vmem:[#allocation3 + $0x50] sm:$0xff] %vm3956_vm12, %v4636_v25  ;;  %v4963_v59 = vld [vmem:[%s10705_s2 + $0x138] sm:$0xff] }
 0x2a3   : > { %4545 = vst.msk [vmem:[#allocation3 + $0x48] sm:$0xff] %vm10802_vm10, %v9747_v32  ;;  %v4002_v32 = vsel %vm3981_vm2, %v4000_v3, %v4001_v21  ;;  %vm10807_vm10 = vcmask 1045504   ;;  %v4959_v25 = vld [vmem:[%s10705_s2 + $0x118] sm:$0xff] }
 0x2a4   : > { %4694 = vst.msk [vmem:[#allocation3 + $0x50] sm:$0xff] %vm4030_vm13, %v4673_v42  ;;  %v4013_v13 = vpop.permute.xlu0 %4012 }
 0x2a5   : > { %4529 = vrot.lane.b32.xlu1 %v4067_v58, %s7214_s8  ;;  %4580 = vst.msk [vmem:[#allocation3 + $0x48] sm:$0xff] %vm4235_vm3, %v9764_v27  ;;  %v4708_v12 = vpop.permute.xlu1 %4707 }
 0x2a6   : > { %4457 = vrot.lane.b32.xlu0 %v3902_v41, %s7212_s23  ;;  %4613 = vst.msk [vmem:[#allocation3 + $0x48] sm:$0xff] %vm4300_vm1, %v4592_v51  ;;  %v4968_v51 = vld [vmem:[%s10705_s2 + $0x160] sm:$0xff] }
 0x2a7   : > { %4034 = vst.msk [vmem:[#allocation3 + $0x60] sm:$0xff] %vm4030_vm13, %v4013_v13 }
 0x2a8   : > { %4729 = vst.msk [vmem:[#allocation3 + $0x50] sm:$0xff] %vm4095_vm14, %v4708_v12  ;;  %4099 = vst.msk [vmem:[#allocation3 + $0x60] sm:$0xff] %vm4095_vm14, %v4078_v20  ;;  %v4808_v16 = vpop.permute.xlu0 %4807  ;;  %v4964_v20 = vld [vmem:[%s10705_s2 + $0x140] sm:$0xff] }
 0x2a9   : > { %4849 = vrot.lane.b32.xlu1 %v4067_v58, %s7217_s14  ;;  %4157 = vst.msk [vmem:[#allocation3 + $0x60] sm:$0xff] %vm10803_vm11, %v9774_v22  ;;  %v4774_v38 = vpop.permute.xlu1 %4773  ;;  %vm10809_vm11 = vmmov %vm10805_vm5 }
 0x2aa   : > { %3944 = vrot.lane.b32.xlu0 %v3902_v41, %s7215_s9  ;;  %4198 = vst.msk [vmem:[#allocation3 + $0x60] sm:$0xff] %vm10804_vm15, %v4177_v46  ;;  %vm10811_vm15 = vmmov %vm10806_vm8 }
 0x2ab   : > { %4239 = vst.msk [vmem:[#allocation3 + $0x60] sm:$0xff] %vm4235_vm3, %v4218_v0  ;;  %4830 = vst.msk [vmem:[#allocation3 + $0x30] sm:$0xff] %vm4235_vm3, %v4808_v16  ;;  %v4970_v0 = vld [vmem:[%s10705_s2 + $0x170] sm:$0xff] }
 0x2ac   : > { %4304 = vst.msk [vmem:[#allocation3 + $0x60] sm:$0xff] %vm4300_vm1, %v4283_v7  ;;  %4866 = vst.msk [vmem:[#allocation3 + $0x30] sm:$0xff] %vm4300_vm1, %v4844_v56  ;;  %v4388_v28 = vpop.permute.xlu0 %4387  ;;  %v4004_v56 = vrot.slane %v9753_v30, 1  ;;  %v4960_v7 = vld [vmem:[%s10705_s2 + $0x120] sm:$0xff]  ;;  %v4958_v16 = vld [vmem:[%s10705_s2 + $0x110] sm:$0xff] }
 0x2ad   : > { %4564 = vrot.lane.b32.xlu1 %v9736_v43, %s7216_s13  ;;  %v4901_v5 = vld [vmem:[#allocation3 + $0x48] sm:$0xff]  ;;  %v4741_v63 = vpop.permute.xlu1 %4740  ;;  %4408 = vst.msk [vmem:[#allocation3 + $0x68] sm:$0xff] %vm3956_vm12, %v4388_v28 }
 0x2ae   : > { %4424 = vrot.lane.b32.xlu0 %v9588_v49, %s10754_s16  ;;  %5077 = vmatprep.mubr.f32.mxu1 %v4901_v5  ;;  %4762 = vst.msk [vmem:[#allocation3 + $0x50] sm:$0xff] %vm10805_vm5, %v4741_v63  ;;  %v7146_v63 = vld [vmem:[#allocation2 + $0x240] sm:$0xff] }
 0x2af   : > { %5078 = vmatmul.mubr.f32.gmra.mxu1 %v4900_v8  ;;  %4795 = vst.msk [vmem:[#allocation3 + $0x50] sm:$0xff] %vm10806_vm8, %v4774_v38  ;;  %v7145_v38 = vld [vmem:[#allocation2 + $0x100] sm:$0xff]  ;;  %v4957_v8 = vld [vmem:[%s10705_s2 + $0x108] sm:$0xff] }
 0x2b0   : > { %v4454_v34 = vpop.permute.xlu0 %4453 }
 0x2b1   : > { %4141 = vrot.lane.b32.xlu1 %v9736_v43, %s7213_s29  ;;  %v3867_v43 = vld [vmem:[#allocation2 + $0xd8] sm:$0x3] }
 0x2b2   : > { %4083 = vrot.lane.b32.xlu0 %v4067_v58, %s7212_s23  ;;  %v4376_v27 = vrot.slane %v3867_v43, 2  ;;  %v4271_v48 = vrot.slane %v3867_v43, 1  ;;  %v9951_v58 = vsel %vm3981_vm2, %v4003_v6, %v4004_v56  ;;  %v10813_v43 = vld [vmem:[#allocation18_spill] sm:$0xff] }
 0x2b3   : > { %v4904_v21 = vld [vmem:[#allocation3 + $0x60] sm:$0xff] }
 0x2b4   : > { %v3941_v49 = vpop.permute.xlu0 %3940  ;;  %v4377_v9 = vsel %vm10807_vm10, %v4375_v52, %v4376_v27  ;;  %v3914_v52 = vld [vmem:[#allocation2 + $0x260] sm:$0xff]  ;;  %v3915_v27 = vld [vmem:[#allocation2 + $0x268] sm:$0x3] }
 0x2b5   : > { %4813 = vrot.lane.b32.xlu1 %v4002_v32, %s7216_s13  ;;  %3961 = vst.msk [vmem:[#allocation3 + $0x80] sm:$0xff] %vm3956_vm12, %v3941_v49  ;;  %v4973_v49 = vld [vmem:[%s10705_s2 + $0x188] sm:$0xff] }
 0x2b6   : > { %4493 = vrot.lane.b32.xlu0 %v4002_v32, %s7213_s29 }
 0x2b7   : > { %v4526_v50 = vpop.permute.xlu1 %4525 }
 0x2b8   : > { %v4421_v39 = vpop.permute.xlu0 %4420 }
 0x2b9   : > { %4223 = vrot.lane.b32.xlu1 %v9672_v60, %s7216_s13  ;;  %4441 = vst.msk [vmem:[#allocation3 + $0x68] sm:$0xff] %vm4030_vm13, %v4421_v39  ;;  %v4971_v60 = vld [vmem:[%s10705_s2 + $0x178] sm:$0xff] }
 0x2ba   : > { %4018 = vrot.lane.b32.xlu0 %v4002_v32, %s10754_s16  ;;  %4474 = vst.msk [vmem:[#allocation3 + $0x68] sm:$0xff] %vm4095_vm14, %v4454_v34  ;;  %5109 = vmatpush1.msra.mxu1 %v4971_v60  ;;  %v4956_v34 = vld [vmem:[%s10705_s2 + $0x100] sm:$0xff] }
 0x2bb   : > { %v4846_v22 = vpop.permute.xlu1 %4845  ;;  %5110 = vmatprep.subr.mxu1 %v10808_v19 }
 0x2bc   : > { %5111 = vmatpush1.msra.mxu1 %v4970_v0  ;;  %v4080_v33 = vpop.permute.xlu0 %4079 }
 0x2bd   : > { %4597 = vrot.lane.b32.xlu1 %v3866_v35, %s7217_s14  ;;  %5112 = vmatprep.subr.mxu1 %v10808_v19 }
 0x2be   : > { %4678 = vrot.lane.b32.xlu0 %v9744_v53, %s10754_s16  ;;  %v4272_v53 = vsel %vm3981_vm2, %v4270_v57, %v4271_v48  ;;  %5113 = vmatpush1.msra.mxu1 %v4969_v14  ;;  %v7147_v48 = vld [vmem:[#allocation2 + $0x110] sm:$0xff] }
 0x2bf   : > { %v4561_v10 = vpop.permute.xlu1 %4560  ;;  %5114 = vmatprep.subr.mxu1 %v10808_v19  ;;  %v4628_v60 = vrot.slane %v7147_v48, 1 }
 0x2c0   : > { %5115 = vmatpush1.msra.mxu1 %v4968_v51 }
 0x2c1   : > { %4182 = vrot.lane.b32.xlu1 %v3866_v35, %s7214_s8  ;;  %5116 = vmatprep.subr.mxu1 %v10808_v19 }
 0x2c2   : > { %4393 = vrot.lane.b32.xlu0 %v4377_v9, %s7215_s9  ;;  %5117 = vmatpush1.msra.mxu1 %v4967_v26 }
 0x2c3   : > { %v4138_v44 = vpop.permute.xlu1 %4137  ;;  %5118 = vmatprep.subr.mxu1 %v10808_v19 }
 0x2c4   : > { %5119 = vmatpush1.msra.mxu1 %v4966_v55  ;;  %v4700_v55 = vrot.slane %v7147_v48, 2 }
 0x2c5   : > { %4288 = vrot.lane.b32.xlu1 %v4272_v53, %s7217_s14  ;;  %5120 = vmatprep.subr.mxu1 %v10808_v19 }
 0x2c6   : > { %4641 = vrot.lane.b32.xlu0 %v4272_v53, %s7215_s9  ;;  %5121 = vmatpush1.msra.mxu1 %v4965_v15  ;;  %v4839_v53 = vrot.slane %v3915_v27, 1 }
 0x2c7   : > { %5122 = vmatprep.subr.mxu1 %v10808_v19 }
 0x2c8   : > { %5123 = vmatpush1.msra.mxu1 %v4964_v20 }
 0x2c9   : > { %4531 = vrot.lane.b32.xlu1 %v9881_v11, %s7214_s8  ;;  %5124 = vmatprep.subr.mxu1 %v10808_v19 }
 0x2ca   : > { %4713 = vrot.lane.b32.xlu0 %v4377_v9, %s7212_s23  ;;  %5125 = vmatpush1.msra.mxu1 %v4963_v59  ;;  %v10814_v9 = vld [vmem:[#allocation17_spill] sm:$0xff] }
 0x2cb   : > { %5126 = vmatprep.subr.mxu1 %v10808_v19 }
 0x2cc   : > { %5127 = vmatpush1.msra.mxu1 %v4962_v54 }
 0x2cd   : > { %4566 = vrot.lane.b32.xlu1 %v9762_v31, %s7216_s13  ;;  %5128 = vmatprep.subr.mxu1 %v10808_v19 }
 0x2ce   : > { %4459 = vrot.lane.b32.xlu0 %v9865_v18, %s7212_s23  ;;  %5129 = vmatpush1.msra.mxu1 %v4961_v23 }
 0x2cf   : > { %5130 = vmatprep.subr.mxu1 %v10808_v19 }
 0x2d0   : > { %5131 = vmatpush1.msra.mxu1 %v4960_v7 }
 0x2d1   : > { %4143 = vrot.lane.b32.xlu1 %v9762_v31, %s7213_s29  ;;  %v10810_v31 = vld [vmem:[#allocation16_spill] sm:$0xff]  ;;  %5132 = vmatprep.subr.mxu1 %v10808_v19 }
 0x2d2   : > { %3946 = vrot.lane.b32.xlu0 %v9865_v18, %s7215_s9  ;;  %5133 = vmatpush1.msra.mxu1 %v4959_v25 }
 0x2d3   : > { %v4810_v46 = vpop.permute.xlu1 %4809  ;;  %v4490_v40 = vpop.permute.xlu0 %4489  ;;  %5134 = vmatprep.subr.mxu1 %v10808_v19 }
 0x2d4   : > { %4831 = vst.msk [vmem:[#allocation3 + $0x50] sm:$0xff] %vm4235_vm3, %v4810_v46  ;;  %5135 = vmatpush1.msra.mxu1 %v4958_v16 }
 0x2d5   : > { %4867 = vst.msk [vmem:[#allocation3 + $0x50] sm:$0xff] %vm4300_vm1, %v4846_v22  ;;  %4643 = vrot.lane.b32.xlu1 %v10810_v31, %s7215_s9  ;;  %5136 = vmatprep.subr.mxu1 %v10808_v19  ;;  %v4802_v31 = vrot.slane %v9776_v37, 1 }
 0x2d6   : > { %4510 = vst.msk [vmem:[#allocation3 + $0x68] sm:$0xff] %vm10809_vm11, %v4490_v40  ;;  %4426 = vrot.lane.b32.xlu0 %v9751_v4, %s10754_s16  ;;  %5137 = vmatpush1.msra.mxu1 %v4957_v8  ;;  %vm10815_vm11 = vmmov %vm10805_vm5 }
 0x2d7   : > { %4546 = vst.msk [vmem:[#allocation3 + $0x68] sm:$0xff] %vm10811_vm15, %v4526_v50  ;;  %v4220_v42 = vpop.permute.xlu1 %4219  ;;  %v4015_v41 = vpop.permute.xlu0 %4014  ;;  %5138 = vmatprep.subr.mxu1 %v10808_v19  ;;  %v3875_v50 = vld [vmem:[#allocation2 + $0x118] sm:$0x3]  ;;  %vm10816_vm15 = vmmov %vm10806_vm8 }
 0x2d8   : > { %4581 = vst.msk [vmem:[#allocation3 + $0x68] sm:$0xff] %vm4235_vm3, %v4561_v10  ;;  %5139 = vmatpush1.msra.mxu1 %v4956_v34  ;;  %v4629_v22 = vrot.slane %v3875_v50, 1  ;;  %v4666_v10 = vrot.slane %v3913_v24, 1 }
 0x2d9   : > { %4035 = vst.msk [vmem:[#allocation3 + $0x80] sm:$0xff] %vm4030_vm13, %v4015_v41  ;;  %4680 = vrot.lane.b32.xlu1 %v9441_v47, %s10754_s16  ;;  %5168 = vmatprep.subr.mxu1 %v10808_v19 }
 0x2da   : > { %4100 = vst.msk [vmem:[#allocation3 + $0x80] sm:$0xff] %vm4095_vm14, %v4080_v33  ;;  %4085 = vrot.lane.b32.xlu0 %v9881_v11, %s7212_s23  ;;  %5169 = vmatpush2.msra.mxu1 %v4973_v49  ;;  %v4630_v14 = vsel %vm3981_vm2, %v4628_v60, %v4629_v22  ;;  %v4701_v33 = vrot.slane %v3875_v50, 2 }
 0x2db   : > { %4158 = vst.msk [vmem:[#allocation3 + $0x80] sm:$0xff] %vm10805_vm5, %v4138_v44  ;;  %v4594_v47 = vpop.permute.xlu1 %4593  ;;  %v4675_v30 = vpop.permute.xlu0 %4674  ;;  %5170 = vmatprep.subr.mxu1 %v10808_v19  ;;  %v4667_v44 = vsel %vm3981_vm2, %v4665_v36, %v4666_v10 }
 0x2dc   : > { %4614 = vst.msk [vmem:[#allocation3 + $0x68] sm:$0xff] %vm4300_vm1, %v4594_v47  ;;  %v4702_v17 = vsel %vm10807_vm10, %v4700_v55, %v4701_v33  ;;  %vm10818_vm10 = vmmov %vm10806_vm8 }
 0x2dd   : > { %4715 = vrot.lane.b32.xlu1 %v10812_v29, %s7212_s23 }
 0x2de   : > { %4495 = vrot.lane.b32.xlu0 %v9951_v58, %s7213_s29 }
 0x2df   : > { %v4179_v13 = vpop.permute.xlu1 %4178 }
 0x2e0   : > { %4199 = vst.msk [vmem:[#allocation3 + $0x80] sm:$0xff] %vm10806_vm8, %v4179_v13  ;;  %v4390_v12 = vpop.permute.xlu0 %4389 }
 0x2e1   : > { %4240 = vst.msk [vmem:[#allocation3 + $0x80] sm:$0xff] %vm4235_vm3, %v4220_v42  ;;  %4748 = vrot.lane.b32.xlu1 %v7145_v38, %s7213_s29  ;;  %v4803_v42 = vrot.slane %v9779_v62, 1 }
 0x2e2   : > { %4409 = vst.msk [vmem:[#allocation3 + $0x88] sm:$0xff] %vm3956_vm12, %v4390_v12  ;;  %4020 = vrot.lane.b32.xlu0 %v9951_v58, %s10754_s16 }
 0x2e3   : > { %v4285_v5 = vpop.permute.xlu1 %4284  ;;  %v4905_v28 = vld [vmem:[#allocation3 + $0x68] sm:$0xff]  ;;  %v4804_v56 = vsel %vm3981_vm2, %v4802_v31, %v4803_v42 }
 0x2e4   : > { %4305 = vst.msk [vmem:[#allocation3 + $0x80] sm:$0xff] %vm4300_vm1, %v4285_v5  ;;  %v4638_v3 = vpop.permute.xlu0 %4637  ;;  %5082 = vmatprep.mubr.f32.mxu1 %v4905_v28 }
 0x2e5   : > { %4658 = vst.msk [vmem:[#allocation3 + $0x70] sm:$0xff] %vm3956_vm12, %v4638_v3  ;;  %4781 = vrot.lane.b32.xlu1 %v7146_v63, %s7214_s8  ;;  %5083 = vmatmul.mubr.f32.gmra.mxu1 %v4904_v21 }
 0x2e6   : > { %4695 = vst.msk [vmem:[#allocation3 + $0x70] sm:$0xff] %vm4030_vm13, %v4675_v30  ;;  %4746 = vrot.lane.b32.xlu0 %v9751_v4, %s7213_s29  ;;  %v4972_v4 = vld [vmem:[%s10705_s2 + $0x180] sm:$0xff] }
 0x2e7   : > { %v9983_v32 = vpop.permute.xlu1 %4527  ;;  %5171 = vmatpush2.msra.mxu1 %v4972_v4 }
 0x2e8   : > { %v4710_v35 = vpop.permute.xlu0 %4709 }
 0x2e9   : > { %4730 = vst.msk [vmem:[#allocation3 + $0x70] sm:$0xff] %vm4095_vm14, %v4710_v35  ;;  %4817 = vrot.lane.b32.xlu1 %v10813_v43, %s7216_s13 }
 0x2ea   : > { %4779 = vrot.lane.b32.xlu0 %v9865_v18, %s7214_s8  ;;  %v4838_v18 = vrot.slane %v3914_v52, 1 }
 0x2eb   : > { %v4563_v39 = vpop.permute.xlu1 %4562  ;;  %v4908_v13 = vld [vmem:[#allocation3 + $0x80] sm:$0xff] }
 0x2ec   : > { %v4456_v57 = vpop.permute.xlu0 %4455  ;;  %v4840_v51 = vsel %vm3981_vm2, %v4838_v18, %v4839_v53  ;;  %vm10817_vm2 = vmmov %vm10805_vm5 }
 0x2ed   : > { %4853 = vrot.lane.b32.xlu1 %v10814_v9, %s7217_s14 }
 0x2ee   : > { %4851 = vrot.lane.b32.xlu0 %v9881_v11, %s7217_s14 }
 0x2ef   : > { %v4140_v45 = vpop.permute.xlu1 %4139 }
 0x2f0   : > { %v3943_v0 = vpop.permute.xlu0 %3942 }
 0x2f1   : > { %3962 = vst.msk [vmem:[#allocation3 + $0xa0] sm:$0xff] %vm3956_vm12, %v3943_v0  ;;  %4783 = vrot.lane.b32.xlu1 %v3914_v52, %s7214_s8  ;;  %s7220_s8 = smov [#allocation6]  }
 0x2f2   : > { %4645 = vrot.lane.b32.xlu0 %v4630_v14, %s7215_s9  ;;  %s7152_s9 = sshll.u32 %s7220_s8, 4  ;;  %s7153_s9 = int_to_ptr.vmem [resolvable:$false] %s7152_s9 }
 0x2f3   : > { %v4222_v26 = vpop.permute.xlu1 %4221 }
 0x2f4   : > { %v4776_v11 = vpop.permute.xlu0 %4775 }
 0x2f5   : > { %4855 = vrot.lane.b32.xlu1 %v4840_v51, %s7217_s14 }
 0x2f6   : > { %4682 = vrot.lane.b32.xlu0 %v4667_v44, %s10754_s16  ;;  %v10828_v44 = vld [vmem:[#allocation29_spill] sm:$0xff] }
 0x2f7   : > { %v4596_v15 = vpop.permute.xlu1 %4595 }
 0x2f8   : > { %v4423_v46 = vpop.permute.xlu0 %4422 }
 0x2f9   : > { %4442 = vst.msk [vmem:[#allocation3 + $0x88] sm:$0xff] %vm4030_vm13, %v4423_v46 }
 0x2fa   : > { %4475 = vst.msk [vmem:[#allocation3 + $0x88] sm:$0xff] %vm4095_vm14, %v4456_v57  ;;  %4717 = vrot.lane.b32.xlu0 %v4702_v17, %s7212_s23 }
 0x2fb   : > { %v4181_v40 = vpop.permute.xlu1 %4180 }
 0x2fc   : > { %v4743_v20 = vpop.permute.xlu0 %4742 }
 0x2fd   : > { %4763 = vst.msk [vmem:[#allocation3 + $0x70] sm:$0xff] %vm10815_vm11, %v4743_v20  ;;  %vm10819_vm11 = vmmov %vm10817_vm2 }
 0x2fe   : > { %4796 = vst.msk [vmem:[#allocation3 + $0x70] sm:$0xff] %vm10816_vm15, %v4776_v11  ;;  %4815 = vrot.lane.b32.xlu0 %v9951_v58, %s7216_s13  ;;  %vm10820_vm15 = vmmov %vm10806_vm8 }
 0x2ff   : > { %v4677_v59 = vpop.permute.xlu1 %4676 }
 0x300   : > { %v4082_v41 = vpop.permute.xlu0 %4081 }
 0x302   : > { %4750 = vrot.lane.b32.xlu0 %v9776_v37, %s7213_s29 }
 0x303   : > { %v4287_v6 = vpop.permute.xlu1 %4286 }
 0x304   : > { %v4848_v54 = vpop.permute.xlu0 %4847 }
 0x306   : > { %4819 = vrot.lane.b32.xlu0 %v4804_v56, %s7216_s13  ;;  %v4894_v56 = vld [vmem:[#allocation3 + $0x10] sm:$0xff] }
 0x307   : > { %v4640_v23 = vpop.permute.xlu1 %4639 }
 0x308   : > { %4659 = vst.msk [vmem:[#allocation3 + $0x90] sm:$0xff] %vm3956_vm12, %v4640_v23  ;;  %v4492_v47 = vpop.permute.xlu0 %4491 }
 0x309   : > { %4696 = vst.msk [vmem:[#allocation3 + $0x90] sm:$0xff] %vm4030_vm13, %v4677_v59  ;;  %v4921_v59 = vld [vmem:[#allocation3 + $0xe8] sm:$0xff] }
 0x30a   : > { %4511 = vst.msk [vmem:[#allocation3 + $0x88] sm:$0xff] %vm10805_vm5, %v4492_v47  ;;  %vm10821_vm5 = vmmov %vm10817_vm2  ;;  %v4898_v47 = vld [vmem:[#allocation3 + $0x30] sm:$0xff] }
 0x30b   : > { %4547 = vst.msk [vmem:[#allocation3 + $0x88] sm:$0xff] %vm10806_vm8, %v9983_v32  ;;  %v4712_v37 = vpop.permute.xlu1 %4711 }
 0x30c   : > { %4582 = vst.msk [vmem:[#allocation3 + $0x88] sm:$0xff] %vm4235_vm3, %v4563_v39  ;;  %v4017_v62 = vpop.permute.xlu0 %4016 }
 0x30d   : > { %4615 = vst.msk [vmem:[#allocation3 + $0x88] sm:$0xff] %vm4300_vm1, %v4596_v15  ;;  %v10831_v15 = vld [vmem:[#allocation25_spill] sm:$0xff] }
 0x30e   : > { %4731 = vst.msk [vmem:[#allocation3 + $0x90] sm:$0xff] %vm4095_vm14, %v4712_v37  ;;  %v4903_v37 = vld [vmem:[#allocation3 + $0x58] sm:$0xff] }
 0x30f   : > { %4036 = vst.msk [vmem:[#allocation3 + $0xa0] sm:$0xff] %vm4030_vm13, %v4017_v62  ;;  %v4778_v30 = vpop.permute.xlu1 %4777 }
 0x310   : > { %4101 = vst.msk [vmem:[#allocation3 + $0xa0] sm:$0xff] %vm4095_vm14, %v4082_v41  ;;  %v4812_v7 = vpop.permute.xlu0 %4811 }
 0x311   : > { %4159 = vst.msk [vmem:[#allocation3 + $0xa0] sm:$0xff] %vm10817_vm2, %v4140_v45 }
 0x312   : > { %4200 = vst.msk [vmem:[#allocation3 + $0xa0] sm:$0xff] %vm10818_vm10, %v4181_v40  ;;  %vm10822_vm10 = vmmov %vm10806_vm8 }
 0x313   : > { %4241 = vst.msk [vmem:[#allocation3 + $0xa0] sm:$0xff] %vm4235_vm3, %v4222_v26  ;;  %4832 = vst.msk [vmem:[#allocation3 + $0x70] sm:$0xff] %vm4235_vm3, %v4812_v7  ;;  %v4745_v29 = vpop.permute.xlu1 %4744  ;;  %v10825_v26 = vld [vmem:[#allocation26_spill] sm:$0xff]  ;;  %v4907_v7 = vld [vmem:[#allocation3 + $0x78] sm:$0xff] }
 0x314   : > { %4306 = vst.msk [vmem:[#allocation3 + $0xa0] sm:$0xff] %vm4300_vm1, %v4287_v6  ;;  %4868 = vst.msk [vmem:[#allocation3 + $0x70] sm:$0xff] %vm4300_vm1, %v4848_v54  ;;  %v4909_v58 = vld [vmem:[#allocation3 + $0x88] sm:$0xff]  ;;  %v4392_v25 = vpop.permute.xlu0 %4391  ;;  %v4895_v6 = vld [vmem:[#allocation3 + $0x18] sm:$0xff] }
 0x315   : > { %4764 = vst.msk [vmem:[#allocation3 + $0x90] sm:$0xff] %vm10819_vm11, %v4745_v29  ;;  %5087 = vmatprep.mubr.f32.mxu1 %v4909_v58  ;;  %vm10823_vm11 = vmmov %vm10817_vm2  ;;  %v4899_v54 = vld [vmem:[#allocation3 + $0x38] sm:$0xff] }
 0x316   : > { %4797 = vst.msk [vmem:[#allocation3 + $0x90] sm:$0xff] %vm10820_vm15, %v4778_v30  ;;  %5088 = vmatmul.mubr.f32.gmra.mxu1 %v4908_v13  ;;  %vm10824_vm15 = vmmov %vm10806_vm8  ;;  %v4902_v30 = vld [vmem:[#allocation3 + $0x50] sm:$0xff]  ;;  %v4911_v13 = vld [vmem:[#allocation3 + $0x98] sm:$0xff] }
 0x317   : > { %4410 = vst.msk [vmem:[#allocation3 + $0xa8] sm:$0xff] %vm3956_vm12, %v4392_v25  ;;  %v4530_v12 = vpop.permute.xlu1 %4529 }
 0x318   : > { %v4458_v16 = vpop.permute.xlu0 %4457 }
 0x31b   : > { %v4850_v38 = vpop.permute.xlu1 %4849  ;;  %v4912_v57 = vld [vmem:[#allocation3 + $0xa0] sm:$0xff]  ;;  %v4906_v58 = vld [vmem:[#allocation3 + $0x70] sm:$0xff] }
 0x31c   : > { %v3945_v5 = vpop.permute.xlu0 %3944 }
 0x31d   : > { %3963 = vst.msk [vmem:[#allocation3 + $0xc0] sm:$0xff] %vm3956_vm12, %v3945_v5 }
 0x31f   : > { %v4565_v28 = vpop.permute.xlu1 %4564 }
 0x320   : > { %v4425_v8 = vpop.permute.xlu0 %4424 }
 0x321   : > { %4443 = vst.msk [vmem:[#allocation3 + $0xa8] sm:$0xff] %vm4030_vm13, %v4425_v8 }
 0x322   : > { %4476 = vst.msk [vmem:[#allocation3 + $0xa8] sm:$0xff] %vm4095_vm14, %v4458_v16 }
 0x323   : > { %v4142_v3 = vpop.permute.xlu1 %4141 }
 0x324   : > { %v4084_v21 = vpop.permute.xlu0 %4083 }
 0x327   : > { %v4814_v63 = vpop.permute.xlu1 %4813 }
 0x328   : > { %4833 = vst.msk [vmem:[#allocation3 + $0x90] sm:$0xff] %vm4235_vm3, %v4814_v63  ;;  %v4494_v34 = vpop.permute.xlu0 %4493 }
 0x329   : > { %4869 = vst.msk [vmem:[#allocation3 + $0x90] sm:$0xff] %vm4300_vm1, %v4850_v38  ;;  %v4915_v38 = vld [vmem:[#allocation3 + $0xb8] sm:$0xff] }
 0x32a   : > { %4512 = vst.msk [vmem:[#allocation3 + $0xa8] sm:$0xff] %vm10821_vm5, %v4494_v34  ;;  %vm10826_vm5 = vmmov %vm10817_vm2 }
 0x32b   : > { %4548 = vst.msk [vmem:[#allocation3 + $0xa8] sm:$0xff] %vm10806_vm8, %v4530_v12  ;;  %v4224_v32 = vpop.permute.xlu1 %4223  ;;  %vm10827_vm8 = vmmov %vm10817_vm2 }
 0x32c   : > { %4583 = vst.msk [vmem:[#allocation3 + $0xa8] sm:$0xff] %vm4235_vm3, %v4565_v28  ;;  %v4019_v49 = vpop.permute.xlu0 %4018 }
 0x32d   : > { %4037 = vst.msk [vmem:[#allocation3 + $0xc0] sm:$0xff] %vm4030_vm13, %v4019_v49 }
 0x32e   : > { %4102 = vst.msk [vmem:[#allocation3 + $0xc0] sm:$0xff] %vm4095_vm14, %v4084_v21  ;;  %v4923_v21 = vld [vmem:[#allocation3 + $0xf8] sm:$0xff] }
 0x32f   : > { %4160 = vst.msk [vmem:[#allocation3 + $0xc0] sm:$0xff] %vm10817_vm2, %v4142_v3  ;;  %v4598_v35 = vpop.permute.xlu1 %4597  ;;  %vm10829_vm2 = vmmov %vm10822_vm10  ;;  %v4919_v3 = vld [vmem:[#allocation3 + $0xd8] sm:$0xff] }
 0x330   : > { %4616 = vst.msk [vmem:[#allocation3 + $0xa8] sm:$0xff] %vm4300_vm1, %v4598_v35  ;;  %v4679_v43 = vpop.permute.xlu0 %4678  ;;  %v4910_v16 = vld [vmem:[#allocation3 + $0x90] sm:$0xff] }
 0x333   : > { %v4183_v4 = vpop.permute.xlu1 %4182 }
 0x334   : > { %4201 = vst.msk [vmem:[#allocation3 + $0xc0] sm:$0xff] %vm10822_vm10, %v4183_v4  ;;  %v4394_v50 = vpop.permute.xlu0 %4393  ;;  %vm10830_vm10 = vmmov %vm10829_vm2  ;;  %v7218_v4 = vmov 1983009808  }
 0x335   : > { %4242 = vst.msk [vmem:[#allocation3 + $0xc0] sm:$0xff] %vm4235_vm3, %v4224_v32 }
 0x336   : > { %4411 = vst.msk [vmem:[#allocation3 + $0xc8] sm:$0xff] %vm3956_vm12, %v4394_v50  ;;  %v5456_v50 = vunpack.c.l.s4 %v7218_v4 }
 0x337   : > { %v4289_v39 = vpop.permute.xlu1 %4288  ;;  %v4913_v52 = vld [vmem:[#allocation3 + $0xa8] sm:$0xff] }
 0x338   : > { %4307 = vst.msk [vmem:[#allocation3 + $0xc0] sm:$0xff] %vm4300_vm1, %v4289_v39  ;;  %v4642_v27 = vpop.permute.xlu0 %4641  ;;  %5092 = vmatprep.mubr.f32.mxu1 %v4913_v52  ;;  %v5457_v39 = vunpack.c.0.s8 %v5456_v50  ;;  %v10836_v52 = vld [vmem:[#allocation9_spill] sm:$0xff] }
 0x339   : > { %4660 = vst.msk [vmem:[#allocation3 + $0xb0] sm:$0xff] %vm3956_vm12, %v4642_v27  ;;  %5093 = vmatmul.mubr.f32.gmra.mxu1 %v4912_v57 }
 0x33a   : > { %4697 = vst.msk [vmem:[#allocation3 + $0xb0] sm:$0xff] %vm4030_vm13, %v4679_v43  ;;  %v10127_v27 = vsub.s32 %v5457_v39, %v10836_v52  ;;  %v10179_v52 = vld [vmem:[%s10708_s5 + $0x2] ss:$0 sm:$0xff] }
 0x33b   : > { %v4532_v48 = vpop.permute.xlu1 %4531 }
 0x33c   : > { %v4714_v60 = vpop.permute.xlu0 %4713 }
 0x33d   : > { %4732 = vst.msk [vmem:[#allocation3 + $0xb0] sm:$0xff] %vm4095_vm14, %v4714_v60 }
 0x33f   : > { %v4567_v9 = vpop.permute.xlu1 %4566  ;;  %v4916_v20 = vld [vmem:[#allocation3 + $0xc0] sm:$0xff] }
 0x340   : > { %v4460_v22 = vpop.permute.xlu0 %4459 }
 0x343   : > { %v4144_v24 = vpop.permute.xlu1 %4143 }
 0x344   : > { %v3947_v18 = vpop.permute.xlu0 %3946 }
 0x345   : > { %3964 = vst.msk [vmem:[#allocation3 + $0xe0] sm:$0xff] %vm3956_vm12, %v3947_v18 }
 0x347   : > { %v4644_v53 = vpop.permute.xlu1 %4643 }
 0x348   : > { %4661 = vst.msk [vmem:[#allocation3 + $0xd0] sm:$0xff] %vm3956_vm12, %v4644_v53  ;;  %v4427_v45 = vpop.permute.xlu0 %4426 }
 0x349   : > { %4444 = vst.msk [vmem:[#allocation3 + $0xc8] sm:$0xff] %vm4030_vm13, %v4427_v45 }
 0x34a   : > { %4477 = vst.msk [vmem:[#allocation3 + $0xc8] sm:$0xff] %vm4095_vm14, %v4460_v22 }
 0x34b   : > { %v4681_v0 = vpop.permute.xlu1 %4680 }
 0x34c   : > { %4698 = vst.msk [vmem:[#allocation3 + $0xd0] sm:$0xff] %vm4030_vm13, %v4681_v0  ;;  %v4086_v14 = vpop.permute.xlu0 %4085 }
 0x34f   : > { %v4716_v36 = vpop.permute.xlu1 %4715 }
 0x350   : > { %4733 = vst.msk [vmem:[#allocation3 + $0xd0] sm:$0xff] %vm4095_vm14, %v4716_v36  ;;  %v4496_v10 = vpop.permute.xlu0 %4495 }
 0x351   : > { %4513 = vst.msk [vmem:[#allocation3 + $0xc8] sm:$0xff] %vm10823_vm11, %v4496_v10  ;;  %vm10832_vm11 = vmmov %vm10826_vm5 }
 0x352   : > { %4549 = vst.msk [vmem:[#allocation3 + $0xc8] sm:$0xff] %vm10824_vm15, %v4532_v48  ;;  %vm10833_vm15 = vmmov %vm10829_vm2 }
 0x353   : > { %4584 = vst.msk [vmem:[#allocation3 + $0xc8] sm:$0xff] %vm4235_vm3, %v4567_v9  ;;  %v4749_v51 = vpop.permute.xlu1 %4748 }
 0x354   : > { %4617 = vst.msk [vmem:[#allocation3 + $0xc8] sm:$0xff] %vm4300_vm1, %v10825_v26  ;;  %v4021_v11 = vpop.permute.xlu0 %4020 }
 0x355   : > { %4766 = vst.msk [vmem:[#allocation3 + $0xd0] sm:$0xff] %vm10826_vm5, %v4749_v51 }
 0x356   : > { %4038 = vst.msk [vmem:[#allocation3 + $0xe0] sm:$0xff] %vm4030_vm13, %v4021_v11 }
 0x357   : > { %4103 = vst.msk [vmem:[#allocation3 + $0xe0] sm:$0xff] %vm4095_vm14, %v4086_v14  ;;  %v4782_v55 = vpop.permute.xlu1 %4781 }
 0x358   : > { %4161 = vst.msk [vmem:[#allocation3 + $0xe0] sm:$0xff] %vm10827_vm8, %v4144_v24  ;;  %v4747_v33 = vpop.permute.xlu0 %4746 }
 0x359   : > { %4202 = vst.msk [vmem:[#allocation3 + $0xe0] sm:$0xff] %vm10829_vm2, %v10828_v44 }
 0x35a   : > { %4799 = vst.msk [vmem:[#allocation3 + $0xd0] sm:$0xff] %vm10830_vm10, %v4782_v55  ;;  %v6681_v55 = vpop.f32.mrf.mxu1  ;;  %vm5489_vm10 = vcmask 779776  }
 0x35b   : > { %4243 = vst.msk [vmem:[#allocation3 + $0xe0] sm:$0xff] %vm4235_vm3, %v10831_v15  ;;  %v4818_v46 = vpop.permute.xlu1 %4817  ;;  %v4917_v17 = vld [vmem:[#allocation3 + $0xc8] sm:$0xff] }
 0x35c   : > { %4765 = vst.msk [vmem:[#allocation3 + $0xb0] sm:$0xff] %vm10832_vm11, %v4747_v33  ;;  %v4780_v40 = vpop.permute.xlu0 %4779  ;;  %5097 = vmatprep.mubr.f32.mxu1 %v4917_v17  ;;  %vm5508_vm11 = vcmask 1042176  }
 0x35d   : > { %4308 = vst.msk [vmem:[#allocation3 + $0xe0] sm:$0xff] %vm4300_vm1, %v9093_v61  ;;  %5098 = vmatmul.mubr.f32.gmra.mxu1 %v4916_v20 }
 0x35e   : > { %4835 = vst.msk [vmem:[#allocation3 + $0xd0] sm:$0xff] %vm4235_vm3, %v4818_v46  ;;  %5102 = vmatprep.mubr.f32.mxu1 %v4921_v59  ;;  %v6682_v46 = vpop.f32.mrf.mxu1 }
 0x35f   : > { %4798 = vst.msk [vmem:[#allocation3 + $0xb0] sm:$0xff] %vm10833_vm15, %v4780_v40  ;;  %v4854_v31 = vpop.permute.xlu1 %4853 }
 0x360   : > { %4871 = vst.msk [vmem:[#allocation3 + $0xd0] sm:$0xff] %vm4300_vm1, %v4854_v31  ;;  %v4852_v42 = vpop.permute.xlu0 %4851  ;;  %v6684_v40 = vpop.f32.mrf.mxu1 }
 0x362   : > { %v6685_v20 = vpop.f32.mrf.mxu1 }
 0x363   : > { %v4784_v25 = vpop.permute.xlu1 %4783 }
 0x364   : > { %v4920_v41 = vld [vmem:[#allocation3 + $0xe0] sm:$0xff]  ;;  %v4646_v61 = vpop.permute.xlu0 %4645 }
 0x365   : > { %5103 = vmatmul.mubr.f32.gmra.mxu1 %v4920_v41  ;;  %4662 = vst.msk [vmem:[#allocation3 + $0xf0] sm:$0xff] %vm3956_vm12, %v4646_v61  ;;  %vm10834_vm12 = vmmov %vm10826_vm5 }
 0x366   : > { %6456 = vmatprep.mubr.msk.f32.mxu1 %vm2292_vm0, %v4895_v6 }
 0x367   : > { %v4856_v5 = vpop.permute.xlu1 %4855  ;;  %v4918_v63 = vld [vmem:[#allocation3 + $0xd0] sm:$0xff] }
 0x368   : > { %v4683_v23 = vpop.permute.xlu0 %4682 }
 0x369   : > { %5173 = vmatmul.mubr.f32.vlgmr.msra.gmra.mxu1 %v4894_v56  ;;  %4699 = vst.msk [vmem:[#allocation3 + $0xf0] sm:$0xff] %vm4030_vm13, %v4683_v23  ;;  %vm10835_vm13 = vmmov %vm10829_vm2 }
 0x36a   : > { %6457 = vmatprep.mubr.msk.f32.mxu1 %vm2292_vm0, %v4899_v54 }
 0x36c   : > { %v4718_v62 = vpop.permute.xlu0 %4717 }
 0x36d   : > { %5178 = vmatmul.mubr.f32.gmra.mxu1 %v4898_v47  ;;  %4734 = vst.msk [vmem:[#allocation3 + $0xf0] sm:$0xff] %vm4095_vm14, %v4718_v62  ;;  %vm5295_vm14 = vcmask 257024  }
 0x36e   : > { %6458 = vmatprep.mubr.msk.f32.mxu1 %vm2292_vm0, %v4903_v37  ;;  %5304 = vst.msk [vmem:[#allocation4 + $0x20] sm:$0xf] %vm5295_vm14, %v10808_v19  ;;  %5296 = vst.msk [vmem:[#allocation4] sm:$0xf] %vm5295_vm14, %v10808_v19 }
 0x36f   : > { %5297 = vst.msk [vmem:[#allocation4 + $0x4] sm:$0xf] %vm5295_vm14, %v10808_v19  ;;  %5298 = vst.msk [vmem:[#allocation4 + $0x8] sm:$0xf] %vm5295_vm14, %v10808_v19  ;;  %v6687_v31 = vpop.f32.mrf.mxu1 }
 0x370   : > { %v4816_v29 = vpop.permute.xlu0 %4815  ;;  %5299 = vst.msk [vmem:[#allocation4 + $0xc] sm:$0xf] %vm5295_vm14, %v10808_v19  ;;  %5300 = vst.msk [vmem:[#allocation4 + $0x10] sm:$0xf] %vm5295_vm14, %v10808_v19 }
 0x371   : > { %5183 = vmatmul.mubr.f32.gmra.mxu1 %v4902_v30  ;;  %4834 = vst.msk [vmem:[#allocation3 + $0xb0] sm:$0xff] %vm4235_vm3, %v4816_v29  ;;  %v6688_v6 = vpop.f32.mrf.mxu1  ;;  %v6683_v29 = vadd.f32 %v6682_v46, %v6681_v55 }
 0x372   : > { %6459 = vmatprep.mubr.msk.f32.mxu1 %vm2292_vm0, %v4907_v7  ;;  %4870 = vst.msk [vmem:[#allocation3 + $0xb0] sm:$0xff] %vm4300_vm1, %v4852_v42 }
 0x373   : > { %5301 = vst.msk [vmem:[#allocation4 + $0x14] sm:$0xf] %vm5295_vm14, %v10808_v19  ;;  %5302 = vst.msk [vmem:[#allocation4 + $0x18] sm:$0xf] %vm5295_vm14, %v10808_v19 }
 0x374   : > { %v4751_v12 = vpop.permute.xlu0 %4750  ;;  %5305 = vst.msk [vmem:[#allocation4 + $0x24] sm:$0xf] %vm5295_vm14, %v10808_v19  ;;  %5306 = vst.msk [vmem:[#allocation4 + $0x28] sm:$0xf] %vm5295_vm14, %v10808_v19 }
 0x375   : > { %5188 = vmatmul.mubr.f32.gmra.mxu1 %v4906_v58  ;;  %4767 = vst.msk [vmem:[#allocation3 + $0xf0] sm:$0xff] %vm10834_vm12, %v4751_v12  ;;  %v6474_v32 = vld.sshfl [vmem:[#allocation4 + $0x20] sm:$0x33 pattern:$0x76325410]  ;;  %v6686_v12 = vadd.f32 %v6685_v20, %v6684_v40 }
 0x376   : > { %6460 = vmatprep.mubr.msk.f32.mxu1 %vm2292_vm0, %v4911_v13  ;;  %4800 = vst.msk [vmem:[#allocation3 + $0xf0] sm:$0xff] %vm10835_vm13, %v4784_v25  ;;  %5444 = vrot.lane.b32.xlu0 %v6474_v32, %s10754_s16  ;;  %v6480_v49 = vld.sshfl [vmem:[#allocation4 + $0x4] sm:$0x33 pattern:$0x76325410]  ;;  %v5492_v22 = vcombine.high %v6474_v32, %v6474_v32  ;;  %v6478_v53 = vrot.slane %v6474_v32, 9 }
 0x377   : > { %5307 = vst.msk [vmem:[#allocation4 + $0x2c] sm:$0xf] %vm5295_vm14, %v10808_v19  ;;  %5308 = vst.msk [vmem:[#allocation4 + $0x30] sm:$0xf] %vm5295_vm14, %v10808_v19  ;;  %v5563_v35 = vcombine.high %v6480_v49, %v6480_v49  ;;  %v5412_v43 = vld [vmem:[#allocation4] sm:$0xf] }
 0x378   : > { %v4820_v28 = vpop.permute.xlu0 %4819  ;;  %5309 = vst.msk [vmem:[#allocation4 + $0x34] sm:$0xf] %vm5295_vm14, %v10808_v19  ;;  %5310 = vst.msk [vmem:[#allocation4 + $0x38] sm:$0xf] %vm5295_vm14, %v10808_v19  ;;  %v5461_v57 = vrot.slane %v5412_v43, %v10127_v27  ;;  %v5496_v45 = vrot.slane %v5492_v22, 7  ;;  %v6483_v14 = vrot.slane %v6480_v49, 9 }
 0x379   : > { %5193 = vmatmul.mubr.f32.gmra.mxu1 %v4910_v16  ;;  %4836 = vst.msk [vmem:[#allocation3 + $0xf0] sm:$0xff] %vm4235_vm3, %v4820_v28  ;;  %v4914_v8 = vld [vmem:[#allocation3 + $0xb0] sm:$0xff]  ;;  %v5567_v36 = vrot.slane %v5563_v35, 7  ;;  %v10162_v25 = vld [vmem:[%s10708_s5] ss:$0 sm:$0xff]  ;;  %vm5935_vm13 = vcmask 261120  }
 0x37a   : > { %6461 = vmatprep.mubr.msk.f32.mxu1 %vm2292_vm0, %v4915_v38  ;;  %4872 = vst.msk [vmem:[#allocation3 + $0xf0] sm:$0xff] %vm4300_vm1, %v4856_v5  ;;  %5531 = vrot.lane.b32.xlu0 %v6480_v49, %s10754_s16  ;;  %vm5471_vm1 = vcmask 1040384   ;;  %v5462_v48 = vcombine.high %v5461_v57, %v5461_v57  ;;  %v6476_v60 = vrot.slane %v5461_v57, 9  ;;  %v5418_v26 = vld [vmem:[#allocation4 + $0x18] sm:$0xf]  ;;  %v5070_v16 = vadd.f32 %v6683_v29, %v10162_v25 }
 0x37b   : > { %vm5472_vm3 = vmor %vm5471_vm1, %vm3016_vm6  ;;  %v6482_v0 = vld.sshfl [vmem:[#allocation4 + $0x24] sm:$0x33 pattern:$0x76325410]  ;;  %v5750_v11 = vrot.slane %v5418_v26, %v10127_v27  ;;  %vm5450_vm6 = vcmask 517376   ;;  %vm6248_vm14 = vcmask 516096  }
 0x37c   : > { %vm5473_vm5 = vmor %vm5472_vm3, %vm3020_vm7  ;;  %v5477_v24 = vrot.slane %v5462_v48, 7  ;;  %v5581_v59 = vcombine.high %v6482_v0, %v6482_v0  ;;  %v6485_v42 = vrot.slane %v6482_v0, 9  ;;  %vm5407_vm7 = vcmask 257026  }
 0x37d   : > { %5198 = vmatmul.mubr.f32.gmra.mxu1 %v4914_v8  ;;  %vm10132_vm8 = vmor %vm5473_vm5, %vm3024_vm9  ;;  %v5751_v44 = vcombine.high %v5750_v11, %v5750_v11  ;;  %v6494_v33 = vrot.slane %v5750_v11, 9  ;;  %vm10839_vm9 = vcmask 1043459  }
 0x37e   : > { %6462 = vmatprep.mubr.msk.f32.mxu1 %vm2292_vm0, %v4919_v3  ;;  %5595 = vrot.lane.b32.xlu0 %v5563_v35, %s10754_s16  ;;  %v5478_v18 = vsel %vm10132_vm8, %v6476_v60, %v5477_v24  ;;  %v5497_v10 = vsel %vm10132_vm8, %v6478_v53, %v5496_v45  ;;  %v5568_v51 = vsel %vm10132_vm8, %v6483_v14, %v5567_v36  ;;  %v5585_v41 = vrot.slane %v5581_v59, 7  ;;  %vm10840_vm2 = vmmov %vm10839_vm9 }
 0x37f   : > { %v5754_v15 = vrot.slane %v5751_v44, 7  ;;  %v6689_v3 = vadd.f32 %v6688_v6, %v6687_v31  ;;  %vm10841_vm15 = vmmov %vm10840_vm2 }
 0x380   : > { %v5586_v56 = vsel %vm10132_vm8, %v6485_v42, %v5585_v41  ;;  %vm10842_vm12 = vmmov %vm10840_vm2 }
 0x381   : > { %5203 = vmatmul.mubr.f32.gmra.mxu1 %v4918_v63  ;;  %v4922_v34 = vld [vmem:[#allocation3 + $0xf0] sm:$0xff]  ;;  %v10152_v17 = vsel %vm10132_vm8, %v6494_v33, %v5754_v15  ;;  %v5075_v63 = vadd.f32 %v6686_v12, %v10162_v25  ;;  %v5080_v39 = vadd.f32 %v6689_v3, %v10162_v25 }
 0x382   : > { %6463 = vmatprep.mubr.msk.f32.mxu1 %vm2292_vm0, %v4923_v21  ;;  %vm5361_vm0 = vcmask 254976   ;;  %5483 = vrot.lane.b32.xlu0 %v5478_v18, %s7213_s29 }
 0x383   : > { %5426 = vst.msk [vmem:[#allocation5] sm:$0x3] %vm5361_vm0, %v5412_v43  ;;  %5513 = vst.msk [vmem:[#allocation5 + $0x2] sm:$0x3] %vm5361_vm0, %v5462_v48 }
 0x384   : > { %5726 = vst.msk [vmem:[#allocation5 + $0x18] sm:$0x3] %vm5361_vm0, %v5418_v26  ;;  %5780 = vst.msk [vmem:[#allocation5 + $0x1a] sm:$0x3] %vm5361_vm0, %v5751_v44 }
 0x385   : > { %5208 = vmatmul.mubr.f32.gmra.mxu1 %v4922_v34  ;;  %5593 = vst.msk [vmem:[#allocation5 + $0x4] sm:$0x3] %vm5361_vm0, %v5586_v56  ;;  %v10172_v34 = vld [vmem:[%s10708_s5 + $0x1] ss:$0 sm:$0xff] }
 0x386   : > { %5555 = vrot.lane.b32.xlu0 %v6482_v0, %s7213_s29 }
 0x38a   : > { %5502 = vrot.lane.b32.xlu0 %v5497_v10, %s7216_s13 }
 0x38e   : > { %5573 = vrot.lane.b32.xlu0 %v5568_v51, %s7216_s13 }
 0x3a5   : > { %v6690_v61 = vpop.f32.mrf.mxu1 }
 0x3a7   : > { %v6691_v54 = vpop.f32.mrf.mxu1 }
 0x3a8   : > { %v6692_v43 = vadd.f32 %v6691_v54, %v6690_v61 }
 0x3aa   : > { %v5085_v0 = vadd.f32 %v6692_v43, %v10162_v25 }
 0x3d6   : > { %v6693_v23 = vpop.f32.mrf.mxu1 }
 0x3d8   : > { %v6694_v47 = vpop.f32.mrf.mxu1 }
 0x3d9   : > { %v6695_v22 = vadd.f32 %v6694_v47, %v6693_v23 }
 0x3db   : > { %v5090_v55 = vadd.f32 %v6695_v22, %v10162_v25 }
 0x3e8   : > { %v5445_v8 = vpop.permute.xlu0 %5444 }
 0x3e9   : > { %5451 = vst.msk [vmem:[#allocation5] sm:$0x3] %vm5450_vm6, %v5445_v8 }
 0x3ec   : > { %v5532_v14 = vpop.permute.xlu0 %5531 }
 0x3ed   : > { %5537 = vst.msk [vmem:[#allocation5 + $0x2] sm:$0x3] %vm5450_vm6, %v5532_v14 }
 0x3f0   : > { %v5596_v40 = vpop.permute.xlu0 %5595 }
 0x3f1   : > { %5601 = vst.msk [vmem:[#allocation5 + $0x4] sm:$0x3] %vm5450_vm6, %v5596_v40 }
 0x3f9   : > { %v6696_v37 = vpop.f32.mrf.mxu1 }
 0x3fb   : > { %v6697_v62 = vpop.f32.mrf.mxu1 }
 0x3fc   : > { %v6698_v26 = vadd.f32 %v6697_v62, %v6696_v37 }
 0x3fe   : > { %v5095_v47 = vadd.f32 %v6698_v26, %v10162_v25 }
 0x41d   : > { %v6699_v30 = vpop.f32.mrf.mxu1 }
 0x41f   : > { %v6700_v7 = vpop.f32.mrf.mxu1 }
 0x420   : > { %v6701_v6 = vadd.f32 %v6700_v7, %v6699_v30 }
 0x422   : > { %v5100_v8 = vadd.f32 %v6701_v6, %v10162_v25 }
 0x425   : > { %v10157_v58 = vpop.f32.mrf.mxu1 }
 0x427   : > { %v10164_v13 = vpop.f32.mrf.mxu1 }
 0x429   : > { %v5174_v38 = vpop.f32.mrf.mxu1 }
 0x42a   : > { %v5175_v5 = vadd.f32 %v5174_v38, %v5070_v16 }
 0x42b   : > { %v5176_v28 = vpop.f32.mrf.mxu1 }
 0x42c   : > { %v5213_v21 = vmax.f32 %v5175_v5, 0.0  ;;  %v6704_v5 = vadd.f32 %v10164_v13, %v10157_v58 }
 0x42d   : > { %v5179_v32 = vpop.f32.mrf.mxu1 }
 0x42e   : > { %v5180_v49 = vadd.f32 %v5179_v32, %v5075_v63  ;;  %v5226_v4 = vmul.f32 %v10172_v34, %v5213_v21 }
 0x42f   : > { %v5181_v35 = vpop.f32.mrf.mxu1 }
 0x430   : > { %v5214_v50 = vmax.f32 %v5180_v49, 0.0  ;;  %v5239_v18 = vadd.f32 %v10179_v52, %v5226_v4 }
 0x431   : > { %v5184_v57 = vpop.f32.mrf.mxu1 }
 0x432   : > { %v5227_v48 = vmul.f32 %v10172_v34, %v5214_v50  ;;  %v5185_v60 = vadd.f32 %v5184_v57, %v5080_v39 }
 0x433   : > { %v5186_v24 = vpop.f32.mrf.mxu1 }
 0x434   : > { %v5240_v53 = vadd.f32 %v10179_v52, %v5227_v48  ;;  %v5215_v45 = vmax.f32 %v5185_v60, 0.0  ;;  %v5105_v60 = vadd.f32 %v6704_v5, %v10162_v25 }
 0x435   : > { %v5189_v36 = vpop.f32.mrf.mxu1 }
 0x436   : > { %v5247_v10 = vmax.f32 %v5239_v18, %v5240_v53  ;;  %v5190_v51 = vadd.f32 %v5189_v36, %v5085_v0  ;;  %v5228_v15 = vmul.f32 %v10172_v34, %v5215_v45 }
 0x437   : > { %v5191_v11 = vpop.f32.mrf.mxu1 }
 0x438   : > { %v5255_v44 = vcombine.high %v5247_v10, %v5247_v10  ;;  %v6466_v33 = vrot.slane %v5247_v10, 9  ;;  %v5216_v46 = vmax.f32 %v5190_v51, 0.0  ;;  %v5241_v54 = vadd.f32 %v10179_v52, %v5228_v15 }
 0x439   : > { %v5194_v20 = vpop.f32.mrf.mxu1 }
 0x43a   : > { %v6467_v59 = vrot.slane %v5255_v44, 9  ;;  %v5287_v31 = vmax.f32 %v5247_v10, %v6466_v33  ;;  %v5229_v42 = vmul.f32 %v10172_v34, %v5216_v46  ;;  %v5195_v41 = vadd.f32 %v5194_v20, %v5090_v55  ;;  %v5484_v20 = vpop.permute.xlu0 %5483 }
 0x43b   : > { %v5196_v61 = vpop.f32.mrf.mxu1  ;;  %5490 = vst.msk [vmem:[#allocation5] sm:$0x3] %vm5489_vm10, %v5484_v20  ;;  %v5812_v20 = vld [vmem:[%s10706_s3 + $0xd8] sm:$0xff] }
 0x43c   : > { %v5288_v56 = vmax.f32 %v5255_v44, %v6467_v59  ;;  %v5242_v23 = vadd.f32 %v10179_v52, %v5229_v42  ;;  %v5323_v37 = vrot.slane %v5287_v31, %v7689_v1  ;;  %v5369_v62 = vrot.slane %v5287_v31, %v7692_v2 }
 0x43d   : > { %v5217_v29 = vmax.f32 %v5195_v41, 0.0  ;;  %v5199_v12 = vpop.f32.mrf.mxu1 }
 0x43e   : > { %v5327_v16 = vrot.slane %v5288_v56, %v7689_v1  ;;  %v5373_v38 = vrot.slane %v5288_v56, %v7692_v2  ;;  %v5248_v30 = vmax.f32 %v5241_v54, %v5242_v23  ;;  %v5200_v7 = vadd.f32 %v5199_v12, %v5095_v47 }
 0x43f   : > { %v5201_v28 = vpop.f32.mrf.mxu1  ;;  %v5230_v49 = vmul.f32 %v10172_v34, %v5217_v29 }
 0x440   : > { %v5352_v3 = vsel %vm3014_vm4, %v5327_v16, %v5323_v37  ;;  %v5398_v21 = vsel %vm10839_vm9, %v5373_v38, %v5369_v62  ;;  %v5256_v63 = vcombine.high %v5248_v30, %v5248_v30  ;;  %v6468_v32 = vrot.slane %v5248_v30, 9  ;;  %v5556_v37 = vpop.permute.xlu0 %5555 }
 0x441   : > { %5362 = vst.msk [vmem:[#allocation4 + $0x9] sm:$0x3] %vm5361_vm0, %v5352_v3  ;;  %v5218_v35 = vmax.f32 %v5200_v7, 0.0  ;;  %v5204_v43 = vpop.f32.mrf.mxu1  ;;  %v5243_v24 = vadd.f32 %v10179_v52, %v5230_v49 }
 0x442   : > { %5408 = vst.msk [vmem:[#allocation4 + $0x27] sm:$0xc] %vm5407_vm7, %v5398_v21  ;;  %v6469_v4 = vrot.slane %v5256_v63, 9  ;;  %v5289_v50 = vmax.f32 %v5248_v30, %v6468_v32  ;;  %v5205_v58 = vadd.f32 %v5204_v43, %v5100_v8 }
 0x443   : > { %v5231_v13 = vmul.f32 %v10172_v34, %v5218_v35  ;;  %v5206_v39 = vpop.f32.mrf.mxu1  ;;  %5561 = vst.msk [vmem:[#allocation5 + $0x2] sm:$0x3] %vm5489_vm10, %v5556_v37  ;;  %v5792_v37 = vld [vmem:[%s10706_s3 + $0x38] sm:$0xff] }
 0x444   : > { %v5290_v57 = vmax.f32 %v5256_v63, %v6469_v4  ;;  %v5219_v48 = vmax.f32 %v5205_v58, 0.0  ;;  %v5331_v22 = vrot.slane %v5289_v50, %v7689_v1  ;;  %v5377_v0 = vrot.slane %v5289_v50, %v7692_v2  ;;  %v5503_v32 = vpop.permute.xlu0 %5502 }
 0x445   : > { %v5244_v18 = vadd.f32 %v10179_v52, %v5231_v13  ;;  %v5209_v53 = vpop.f32.mrf.mxu1  ;;  %5509 = vst.msk [vmem:[#allocation5] sm:$0x3] %vm5508_vm11, %v5503_v32  ;;  %v5802_v32 = vld [vmem:[%s10706_s3 + $0x88] sm:$0xff] }
 0x446   : > { %v5335_v45 = vrot.slane %v5290_v57, %v7689_v1  ;;  %v5381_v14 = vrot.slane %v5290_v57, %v7692_v2  ;;  %v5210_v36 = vadd.f32 %v5209_v53, %v5105_v60  ;;  %v5232_v11 = vmul.f32 %v10172_v34, %v5219_v48  ;;  %v5816_v48 = vld [vmem:[%s10706_s3 + $0xf8] sm:$0xff] }
 0x447   : > { %v5249_v10 = vmax.f32 %v5243_v24, %v5244_v18  ;;  %v5211_v51 = vpop.f32.mrf.mxu1  ;;  %6705 = vmatprep.subr.mxu1 %v5816_v48 }
 0x448   : > { %v5353_v26 = vsel %vm3014_vm4, %v5335_v45, %v5331_v22  ;;  %v5399_v25 = vsel %vm10840_vm2, %v5381_v14, %v5377_v0  ;;  %v5220_v55 = vmax.f32 %v5210_v36, 0.0  ;;  %v5414_v40 = vld [vmem:[#allocation4 + $0x8] sm:$0xf]  ;;  %v5245_v56 = vadd.f32 %v10179_v52, %v5232_v11  ;;  %v5574_v57 = vpop.permute.xlu0 %5573  ;;  %v5799_v36 = vld [vmem:[%s10706_s3 + $0x70] sm:$0xff] }
 0x449   : > { %v6475_v44 = vld.sshfl [vmem:[#allocation4 + $0x28] sm:$0x33 pattern:$0x76325410]  ;;  %5363 = vst.msk [vmem:[#allocation4 + $0xd] sm:$0x3] %vm5361_vm0, %v5353_v26  ;;  %v5257_v33 = vcombine.high %v5249_v10, %v5249_v10  ;;  %v5469_v31 = vrot.slane %v5414_v40, %v10127_v27 }
 0x44a   : > { %5409 = vst.msk [vmem:[#allocation4 + $0x2b] sm:$0xc] %vm5407_vm7, %v5399_v25  ;;  %v6470_v15 = vrot.slane %v5249_v10, 9  ;;  %5627 = vrot.lane.b32.xlu0 %v6475_v44, %s7216_s13  ;;  %v5493_v46 = vcombine.high %v6475_v44, %v6475_v44  ;;  %5446 = vrot.lane.b32.xlu1 %v6475_v44, %s10754_s16  ;;  %v5233_v59 = vmul.f32 %v10172_v34, %v5220_v55  ;;  %v6479_v6 = vrot.slane %v6475_v44, 9  ;;  %v5814_v25 = vld [vmem:[%s10706_s3 + $0xe8] sm:$0xff] }
 0x44b   : > { %5427 = vst.msk [vmem:[#allocation5 + $0xe] sm:$0x3] %vm5361_vm0, %v5414_v40  ;;  %v6471_v42 = vrot.slane %v5257_v33, 9  ;;  %v5470_v23 = vcombine.high %v5469_v31, %v5469_v31  ;;  %v6477_v29 = vrot.slane %v5469_v31, 9  ;;  %v5798_v44 = vld [vmem:[%s10706_s3 + $0x68] sm:$0xff]  ;;  %v5797_v40 = vld [vmem:[%s10706_s3 + $0x60] sm:$0xff] }
 0x44c   : > { %v5291_v41 = vmax.f32 %v5249_v10, %v6470_v15  ;;  %v5500_v61 = vrot.slane %v5493_v46, 7  ;;  %v5246_v54 = vadd.f32 %v10179_v52, %v5233_v59  ;;  %5579 = vst.msk [vmem:[#allocation5 + $0x2] sm:$0x3] %vm5508_vm11, %v5574_v57  ;;  %v5813_v46 = vld [vmem:[%s10706_s3 + $0xe0] sm:$0xff] }
 0x44d   : > { %v5292_v47 = vmax.f32 %v5257_v33, %v6471_v42  ;;  %5514 = vst.msk [vmem:[#allocation5 + $0x10] sm:$0x3] %vm5361_vm0, %v5470_v23  ;;  %v5481_v12 = vrot.slane %v5470_v23, 7 }
 0x44e   : > { %5611 = vrot.lane.b32.xlu0 %v5469_v31, %s7213_s29  ;;  %v5501_v34 = vsel %vm10132_vm8, %v6479_v6, %v5500_v61  ;;  %v5250_v62 = vmax.f32 %v5245_v56, %v5246_v54  ;;  %v5339_v16 = vrot.slane %v5291_v41, %v7689_v1  ;;  %v5385_v38 = vrot.slane %v5291_v41, %v7692_v2  ;;  %v5796_v41 = vld [vmem:[%s10706_s3 + $0x58] sm:$0xff]  ;;  %v5811_v6 = vld [vmem:[%s10706_s3 + $0xd0] sm:$0xff]  ;;  %v5810_v56 = vld [vmem:[%s10706_s3 + $0xc8] sm:$0xff] }
 0x44f   : > { %5504 = vrot.lane.b32.xlu1 %v5501_v34, %s7216_s13  ;;  %v5343_v52 = vrot.slane %v5292_v47, %v7689_v1  ;;  %v5389_v30 = vrot.slane %v5292_v47, %v7692_v2  ;;  %v5482_v28 = vsel %vm10132_vm8, %v6477_v29, %v5481_v12  ;;  %v5795_v61 = vld [vmem:[%s10706_s3 + $0x50] sm:$0xff]  ;;  %v5794_v54 = vld [vmem:[%s10706_s3 + $0x48] sm:$0xff]  ;;  %v5793_v47 = vld [vmem:[%s10706_s3 + $0x40] sm:$0xff] }
 0x450   : > { %v5258_v7 = vcombine.high %v5250_v62, %v5250_v62  ;;  %v6472_v5 = vrot.slane %v5250_v62, 9  ;;  %5642 = vst.msk [vmem:[#allocation5 + $0x6] sm:$0x3] %vm5361_vm0, %v5482_v28  ;;  %v5807_v29 = vld [vmem:[%s10706_s3 + $0xb0] sm:$0xff] }
 0x451   : > { %v5354_v8 = vsel %vm3014_vm4, %v5343_v52, %v5339_v16  ;;  %v5400_v3 = vsel %vm10841_vm15, %v5389_v30, %v5385_v38  ;;  %v6481_v21 = vld.sshfl [vmem:[#allocation4 + $0xc] sm:$0x33 pattern:$0x76325410]  ;;  %v5791_v12 = vld [vmem:[%s10706_s3 + $0x30] sm:$0xff]  ;;  %v5805_v30 = vld [vmem:[%s10706_s3 + $0xa0] sm:$0xff] }
 0x452   : > { %5657 = vrot.lane.b32.xlu0 %v5470_v23, %s7213_s29  ;;  %v5422_v63 = vld [vmem:[#allocation4 + $0x2c] sm:$0xf]  ;;  %5364 = vst.msk [vmem:[#allocation4 + $0x11] sm:$0x3] %vm5361_vm0, %v5354_v8  ;;  %v6473_v49 = vrot.slane %v5258_v7, 9  ;;  %v5293_v35 = vmax.f32 %v5250_v62, %v6472_v5  ;;  %v10248_v50 = vcombine.high %v6481_v21, %v6481_v21  ;;  %v6484_v51 = vrot.slane %v6481_v21, 9 }
 0x453   : > { %5410 = vst.msk [vmem:[#allocation4 + $0x2f] sm:$0xc] %vm5407_vm7, %v5400_v3  ;;  %5485 = vrot.lane.b32.xlu1 %v5482_v28, %s7213_s29  ;;  %v5554_v43 = vrot.slane %v5422_v63, %v10127_v27  ;;  %v5809_v23 = vld [vmem:[%s10706_s3 + $0xc0] sm:$0xff]  ;;  %v5806_v16 = vld [vmem:[%s10706_s3 + $0xa8] sm:$0xff]  ;;  %v5804_v28 = vld [vmem:[%s10706_s3 + $0x98] sm:$0xff] }
 0x454   : > { %5681 = vst.msk [vmem:[#allocation5 + $0x8] sm:$0x3] %vm5361_vm0, %v5422_v63  ;;  %v5294_v4 = vmax.f32 %v5258_v7, %v6473_v49  ;;  %v5347_v13 = vrot.slane %v5293_v35, %v7689_v1  ;;  %v5393_v39 = vrot.slane %v5293_v35, %v7692_v2  ;;  %v5571_v0 = vrot.slane %v10248_v50, 7  ;;  %v5790_v52 = vld [vmem:[%s10706_s3 + $0x28] sm:$0xff]  ;;  %v5789_v7 = vld [vmem:[%s10706_s3 + $0x20] sm:$0xff]  ;;  %v5788_v8 = vld [vmem:[%s10706_s3 + $0x18] sm:$0xff] }
 0x455   : > { %v5582_v58 = vcombine.high %v5554_v43, %v5554_v43  ;;  %v6486_v24 = vrot.slane %v5554_v43, 9  ;;  %v5787_v63 = vld [vmem:[%s10706_s3 + $0x10] sm:$0xff]  ;;  %v5786_v49 = vld [vmem:[%s10706_s3 + $0x8] sm:$0xff]  ;;  %v5801_v35 = vld [vmem:[%s10706_s3 + $0x80] sm:$0xff] }
 0x456   : > { %5649 = vrot.lane.b32.xlu0 %v5501_v34, %s10754_s16  ;;  %v5351_v60 = vrot.slane %v5294_v4, %v7689_v1  ;;  %v5397_v22 = vrot.slane %v5294_v4, %v7692_v2  ;;  %v5800_v1 = vld [vmem:[%s10706_s3 + $0x78] sm:$0xff]  ;;  %v5815_v2 = vld [vmem:[%s10706_s3 + $0xf0] sm:$0xff]  ;;  %v5572_v11 = vsel %vm10132_vm8, %v6484_v51, %v5571_v0  ;;  %v5785_v4 = vld [vmem:[%s10706_s3] sm:$0xff] }
 0x457   : > { %5533 = vrot.lane.b32.xlu1 %v6481_v21, %s10754_s16  ;;  %v5589_v18 = vrot.slane %v5582_v58, 7  ;;  %6706 = vmatpush3.msra.mxu1 %v5800_v1  ;;  %v5808_v34 = vld [vmem:[%s10706_s3 + $0xb8] sm:$0xff] }
 0x458   : > { %v5355_v53 = vsel %vm3014_vm4, %v5351_v60, %v5347_v13  ;;  %v5401_v45 = vsel %vm10842_vm12, %v5397_v22, %v5393_v39  ;;  %6707 = vmatprep.subr.mxu1 %v5815_v2  ;;  %v6493_v58 = vld.sshfl [vmem:[#allocation4 + $0x38] sm:$0x33 pattern:$0x76325410]  ;;  %vm7219_vm4 = vmmov 0  }
 0x459   : > { %v5590_v14 = vsel %vm10132_vm8, %v6486_v24, %v5589_v18  ;;  %5365 = vst.msk [vmem:[#allocation4 + $0x15] sm:$0x3] %vm5361_vm0, %v5355_v53  ;;  %v5416_v10 = vld [vmem:[#allocation4 + $0x10] sm:$0xf]  ;;  %6708 = vmatpush3.msra.mxu1 %v5799_v36  ;;  %v5764_v22 = vcombine.high %v6493_v58, %v6493_v58  ;;  %v6495_v53 = vrot.slane %v6493_v58, 9 }
 0x45a   : > { %5411 = vst.msk [vmem:[#allocation4 + $0x33] sm:$0xc] %vm5407_vm7, %v5401_v45  ;;  %5673 = vrot.lane.b32.xlu0 %v6481_v21, %s7216_s13  ;;  %v5610_v26 = vrot.slane %v5416_v10, %v10127_v27  ;;  %6709 = vmatprep.subr.mxu1 %v5814_v25  ;;  %v6487_v59 = vld.sshfl [vmem:[#allocation4 + $0x30] sm:$0x33 pattern:$0x76325410] }
 0x45b   : > { %5594 = vst.msk [vmem:[#allocation5 + $0x12] sm:$0x3] %vm5361_vm0, %v5590_v14  ;;  %5597 = vrot.lane.b32.xlu1 %v10248_v50, %s10754_s16  ;;  %5725 = vst.msk [vmem:[#allocation5 + $0xa] sm:$0x3] %vm5361_vm0, %v5416_v10  ;;  %6710 = vmatpush3.msra.mxu1 %v5798_v44  ;;  %v5644_v62 = vcombine.high %v6487_v59, %v6487_v59  ;;  %v6489_v5 = vrot.slane %v6487_v59, 9  ;;  %v5803_v21 = vld [vmem:[%s10706_s3 + $0x90] sm:$0xff] }
 0x45c   : > { %v5635_v55 = vcombine.high %v5610_v26, %v5610_v26  ;;  %v6488_v33 = vrot.slane %v5610_v26, 9  ;;  %6711 = vmatprep.subr.mxu1 %v5813_v46  ;;  %v5767_v45 = vrot.slane %v5764_v22, 7  ;;  %v5839_v22 = vld [vmem:[%s10706_s3 + $0x1b0] sm:$0xff] }
 0x45d   : > { %6712 = vmatpush3.msra.mxu1 %v5797_v40  ;;  %v5647_v38 = vrot.slane %v5644_v62, 7 }
 0x45e   : > { %5688 = vrot.lane.b32.xlu0 %v5572_v11, %s10754_s16  ;;  %v5638_v15 = vrot.slane %v5635_v55, 7  ;;  %5779 = vst.msk [vmem:[#allocation5 + $0xc] sm:$0x3] %vm5361_vm0, %v5635_v55  ;;  %6713 = vmatprep.subr.mxu1 %v5812_v20 }
 0x45f   : > { %5557 = vrot.lane.b32.xlu1 %v5554_v43, %s7213_s29  ;;  %6714 = vmatpush3.msra.mxu1 %v5796_v41  ;;  %v5648_v3 = vsel %vm10132_vm8, %v6489_v5, %v5647_v38  ;;  %v5832_v38 = vld [vmem:[%s10706_s3 + $0x178] sm:$0xff]  ;;  %v5831_v5 = vld [vmem:[%s10706_s3 + $0x170] sm:$0xff] }
 0x460   : > { %v5639_v31 = vsel %vm10132_vm8, %v6488_v33, %v5638_v15  ;;  %6715 = vmatprep.subr.mxu1 %v5811_v6  ;;  %v6490_v43 = vld.sshfl [vmem:[#allocation4 + $0x14] sm:$0x33 pattern:$0x76325410] }
 0x461   : > { %v10304_v42 = vld [vmem:[#allocation4 + $0x34] sm:$0xf]  ;;  %5643 = vst.msk [vmem:[#allocation5 + $0x14] sm:$0x3] %vm5361_vm0, %v5639_v31  ;;  %6716 = vmatpush3.msra.mxu1 %v5795_v61  ;;  %v5683_v13 = vcombine.high %v6490_v43, %v6490_v43  ;;  %v6491_v60 = vrot.slane %v6490_v43, 9 }
 0x462   : > { %5735 = vrot.lane.b32.xlu0 %v6487_v59, %s10754_s16  ;;  %5682 = vst.msk [vmem:[#allocation5 + $0x16] sm:$0x3] %vm5361_vm0, %v10304_v42  ;;  %6717 = vmatprep.subr.mxu1 %v5810_v56  ;;  %v5703_v39 = vrot.slane %v10304_v42, %v10127_v27 }
 0x463   : > { %5575 = vrot.lane.b32.xlu1 %v5572_v11, %s7216_s13  ;;  %6718 = vmatpush3.msra.mxu1 %v5794_v54  ;;  %v5686_v57 = vrot.slane %v5683_v13, 7 }
 0x464   : > { %6719 = vmatprep.subr.mxu1 %v5809_v23  ;;  %v5704_v48 = vcombine.high %v5703_v39, %v5703_v39  ;;  %v6492_v0 = vrot.slane %v5703_v39, 9  ;;  %v5841_v39 = vld [vmem:[%s10706_s3 + $0x1c0] sm:$0xff] }
 0x465   : > { %6720 = vmatpush3.msra.mxu1 %v5793_v47  ;;  %v5687_v24 = vsel %vm10132_vm8, %v6491_v60, %v5686_v57  ;;  %v5825_v57 = vld [vmem:[%s10706_s3 + $0x140] sm:$0xff]  ;;  %v5824_v60 = vld [vmem:[%s10706_s3 + $0x138] sm:$0xff] }
 0x466   : > { %5709 = vrot.lane.b32.xlu0 %v5590_v14, %s7213_s29  ;;  %6721 = vmatprep.subr.mxu1 %v5808_v34  ;;  %v5707_v18 = vrot.slane %v5704_v48, 7  ;;  %v5840_v48 = vld [vmem:[%s10706_s3 + $0x1b8] sm:$0xff] }
 0x467   : > { %5629 = vrot.lane.b32.xlu1 %v6487_v59, %s7216_s13  ;;  %6722 = vmatpush3.msra.mxu1 %v5792_v37 }
 0x468   : > { %6723 = vmatprep.subr.mxu1 %v5807_v29  ;;  %v5708_v14 = vsel %vm10132_vm8, %v6492_v0, %v5707_v18  ;;  %v5838_v18 = vld [vmem:[%s10706_s3 + $0x1a8] sm:$0xff]  ;;  %v5821_v0 = vld [vmem:[%s10706_s3 + $0x120] sm:$0xff] }
 0x469   : > { %6724 = vmatpush3.msra.mxu1 %v5791_v12 }
 0x46a   : > { %5756 = vrot.lane.b32.xlu0 %v5639_v31, %s7213_s29  ;;  %6725 = vmatprep.subr.mxu1 %v5806_v16 }
 0x46b   : > { %5613 = vrot.lane.b32.xlu1 %v5610_v26, %s7213_s29  ;;  %6726 = vmatpush3.msra.mxu1 %v5790_v52 }
 0x46c   : > { %6727 = vmatprep.subr.mxu1 %v5805_v30 }
 0x46d   : > { %6728 = vmatpush3.msra.mxu1 %v5789_v7  ;;  %v5847_v7 = vld [vmem:[%s10706_s3 + $0x1f0] sm:$0xff] }
 0x46e   : > { %5717 = vrot.lane.b32.xlu0 %v10248_v50, %s7216_s13  ;;  %6729 = vmatprep.subr.mxu1 %v5804_v28  ;;  %v5848_v50 = vld [vmem:[%s10706_s3 + $0x1f8] sm:$0xff] }
 0x46f   : > { %5659 = vrot.lane.b32.xlu1 %v5635_v55, %s7213_s29  ;;  %6730 = vmatpush3.msra.mxu1 %v5788_v8  ;;  %v5846_v8 = vld [vmem:[%s10706_s3 + $0x1e8] sm:$0xff] }
 0x470   : > { %6731 = vmatprep.subr.mxu1 %v5803_v21  ;;  %v5845_v21 = vld [vmem:[%s10706_s3 + $0x1e0] sm:$0xff] }
 0x471   : > { %6732 = vmatpush3.msra.mxu1 %v5787_v63  ;;  %v5829_v63 = vld [vmem:[%s10706_s3 + $0x160] sm:$0xff] }
 0x472   : > { %5769 = vrot.lane.b32.xlu0 %v5648_v3, %s7216_s13  ;;  %6733 = vmatprep.subr.mxu1 %v5802_v32 }
 0x473   : > { %5651 = vrot.lane.b32.xlu1 %v5648_v3, %s10754_s16  ;;  %6734 = vmatpush3.msra.mxu1 %v5786_v49  ;;  %v5830_v3 = vld [vmem:[%s10706_s3 + $0x168] sm:$0xff]  ;;  %v5844_v49 = vld [vmem:[%s10706_s3 + $0x1d8] sm:$0xff] }
 0x474   : > { %6735 = vmatprep.subr.mxu1 %v5801_v35  ;;  %v5828_v35 = vld [vmem:[%s10706_s3 + $0x158] sm:$0xff] }
 0x475   : > { %6736 = vmatpush3.msra.mxu1 %v5785_v4  ;;  %v5827_v4 = vld [vmem:[%s10706_s3 + $0x150] sm:$0xff] }
 0x476   : > { %6740 = vmatprep.subr.mxu1 %v5848_v50 }
 0x477   : > { %5675 = vrot.lane.b32.xlu1 %v6490_v43, %s7216_s13  ;;  %v5843_v43 = vld [vmem:[%s10706_s3 + $0x1d0] sm:$0xff] }
 0x47b   : > { %5737 = vrot.lane.b32.xlu1 %v6493_v58, %s10754_s16  ;;  %v5842_v58 = vld [vmem:[%s10706_s3 + $0x1c8] sm:$0xff] }
 0x47f   : > { %5758 = vrot.lane.b32.xlu1 %v10152_v17, %s7213_s29  ;;  %v5768_v17 = vsel %vm10132_vm8, %v6495_v53, %v5767_v45  ;;  %v5822_v53 = vld [vmem:[%s10706_s3 + $0x128] sm:$0xff]  ;;  %v5837_v45 = vld [vmem:[%s10706_s3 + $0x1a0] sm:$0xff] }
 0x483   : > { %5719 = vrot.lane.b32.xlu1 %v5683_v13, %s7216_s13  ;;  %v5826_v13 = vld [vmem:[%s10706_s3 + $0x148] sm:$0xff] }
 0x487   : > { %5690 = vrot.lane.b32.xlu1 %v5687_v24, %s10754_s16  ;;  %v5823_v24 = vld [vmem:[%s10706_s3 + $0x130] sm:$0xff] }
 0x48b   : > { %5711 = vrot.lane.b32.xlu1 %v5708_v14, %s7213_s29  ;;  %v5836_v14 = vld [vmem:[%s10706_s3 + $0x198] sm:$0xff]  ;;  %s269_s29 = sand.u32 1, %s7200_s25  }
 0x48c   : > { %s270_s16 = scalar_lea.vmem [#allocation6], %s269_s29  ;;  %s6251_s19 = scalar_lea.sflag [#allocation7], %s269_s29 }
 0x48d   : > { %s6263_s15 = sshll.u32 %s270_s16, 4  ;;  %s6264_s15 = int_to_ptr.vmem [resolvable:$true] %s6263_s15 }
 0x48e   : > { %s7148_s23 = scalar_lea.vmem %s6264_s15, 16  ;;  %p7155_p0 = scmp.lt.s32.totalorder %s6264_s15, %s7153_s9 }
 0x48f   : > { %5771 = vrot.lane.b32.xlu1 %v5768_v17, %s7216_s13  ;;  %v5820_v17 = vld [vmem:[%s10706_s3 + $0x118] sm:$0xff]  ;;  %s6501_s13 = sshll.u32 %s7282_s28, 4  ;;  %p7149_p11 = scmp.ne.s32.totalorder %s6264_s15, %s7148_s23 }
 0x490   : > { %s6261_s18 = scalar_lea.hbm %s10710_s7, %s6501_s13  ;;  %s7154_s28 = scalar_lea.vmem %s7153_s9, 32 }
 0x491   : > { %p7150_p12 = pnand %p7149_p11, %p7299_p5  ;;  %p7156_p1 = scmp.lt.s32.totalorder %s7154_s28, %s7148_s23 }
 0x493   : > { %p7151_p13 = pneg %p7150_p12  ;;  %p7157_p2 = por %p7156_p1, %p7155_p0 }
 0x495   : > { %p7158_p3 = pnand %p7157_p2, %p7151_p13 }
 0x4bc   : > { %v5628_v1 = vpop.permute.xlu0 %5627  ;;  %v5447_v2 = vpop.permute.xlu1 %5446 }
 0x4bd   : > { %5452 = vst.msk [vmem:[#allocation5 + $0xe] sm:$0x3] %vm5450_vm6, %v5447_v2 }
 0x4c0   : > { %v5612_v36 = vpop.permute.xlu0 %5611 }
 0x4c1   : > { %5617 = vst.msk [vmem:[#allocation5 + $0x4] sm:$0x3] %vm5489_vm10, %v5612_v36  ;;  %v5505_v10 = vpop.permute.xlu1 %5504  ;;  %v5819_v36 = vld [vmem:[%s10706_s3 + $0x110] sm:$0xff] }
 0x4c2   : > { %5633 = vst.msk [vmem:[#allocation5 + $0x4] sm:$0x3] %vm5508_vm11, %v5628_v1  ;;  %v5835_v1 = vld [vmem:[%s10706_s3 + $0x190] sm:$0xff] }
 0x4c4   : > { %v5658_v51 = vpop.permute.xlu0 %5657 }
 0x4c5   : > { %v5486_v26 = vpop.permute.xlu1 %5485 }
 0x4c6   : > { %5491 = vst.msk [vmem:[#allocation5 + $0xe] sm:$0x3] %vm5489_vm10, %v5486_v26  ;;  %v5833_v26 = vld [vmem:[%s10706_s3 + $0x180] sm:$0xff] }
 0x4c7   : > { %5510 = vst.msk [vmem:[#allocation5 + $0xe] sm:$0x3] %vm5508_vm11, %v5505_v10  ;;  %v5834_v10 = vld [vmem:[%s10706_s3 + $0x188] sm:$0xff] }
 0x4c8   : > { %v5650_v9 = vpop.permute.xlu0 %5649 }
 0x4c9   : > { %5655 = vst.msk [vmem:[#allocation5 + $0x6] sm:$0x3] %vm5450_vm6, %v5650_v9  ;;  %v5534_v25 = vpop.permute.xlu1 %5533 }
 0x4ca   : > { %5663 = vst.msk [vmem:[#allocation5 + $0x6] sm:$0x3] %vm5489_vm10, %v5658_v51  ;;  %v5818_v51 = vld [vmem:[%s10706_s3 + $0x108] sm:$0xff] }
 0x4cb   : > { %5538 = vst.msk [vmem:[#allocation5 + $0x10] sm:$0x3] %vm5450_vm6, %v5534_v25  ;;  %v5817_v25 = vld [vmem:[%s10706_s3 + $0x100] sm:$0xff] }
 0x4cc   : > { %v5674_v11 = vpop.permute.xlu0 %5673 }
 0x4cd   : > { %5679 = vst.msk [vmem:[#allocation5 + $0x6] sm:$0x3] %vm5508_vm11, %v5674_v11  ;;  %v5598_v55 = vpop.permute.xlu1 %5597  ;;  %v5880_v11 = vld [vmem:[%s10706_s3 + $0x2f8] sm:$0xff] }
 0x4ce   : > { %5602 = vst.msk [vmem:[#allocation5 + $0x12] sm:$0x3] %vm5450_vm6, %v5598_v55  ;;  %v5864_v55 = vld [vmem:[%s10706_s3 + $0x278] sm:$0xff] }
 0x4d0   : > { %v5689_v44 = vpop.permute.xlu0 %5688 }
 0x4d1   : > { %5694 = vst.msk [vmem:[#allocation5 + $0x8] sm:$0x3] %vm5450_vm6, %v5689_v44  ;;  %v5558_v33 = vpop.permute.xlu1 %5557 }
 0x4d2   : > { %5562 = vst.msk [vmem:[#allocation5 + $0x10] sm:$0x3] %vm5489_vm10, %v5558_v33  ;;  %v5879_v33 = vld [vmem:[%s10706_s3 + $0x2f0] sm:$0xff] }
 0x4d4   : > { %v5736_v15 = vpop.permute.xlu0 %5735  ;;  %v5781_v47 = vld [vmem:[#allocation5] sm:$0xff] }
 0x4d5   : > { %5741 = vst.msk [vmem:[#allocation5 + $0xa] sm:$0x3] %vm5450_vm6, %v5736_v15  ;;  %v5576_v46 = vpop.permute.xlu1 %5575  ;;  %v5863_v15 = vld [vmem:[%s10706_s3 + $0x270] sm:$0xff] }
 0x4d6   : > { %5580 = vst.msk [vmem:[#allocation5 + $0x10] sm:$0x3] %vm5508_vm11, %v5576_v46  ;;  %v5878_v46 = vld [vmem:[%s10706_s3 + $0x2e8] sm:$0xff] }
 0x4d8   : > { %v5710_v40 = vpop.permute.xlu0 %5709 }
 0x4d9   : > { %5715 = vst.msk [vmem:[#allocation5 + $0x8] sm:$0x3] %vm5489_vm10, %v5710_v40  ;;  %v5630_v20 = vpop.permute.xlu1 %5629  ;;  %v5862_v40 = vld [vmem:[%s10706_s3 + $0x268] sm:$0xff] }
 0x4dc   : > { %v5757_v59 = vpop.permute.xlu0 %5756 }
 0x4dd   : > { %5762 = vst.msk [vmem:[#allocation5 + $0xa] sm:$0x3] %vm5489_vm10, %v5757_v59  ;;  %v5614_v31 = vpop.permute.xlu1 %5613  ;;  %v7131_v37 = vld [vmem:[#allocation5] ss:$14 sps:$4 sm:$0xff]  }
 0x4de   : > { %5618 = vst.msk [vmem:[#allocation5 + $0x12] sm:$0x3] %vm5489_vm10, %v5614_v31  ;;  %v5902_v29 = vrot.slane %v7131_v37, %v10127_v27  ;;  %v5861_v59 = vld [vmem:[%s10706_s3 + $0x260] sm:$0xff]  ;;  %v5876_v31 = vld [vmem:[%s10706_s3 + $0x2d8] sm:$0xff]  ;;  %v5871_v37 = vld [vmem:[%s10706_s3 + $0x2b0] sm:$0xff] }
 0x4df   : > { %5634 = vst.msk [vmem:[#allocation5 + $0x12] sm:$0x3] %vm5508_vm11, %v5630_v20  ;;  %v5877_v20 = vld [vmem:[%s10706_s3 + $0x2e0] sm:$0xff] }
 0x4e0   : > { %v5718_v42 = vpop.permute.xlu0 %5717  ;;  %v5910_v52 = vcombine.high %v5902_v29, %v5902_v29 }
 0x4e1   : > { %5723 = vst.msk [vmem:[#allocation5 + $0x8] sm:$0x3] %vm5508_vm11, %v5718_v42  ;;  %v5660_v41 = vpop.permute.xlu1 %5659  ;;  %v5860_v42 = vld [vmem:[%s10706_s3 + $0x258] sm:$0xff] }
 0x4e2   : > { %6002 = vmatprep.mubr.f32.mxu1 %v5910_v52  ;;  %v5853_v52 = vld [vmem:[%s10706_s3 + $0x220] sm:$0xff] }
 0x4e3   : > { %6003 = vmatmul.mubr.f32.vlgmr.msra.gmra.mxu1 %v5902_v29  ;;  %v5870_v29 = vld [vmem:[%s10706_s3 + $0x2a8] sm:$0xff] }
 0x4e4   : > { %v5770_v6 = vpop.permute.xlu0 %5769  ;;  %6741 = vmatpush3.msra.mxu1 %v5832_v38  ;;  %v5868_v38 = vld [vmem:[%s10706_s3 + $0x298] sm:$0xff] }
 0x4e5   : > { %5775 = vst.msk [vmem:[#allocation5 + $0xa] sm:$0x3] %vm5508_vm11, %v5770_v6  ;;  %v5652_v61 = vpop.permute.xlu1 %5651  ;;  %6742 = vmatprep.subr.mxu1 %v5847_v7  ;;  %v5859_v6 = vld [vmem:[%s10706_s3 + $0x250] sm:$0xff] }
 0x4e6   : > { %5656 = vst.msk [vmem:[#allocation5 + $0x14] sm:$0x3] %vm5450_vm6, %v5652_v61  ;;  %6743 = vmatpush3.msra.mxu1 %v5831_v5  ;;  %v5874_v61 = vld [vmem:[%s10706_s3 + $0x2c8] sm:$0xff]  ;;  %v5867_v7 = vld [vmem:[%s10706_s3 + $0x290] sm:$0xff] }
 0x4e7   : > { %5664 = vst.msk [vmem:[#allocation5 + $0x14] sm:$0x3] %vm5489_vm10, %v5660_v41  ;;  %6744 = vmatprep.subr.mxu1 %v5846_v8  ;;  %v5875_v41 = vld [vmem:[%s10706_s3 + $0x2d0] sm:$0xff]  ;;  %v5850_v8 = vld [vmem:[%s10706_s3 + $0x208] sm:$0xff] }
 0x4e8   : > { %6745 = vmatpush3.msra.mxu1 %v5830_v3  ;;  %v5851_v5 = vld [vmem:[%s10706_s3 + $0x210] sm:$0xff]  ;;  %v5865_v3 = vld [vmem:[%s10706_s3 + $0x280] sm:$0xff] }
 0x4e9   : > { %v5676_v56 = vpop.permute.xlu1 %5675  ;;  %6746 = vmatprep.subr.mxu1 %v5845_v21  ;;  %v5849_v21 = vld [vmem:[%s10706_s3 + $0x200] sm:$0xff] }
 0x4ea   : > { %5680 = vst.msk [vmem:[#allocation5 + $0x14] sm:$0x3] %vm5508_vm11, %v5676_v56  ;;  %6747 = vmatpush3.msra.mxu1 %v5829_v63  ;;  %v5858_v56 = vld [vmem:[%s10706_s3 + $0x248] sm:$0xff]  ;;  %v5884_v63 = vld [vmem:[%s10706_s3 + $0x318] sm:$0xff] }
 0x4eb   : > { %6748 = vmatprep.subr.mxu1 %v5844_v49  ;;  %v7135_v49 = vld [vmem:[#allocation5 + $0xc] ss:$14 sps:$4 sm:$0x33]  }
 0x4ec   : > { %6749 = vmatpush3.msra.mxu1 %v5828_v35  ;;  %v5882_v35 = vld [vmem:[%s10706_s3 + $0x308] sm:$0xff] }
 0x4ed   : > { %v5738_v54 = vpop.permute.xlu1 %5737  ;;  %6750 = vmatprep.subr.mxu1 %v5843_v43  ;;  %v5881_v43 = vld [vmem:[%s10706_s3 + $0x300] sm:$0xff] }
 0x4ee   : > { %5742 = vst.msk [vmem:[#allocation5 + $0x18] sm:$0x3] %vm5450_vm6, %v5738_v54  ;;  %6751 = vmatpush3.msra.mxu1 %v5827_v4  ;;  %v5873_v54 = vld [vmem:[%s10706_s3 + $0x2c0] sm:$0xff]  ;;  %v5927_v4 = vrot.slane %v7135_v49, %v10127_v27 }
 0x4ef   : > { %6752 = vmatprep.subr.mxu1 %v5842_v58 }
 0x4f0   : > { %6753 = vmatpush3.msra.mxu1 %v5826_v13 }
 0x4f1   : > { %v5759_v23 = vpop.permute.xlu1 %5758  ;;  %v5783_v34 = vld [vmem:[#allocation5 + $0xe] sm:$0xff]  ;;  %6754 = vmatprep.subr.mxu1 %v5841_v39 }
 0x4f2   : > { %5763 = vst.msk [vmem:[#allocation5 + $0x18] sm:$0x3] %vm5489_vm10, %v5759_v23  ;;  %v5895_v62 = vcombine.high %v5781_v47, %v5783_v34  ;;  %6755 = vmatpush3.msra.mxu1 %v5825_v57  ;;  %v5857_v23 = vld [vmem:[%s10706_s3 + $0x240] sm:$0xff]  ;;  %v5872_v47 = vld [vmem:[%s10706_s3 + $0x2b8] sm:$0xff] }
 0x4f3   : > { %6756 = vmatprep.subr.mxu1 %v5840_v48  ;;  %v5856_v34 = vld [vmem:[%s10706_s3 + $0x238] sm:$0xff]  ;;  %v6496_v48 = vld [vmem:[%s10709_s6] ss:$0 sm:$0xff] }
 0x4f4   : > { %v10437_v12 = vrot.slane %v5895_v62, %v10127_v27  ;;  %6757 = vmatpush3.msra.mxu1 %v5824_v60  ;;  %v5855_v62 = vld [vmem:[%s10706_s3 + $0x230] sm:$0xff] }
 0x4f5   : > { %v5720_v16 = vpop.permute.xlu1 %5719  ;;  %6758 = vmatprep.subr.mxu1 %v5839_v22 }
 0x4f6   : > { %v5911_v30 = vcombine.high %v10437_v12, %v10437_v12  ;;  %6759 = vmatpush3.msra.mxu1 %v5823_v24 }
 0x4f7   : > { %6760 = vmatprep.subr.mxu1 %v5838_v18 }
 0x4f8   : > { %6072 = vmatprep.mubr.f32.mxu1 %v5911_v30  ;;  %6761 = vmatpush3.msra.mxu1 %v5822_v53  ;;  %v5852_v30 = vld [vmem:[%s10706_s3 + $0x218] sm:$0xff] }
 0x4f9   : > { %v5691_v28 = vpop.permute.xlu1 %5690  ;;  %6762 = vmatprep.subr.mxu1 %v5837_v45 }
 0x4fa   : > { %5695 = vst.msk [vmem:[#allocation5 + $0x16] sm:$0x3] %vm5450_vm6, %v5691_v28  ;;  %6763 = vmatpush3.msra.mxu1 %v5821_v0  ;;  %v5866_v28 = vld [vmem:[%s10706_s3 + $0x288] sm:$0xff] }
 0x4fb   : > { %6764 = vmatprep.subr.mxu1 %v5836_v14 }
 0x4fc   : > { %6765 = vmatpush3.msra.mxu1 %v5820_v17  ;;  %v6498_v17 = vld [vmem:[%s10709_s6 + $0x1] ss:$0 sm:$0xff] }
 0x4fd   : > { %v5712_v32 = vpop.permute.xlu1 %5711  ;;  %6766 = vmatprep.subr.mxu1 %v5835_v1 }
 0x4fe   : > { %5716 = vst.msk [vmem:[#allocation5 + $0x16] sm:$0x3] %vm5489_vm10, %v5712_v32  ;;  %6767 = vmatpush3.msra.mxu1 %v5819_v36  ;;  %v5883_v32 = vld [vmem:[%s10706_s3 + $0x310] sm:$0xff]  ;;  %v6499_v36 = vld [vmem:[%s10709_s6 + $0x2] ss:$0 sm:$0xff] }
 0x4ff   : > { %5724 = vst.msk [vmem:[#allocation5 + $0x16] sm:$0x3] %vm5508_vm11, %v5720_v16  ;;  %6768 = vmatprep.subr.mxu1 %v5834_v10  ;;  %v5869_v16 = vld [vmem:[%s10706_s3 + $0x2a0] sm:$0xff] }
 0x500   : > { %6769 = vmatpush3.msra.mxu1 %v5818_v51 }
 0x501   : > { %v5772_v50 = vpop.permute.xlu1 %5771  ;;  %6770 = vmatprep.subr.mxu1 %v5833_v26 }
 0x502   : > { %5776 = vst.msk [vmem:[#allocation5 + $0x18] sm:$0x3] %vm5508_vm11, %v5772_v50  ;;  %6771 = vmatpush3.msra.mxu1 %v5817_v25 }
 0x503   : > { %6073 = vmatmul.mubr.f32.vlgmr.msra.gmra.mxu1 %v10437_v12  ;;  %6775 = vmatprep.subr.mxu1 %v5880_v11  ;;  %v5854_v12 = vld [vmem:[%s10706_s3 + $0x228] sm:$0xff] }
 0x504   : > { %6776 = vmatpush3.msra.mxu1 %v5864_v55 }
 0x505   : > { %6777 = vmatprep.subr.mxu1 %v5879_v33 }
 0x506   : > { %6778 = vmatpush3.msra.mxu1 %v5863_v15 }
 0x507   : > { %6779 = vmatprep.subr.mxu1 %v5878_v46 }
 0x508   : > { %6780 = vmatpush3.msra.mxu1 %v5862_v40 }
 0x509   : > { %v7133_v2 = vld [vmem:[#allocation5 + $0x8] ss:$14 sps:$4 sm:$0xff]   ;;  %6781 = vmatprep.subr.mxu1 %v5877_v20 }
 0x50a   : > { %v10536_v9 = vrot.slane %v7133_v2, %v10127_v27  ;;  %6782 = vmatpush3.msra.mxu1 %v5861_v59 }
 0x50b   : > { %6783 = vmatprep.subr.mxu1 %v5876_v31 }
 0x50c   : > { %v5928_v44 = vcombine.high %v10536_v9, %v10536_v9  ;;  %6784 = vmatpush3.msra.mxu1 %v5860_v42 }
 0x50d   : > { %6785 = vmatprep.subr.mxu1 %v5875_v41 }
 0x50e   : > { %6142 = vmatprep.mubr.f32.mxu1 %v5928_v44  ;;  %6786 = vmatpush3.msra.mxu1 %v5859_v6 }
 0x50f   : > { %6787 = vmatprep.subr.mxu1 %v5874_v61 }
 0x510   : > { %6788 = vmatpush3.msra.mxu1 %v5858_v56 }
 0x511   : > { %6789 = vmatprep.subr.mxu1 %v5873_v54 }
 0x512   : > { %6790 = vmatpush3.msra.mxu1 %v5857_v23 }
 0x513   : > { %6791 = vmatprep.subr.mxu1 %v5872_v47 }
 0x514   : > { %6792 = vmatpush3.msra.mxu1 %v5856_v34 }
 0x515   : > { %6793 = vmatprep.subr.mxu1 %v5871_v37 }
 0x516   : > { %6794 = vmatpush3.msra.mxu1 %v5855_v62 }
 0x517   : > { %6795 = vmatprep.subr.mxu1 %v5870_v29 }
 0x518   : > { %6796 = vmatpush3.msra.mxu1 %v5854_v12 }
 0x519   : > { %6797 = vmatprep.subr.mxu1 %v5869_v16 }
 0x51a   : > { %6798 = vmatpush3.msra.mxu1 %v5853_v52 }
 0x51b   : > { %6799 = vmatprep.subr.mxu1 %v5868_v38 }
 0x51c   : > { %6800 = vmatpush3.msra.mxu1 %v5852_v30 }
 0x51d   : > { %6801 = vmatprep.subr.mxu1 %v5867_v7 }
 0x51e   : > { %6802 = vmatpush3.msra.mxu1 %v5851_v5 }
 0x51f   : > { %6803 = vmatprep.subr.mxu1 %v5866_v28 }
 0x520   : > { %6804 = vmatpush3.msra.mxu1 %v5850_v8 }
 0x521   : > { %6805 = vmatprep.subr.mxu1 %v5865_v3 }
 0x522   : > { %6806 = vmatpush3.msra.mxu1 %v5849_v21 }
 0x523   : > { %6143 = vmatmul.mubr.f32.vlgmr.msra.gmra.mxu1 %v10536_v9  ;;  %7039 = vmatprep.subr.mxu1 %v10808_v19 }
 0x524   : > { %7040 = vmatpush3.msra.mxu1 %v5884_v63  ;;  %7047 = vmatprep.mubr.msk.f32.mxu1 %vm7219_vm4, %v10808_v19 }
 0x525   : > { %7041 = vmatprep.subr.mxu1 %v10808_v19 }
 0x526   : > { %7042 = vmatpush3.msra.mxu1 %v5883_v32 }
 0x527   : > { %7043 = vmatprep.subr.mxu1 %v10808_v19 }
 0x528   : > { %7044 = vmatpush3.msra.mxu1 %v5882_v35 }
 0x529   : > { %7045 = vmatprep.subr.mxu1 %v10808_v19 }
 0x52a   : > { %7046 = vmatpush3.msra.mxu1 %v5881_v43 }
 0x52b   : > { %7048 = vmatmul.mubr.msk.f32.vlgmr.msra.gmra.mxu1 %vm5935_vm13, %v5927_v4 }
 0x5a3   : > { %v6737_v50 = vpop.f32.mrf.mxu1 }
 0x5a5   : > { %v6738_v58 = vpop.f32.mrf.mxu1 }
 0x5a6   : > { %v6739_v57 = vadd.f32 %v6738_v58, %v6737_v50 }
 0x5a8   : > { %v6005_v18 = vadd.f32 %v6739_v57, %v6496_v48 }
 0x5c3   : > { %v6772_v13 = vpop.f32.mrf.mxu1 }
 0x5c5   : > { %v6773_v39 = vpop.f32.mrf.mxu1 }
 0x5c6   : > { %v6774_v22 = vadd.f32 %v6773_v39, %v6772_v13 }
 0x5c8   : > { %v6075_v53 = vadd.f32 %v6774_v22, %v6005_v18 }
 0x5e3   : > { %v6807_v60 = vpop.f32.mrf.mxu1 }
 0x5e5   : > { %v6808_v24 = vpop.f32.mrf.mxu1 }
 0x5e6   : > { %v6809_v19 = vadd.f32 %v6808_v24, %v6807_v60 }
 0x5e8   : > { %v6145_v45 = vadd.f32 %v6809_v19, %v6075_v53 }
 0x5eb   : > { %v6214_v0 = vpop.f32.mrf.mxu1 }
 0x5ec   : > { %v6215_v14 = vadd.f32 %v6214_v0, %v6145_v45 }
 0x5ed   : > { %v7049_v1 = vpop.f32.mrf.mxu1 }
 0x5ee   : > { %v6218_v2 = vmax.f32 %v6215_v14, 0.0 }
 0x5f0   : > { %v6224_v10 = vmul.f32 %v6498_v17, %v6218_v2 }
 0x5f2   : > { %v6230_v51 = vadd.f32 %v6499_v36, %v6224_v10 }
 0x5f4   : > { %v6238_v26 = vrot.slane %v6230_v51, %v10127_v27 }
 0x5f6   : > { %v6239_v9 = vcombine.high %v6238_v26, %v6238_v26 }
 0x5f8   : > { %v6242_v25 = vmax.f32 %v6238_v26, %v6239_v9 }
 0x5fa   : > { %v6500_v11 = vrot.slane %v6242_v25, 9 }
 0x5fc   : > { %v6247_v55 = vmax.f32 %v6242_v25, %v6500_v11 }
 0x5fe   : > { %6249 = vst.msk [vmem:[%s270_s16] sm:$0x1] %vm6248_vm14, %v6247_v55 }
 0x5ff   : > { %7161 = shalt.err (!%p7158_p3)
}
 0x600   : > { %s7162_s14 = scalar_lea.hbm %s6261_s18, 16  ;;  %s7166_s29 = scalar_lea.hbm %s10710_s7, 32 }
 0x601   : > { %p7163_p4 = scmp.ne.s32.totalorder %s6261_s18, %s7162_s14  ;;  %p7167_p9 = scmp.lt.s32.totalorder %s6261_s18, %s10710_s7 }
 0x602   : > { %p7168_p10 = scmp.lt.s32.totalorder %s7166_s29, %s7162_s14 }
 0x603   : > { %p7164_p7 = pnand %p7163_p4, %p7299_p5 }
 0x604   : > { %p7169_p11 = por %p7168_p10, %p7167_p9 }
 0x605   : > { %p7165_p8 = pneg %p7164_p7 }
 0x607   : > { %p7170_p12 = pnand %p7169_p11, %p7165_p8 }
 0x609   : > { %7173 = shalt.err (!%p7170_p12)
}
 0x60a   : > { %7082 = dma.vmem_to_hbm [thread:$0]  (%p7299_p5), %s6264_s15, 16, %s6261_s18, %s6251_s19  }
 0x60b PF: > { %p7088_p13 = scmp.ge.s32.totalorder %s7208_s27, 2  ;;  %s6275_s17 = sand.u32 1, %s7196_s24  }
 0x60c   : > { %s6276_s22 = scalar_lea.sflag [#allocation7], %s6275_s17 }
 0x60d   : > { %p7085_p0 = pnand %p7088_p13, %p7303_p6 }
 0x60f   : > { %p7086_p1 = pneg %p7085_p0 }
 0x611   : > { %7191 = dma.done.wait (%p7086_p1), %s6276_s22, 16  }
 0x612   : > { %7193 = vsyncadd (%p7086_p1), %s6276_s22, 4294967280  ;;  %p17_p2 = scmp.ge.s32.totalorder %s7286_s30, 4   ;;  %s10843_s24 = smov %s7200_s25 }
 0x613   : > { %s10844_s25 = smov %s7204_s26  ;;  %s10845_s26 = smov %s7297_s10 }
 0x614   : > { %s10846_s27 = smov %s7286_s30  ;;  %19 = sbr.rel (!%p17_p2) target bundleno = 3 (0x3), region = 87 }
 0x619   :  { %6280 = vsyncpa [#allocation7], 1 }
 0x61a   :  { %6282 = vsyncpa [#allocation7 + $0x1], 1 }

</bundles_post_ra>
